<compile_context>
chip_gen: v5e
topology: v5e:2x2
jax: 0.10.0
libtpu: 0.0.40
codegen_flags: <defaults>
</compile_context>

<pallas_src>
import functools

import jax
import jax.numpy as jnp
from jax import lax
from jax.experimental import pallas as pl
from jax.experimental.pallas import tpu as pltpu

_FP8_MAX = {
    jnp.float8_e4m3fn: 448.0,
    jnp.float8_e5m2: 57344.0,
}


def _vmem_limit_bytes():
    """Generation-aware scoped-VMEM limit: leave compiler headroom below physical
    VMEM (64 MiB on v7x, 128 MiB on v5e/v6e) instead of requesting all of it."""
    phys = None
    try:
        phys = int(pltpu.get_tpu_info().vmem_capacity_bytes)
    except Exception:
        phys = None
    if not phys:
        try:
            kind = jax.devices()[0].device_kind.lower()
            phys = 64 * 1024 * 1024 if "v7" in kind else 128 * 1024 * 1024
        except Exception:
            phys = 64 * 1024 * 1024
    return (phys * 3) // 4  # 48 MiB on v7x, 96 MiB on v5e/v6e


def _mxu_native_fp8():
    """True only on generations whose MXU accepts fp8 operands directly (v7x)."""
    try:
        return "v7" in jax.devices()[0].device_kind.lower()
    except Exception:
        return False


def _pick_tile(dim, target, align):
    """Largest tile <= target that is a multiple of `align` and divides `dim`.
    Dims that fit entirely use a single full-extent block (always legal)."""
    if dim <= target:
        return dim
    t = (target // align) * align
    while t >= align:
        if dim % t == 0:
            return t
        t -= align
    # TODO(synk): support awkward dims via a pl.cdiv grid with a masked partial
    # last tile; silently falling back to a full-extent block can blow VMEM.
    raise ValueError(
        f"dim={dim} has no {align}-aligned divisor <= {target}; pad the input.")


# ----------------------------- cast kernel ---------------------------------
def _cast_to_fp8_kernel(x_ref, scale_ref, seed_ref, out_ref, *,
                        fp8_dtype, use_sr, rowwise):
    x = x_ref[...].astype(jnp.float32)
    if rowwise:
        y = x * scale_ref[...]          # (tm, tk) * (tm, 1) broadcast
    else:
        y = x * scale_ref[0]            # per-tensor scalar from SMEM
    fmax = _FP8_MAX[fp8_dtype]
    y = jnp.clip(y, -fmax, fmax)        # HPU-style saturation
    if use_sr:
        # Decorrelate tiles: hash the tile id into the seed (adjacent integer
        # seeds can give weakly correlated HW PRNG streams).
        tile_id = pl.program_id(0) * pl.num_programs(1) + pl.program_id(1)
        mixed = seed_ref[0] ^ (tile_id * jnp.int32(0x27D4EB2D))
        pltpu.prng_seed(mixed)
        bits = pltpu.prng_random_bits(y.shape)
        # TODO(synk): verify pltpu.stochastic_round supports fp8 targets on all
        # generations; fall back to a manual mantissa-SR path if it does not.
        out_ref[...] = pltpu.stochastic_round(y, bits, target_dtype=fp8_dtype)
    else:
        out_ref[...] = y.astype(fp8_dtype)


def cast_to_fp8(x, scale, *, rowwise, use_sr, fp8_dtype, seed=0, tm=512, tk=1024):
    """Pallas equivalent of torch.ops.hpu.cast_to_fp8_v2 (no amax output)."""
    m, k = x.shape
    scale_f = scale.astype(jnp.float32)
    seed_arr = jnp.asarray([seed], dtype=jnp.int32)

    tm = _pick_tile(m, tm, 32)     # fp8 output packs 32 rows per sublane group
    tk = _pick_tile(k, tk, 128)    # lane dim multiple of 128
    grid = (m // tm, k // tk)

    if rowwise:
        scale_arg = jnp.reshape(scale_f, (m, 1))
        scale_spec = pl.BlockSpec((tm, 1), lambda i, j: (i, 0))
    else:
        # Per-tensor scale: a single SMEM scalar instead of a broadcast (m,1)
        # HBM operand (saves a DMA per grid step on a purely mem-bound kernel).
        scale_arg = jnp.reshape(scale_f, (1,))
        scale_spec = pl.BlockSpec(memory_space=pltpu.MemorySpace.SMEM)

    kernel = functools.partial(_cast_to_fp8_kernel, fp8_dtype=fp8_dtype,
                               use_sr=use_sr, rowwise=rowwise)
    return pl.pallas_call(
        kernel,
        out_shape=jax.ShapeDtypeStruct((m, k), fp8_dtype),
        grid_spec=pltpu.PrefetchScalarGridSpec(
            num_scalar_prefetch=0,
            grid=grid,
            in_specs=[
                pl.BlockSpec((tm, tk), lambda i, j: (i, j)),
                scale_spec,
                pl.BlockSpec(memory_space=pltpu.MemorySpace.SMEM),
            ],
            out_specs=pl.BlockSpec((tm, tk), lambda i, j: (i, j)),
        ),
        compiler_params=pltpu.CompilerParams(
            dimension_semantics=("parallel", "parallel"),
            vmem_limit_bytes=_vmem_limit_bytes(),
        ),
    )(x, scale_arg, seed_arr)


# ----------------------------- gemm kernel ----------------------------------
def _fp8_gemm_kernel(a_ref, b_ref, scale_ref, out_ref, acc_ref, *, native_fp8):
    kk = pl.program_id(2)

    @pl.when(kk == 0)
    def _():
        acc_ref[...] = jnp.zeros_like(acc_ref)

    if native_fp8:
        # v7x MXU takes fp8 operands directly: skip the fp8->bf16 unpack.
        a = a_ref[...]
        b = b_ref[...]
    else:
        # Feed the MXU bf16 on v5e/v6e (exact for fp8 inputs; MXU-native there).
        a = a_ref[...].astype(jnp.bfloat16)
        b = b_ref[...].astype(jnp.bfloat16)
    # A [tm, tk] contracted against B [tn, tk] on K (trans_B=True). B keeps its
    # HBM [N, K] layout; the transpose happens on-chip under the matmul, so
    # there is no standalone HBM transpose pass.
    acc_ref[...] += lax.dot_general(
        a, b, dimension_numbers=(((1,), (1,)), ((), ())),
        preferred_element_type=jnp.float32)

    @pl.when(kk == pl.num_programs(2) - 1)
    def _():
        out_ref[...] = (acc_ref[...] * scale_ref[0]).astype(jnp.bfloat16)


def fp8_gemm(a_fp8, b_fp8, scale_inv_a, scale_inv_b, *, tm=512, tn=512, tk=1024):
    """Pallas equivalent of torch.ops.hpu.fp8_gemm_v2 (trans_A=False, trans_B=True,
    out_dtype=bf16, no bias, accumulate=False, per-tensor scale_inv)."""
    m, k = a_fp8.shape
    n, k2 = b_fp8.shape
    assert k == k2
    assert jnp.size(scale_inv_a) == 1 and jnp.size(scale_inv_b) == 1, (
        "fp8_gemm: only per-tensor scale_inv is implemented")

    # Fold the two scale_inv factors into one scalar, applied only at finalize.
    combined_scale = (scale_inv_a.astype(jnp.float32).reshape(()) *
                      scale_inv_b.astype(jnp.float32).reshape(())).reshape((1,))

    tm = _pick_tile(m, tm, 128)
    tn = _pick_tile(n, tn, 128)
    tk = _pick_tile(k, tk, 128)
    grid = (m // tm, n // tn, k // tk)

    kernel = functools.partial(_fp8_gemm_kernel, native_fp8=_mxu_native_fp8())
    return pl.pallas_call(
        kernel,
        out_shape=jax.ShapeDtypeStruct((m, n), jnp.bfloat16),
        grid_spec=pltpu.PrefetchScalarGridSpec(
            num_scalar_prefetch=0,
            grid=grid,
            in_specs=[
                pl.BlockSpec((tm, tk), lambda i, j, kk: (i, kk)),
                pl.BlockSpec((tn, tk), lambda i, j, kk: (j, kk)),  # B stays [N, K]
                pl.BlockSpec(memory_space=pltpu.MemorySpace.SMEM),
            ],
            out_specs=pl.BlockSpec((tm, tn), lambda i, j, kk: (i, j)),
            scratch_shapes=[pltpu.VMEM((tm, tn), jnp.float32)],
        ),
        compiler_params=pltpu.CompilerParams(
            dimension_semantics=("parallel", "parallel", "arbitrary"),
            vmem_limit_bytes=_vmem_limit_bytes(),
        ),
        cost_estimate=pl.CostEstimate(
            flops=2 * m * n * k,
            bytes_accessed=m * k + n * k + 2 * m * n,
            transcendentals=0),
    )(a_fp8, b_fp8, combined_scale)


# ----------------------------- module wrapper --------------------------------
class FP8GEMM:
    """JAX/Pallas port of the PyTorch FP8GEMM module."""

    def __init__(self, s1, s2, si1, si2):
        self.scale1 = s1
        self.scale2 = s2
        self.scale_inv1 = si1
        self.scale_inv2 = si2

    def __call__(self, x1, x1_fp8, rowwise1, do_cast1, use_sr1,
                 x2, x2_fp8, rowwise2, do_cast2, use_sr2, fp8_dtype):
        # TODO(synk): when do_cast=True and operand reuse is low, fuse the fp8 cast
        # into the GEMM prologue to skip the fp8 HBM round-trip entirely.
        if do_cast1:
            x1_fp8 = cast_to_fp8(x1, self.scale1, rowwise=rowwise1,
                                 use_sr=use_sr1, fp8_dtype=fp8_dtype, seed=0)
        if do_cast2:
            x2_fp8 = cast_to_fp8(x2, self.scale2, rowwise=rowwise2,
                                 use_sr=use_sr2, fp8_dtype=fp8_dtype, seed=1)
        return fp8_gemm(x1_fp8, x2_fp8, self.scale_inv1, self.scale_inv2)


# ----------------------------- reference (pure JAX) ---------------------------
def _reference(x1, x2, s1, s2, si1, si2, fp8_dtype):
    fmax = _FP8_MAX[fp8_dtype]
    a = jnp.clip(x1.astype(jnp.float32) * s1, -fmax, fmax).astype(fp8_dtype)
    b = jnp.clip(x2.astype(jnp.float32) * s2, -fmax, fmax).astype(fp8_dtype)
    out = jnp.dot(a.astype(jnp.float32), b.astype(jnp.float32).T,
                  preferred_element_type=jnp.float32)
    return (out * si1 * si2).astype(jnp.bfloat16)


if __name__ == "__main__":
    key = jax.random.PRNGKey(0)
    k1, k2 = jax.random.split(key)

    # Shapes chosen to exercise the tiled grid: 2 M-tiles, 1 N-tile, 2 K steps.
    M, K, N = 1024, 2048, 512          # A: [M, K], B: [N, K]
    fp8_dtype = jnp.float8_e4m3fn
    fmax = _FP8_MAX[fp8_dtype]

    x1 = jax.random.normal(k1, (M, K), dtype=jnp.float32)
    x2 = jax.random.normal(k2, (N, K), dtype=jnp.float32)

    # Deterministic per-tensor scales: scale = fp8_max / amax, scale_inv = 1/scale.
    s1 = jnp.asarray(fmax / jnp.max(jnp.abs(x1)), dtype=jnp.float32)
    s2 = jnp.asarray(fmax / jnp.max(jnp.abs(x2)), dtype=jnp.float32)
    si1 = 1.0 / s1
    si2 = 1.0 / s2

    # --- per-tensor scales, deterministic rounding ---
    mod = FP8GEMM(s1, s2, si1, si2)
    out = mod(x1, None, False, True, False,    # x1, x1_fp8, rowwise1, do_cast1, use_sr1
              x2, None, False, True, False,    # x2, x2_fp8, rowwise2, do_cast2, use_sr2
              fp8_dtype)
    out = jax.block_until_ready(out)
    assert out.shape == (M, N) and out.dtype == jnp.bfloat16
    ref = _reference(x1, x2, s1, s2, si1, si2, fp8_dtype)
    assert jnp.allclose(out.astype(jnp.float32), ref.astype(jnp.float32),
                        rtol=0.1, atol=0.5)

    # --- row-wise scale for A (exercises the rowwise cast path) ---
    s1_row = (fmax / jnp.max(jnp.abs(x1), axis=1)).astype(jnp.float32)
    mod_row = FP8GEMM(s1_row, s2, si1, si2)
    out_row = mod_row(x1, None, True, True, False,
                      x2, None, False, True, False, fp8_dtype)
    out_row = jax.block_until_ready(out_row)
    ref_row = _reference(x1, x2, s1_row[:, None], s2, si1, si2, fp8_dtype)
    assert jnp.allclose(out_row.astype(jnp.float32), ref_row.astype(jnp.float32),
                        rtol=0.1, atol=0.5)

    print("KERNEL_OK")
</pallas_src>

<mosaic_0001>
module attributes {stable_mosaic.version = 11 : i64} {
  func.func @_cast_to_fp8_kernel(%arg0: i32, %arg1: i32, %arg2: memref<512x1024xf32, #tpu.memory_space<vmem>>, %arg3: memref<1xf32, #tpu.memory_space<smem>>, %arg4: memref<1xi32, #tpu.memory_space<smem>>, %arg5: memref<512x1024xf8E4M3FN, #tpu.memory_space<vmem>>) attributes {dimension_semantics = [#tpu.dimension_semantics<parallel>, #tpu.dimension_semantics<parallel>], iteration_bounds = array<i64: 2, 2>, scalar_prefetch = 0 : i64, scratch_operands = 0 : i64, tpu.core_type = #tpu.core_type<tc>, window_params = [{transform_indices = @transform_0, window_bounds = array<i64: 512, 1024>}, {transform_indices = @transform_1, window_bounds = array<i64: 1>}, {transform_indices = @transform_2, window_bounds = array<i64: 1>}, {transform_indices = @transform_3, window_bounds = array<i64: 512, 1024>}]} {
    %c0 = arith.constant 0 : index
    %c0_0 = arith.constant 0 : index
    %0 = vector.load %arg2[%c0, %c0_0] : memref<512x1024xf32, #tpu.memory_space<vmem>>, vector<512x1024xf32>
    %c0_1 = arith.constant 0 : index
    %1 = memref.load %arg3[%c0_1] : memref<1xf32, #tpu.memory_space<smem>>
    %2 = vector.broadcast %1 : f32 to vector<512x1024xf32>
    %3 = arith.mulf %0, %2 : vector<512x1024xf32>
    %cst = arith.constant -4.480000e+02 : f32
    %cst_2 = arith.constant 4.480000e+02 : f32
    %4 = vector.broadcast %cst : f32 to vector<512x1024xf32>
    %5 = arith.maximumf %4, %3 : vector<512x1024xf32>
    %6 = vector.broadcast %cst_2 : f32 to vector<512x1024xf32>
    %7 = arith.minimumf %6, %5 : vector<512x1024xf32>
    %8 = arith.truncf %7 : vector<512x1024xf32> to vector<512x1024xf8E4M3FN>
    %c0_3 = arith.constant 0 : index
    %c0_4 = arith.constant 0 : index
    %9 = vector.load %arg5[%c0_3, %c0_4] : memref<512x1024xf8E4M3FN, #tpu.memory_space<vmem>>, vector<512x1024xf8E4M3FN>
    tpu.vector_store %arg5[%c0_3, %c0_4], %8 {strides = array<i32>} : memref<512x1024xf8E4M3FN, #tpu.memory_space<vmem>>, vector<512x1024xf8E4M3FN>,
    return
  }
  func.func @transform_0(%arg0: i32, %arg1: i32) -> (i32, i32) {
    %c0_i32 = arith.constant 0 : i32
    return %arg0, %arg1 : i32, i32
  }
  func.func @transform_1(%arg0: i32, %arg1: i32) -> i32 {
    %c0_i32 = arith.constant 0 : i32
    %c0_i32_0 = arith.constant 0 : i32
    return %c0_i32 : i32
  }
  func.func @transform_2(%arg0: i32, %arg1: i32) -> i32 {
    %c0_i32 = arith.constant 0 : i32
    %c0_i32_0 = arith.constant 0 : i32
    return %c0_i32 : i32
  }
  func.func @transform_3(%arg0: i32, %arg1: i32) -> (i32, i32) {
    %c0_i32 = arith.constant 0 : i32
    return %arg0, %arg1 : i32, i32
  }
}

</mosaic_0001>

<bundles_post_ra>
// kernel: tpu_custom_call.1
= control target key start
LH: loop header
LB: loop body
LE: loop exit
PB: predicated region body
PF: predicated region fallthrough
CT: control target
= control target key end

     0   :  { %s12793_s0 = inlined_call_operand.hbm [shape: f32[1024,2048], index: 0, kind: input, shape index: {}]   ;;  %s12794_s1 = inlined_call_operand.<no memory space> [shape: f32[1], index: 1, kind: input, shape index: {}]   ;;  %s12795_s2 = inlined_call_operand.<no memory space> [shape: s32[1], index: 2, kind: input, shape index: {}]   ;;  %s12796_s3 = inlined_call_operand.hbm [shape: f8e4m3fn[1024,2048], index: 3, kind: output, shape index: {}]  }
   0x1   :  { %8 = sst [smem:[#allocation2]] %s12794_s1 }
   0x2   :  { %10 = vsyncpa [#allocation5], 0 }
   0x3   :  { %12 = vsyncpa [#allocation5 + $0x1], 0 }
   0x4   :  { %13 = vsyncpa [#allocation6], 0 }
   0x5   :  { %15 = vsyncpa [#allocation6 + $0x1], 0  ;;  %s8399_s14 = smov 0   ;;  %s8401_s15 = smov 0  }
   0x6   :  { %s8403_s16 = smov 0   ;;  %s8405_s17 = smov 0  }
   0x7   :  { %s8407_s2 = smov 0   ;;  %s8409_s18 = smov 0  }
   0x8   :  { %s8411_s19 = smov 0   ;;  %s8413_s20 = smov 0  }
   0x9 LB: > { %s7623_s1 = sadd.s32 4294967295, %s8368_s20   ;;  %s7624_s21 = sadd.s32 4294967294, %s8368_s20   ;;  %s8368_s20 = sphi %s8413_s20, %s21_s20   ;;  %s8364_s19 = sphi %s8411_s19, %s13833_s19   ;;  %s8360_s18 = sphi %s8409_s18, %s13832_s18   ;;  %s8356_s2 = sphi %s8407_s2, %s13831_s2   ;;  %s8352_s17 = sphi %s8405_s17, %s13830_s17   ;;  %s8348_s16 = sphi %s8403_s16, %s13829_s16   ;;  %s8344_s15 = sphi %s8401_s15, %s13828_s15   ;;  %s8340_s14 = sphi %s8399_s14, %s13827_s14  }
   0xa   : > { %s30_s22 = sadd.s32 1, %s8360_s18  ;;  %s33_s23 = sadd.s32 1, %s8364_s19 }
   0xb   : > { %p31_p0 = scmp.ge.s32.totalorder %s30_s22, 2  ;;  %s42_s24 = sadd.s32 1, %s8348_s16 }
   0xc   : > { %p49_p1 = scmp.ne.s32.totalorder %s8348_s16, %s8344_s15  ;;  %p50_p2 = scmp.eq.s32.totalorder %s8368_s20, 0 }
   0xd   : > { %s13835_s22 = smov (%p31_p0, %s30_s22), 0  ;;  %s13837_s23 = smov (!%p31_p0, %s33_s23), %s8364_s19 }
   0xe   : > { %12799 = sst [smem:[#allocation10_spill]] %s13835_s22  ;;  %s38_s25 = ssub.s32 %s8360_s18, %s13835_s22 }
   0xf   : > { %p8452_p3 = por %p50_p2, %p49_p1  ;;  %p35_p4 = scmp.ge.s32.totalorder %s13837_s23, 2 }
  0x10   : > { %p55_p5 = scmp.ne.s32.totalorder %s8344_s15, %s8340_s14  ;;  %p56_p6 = scmp.eq.s32.totalorder %s7623_s1, 0 }
  0x11   : > { %p123_p7 = scmp.eq.s32.totalorder %s7623_s1, 3  ;;  %s13839_s23 = smov (%p35_p4, %s13837_s23), 0 }
  0x12   : > { %12801 = sst [smem:[#allocation11_spill]] %s13839_s23  ;;  %p8460_p8 = por %p56_p6, %p55_p5 }
  0x13   : > { %p8464_p9 = por %p123_p7, %p49_p1  ;;  %s37_s29 = ssub.s32 %s8364_s19, %s13839_s23 }
  0x14   : > { %p129_p10 = scmp.eq.s32.totalorder %s7624_s21, 3  ;;  %s39_s30 = sor.u32 %s38_s25, %s37_s29 }
  0x15   : > { %p40_p11 = scmp.eq.s32.totalorder %s39_s30, 0  ;;  %p8168_p13 = scmp.lt.s32.totalorder %s8368_s20, 4 }
  0x16   : > { %p8470_p12 = por %p129_p10, %p55_p5  ;;  %s155_s5 = sand.u32 1, %s8348_s16  }
  0x17   : > { %s8477_s6 = scalar_select %p40_p11, %s8348_s16, %s42_s24  }
  0x18   : > { %s7627_s7 = sshll.u32 %s155_s5, 12  ;;  %s7629_s8 = sshll.u32 %s8360_s18, 3 }
  0x19   : > { %s8154_s9 = sshll.u32 %s8364_s19, 10  ;;  %s159_s10 = scalar_lea.vmem [#allocation4], %s7627_s7 }
  0x1a   : > { %s170_s11 = sshll.u32 %s159_s10, 4  ;;  %s165_s12 = sadd.s32 %s8154_s9, %s7629_s8  ;;  %s171_s11 = int_to_ptr.vmem [resolvable:$true] %s170_s11 }
  0x1b   : > { %s7631_s13 = sshll.u32 %s165_s12, 3  ;;  %p8161_p0 = pnand %p8168_p13, %p8452_p3 }
  0x1c   : > { %s167_s25 = scalar_lea.hbm %s12793_s0, %s7631_s13  ;;  %p7632_p1 = scmp.ge.s32.totalorder %s8368_s20, 1 }
  0x1d   : > { %s168_s29 = sshll.u32 %s167_s25, 4  ;;  %s156_s24 = scalar_lea.sflag [#allocation5], %s155_s5  ;;  %s169_s29 = int_to_ptr.hbm [resolvable:$true] %s168_s29 }
  0x1e   : > { %s8370_s30 = smov 2048   ;;  %s8371_s23 = smov 1024  }
  0x1f   : > { %s8372_s22 = smov 64   ;;  %p178_p2 = scmp.lt.s32.totalorder %s8368_s20, 5 }
  0x20   : > { %8163 = dma.hbm_to_vmem [thread:$0]  (!%p8161_p0), %s169_s29, 65536, %s171_s11, %s156_s24, %s8370_s30, %s8371_s23, %s8372_s22  }
  0x21   : > { %p179_p4 = pnand %p7632_p1, %p178_p2 }
  0x22   : > { %s8489_s7 = sand.u32 (!%p179_p4), 1, %s8344_s15  }
  0x23   : > { %182 = sbr.rel (%p179_p4) target bundleno = 1563 (0x61b), region = 32  ;;  %s7633_s26 = sshll.u32 (!%p179_p4), %s8489_s7, 12 }
  0x24   : > { %s185_s8 = scalar_lea.sflag (!%p179_p4), [#allocation5], %s8489_s7  ;;  %s8493_s9 = scalar_lea.vmem (!%p179_p4), [#allocation4], %s7633_s26 }
  0x28   : > { %8331 = dma.done.wait (%p8460_p8), %s185_s8, 65536  }
  0x29   : > { %8333 = vsyncadd (%p8460_p8), %s185_s8, 4294901760  ;;  %s728_s22 = sld [smem:[#allocation2]]  ;;  %v216_v0 = vld [vmem:[%s8493_s9] sm:$0xff]  ;;  %v217_v8 = vld [vmem:[%s8493_s9 + $0x8] sm:$0xff]  ;;  %s7634_s23 = sshll.u32 %s8489_s7, 10 }
  0x2a   : > { %v224_v1 = vld [vmem:[%s8493_s9 + $0x40] sm:$0xff]  ;;  %v225_v9 = vld [vmem:[%s8493_s9 + $0x48] sm:$0xff]  ;;  %s8554_s27 = scalar_lea.vmem [#allocation7], %s7634_s23  ;;  %v219_v31 = vld [vmem:[%s8493_s9 + $0x18] sm:$0xff]  ;;  %s8149_s5 = sshll.u32 %s8352_s17, 3 }
  0x2b   : > { %v232_v2 = vld [vmem:[%s8493_s9 + $0x80] sm:$0xff]  ;;  %v233_v11 = vld [vmem:[%s8493_s9 + $0x88] sm:$0xff]  ;;  %s8155_s10 = sshll.u32 %s8356_s2, 8  ;;  %s7530_s1 = sshll.u32 %s8554_s27, 4  ;;  %s7531_s1 = int_to_ptr.vmem [resolvable:$true] %s7530_s1 }
  0x2c   : > { %v240_v4 = vld [vmem:[%s8493_s9 + $0xc0] sm:$0xff]  ;;  %v241_v12 = vld [vmem:[%s8493_s9 + $0xc8] sm:$0xff]  ;;  %s7527_s11 = sadd.s32 %s8155_s10, %s8149_s5  ;;  %s7515_s25 = scalar_lea.sflag [#allocation6], %s8489_s7 }
  0x2d   : > { %s8151_s17 = sshll.u32 %s7527_s11, 3  ;;  %s8290_s8 = scalar_lea.hbm %s12796_s3, 4096 }
  0x2e   : > { %s7529_s13 = scalar_lea.hbm %s12796_s3, %s8151_s17 }
  0x2f   : > { %v8502_v3 = vstv %s728_s22  ;;  %s7532_s21 = sshll.u32 %s7529_s13, 4  ;;  %s7533_s21 = int_to_ptr.hbm [resolvable:$true] %s7532_s21 }
  0x30   : > { %v730_v5 = vmul.f32 %v8502_v3, %v216_v0  ;;  %v738_v6 = vmul.f32 %v8502_v3, %v224_v1  ;;  %v746_v7 = vmul.f32 %v8502_v3, %v232_v2  ;;  %v754_v10 = vmul.f32 %v8502_v3, %v240_v4  ;;  %s8284_s29 = sshra.s32 %s7533_s21, 4  ;;  %s8285_s29 = int_to_ptr.hbm [resolvable:$true] %s8284_s29 }
  0x31   : > { %v731_v13 = vmul.f32 %v8502_v3, %v217_v8  ;;  %v739_v14 = vmul.f32 %v8502_v3, %v225_v9  ;;  %v747_v18 = vmul.f32 %v8502_v3, %v233_v11  ;;  %v755_v20 = vmul.f32 %v8502_v3, %v241_v12  ;;  %s8286_s24 = scalar_lea.hbm %s8285_s29, 1024  ;;  %p8291_p7 = scmp.lt.s32.totalorder %s8285_s29, %s12796_s3 }
  0x32   : > { %v7635_v15 = vclamps-f32 %v730_v5, 448.0  ;;  %v7643_v16 = vclamps-f32 %v738_v6, 448.0  ;;  %v7651_v17 = vclamps-f32 %v746_v7, 448.0  ;;  %v7659_v19 = vclamps-f32 %v754_v10, 448.0  ;;  %p8287_p3 = scmp.ne.s32.totalorder %s8285_s29, %s8286_s24  ;;  %p8292_p8 = scmp.lt.s32.totalorder %s8290_s8, %s8286_s24 }
  0x33   : > { %v7636_v21 = vclamps-f32 %v731_v13, 448.0  ;;  %v7644_v22 = vclamps-f32 %v739_v14, 448.0  ;;  %v7652_v53 = vclamps-f32 %v747_v18, 448.0  ;;  %v7660_v54 = vclamps-f32 %v755_v20, 448.0 }
  0x34   : > { %v2266_v23 = vand.u32 2147483647, %v7635_v15  ;;  %v2267_v24 = vmul.f32 0.0625, %v7635_v15  ;;  %vm2269_vm0 = vweird.f32 %v7635_v15  ;;  %v2271_v25 = vshrl.u32 %v7635_v15, 24  ;;  %p8288_p5 = pnand %p8287_p3, %p8464_p9  ;;  %p8293_p10 = por %p8292_p8, %p8291_p7 }
  0x35   : > { %v2275_v26 = vand.u32 2147483647, %v7643_v16  ;;  %v2276_v27 = vmul.f32 0.0625, %v7643_v16  ;;  %vm2278_vm1 = vweird.f32 %v7643_v16  ;;  %v2280_v28 = vshrl.u32 %v7643_v16, 24  ;;  %v218_v16 = vld [vmem:[%s8493_s9 + $0x10] sm:$0xff] }
  0x36   : > { %v2268_v29 = vcvt.f32.f8e4m3b11 %v2267_v24  ;;  %v2272_v30 = vand.u32 128, %v2271_v25  ;;  %vm8517_vm2 = vcmp.le.f32.partialorder %v2266_v23, 0.0009765625  ;;  %v2284_v32 = vand.u32 2147483647, %v7651_v17  ;;  %v242_v23 = vld [vmem:[%s8493_s9 + $0xd0] sm:$0xff]  ;;  %p8289_p6 = pneg %p8288_p5 }
  0x37   : > { %v2277_v33 = vcvt.f32.f8e4m3b11 %v2276_v27  ;;  %v2281_v34 = vand.u32 128, %v2280_v28  ;;  %vm8521_vm3 = vcmp.le.f32.partialorder %v2275_v26, 0.0009765625  ;;  %v2285_v36 = vmul.f32 0.0625, %v7651_v17 }
  0x38   : > { %v2270_v37 = vsel %vm2269_vm0, 127, %v2268_v29  ;;  %vm2287_vm4 = vweird.f32 %v7651_v17  ;;  %v2289_v38 = vshrl.u32 %v7651_v17, 24  ;;  %vm8525_vm5 = vcmp.le.f32.partialorder %v2284_v32, 0.0009765625  ;;  %v226_v17 = vld [vmem:[%s8493_s9 + $0x50] sm:$0xff]  ;;  %p8294_p11 = pnand %p8293_p10, %p8289_p6 }
  0x39   : > { %v2274_v40 = vsel %vm8517_vm2, %v2272_v30, %v2270_v37  ;;  %v2279_v41 = vsel %vm2278_vm1, 127, %v2277_v33  ;;  %v2286_v42 = vcvt.f32.f8e4m3b11 %v2285_v36  ;;  %v2293_v43 = vand.u32 2147483647, %v7659_v19 }
  0x3a   : > { %v2283_v44 = vsel %vm8521_vm3, %v2281_v34, %v2279_v41  ;;  %v2290_v45 = vand.u32 128, %v2289_v38  ;;  %v2294_v46 = vmul.f32 0.0625, %v7659_v19  ;;  %vm2296_vm6 = vweird.f32 %v7659_v19 }
  0x3b   : > { %v2288_v47 = vsel %vm2287_vm4, 127, %v2286_v42  ;;  %v2298_v48 = vshrl.u32 %v7659_v19, 24  ;;  %vm8533_vm7 = vcmp.le.f32.partialorder %v2293_v43, 0.0009765625  ;;  %v2302_v50 = vpack.c.b16 %v2283_v44, %v2274_v40 }
  0x3c   : > { %v2292_v51 = vsel %vm8525_vm5, %v2290_v45, %v2288_v47  ;;  %v2295_v52 = vcvt.f32.f8e4m3b11 %v2294_v46  ;;  %v2306_v56 = vand.u32 2147483647, %v7636_v21  ;;  %v2307_v57 = vmul.f32 0.0625, %v7636_v21  ;;  %v227_v47 = vld [vmem:[%s8493_s9 + $0x58] sm:$0xff] }
  0x3d   : > { %v2299_v55 = vand.u32 128, %v2298_v48  ;;  %vm2309_vm8 = vweird.f32 %v7636_v21  ;;  %v2311_v59 = vshrl.u32 %v7636_v21, 24  ;;  %v2315_v60 = vand.u32 2147483647, %v7644_v22 }
  0x3e   : > { %v2297_v58 = vsel %vm2296_vm6, 127, %v2295_v52  ;;  %v2316_v61 = vmul.f32 0.0625, %v7644_v22  ;;  %v2308_v63 = vcvt.f32.f8e4m3b11 %v2307_v57  ;;  %vm8542_vm9 = vcmp.le.f32.partialorder %v2306_v56, 0.0009765625 }
  0x3f   : > { %v2301_v62 = vsel %vm8533_vm7, %v2299_v55, %v2297_v58  ;;  %vm2318_vm10 = vweird.f32 %v7644_v22  ;;  %v2312_v2 = vand.u32 128, %v2311_v59  ;;  %v2320_v5 = vshrl.u32 %v7644_v22, 24  ;;  %v234_v22 = vld [vmem:[%s8493_s9 + $0x90] sm:$0xff] }
  0x40   : > { %v2303_v1 = vpack.c.b16 %v2301_v62, %v2292_v51  ;;  %v2317_v4 = vcvt.f32.f8e4m3b11 %v2316_v61  ;;  %v2310_v6 = vsel %vm2309_vm8, 127, %v2308_v63  ;;  %vm8546_vm11 = vcmp.le.f32.partialorder %v2315_v60, 0.0009765625 }
  0x41   : > { %v2324_v8 = vand.u32 2147483647, %v7652_v53  ;;  %v2325_v9 = vmul.f32 0.0625, %v7652_v53  ;;  %v2321_v12 = vand.u32 128, %v2320_v5  ;;  %v2314_v13 = vsel %vm8542_vm9, %v2312_v2, %v2310_v6  ;;  %v235_v2 = vld [vmem:[%s8493_s9 + $0x98] sm:$0xff] }
  0x42   : > { %v2304_v10 = vpack.c.b8 %v2303_v1, %v2302_v50  ;;  %v2319_v11 = vsel %vm2318_vm10, 127, %v2317_v4  ;;  %vm2327_vm12 = vweird.f32 %v7652_v53  ;;  %v2329_v15 = vshrl.u32 %v7652_v53, 24 }
  0x43   : > { %v2326_v14 = vcvt.f32.f8e4m3b11 %v2325_v9  ;;  %v2323_v18 = vsel %vm8546_vm11, %v2321_v12, %v2319_v11  ;;  %vm8559_vm13 = vcmp.le.f32.partialorder %v2324_v8, 0.0009765625  ;;  %v2333_v20 = vand.u32 2147483647, %v7660_v54  ;;  %v243_v8 = vld [vmem:[%s8493_s9 + $0xd8] sm:$0xff] }
  0x44   : > { %7386 = vst [vmem:[%s8554_s27] sm:$0xff] %v2304_v10  ;;  %v2334_v21 = vmul.f32 0.0625, %v7660_v54  ;;  %v2330_v25 = vand.u32 128, %v2329_v15  ;;  %vm2336_vm14 = vweird.f32 %v7660_v54  ;;  %v2338_v26 = vshrl.u32 %v7660_v54, 24 }
  0x45   : > { %v2328_v24 = vsel %vm2327_vm12, 127, %v2326_v14  ;;  %vm8565_vm15 = vcmp.le.f32.partialorder %v2333_v20, 0.0009765625  ;;  %v732_v29 = vmul.f32 %v8502_v3, %v218_v16  ;;  %v740_v30 = vmul.f32 %v8502_v3, %v226_v17 }
  0x46   : > { %v2335_v27 = vcvt.f32.f8e4m3b11 %v2334_v21  ;;  %v2332_v32 = vsel %vm8559_vm13, %v2330_v25, %v2328_v24  ;;  %v2339_v33 = vand.u32 128, %v2338_v26  ;;  %v748_v34 = vmul.f32 %v8502_v3, %v234_v22 }
  0x47   : > { %v756_v35 = vmul.f32 %v8502_v3, %v242_v23  ;;  %v2342_v37 = vpack.c.b16 %v2323_v18, %v2314_v13  ;;  %v7637_v38 = vclamps-f32 %v732_v29, 448.0  ;;  %v7645_v39 = vclamps-f32 %v740_v30, 448.0 }
  0x48   : > { %v2337_v36 = vsel %vm2336_vm14, 127, %v2335_v27  ;;  %v7653_v41 = vclamps-f32 %v748_v34, 448.0  ;;  %v733_v43 = vmul.f32 %v8502_v3, %v219_v31  ;;  %v741_v58 = vmul.f32 %v8502_v3, %v227_v47 }
  0x49   : > { %v2341_v40 = vsel %vm8565_vm15, %v2339_v33, %v2337_v36  ;;  %v7661_v42 = vclamps-f32 %v756_v35, 448.0  ;;  %v2346_v45 = vand.u32 2147483647, %v7637_v38  ;;  %v2347_v46 = vmul.f32 0.0625, %v7637_v38  ;;  %v220_v33 = vld [vmem:[%s8493_s9 + $0x20] sm:$0xff] }
  0x4a   : > { %v2343_v44 = vpack.c.b16 %v2341_v40, %v2332_v32  ;;  %vm2349_vm0 = vweird.f32 %v7637_v38  ;;  %v2351_v48 = vshrl.u32 %v7637_v38, 24  ;;  %v2355_v49 = vand.u32 2147483647, %v7645_v39 }
  0x4b   : > { %v2356_v50 = vmul.f32 0.0625, %v7645_v39  ;;  %vm2358_vm1 = vweird.f32 %v7645_v39  ;;  %v2348_v52 = vcvt.f32.f8e4m3b11 %v2347_v46  ;;  %vm8580_vm2 = vcmp.le.f32.partialorder %v2346_v45, 0.0009765625 }
  0x4c   : > { %v2344_v51 = vpack.c.b8 %v2343_v44, %v2342_v37  ;;  %v2360_v54 = vshrl.u32 %v7645_v39, 24  ;;  %v2352_v55 = vand.u32 128, %v2351_v48  ;;  %v2364_v57 = vand.u32 2147483647, %v7653_v41 }
  0x4d   : > { %v2357_v56 = vcvt.f32.f8e4m3b11 %v2356_v50  ;;  %v2350_v59 = vsel %vm2349_vm0, 127, %v2348_v52  ;;  %vm8586_vm3 = vcmp.le.f32.partialorder %v2355_v49, 0.0009765625  ;;  %v2365_v62 = vmul.f32 0.0625, %v7653_v41  ;;  %v228_v49 = vld [vmem:[%s8493_s9 + $0x60] sm:$0xff] }
  0x4e   : > { %7387 = vst [vmem:[%s8554_s27 + $0x8] sm:$0xff] %v2344_v51  ;;  %v2361_v60 = vand.u32 128, %v2360_v54  ;;  %v2354_v63 = vsel %vm8580_vm2, %v2352_v55, %v2350_v59  ;;  %vm2367_vm4 = vweird.f32 %v7653_v41  ;;  %v2369_v1 = vshrl.u32 %v7653_v41, 24  ;;  %v236_v50 = vld [vmem:[%s8493_s9 + $0xa0] sm:$0xff]  ;;  %v221_v59 = vld [vmem:[%s8493_s9 + $0x28] sm:$0xff] }
  0x4f   : > { %v2359_v0 = vsel %vm2358_vm1, 127, %v2357_v56  ;;  %v2366_v4 = vcvt.f32.f8e4m3b11 %v2365_v62  ;;  %vm8593_vm5 = vcmp.le.f32.partialorder %v2364_v57, 0.0009765625  ;;  %v2373_v6 = vand.u32 2147483647, %v7661_v42  ;;  %v244_v55 = vld [vmem:[%s8493_s9 + $0xe0] sm:$0xff] }
  0x50   : > { %v2374_v7 = vmul.f32 0.0625, %v7661_v42  ;;  %v2363_v9 = vsel %vm8586_vm3, %v2361_v60, %v2359_v0  ;;  %v2370_v10 = vand.u32 128, %v2369_v1  ;;  %vm2376_vm6 = vweird.f32 %v7661_v42 }
  0x51   : > { %v2378_v11 = vshrl.u32 %v7661_v42, 24  ;;  %v2368_v12 = vsel %vm2367_vm4, 127, %v2366_v4  ;;  %vm2380_vm7 = vcmp.le.f32.partialorder %v2373_v6, 0.0009765625  ;;  %v749_v14 = vmul.f32 %v8502_v3, %v235_v2 }
  0x52   : > { %v2375_v13 = vcvt.f32.f8e4m3b11 %v2374_v7  ;;  %v2372_v15 = vsel %vm8593_vm5, %v2370_v10, %v2368_v12  ;;  %v757_v17 = vmul.f32 %v8502_v3, %v243_v8  ;;  %v7638_v18 = vclamps-f32 %v733_v43, 448.0 }
  0x53   : > { %v2379_v16 = vand.u32 128, %v2378_v11  ;;  %v2382_v20 = vpack.c.b16 %v2363_v9, %v2354_v63  ;;  %v7646_v21 = vclamps-f32 %v741_v58, 448.0  ;;  %v7654_v22 = vclamps-f32 %v749_v14, 448.0 }
  0x54   : > { %v2377_v19 = vsel %vm2376_vm6, 127, %v2375_v13  ;;  %v7662_v24 = vclamps-f32 %v757_v17, 448.0  ;;  %v2386_v25 = vand.u32 2147483647, %v7638_v18  ;;  %v2387_v26 = vmul.f32 0.0625, %v7638_v18 }
  0x55   : > { %v2381_v23 = vsel %vm2380_vm7, %v2379_v16, %v2377_v19  ;;  %vm2389_vm8 = vweird.f32 %v7638_v18  ;;  %v2391_v28 = vshrl.u32 %v7638_v18, 24  ;;  %v2395_v29 = vand.u32 2147483647, %v7646_v21  ;;  %v229_v19 = vld [vmem:[%s8493_s9 + $0x68] sm:$0xff] }
  0x56   : > { %v2383_v27 = vpack.c.b16 %v2381_v23, %v2372_v15  ;;  %v2388_v30 = vcvt.f32.f8e4m3b11 %v2387_v26  ;;  %vm8604_vm9 = vcmp.le.f32.partialorder %v2386_v25, 0.0009765625  ;;  %v2396_v32 = vmul.f32 0.0625, %v7646_v21 }
  0x57   : > { %vm2398_vm10 = vweird.f32 %v7646_v21  ;;  %v2392_v35 = vand.u32 128, %v2391_v28  ;;  %v2400_v36 = vshrl.u32 %v7646_v21, 24  ;;  %vm8609_vm11 = vcmp.le.f32.partialorder %v2395_v29, 0.0009765625 }
  0x58   : > { %v2384_v34 = vpack.c.b8 %v2383_v27, %v2382_v20  ;;  %v2390_v38 = vsel %vm2389_vm8, 127, %v2388_v30  ;;  %v2397_v39 = vcvt.f32.f8e4m3b11 %v2396_v32  ;;  %v2404_v40 = vand.u32 2147483647, %v7654_v22 }
  0x59   : > { %v2405_v41 = vmul.f32 0.0625, %v7654_v22  ;;  %v2401_v42 = vand.u32 128, %v2400_v36  ;;  %vm2407_vm12 = vweird.f32 %v7654_v22  ;;  %v2409_v43 = vshrl.u32 %v7654_v22, 24  ;;  %v245_v36 = vld [vmem:[%s8493_s9 + $0xe8] sm:$0xff] }
  0x5a   : > { %7388 = vst [vmem:[%s8554_s27 + $0x10] sm:$0xff] %v2384_v34  ;;  %v734_v44 = vmul.f32 %v8502_v3, %v220_v33  ;;  %v2394_v45 = vsel %vm8604_vm9, %v2392_v35, %v2390_v38  ;;  %v2399_v46 = vsel %vm2398_vm10, 127, %v2397_v39  ;;  %v2413_v48 = vand.u32 2147483647, %v7662_v24  ;;  %v237_v35 = vld [vmem:[%s8493_s9 + $0xa8] sm:$0xff] }
  0x5b   : > { %v2406_v47 = vcvt.f32.f8e4m3b11 %v2405_v41  ;;  %v2403_v51 = vsel %vm8609_vm11, %v2401_v42, %v2399_v46  ;;  %v2410_v52 = vand.u32 128, %v2409_v43  ;;  %vm8622_vm13 = vcmp.le.f32.partialorder %v2404_v40, 0.0009765625 }
  0x5c   : > { %v2414_v54 = vmul.f32 0.0625, %v7662_v24  ;;  %vm2416_vm14 = vweird.f32 %v7662_v24  ;;  %v2418_v57 = vshrl.u32 %v7662_v24, 24  ;;  %vm8627_vm15 = vcmp.le.f32.partialorder %v2413_v48, 0.0009765625 }
  0x5d   : > { %v2408_v56 = vsel %vm2407_vm12, 127, %v2406_v47  ;;  %v2422_v61 = vpack.c.b16 %v2403_v51, %v2394_v45  ;;  %v742_v62 = vmul.f32 %v8502_v3, %v228_v49  ;;  %v750_v63 = vmul.f32 %v8502_v3, %v236_v50 }
  0x5e   : > { %v2415_v60 = vcvt.f32.f8e4m3b11 %v2414_v54  ;;  %v2412_v0 = vsel %vm8622_vm13, %v2410_v52, %v2408_v56  ;;  %v2419_v1 = vand.u32 128, %v2418_v57  ;;  %v758_v2 = vmul.f32 %v8502_v3, %v244_v55 }
  0x5f   : > { %v7639_v4 = vclamps-f32 %v734_v44, 448.0  ;;  %v7647_v6 = vclamps-f32 %v742_v62, 448.0  ;;  %v7655_v7 = vclamps-f32 %v750_v63, 448.0  ;;  %v735_v8 = vmul.f32 %v8502_v3, %v221_v59  ;;  %v222_v44 = vld [vmem:[%s8493_s9 + $0x30] sm:$0xff] }
  0x60   : > { %v2417_v5 = vsel %vm2416_vm14, 127, %v2415_v60  ;;  %v7663_v10 = vclamps-f32 %v758_v2, 448.0  ;;  %v743_v30 = vmul.f32 %v8502_v3, %v229_v19  ;;  %v751_v47 = vmul.f32 %v8502_v3, %v237_v35 }
  0x61   : > { %v2421_v9 = vsel %vm8627_vm15, %v2419_v1, %v2417_v5  ;;  %v2426_v11 = vand.u32 2147483647, %v7639_v4  ;;  %v2427_v12 = vmul.f32 0.0625, %v7639_v4  ;;  %vm2429_vm0 = vweird.f32 %v7639_v4 }
  0x62   : > { %v2423_v13 = vpack.c.b16 %v2421_v9, %v2412_v0  ;;  %v2431_v14 = vshrl.u32 %v7639_v4, 24  ;;  %v2435_v15 = vand.u32 2147483647, %v7647_v6  ;;  %v2436_v18 = vmul.f32 0.0625, %v7647_v6  ;;  %v230_v4 = vld [vmem:[%s8493_s9 + $0x70] sm:$0xff] }
  0x63   : > { %v2428_v16 = vcvt.f32.f8e4m3b11 %v2427_v12  ;;  %vm8640_vm1 = vcmp.le.f32.partialorder %v2426_v11, 0.0009765625  ;;  %vm2438_vm2 = vweird.f32 %v7647_v6  ;;  %v2440_v22 = vshrl.u32 %v7647_v6, 24 }
  0x64   : > { %v2424_v20 = vpack.c.b8 %v2423_v13, %v2422_v61  ;;  %v2432_v21 = vand.u32 128, %v2431_v14  ;;  %vm8645_vm3 = vcmp.le.f32.partialorder %v2435_v15, 0.0009765625  ;;  %v2437_v25 = vcvt.f32.f8e4m3b11 %v2436_v18  ;;  %v238_v15 = vld [vmem:[%s8493_s9 + $0xb0] sm:$0xff] }
  0x65   : > { %v2430_v24 = vsel %vm2429_vm0, 127, %v2428_v16  ;;  %v2444_v26 = vand.u32 2147483647, %v7655_v7  ;;  %v2445_v27 = vmul.f32 0.0625, %v7655_v7  ;;  %v2441_v28 = vand.u32 128, %v2440_v22 }
  0x66   : > { %7389 = vst [vmem:[%s8554_s27 + $0x18] sm:$0xff] %v2424_v20  ;;  %vm2447_vm4 = vweird.f32 %v7655_v7  ;;  %v2449_v29 = vshrl.u32 %v7655_v7, 24  ;;  %v2434_v31 = vsel %vm8640_vm1, %v2432_v21, %v2430_v24  ;;  %v2439_v32 = vsel %vm2438_vm2, 127, %v2437_v25  ;;  %v246_v21 = vld [vmem:[%s8493_s9 + $0xf0] sm:$0xff] }
  0x67   : > { %v2446_v33 = vcvt.f32.f8e4m3b11 %v2445_v27  ;;  %v2453_v34 = vand.u32 2147483647, %v7663_v10  ;;  %v2443_v37 = vsel %vm8645_vm3, %v2441_v28, %v2439_v32  ;;  %vm8658_vm5 = vcmp.le.f32.partialorder %v2444_v26, 0.0009765625 }
  0x68   : > { %v2450_v38 = vand.u32 128, %v2449_v29  ;;  %v2454_v40 = vmul.f32 0.0625, %v7663_v10  ;;  %vm2456_vm6 = vweird.f32 %v7663_v10  ;;  %v2458_v42 = vshrl.u32 %v7663_v10, 24  ;;  %v223_v29 = vld [vmem:[%s8493_s9 + $0x38] sm:$0xff] }
  0x69   : > { %v2448_v41 = vsel %vm2447_vm4, 127, %v2446_v33  ;;  %vm8662_vm7 = vcmp.le.f32.partialorder %v2453_v34, 0.0009765625  ;;  %v2462_v46 = vpack.c.b16 %v2443_v37, %v2434_v31  ;;  %v759_v48 = vmul.f32 %v8502_v3, %v245_v36 }
  0x6a   : > { %v2455_v45 = vcvt.f32.f8e4m3b11 %v2454_v40  ;;  %v2452_v49 = vsel %vm8658_vm5, %v2450_v38, %v2448_v41  ;;  %v2459_v50 = vand.u32 128, %v2458_v42  ;;  %v7640_v51 = vclamps-f32 %v735_v8, 448.0 }
  0x6b   : > { %v7648_v52 = vclamps-f32 %v743_v30, 448.0  ;;  %v7656_v54 = vclamps-f32 %v751_v47, 448.0  ;;  %v7664_v55 = vclamps-f32 %v759_v48, 448.0  ;;  %v736_v56 = vmul.f32 %v8502_v3, %v222_v44  ;;  %v231_v30 = vld [vmem:[%s8493_s9 + $0x78] sm:$0xff] }
  0x6c   : > { %v2457_v53 = vsel %vm2456_vm6, 127, %v2455_v45  ;;  %v2466_v58 = vand.u32 2147483647, %v7640_v51  ;;  %v2467_v59 = vmul.f32 0.0625, %v7640_v51  ;;  %vm2469_vm8 = vweird.f32 %v7640_v51 }
  0x6d   : > { %v2461_v57 = vsel %vm8662_vm7, %v2459_v50, %v2457_v53  ;;  %v2471_v61 = vshrl.u32 %v7640_v51, 24  ;;  %v2475_v62 = vand.u32 2147483647, %v7648_v52  ;;  %v2476_v63 = vmul.f32 0.0625, %v7648_v52  ;;  %v239_v53 = vld [vmem:[%s8493_s9 + $0xb8] sm:$0xff] }
  0x6e   : > { %v2463_v60 = vpack.c.b16 %v2461_v57, %v2452_v49  ;;  %v2468_v0 = vcvt.f32.f8e4m3b11 %v2467_v59  ;;  %vm8674_vm9 = vcmp.le.f32.partialorder %v2466_v58, 0.0009765625  ;;  %vm2478_vm10 = vweird.f32 %v7648_v52 }
  0x6f   : > { %v2480_v2 = vshrl.u32 %v7648_v52, 24  ;;  %v2472_v6 = vand.u32 128, %v2471_v61  ;;  %v2477_v7 = vcvt.f32.f8e4m3b11 %v2476_v63  ;;  %vm8679_vm11 = vcmp.le.f32.partialorder %v2475_v62, 0.0009765625 }
  0x70   : > { %v2464_v5 = vpack.c.b8 %v2463_v60, %v2462_v46  ;;  %v2470_v9 = vsel %vm2469_vm8, 127, %v2468_v0  ;;  %v2484_v11 = vand.u32 2147483647, %v7656_v54  ;;  %v2485_v12 = vmul.f32 0.0625, %v7656_v54  ;;  %v247_v0 = vld [vmem:[%s8493_s9 + $0xf8] sm:$0xff] }
  0x71   : > { %v2481_v10 = vand.u32 128, %v2480_v2  ;;  %v2479_v13 = vsel %vm2478_vm10, 127, %v2477_v7  ;;  %vm2487_vm12 = vweird.f32 %v7656_v54  ;;  %v2489_v14 = vshrl.u32 %v7656_v54, 24 }
  0x72   : > { %7390 = vst [vmem:[%s8554_s27 + $0x20] sm:$0xff] %v2464_v5  ;;  %v744_v16 = vmul.f32 %v8502_v3, %v230_v4  ;;  %v2474_v17 = vsel %vm8674_vm9, %v2472_v6, %v2470_v9  ;;  %v2486_v19 = vcvt.f32.f8e4m3b11 %v2485_v12  ;;  %v2493_v20 = vand.u32 2147483647, %v7664_v55 }
  0x73   : > { %v2483_v18 = vsel %vm8679_vm11, %v2481_v10, %v2479_v13  ;;  %v2490_v22 = vand.u32 128, %v2489_v14  ;;  %vm8691_vm13 = vcmp.le.f32.partialorder %v2484_v11, 0.0009765625  ;;  %v2494_v24 = vmul.f32 0.0625, %v7664_v55 }
  0x74   : > { %v2498_v25 = vshrl.u32 %v7664_v55, 24  ;;  %v2488_v26 = vsel %vm2487_vm12, 127, %v2486_v19  ;;  %vm2496_vm14 = vweird.f32 %v7664_v55  ;;  %vm8695_vm15 = vcmp.le.f32.partialorder %v2493_v20, 0.0009765625 }
  0x75   : > { %v752_v28 = vmul.f32 %v8502_v3, %v238_v15  ;;  %v2495_v31 = vcvt.f32.f8e4m3b11 %v2494_v24  ;;  %v2502_v33 = vpack.c.b16 %v2483_v18, %v2474_v17  ;;  %v760_v34 = vmul.f32 %v8502_v3, %v246_v21 }
  0x76   : > { %v2499_v32 = vand.u32 128, %v2498_v25  ;;  %v2492_v35 = vsel %vm8691_vm13, %v2490_v22, %v2488_v26  ;;  %v7641_v36 = vclamps-f32 %v736_v56, 448.0  ;;  %v7649_v37 = vclamps-f32 %v744_v16, 448.0 }
  0x77   : > { %v7657_v38 = vclamps-f32 %v752_v28, 448.0  ;;  %v2497_v39 = vsel %vm2496_vm14, 127, %v2495_v31  ;;  %v7665_v40 = vclamps-f32 %v760_v34, 448.0  ;;  %v737_v41 = vmul.f32 %v8502_v3, %v223_v29 }
  0x78   : > { %v745_v42 = vmul.f32 %v8502_v3, %v231_v30  ;;  %v2501_v43 = vsel %vm8695_vm15, %v2499_v32, %v2497_v39  ;;  %v2506_v44 = vand.u32 2147483647, %v7641_v36  ;;  %v2507_v45 = vmul.f32 0.0625, %v7641_v36  ;;  %v248_v32 = vld [vmem:[%s8493_s9 + $0x100] sm:$0xff] }
  0x79   : > { %vm2509_vm0 = vweird.f32 %v7641_v36  ;;  %v2503_v46 = vpack.c.b16 %v2501_v43, %v2492_v35  ;;  %v2511_v47 = vshrl.u32 %v7641_v36, 24  ;;  %v2515_v48 = vand.u32 2147483647, %v7649_v37 }
  0x7a   : > { %v2516_v49 = vmul.f32 0.0625, %v7649_v37  ;;  %v2508_v50 = vcvt.f32.f8e4m3b11 %v2507_v45  ;;  %vm8709_vm1 = vcmp.le.f32.partialorder %v2506_v44, 0.0009765625  ;;  %vm2518_vm2 = vweird.f32 %v7649_v37 }
  0x7b   : > { %v2520_v52 = vshrl.u32 %v7649_v37, 24  ;;  %v2504_v54 = vpack.c.b8 %v2503_v46, %v2502_v33  ;;  %v2512_v55 = vand.u32 128, %v2511_v47  ;;  %vm8714_vm3 = vcmp.le.f32.partialorder %v2515_v48, 0.0009765625  ;;  %v256_v48 = vld [vmem:[%s8493_s9 + $0x140] sm:$0xff] }
  0x7c   : > { %v2517_v56 = vcvt.f32.f8e4m3b11 %v2516_v49  ;;  %v2510_v58 = vsel %vm2509_vm0, 127, %v2508_v50  ;;  %v2524_v60 = vand.u32 2147483647, %v7657_v38  ;;  %v2525_v61 = vmul.f32 0.0625, %v7657_v38  ;;  %v264_v49 = vld [vmem:[%s8493_s9 + $0x180] sm:$0xff] }
  0x7d   : > { %v2521_v59 = vand.u32 128, %v2520_v52  ;;  %7391 = vst [vmem:[%s8554_s27 + $0x28] sm:$0xff] %v2504_v54  ;;  %vm2527_vm4 = vweird.f32 %v7657_v38  ;;  %v2529_v63 = vshrl.u32 %v7657_v38, 24  ;;  %v753_v1 = vmul.f32 %v8502_v3, %v239_v53  ;;  %v272_v54 = vld [vmem:[%s8493_s9 + $0x1c0] sm:$0xff] }
  0x7e   : > { %v2519_v62 = vsel %vm2518_vm2, 127, %v2517_v56  ;;  %v2514_v2 = vsel %vm8709_vm1, %v2512_v55, %v2510_v58  ;;  %v2526_v5 = vcvt.f32.f8e4m3b11 %v2525_v61  ;;  %v2533_v6 = vand.u32 2147483647, %v7665_v40  ;;  %v249_v58 = vld [vmem:[%s8493_s9 + $0x108] sm:$0xff] }
  0x7f   : > { %v2523_v4 = vsel %vm8714_vm3, %v2521_v59, %v2519_v62  ;;  %v2530_v7 = vand.u32 128, %v2529_v63  ;;  %vm8725_vm5 = vcmp.le.f32.partialorder %v2524_v60, 0.0009765625  ;;  %v2534_v9 = vmul.f32 0.0625, %v7665_v40 }
  0x80   : > { %v2538_v10 = vshrl.u32 %v7665_v40, 24  ;;  %v2528_v11 = vsel %vm2527_vm4, 127, %v2526_v5  ;;  %vm2536_vm6 = vweird.f32 %v7665_v40  ;;  %vm8729_vm7 = vcmp.le.f32.partialorder %v2533_v6, 0.0009765625 }
  0x81   : > { %v761_v13 = vmul.f32 %v8502_v3, %v247_v0  ;;  %v2535_v14 = vcvt.f32.f8e4m3b11 %v2534_v9  ;;  %v2542_v16 = vpack.c.b16 %v2523_v4, %v2514_v2  ;;  %v7642_v17 = vclamps-f32 %v737_v41, 448.0 }
  0x82   : > { %v2539_v15 = vand.u32 128, %v2538_v10  ;;  %v2532_v18 = vsel %vm8725_vm5, %v2530_v7, %v2528_v11  ;;  %v7650_v19 = vclamps-f32 %v745_v42, 448.0  ;;  %v7658_v20 = vclamps-f32 %v753_v1, 448.0 }
  0x83   : > { %v7666_v21 = vclamps-f32 %v761_v13, 448.0  ;;  %v2537_v22 = vsel %vm2536_vm6, 127, %v2535_v14  ;;  %v2546_v23 = vand.u32 2147483647, %v7642_v17  ;;  %v2547_v24 = vmul.f32 0.0625, %v7642_v17 }
  0x84   : > { %vm2549_vm8 = vweird.f32 %v7642_v17  ;;  %v2541_v25 = vsel %vm8729_vm7, %v2539_v15, %v2537_v22  ;;  %v2551_v26 = vshrl.u32 %v7642_v17, 24  ;;  %v2555_v27 = vand.u32 2147483647, %v7650_v19 }
  0x85   : > { %v2556_v28 = vmul.f32 0.0625, %v7650_v19  ;;  %v2543_v29 = vpack.c.b16 %v2541_v25, %v2532_v18  ;;  %v2548_v30 = vcvt.f32.f8e4m3b11 %v2547_v24  ;;  %vm8738_vm9 = vcmp.le.f32.partialorder %v2546_v23, 0.0009765625  ;;  %v257_v18 = vld [vmem:[%s8493_s9 + $0x148] sm:$0xff] }
  0x86   : > { %vm2558_vm10 = vweird.f32 %v7650_v19  ;;  %v2552_v33 = vand.u32 128, %v2551_v26  ;;  %v2560_v35 = vshrl.u32 %v7650_v19, 24  ;;  %vm8743_vm11 = vcmp.le.f32.partialorder %v2555_v27, 0.0009765625 }
  0x87   : > { %v2557_v34 = vcvt.f32.f8e4m3b11 %v2556_v28  ;;  %v2544_v37 = vpack.c.b8 %v2543_v29, %v2542_v16  ;;  %v2550_v38 = vsel %vm2549_vm8, 127, %v2548_v30  ;;  %v2564_v39 = vand.u32 2147483647, %v7658_v20 }
  0x88   : > { %v2565_v40 = vmul.f32 0.0625, %v7658_v20  ;;  %v2561_v42 = vand.u32 128, %v2560_v35  ;;  %vm2567_vm12 = vweird.f32 %v7658_v20  ;;  %v762_v43 = vmul.f32 %v8502_v3, %v248_v32  ;;  %v273_v35 = vld [vmem:[%s8493_s9 + $0x1c8] sm:$0xff] }
  0x89   : > { %v2559_v41 = vsel %vm2558_vm10, 127, %v2557_v34  ;;  %7392 = vst [vmem:[%s8554_s27 + $0x30] sm:$0xff] %v2544_v37  ;;  %v2554_v44 = vsel %vm8738_vm9, %v2552_v33, %v2550_v38  ;;  %v2569_v46 = vshrl.u32 %v7658_v20, 24  ;;  %v2573_v47 = vand.u32 2147483647, %v7666_v21  ;;  %v265_v34 = vld [vmem:[%s8493_s9 + $0x188] sm:$0xff] }
  0x8a   : > { %v2566_v45 = vcvt.f32.f8e4m3b11 %v2565_v40  ;;  %v2563_v50 = vsel %vm8743_vm11, %v2561_v42, %v2559_v41  ;;  %vm8755_vm13 = vcmp.le.f32.partialorder %v2564_v39, 0.0009765625  ;;  %v2574_v52 = vmul.f32 0.0625, %v7666_v21 }
  0x8b   : > { %v2578_v53 = vshrl.u32 %v7666_v21, 24  ;;  %v2570_v56 = vand.u32 128, %v2569_v46  ;;  %vm2576_vm14 = vweird.f32 %v7666_v21  ;;  %vm8760_vm15 = vcmp.le.f32.partialorder %v2573_v47, 0.0009765625 }
  0x8c   : > { %v2568_v55 = vsel %vm2567_vm12, 127, %v2566_v45  ;;  %v2575_v59 = vcvt.f32.f8e4m3b11 %v2574_v52  ;;  %v770_v61 = vmul.f32 %v8502_v3, %v256_v48  ;;  %v778_v62 = vmul.f32 %v8502_v3, %v264_v49 }
  0x8d   : > { %v2579_v60 = vand.u32 128, %v2578_v53  ;;  %v2572_v63 = vsel %vm8755_vm13, %v2570_v56, %v2568_v55  ;;  %v2582_v0 = vpack.c.b16 %v2563_v50, %v2554_v44  ;;  %v786_v1 = vmul.f32 %v8502_v3, %v272_v54 }
  0x8e   : > { %v7667_v2 = vclamps-f32 %v762_v43, 448.0  ;;  %v2577_v4 = vsel %vm2576_vm14, 127, %v2575_v59  ;;  %v7675_v5 = vclamps-f32 %v770_v61, 448.0  ;;  %v7683_v6 = vclamps-f32 %v778_v62, 448.0  ;;  %v250_v43 = vld [vmem:[%s8493_s9 + $0x110] sm:$0xff] }
  0x8f   : > { %v763_v7 = vmul.f32 %v8502_v3, %v249_v58  ;;  %v2581_v8 = vsel %vm8760_vm15, %v2579_v60, %v2577_v4  ;;  %v7691_v9 = vclamps-f32 %v786_v1, 448.0  ;;  %v771_v29 = vmul.f32 %v8502_v3, %v257_v18 }
  0x90   : > { %v2586_v10 = vand.u32 2147483647, %v7667_v2  ;;  %v2587_v11 = vmul.f32 0.0625, %v7667_v2  ;;  %v2583_v12 = vpack.c.b16 %v2581_v8, %v2572_v63  ;;  %vm2589_vm0 = vweird.f32 %v7667_v2 }
  0x91   : > { %v2591_v13 = vshrl.u32 %v7667_v2, 24  ;;  %v2595_v14 = vand.u32 2147483647, %v7675_v5  ;;  %v2596_v17 = vmul.f32 0.0625, %v7675_v5  ;;  %vm2598_vm2 = vweird.f32 %v7675_v5  ;;  %v258_v2 = vld [vmem:[%s8493_s9 + $0x150] sm:$0xff] }
  0x92   : > { %v2588_v15 = vcvt.f32.f8e4m3b11 %v2587_v11  ;;  %vm8773_vm1 = vcmp.le.f32.partialorder %v2586_v10, 0.0009765625  ;;  %v2584_v19 = vpack.c.b8 %v2583_v12, %v2582_v0  ;;  %v2600_v21 = vshrl.u32 %v7675_v5, 24 }
  0x93   : > { %v2592_v20 = vand.u32 128, %v2591_v13  ;;  %vm8778_vm3 = vcmp.le.f32.partialorder %v2595_v14, 0.0009765625  ;;  %v2597_v24 = vcvt.f32.f8e4m3b11 %v2596_v17  ;;  %v2604_v25 = vand.u32 2147483647, %v7683_v6  ;;  %v266_v14 = vld [vmem:[%s8493_s9 + $0x190] sm:$0xff] }
  0x94   : > { %v2590_v23 = vsel %vm2589_vm0, 127, %v2588_v15  ;;  %v2605_v26 = vmul.f32 0.0625, %v7683_v6  ;;  %7393 = vst [vmem:[%s8554_s27 + $0x38] sm:$0xff] %v2584_v19  ;;  %v2601_v27 = vand.u32 128, %v2600_v21  ;;  %vm2607_vm4 = vweird.f32 %v7683_v6 }
  0x95   : > { %v2609_v28 = vshrl.u32 %v7683_v6, 24  ;;  %v2594_v30 = vsel %vm8773_vm1, %v2592_v20, %v2590_v23  ;;  %v2599_v31 = vsel %vm2598_vm2, 127, %v2597_v24  ;;  %v2613_v33 = vand.u32 2147483647, %v7691_v9  ;;  %v274_v20 = vld [vmem:[%s8493_s9 + $0x1d0] sm:$0xff] }
  0x96   : > { %v2606_v32 = vcvt.f32.f8e4m3b11 %v2605_v26  ;;  %v2603_v36 = vsel %vm8778_vm3, %v2601_v27, %v2599_v31  ;;  %vm8791_vm5 = vcmp.le.f32.partialorder %v2604_v25, 0.0009765625  ;;  %v2614_v39 = vmul.f32 0.0625, %v7691_v9 }
  0x97   : > { %v2610_v37 = vand.u32 128, %v2609_v28  ;;  %vm2616_vm6 = vweird.f32 %v7691_v9  ;;  %v2618_v41 = vshrl.u32 %v7691_v9, 24  ;;  %vm8795_vm7 = vcmp.le.f32.partialorder %v2613_v33, 0.0009765625  ;;  %v251_v28 = vld [vmem:[%s8493_s9 + $0x118] sm:$0xff] }
  0x98   : > { %v2608_v40 = vsel %vm2607_vm4, 127, %v2606_v32  ;;  %v2615_v44 = vcvt.f32.f8e4m3b11 %v2614_v39  ;;  %v2622_v45 = vpack.c.b16 %v2603_v36, %v2594_v30  ;;  %v779_v46 = vmul.f32 %v8502_v3, %v265_v34 }
  0x99   : > { %v787_v47 = vmul.f32 %v8502_v3, %v273_v35  ;;  %v2612_v48 = vsel %vm8791_vm5, %v2610_v37, %v2608_v40  ;;  %v2619_v49 = vand.u32 128, %v2618_v41  ;;  %v7668_v50 = vclamps-f32 %v763_v7, 448.0 }
  0x9a   : > { %v7676_v51 = vclamps-f32 %v771_v29, 448.0  ;;  %v2617_v52 = vsel %vm2616_vm6, 127, %v2615_v44  ;;  %v7684_v53 = vclamps-f32 %v779_v46, 448.0  ;;  %v764_v55 = vmul.f32 %v8502_v3, %v250_v43  ;;  %v259_v29 = vld [vmem:[%s8493_s9 + $0x158] sm:$0xff] }
  0x9b   : > { %v7692_v54 = vclamps-f32 %v787_v47, 448.0  ;;  %v2621_v56 = vsel %vm8795_vm7, %v2619_v49, %v2617_v52  ;;  %v2626_v57 = vand.u32 2147483647, %v7668_v50  ;;  %v2627_v58 = vmul.f32 0.0625, %v7668_v50  ;;  %v267_v52 = vld [vmem:[%s8493_s9 + $0x198] sm:$0xff] }
  0x9c   : > { %vm2629_vm8 = vweird.f32 %v7668_v50  ;;  %v2623_v59 = vpack.c.b16 %v2621_v56, %v2612_v48  ;;  %v2631_v60 = vshrl.u32 %v7668_v50, 24  ;;  %v2635_v61 = vand.u32 2147483647, %v7676_v51 }
  0x9d   : > { %v2636_v62 = vmul.f32 0.0625, %v7676_v51  ;;  %v2628_v63 = vcvt.f32.f8e4m3b11 %v2627_v58  ;;  %vm8807_vm9 = vcmp.le.f32.partialorder %v2626_v57, 0.0009765625  ;;  %vm2638_vm10 = vweird.f32 %v7676_v51 }
  0x9e   : > { %v2640_v1 = vshrl.u32 %v7676_v51, 24  ;;  %v2624_v4 = vpack.c.b8 %v2623_v59, %v2622_v45  ;;  %v2632_v5 = vand.u32 128, %v2631_v60  ;;  %vm8812_vm11 = vcmp.le.f32.partialorder %v2635_v61, 0.0009765625 }
  0x9f   : > { %v2637_v6 = vcvt.f32.f8e4m3b11 %v2636_v62  ;;  %v2630_v8 = vsel %vm2629_vm8, 127, %v2628_v63  ;;  %v2644_v10 = vand.u32 2147483647, %v7684_v53  ;;  %v2645_v11 = vmul.f32 0.0625, %v7684_v53  ;;  %v275_v63 = vld [vmem:[%s8493_s9 + $0x1d8] sm:$0xff] }
  0xa0   : > { %v2641_v9 = vand.u32 128, %v2640_v1  ;;  %7394 = vst [vmem:[%s8554_s27 + $0x40] sm:$0xff] %v2624_v4  ;;  %vm2647_vm12 = vweird.f32 %v7684_v53  ;;  %v2649_v13 = vshrl.u32 %v7684_v53, 24  ;;  %v772_v15 = vmul.f32 %v8502_v3, %v258_v2 }
  0xa1   : > { %v2639_v12 = vsel %vm2638_vm10, 127, %v2637_v6  ;;  %v2634_v16 = vsel %vm8807_vm9, %v2632_v5, %v2630_v8  ;;  %v2646_v18 = vcvt.f32.f8e4m3b11 %v2645_v11  ;;  %v2653_v19 = vand.u32 2147483647, %v7692_v54 }
  0xa2   : > { %v2643_v17 = vsel %vm8812_vm11, %v2641_v9, %v2639_v12  ;;  %v2650_v21 = vand.u32 128, %v2649_v13  ;;  %vm8824_vm13 = vcmp.le.f32.partialorder %v2644_v10, 0.0009765625  ;;  %v2654_v23 = vmul.f32 0.0625, %v7692_v54 }
  0xa3   : > { %v2658_v24 = vshrl.u32 %v7692_v54, 24  ;;  %v2648_v25 = vsel %vm2647_vm12, 127, %v2646_v18  ;;  %vm2656_vm14 = vweird.f32 %v7692_v54  ;;  %vm8828_vm15 = vcmp.le.f32.partialorder %v2653_v19, 0.0009765625 }
  0xa4   : > { %v780_v27 = vmul.f32 %v8502_v3, %v266_v14  ;;  %v2655_v30 = vcvt.f32.f8e4m3b11 %v2654_v23  ;;  %v2662_v32 = vpack.c.b16 %v2643_v17, %v2634_v16  ;;  %v788_v33 = vmul.f32 %v8502_v3, %v274_v20 }
  0xa5   : > { %v2659_v31 = vand.u32 128, %v2658_v24  ;;  %v2652_v34 = vsel %vm8824_vm13, %v2650_v21, %v2648_v25  ;;  %v7669_v35 = vclamps-f32 %v764_v55, 448.0  ;;  %v7677_v36 = vclamps-f32 %v772_v15, 448.0 }
  0xa6   : > { %v7685_v37 = vclamps-f32 %v780_v27, 448.0  ;;  %v2657_v38 = vsel %vm2656_vm14, 127, %v2655_v30  ;;  %v7693_v39 = vclamps-f32 %v788_v33, 448.0  ;;  %v765_v40 = vmul.f32 %v8502_v3, %v251_v28 }
  0xa7   : > { %v773_v41 = vmul.f32 %v8502_v3, %v259_v29  ;;  %v2661_v42 = vsel %vm8828_vm15, %v2659_v31, %v2657_v38  ;;  %v2666_v43 = vand.u32 2147483647, %v7669_v35  ;;  %v2667_v44 = vmul.f32 0.0625, %v7669_v35  ;;  %v252_v31 = vld [vmem:[%s8493_s9 + $0x120] sm:$0xff] }
  0xa8   : > { %vm2669_vm0 = vweird.f32 %v7669_v35  ;;  %v2663_v45 = vpack.c.b16 %v2661_v42, %v2652_v34  ;;  %v2671_v46 = vshrl.u32 %v7669_v35, 24  ;;  %v2675_v47 = vand.u32 2147483647, %v7677_v36 }
  0xa9   : > { %v2676_v48 = vmul.f32 0.0625, %v7677_v36  ;;  %v2668_v49 = vcvt.f32.f8e4m3b11 %v2667_v44  ;;  %vm8842_vm1 = vcmp.le.f32.partialorder %v2666_v43, 0.0009765625  ;;  %vm2678_vm2 = vweird.f32 %v7677_v36 }
  0xaa   : > { %v2680_v51 = vshrl.u32 %v7677_v36, 24  ;;  %v2664_v53 = vpack.c.b8 %v2663_v45, %v2662_v32  ;;  %v2672_v54 = vand.u32 128, %v2671_v46  ;;  %vm8847_vm3 = vcmp.le.f32.partialorder %v2675_v47, 0.0009765625  ;;  %v260_v47 = vld [vmem:[%s8493_s9 + $0x160] sm:$0xff] }
  0xab   : > { %v2677_v55 = vcvt.f32.f8e4m3b11 %v2676_v48  ;;  %v2670_v57 = vsel %vm2669_vm0, 127, %v2668_v49  ;;  %v2684_v59 = vand.u32 2147483647, %v7685_v37  ;;  %v2685_v60 = vmul.f32 0.0625, %v7685_v37  ;;  %v268_v48 = vld [vmem:[%s8493_s9 + $0x1a0] sm:$0xff] }
  0xac   : > { %v2681_v58 = vand.u32 128, %v2680_v51  ;;  %7395 = vst [vmem:[%s8554_s27 + $0x48] sm:$0xff] %v2664_v53  ;;  %vm2687_vm4 = vweird.f32 %v7685_v37  ;;  %v2689_v62 = vshrl.u32 %v7685_v37, 24  ;;  %v781_v0 = vmul.f32 %v8502_v3, %v267_v52  ;;  %v276_v53 = vld [vmem:[%s8493_s9 + $0x1e0] sm:$0xff] }
  0xad   : > { %v2679_v61 = vsel %vm2678_vm2, 127, %v2677_v55  ;;  %v2674_v1 = vsel %vm8842_vm1, %v2672_v54, %v2670_v57  ;;  %v2686_v4 = vcvt.f32.f8e4m3b11 %v2685_v60  ;;  %v2693_v5 = vand.u32 2147483647, %v7693_v39  ;;  %v253_v57 = vld [vmem:[%s8493_s9 + $0x128] sm:$0xff] }
  0xae   : > { %v2683_v2 = vsel %vm8847_vm3, %v2681_v58, %v2679_v61  ;;  %v2690_v6 = vand.u32 128, %v2689_v62  ;;  %vm8858_vm5 = vcmp.le.f32.partialorder %v2684_v59, 0.0009765625  ;;  %v2694_v8 = vmul.f32 0.0625, %v7693_v39 }
  0xaf   : > { %v2698_v9 = vshrl.u32 %v7693_v39, 24  ;;  %v2688_v10 = vsel %vm2687_vm4, 127, %v2686_v4  ;;  %vm2696_vm6 = vweird.f32 %v7693_v39  ;;  %vm8862_vm7 = vcmp.le.f32.partialorder %v2693_v5, 0.0009765625 }
  0xb0   : > { %v789_v12 = vmul.f32 %v8502_v3, %v275_v63  ;;  %v2695_v13 = vcvt.f32.f8e4m3b11 %v2694_v8  ;;  %v2702_v15 = vpack.c.b16 %v2683_v2, %v2674_v1  ;;  %v7670_v16 = vclamps-f32 %v765_v40, 448.0 }
  0xb1   : > { %v2699_v14 = vand.u32 128, %v2698_v9  ;;  %v2692_v17 = vsel %vm8858_vm5, %v2690_v6, %v2688_v10  ;;  %v7678_v18 = vclamps-f32 %v773_v41, 448.0  ;;  %v7686_v19 = vclamps-f32 %v781_v0, 448.0 }
  0xb2   : > { %v7694_v20 = vclamps-f32 %v789_v12, 448.0  ;;  %v2697_v21 = vsel %vm2696_vm6, 127, %v2695_v13  ;;  %v2706_v22 = vand.u32 2147483647, %v7670_v16  ;;  %v2707_v23 = vmul.f32 0.0625, %v7670_v16 }
  0xb3   : > { %vm2709_vm8 = vweird.f32 %v7670_v16  ;;  %v2701_v24 = vsel %vm8862_vm7, %v2699_v14, %v2697_v21  ;;  %v2711_v25 = vshrl.u32 %v7670_v16, 24  ;;  %v2715_v26 = vand.u32 2147483647, %v7678_v18 }
  0xb4   : > { %v2716_v27 = vmul.f32 0.0625, %v7678_v18  ;;  %v2703_v28 = vpack.c.b16 %v2701_v24, %v2692_v17  ;;  %v2708_v29 = vcvt.f32.f8e4m3b11 %v2707_v23  ;;  %vm8871_vm9 = vcmp.le.f32.partialorder %v2706_v22, 0.0009765625  ;;  %v261_v17 = vld [vmem:[%s8493_s9 + $0x168] sm:$0xff] }
  0xb5   : > { %vm2718_vm10 = vweird.f32 %v7678_v18  ;;  %v2712_v32 = vand.u32 128, %v2711_v25  ;;  %v2720_v34 = vshrl.u32 %v7678_v18, 24  ;;  %vm8876_vm11 = vcmp.le.f32.partialorder %v2715_v26, 0.0009765625 }
  0xb6   : > { %v2717_v33 = vcvt.f32.f8e4m3b11 %v2716_v27  ;;  %v2704_v36 = vpack.c.b8 %v2703_v28, %v2702_v15  ;;  %v2710_v37 = vsel %vm2709_vm8, 127, %v2708_v29  ;;  %v2724_v38 = vand.u32 2147483647, %v7686_v19 }
  0xb7   : > { %v2725_v39 = vmul.f32 0.0625, %v7686_v19  ;;  %v2721_v41 = vand.u32 128, %v2720_v34  ;;  %vm2727_vm12 = vweird.f32 %v7686_v19  ;;  %v766_v42 = vmul.f32 %v8502_v3, %v252_v31  ;;  %v277_v34 = vld [vmem:[%s8493_s9 + $0x1e8] sm:$0xff] }
  0xb8   : > { %v2719_v40 = vsel %vm2718_vm10, 127, %v2717_v33  ;;  %7396 = vst [vmem:[%s8554_s27 + $0x50] sm:$0xff] %v2704_v36  ;;  %v2714_v43 = vsel %vm8871_vm9, %v2712_v32, %v2710_v37  ;;  %v2729_v45 = vshrl.u32 %v7686_v19, 24  ;;  %v2733_v46 = vand.u32 2147483647, %v7694_v20  ;;  %v269_v33 = vld [vmem:[%s8493_s9 + $0x1a8] sm:$0xff] }
  0xb9   : > { %v2726_v44 = vcvt.f32.f8e4m3b11 %v2725_v39  ;;  %v2723_v49 = vsel %vm8876_vm11, %v2721_v41, %v2719_v40  ;;  %vm8888_vm13 = vcmp.le.f32.partialorder %v2724_v38, 0.0009765625  ;;  %v2734_v51 = vmul.f32 0.0625, %v7694_v20 }
  0xba   : > { %v2738_v52 = vshrl.u32 %v7694_v20, 24  ;;  %v2730_v55 = vand.u32 128, %v2729_v45  ;;  %vm2736_vm14 = vweird.f32 %v7694_v20  ;;  %vm8893_vm15 = vcmp.le.f32.partialorder %v2733_v46, 0.0009765625 }
  0xbb   : > { %v2728_v54 = vsel %vm2727_vm12, 127, %v2726_v44  ;;  %v2735_v58 = vcvt.f32.f8e4m3b11 %v2734_v51  ;;  %v774_v60 = vmul.f32 %v8502_v3, %v260_v47  ;;  %v782_v61 = vmul.f32 %v8502_v3, %v268_v48 }
  0xbc   : > { %v2739_v59 = vand.u32 128, %v2738_v52  ;;  %v2732_v62 = vsel %vm8888_vm13, %v2730_v55, %v2728_v54  ;;  %v2742_v63 = vpack.c.b16 %v2723_v49, %v2714_v43  ;;  %v790_v0 = vmul.f32 %v8502_v3, %v276_v53 }
  0xbd   : > { %v7671_v1 = vclamps-f32 %v766_v42, 448.0  ;;  %v2737_v2 = vsel %vm2736_vm14, 127, %v2735_v58  ;;  %v7679_v4 = vclamps-f32 %v774_v60, 448.0  ;;  %v7687_v5 = vclamps-f32 %v782_v61, 448.0  ;;  %v254_v42 = vld [vmem:[%s8493_s9 + $0x130] sm:$0xff] }
  0xbe   : > { %v767_v6 = vmul.f32 %v8502_v3, %v253_v57  ;;  %v2741_v7 = vsel %vm8893_vm15, %v2739_v59, %v2737_v2  ;;  %v7695_v8 = vclamps-f32 %v790_v0, 448.0  ;;  %v775_v28 = vmul.f32 %v8502_v3, %v261_v17 }
  0xbf   : > { %v2746_v9 = vand.u32 2147483647, %v7671_v1  ;;  %v2747_v10 = vmul.f32 0.0625, %v7671_v1  ;;  %v2743_v11 = vpack.c.b16 %v2741_v7, %v2732_v62  ;;  %vm2749_vm0 = vweird.f32 %v7671_v1 }
  0xc0   : > { %v2751_v12 = vshrl.u32 %v7671_v1, 24  ;;  %v2755_v13 = vand.u32 2147483647, %v7679_v4  ;;  %v2756_v16 = vmul.f32 0.0625, %v7679_v4  ;;  %vm2758_vm2 = vweird.f32 %v7679_v4  ;;  %v262_v1 = vld [vmem:[%s8493_s9 + $0x170] sm:$0xff] }
  0xc1   : > { %v2748_v14 = vcvt.f32.f8e4m3b11 %v2747_v10  ;;  %vm8906_vm1 = vcmp.le.f32.partialorder %v2746_v9, 0.0009765625  ;;  %v2744_v18 = vpack.c.b8 %v2743_v11, %v2742_v63  ;;  %v2760_v20 = vshrl.u32 %v7679_v4, 24 }
  0xc2   : > { %v2752_v19 = vand.u32 128, %v2751_v12  ;;  %vm8911_vm3 = vcmp.le.f32.partialorder %v2755_v13, 0.0009765625  ;;  %v2757_v23 = vcvt.f32.f8e4m3b11 %v2756_v16  ;;  %v2764_v24 = vand.u32 2147483647, %v7687_v5  ;;  %v270_v13 = vld [vmem:[%s8493_s9 + $0x1b0] sm:$0xff] }
  0xc3   : > { %v2750_v22 = vsel %vm2749_vm0, 127, %v2748_v14  ;;  %v2765_v25 = vmul.f32 0.0625, %v7687_v5  ;;  %7397 = vst [vmem:[%s8554_s27 + $0x58] sm:$0xff] %v2744_v18  ;;  %v2761_v26 = vand.u32 128, %v2760_v20  ;;  %vm2767_vm4 = vweird.f32 %v7687_v5 }
  0xc4   : > { %v2769_v27 = vshrl.u32 %v7687_v5, 24  ;;  %v2754_v29 = vsel %vm8906_vm1, %v2752_v19, %v2750_v22  ;;  %v2759_v30 = vsel %vm2758_vm2, 127, %v2757_v23  ;;  %v2773_v32 = vand.u32 2147483647, %v7695_v8  ;;  %v278_v19 = vld [vmem:[%s8493_s9 + $0x1f0] sm:$0xff] }
  0xc5   : > { %v2766_v31 = vcvt.f32.f8e4m3b11 %v2765_v25  ;;  %v2763_v35 = vsel %vm8911_vm3, %v2761_v26, %v2759_v30  ;;  %vm8924_vm5 = vcmp.le.f32.partialorder %v2764_v24, 0.0009765625  ;;  %v2774_v38 = vmul.f32 0.0625, %v7695_v8 }
  0xc6   : > { %v2770_v36 = vand.u32 128, %v2769_v27  ;;  %vm2776_vm6 = vweird.f32 %v7695_v8  ;;  %v2778_v40 = vshrl.u32 %v7695_v8, 24  ;;  %vm8928_vm7 = vcmp.le.f32.partialorder %v2773_v32, 0.0009765625  ;;  %v255_v27 = vld [vmem:[%s8493_s9 + $0x138] sm:$0xff] }
  0xc7   : > { %v2768_v39 = vsel %vm2767_vm4, 127, %v2766_v31  ;;  %v2775_v43 = vcvt.f32.f8e4m3b11 %v2774_v38  ;;  %v2782_v44 = vpack.c.b16 %v2763_v35, %v2754_v29  ;;  %v783_v45 = vmul.f32 %v8502_v3, %v269_v33 }
  0xc8   : > { %v791_v46 = vmul.f32 %v8502_v3, %v277_v34  ;;  %v2772_v47 = vsel %vm8924_vm5, %v2770_v36, %v2768_v39  ;;  %v2779_v48 = vand.u32 128, %v2778_v40  ;;  %v7672_v49 = vclamps-f32 %v767_v6, 448.0 }
  0xc9   : > { %v7680_v50 = vclamps-f32 %v775_v28, 448.0  ;;  %v2777_v51 = vsel %vm2776_vm6, 127, %v2775_v43  ;;  %v7688_v52 = vclamps-f32 %v783_v45, 448.0  ;;  %v768_v54 = vmul.f32 %v8502_v3, %v254_v42  ;;  %v263_v28 = vld [vmem:[%s8493_s9 + $0x178] sm:$0xff] }
  0xca   : > { %v7696_v53 = vclamps-f32 %v791_v46, 448.0  ;;  %v2781_v55 = vsel %vm8928_vm7, %v2779_v48, %v2777_v51  ;;  %v2786_v56 = vand.u32 2147483647, %v7672_v49  ;;  %v2787_v57 = vmul.f32 0.0625, %v7672_v49  ;;  %v271_v51 = vld [vmem:[%s8493_s9 + $0x1b8] sm:$0xff] }
  0xcb   : > { %vm2789_vm8 = vweird.f32 %v7672_v49  ;;  %v2783_v58 = vpack.c.b16 %v2781_v55, %v2772_v47  ;;  %v2791_v59 = vshrl.u32 %v7672_v49, 24  ;;  %v2795_v60 = vand.u32 2147483647, %v7680_v50 }
  0xcc   : > { %v2796_v61 = vmul.f32 0.0625, %v7680_v50  ;;  %v2788_v62 = vcvt.f32.f8e4m3b11 %v2787_v57  ;;  %vm8940_vm9 = vcmp.le.f32.partialorder %v2786_v56, 0.0009765625  ;;  %vm2798_vm10 = vweird.f32 %v7680_v50 }
  0xcd   : > { %v2800_v0 = vshrl.u32 %v7680_v50, 24  ;;  %v2784_v2 = vpack.c.b8 %v2783_v58, %v2782_v44  ;;  %v2792_v4 = vand.u32 128, %v2791_v59  ;;  %vm8945_vm11 = vcmp.le.f32.partialorder %v2795_v60, 0.0009765625 }
  0xce   : > { %v2797_v5 = vcvt.f32.f8e4m3b11 %v2796_v61  ;;  %v2790_v7 = vsel %vm2789_vm8, 127, %v2788_v62  ;;  %v2804_v9 = vand.u32 2147483647, %v7688_v52  ;;  %v2805_v10 = vmul.f32 0.0625, %v7688_v52  ;;  %v279_v62 = vld [vmem:[%s8493_s9 + $0x1f8] sm:$0xff] }
  0xcf   : > { %v2801_v8 = vand.u32 128, %v2800_v0  ;;  %7398 = vst [vmem:[%s8554_s27 + $0x60] sm:$0xff] %v2784_v2  ;;  %vm2807_vm12 = vweird.f32 %v7688_v52  ;;  %v2809_v12 = vshrl.u32 %v7688_v52, 24  ;;  %v776_v14 = vmul.f32 %v8502_v3, %v262_v1 }
  0xd0   : > { %v2799_v11 = vsel %vm2798_vm10, 127, %v2797_v5  ;;  %v2794_v15 = vsel %vm8940_vm9, %v2792_v4, %v2790_v7  ;;  %v2806_v17 = vcvt.f32.f8e4m3b11 %v2805_v10  ;;  %v2813_v18 = vand.u32 2147483647, %v7696_v53 }
  0xd1   : > { %v2803_v16 = vsel %vm8945_vm11, %v2801_v8, %v2799_v11  ;;  %v2810_v20 = vand.u32 128, %v2809_v12  ;;  %vm8957_vm13 = vcmp.le.f32.partialorder %v2804_v9, 0.0009765625  ;;  %v2814_v22 = vmul.f32 0.0625, %v7696_v53 }
  0xd2   : > { %v2818_v23 = vshrl.u32 %v7696_v53, 24  ;;  %v2808_v24 = vsel %vm2807_vm12, 127, %v2806_v17  ;;  %vm2816_vm14 = vweird.f32 %v7696_v53  ;;  %vm8961_vm15 = vcmp.le.f32.partialorder %v2813_v18, 0.0009765625 }
  0xd3   : > { %v784_v26 = vmul.f32 %v8502_v3, %v270_v13  ;;  %v2815_v29 = vcvt.f32.f8e4m3b11 %v2814_v22  ;;  %v2822_v31 = vpack.c.b16 %v2803_v16, %v2794_v15  ;;  %v792_v32 = vmul.f32 %v8502_v3, %v278_v19 }
  0xd4   : > { %v2819_v30 = vand.u32 128, %v2818_v23  ;;  %v2812_v33 = vsel %vm8957_vm13, %v2810_v20, %v2808_v24  ;;  %v7673_v34 = vclamps-f32 %v768_v54, 448.0  ;;  %v7681_v35 = vclamps-f32 %v776_v14, 448.0 }
  0xd5   : > { %v7689_v36 = vclamps-f32 %v784_v26, 448.0  ;;  %v2817_v37 = vsel %vm2816_vm14, 127, %v2815_v29  ;;  %v7697_v38 = vclamps-f32 %v792_v32, 448.0  ;;  %v769_v39 = vmul.f32 %v8502_v3, %v255_v27 }
  0xd6   : > { %v777_v40 = vmul.f32 %v8502_v3, %v263_v28  ;;  %v2821_v41 = vsel %vm8961_vm15, %v2819_v30, %v2817_v37  ;;  %v2826_v42 = vand.u32 2147483647, %v7673_v34  ;;  %v2827_v43 = vmul.f32 0.0625, %v7673_v34  ;;  %v280_v30 = vld [vmem:[%s8493_s9 + $0x200] sm:$0xff] }
  0xd7   : > { %vm2829_vm0 = vweird.f32 %v7673_v34  ;;  %v2823_v44 = vpack.c.b16 %v2821_v41, %v2812_v33  ;;  %v2831_v45 = vshrl.u32 %v7673_v34, 24  ;;  %v2835_v46 = vand.u32 2147483647, %v7681_v35 }
  0xd8   : > { %v2836_v47 = vmul.f32 0.0625, %v7681_v35  ;;  %v2828_v48 = vcvt.f32.f8e4m3b11 %v2827_v43  ;;  %vm8975_vm1 = vcmp.le.f32.partialorder %v2826_v42, 0.0009765625  ;;  %vm2838_vm2 = vweird.f32 %v7681_v35 }
  0xd9   : > { %v2840_v50 = vshrl.u32 %v7681_v35, 24  ;;  %v2824_v52 = vpack.c.b8 %v2823_v44, %v2822_v31  ;;  %v2832_v53 = vand.u32 128, %v2831_v45  ;;  %vm8980_vm3 = vcmp.le.f32.partialorder %v2835_v46, 0.0009765625  ;;  %v288_v46 = vld [vmem:[%s8493_s9 + $0x240] sm:$0xff] }
  0xda   : > { %v2837_v54 = vcvt.f32.f8e4m3b11 %v2836_v47  ;;  %v2830_v56 = vsel %vm2829_vm0, 127, %v2828_v48  ;;  %v2844_v58 = vand.u32 2147483647, %v7689_v36  ;;  %v2845_v59 = vmul.f32 0.0625, %v7689_v36  ;;  %v296_v47 = vld [vmem:[%s8493_s9 + $0x280] sm:$0xff] }
  0xdb   : > { %v2841_v57 = vand.u32 128, %v2840_v50  ;;  %7399 = vst [vmem:[%s8554_s27 + $0x68] sm:$0xff] %v2824_v52  ;;  %vm2847_vm4 = vweird.f32 %v7689_v36  ;;  %v2849_v61 = vshrl.u32 %v7689_v36, 24  ;;  %v785_v63 = vmul.f32 %v8502_v3, %v271_v51  ;;  %v304_v52 = vld [vmem:[%s8493_s9 + $0x2c0] sm:$0xff] }
  0xdc   : > { %v2839_v60 = vsel %vm2838_vm2, 127, %v2837_v54  ;;  %v2834_v0 = vsel %vm8975_vm1, %v2832_v53, %v2830_v56  ;;  %v2846_v2 = vcvt.f32.f8e4m3b11 %v2845_v59  ;;  %v2853_v4 = vand.u32 2147483647, %v7697_v38  ;;  %v281_v56 = vld [vmem:[%s8493_s9 + $0x208] sm:$0xff] }
  0xdd   : > { %v2843_v1 = vsel %vm8980_vm3, %v2841_v57, %v2839_v60  ;;  %v2850_v5 = vand.u32 128, %v2849_v61  ;;  %vm8991_vm5 = vcmp.le.f32.partialorder %v2844_v58, 0.0009765625  ;;  %v2854_v7 = vmul.f32 0.0625, %v7697_v38 }
  0xde   : > { %v2858_v8 = vshrl.u32 %v7697_v38, 24  ;;  %v2848_v9 = vsel %vm2847_vm4, 127, %v2846_v2  ;;  %vm2856_vm6 = vweird.f32 %v7697_v38  ;;  %vm8995_vm7 = vcmp.le.f32.partialorder %v2853_v4, 0.0009765625 }
  0xdf   : > { %v793_v11 = vmul.f32 %v8502_v3, %v279_v62  ;;  %v2855_v12 = vcvt.f32.f8e4m3b11 %v2854_v7  ;;  %v2862_v14 = vpack.c.b16 %v2843_v1, %v2834_v0  ;;  %v7674_v15 = vclamps-f32 %v769_v39, 448.0 }
  0xe0   : > { %v2859_v13 = vand.u32 128, %v2858_v8  ;;  %v2852_v16 = vsel %vm8991_vm5, %v2850_v5, %v2848_v9  ;;  %v7682_v17 = vclamps-f32 %v777_v40, 448.0  ;;  %v7690_v18 = vclamps-f32 %v785_v63, 448.0 }
  0xe1   : > { %v7698_v19 = vclamps-f32 %v793_v11, 448.0  ;;  %v2857_v20 = vsel %vm2856_vm6, 127, %v2855_v12  ;;  %v2866_v21 = vand.u32 2147483647, %v7674_v15  ;;  %v2867_v22 = vmul.f32 0.0625, %v7674_v15 }
  0xe2   : > { %vm2869_vm8 = vweird.f32 %v7674_v15  ;;  %v2861_v23 = vsel %vm8995_vm7, %v2859_v13, %v2857_v20  ;;  %v2871_v24 = vshrl.u32 %v7674_v15, 24  ;;  %v2875_v25 = vand.u32 2147483647, %v7682_v17 }
  0xe3   : > { %v2876_v26 = vmul.f32 0.0625, %v7682_v17  ;;  %v2863_v27 = vpack.c.b16 %v2861_v23, %v2852_v16  ;;  %v2868_v28 = vcvt.f32.f8e4m3b11 %v2867_v22  ;;  %vm9004_vm9 = vcmp.le.f32.partialorder %v2866_v21, 0.0009765625  ;;  %v289_v16 = vld [vmem:[%s8493_s9 + $0x248] sm:$0xff] }
  0xe4   : > { %vm2878_vm10 = vweird.f32 %v7682_v17  ;;  %v2872_v31 = vand.u32 128, %v2871_v24  ;;  %v2880_v33 = vshrl.u32 %v7682_v17, 24  ;;  %vm9009_vm11 = vcmp.le.f32.partialorder %v2875_v25, 0.0009765625 }
  0xe5   : > { %v2877_v32 = vcvt.f32.f8e4m3b11 %v2876_v26  ;;  %v2864_v35 = vpack.c.b8 %v2863_v27, %v2862_v14  ;;  %v2870_v36 = vsel %vm2869_vm8, 127, %v2868_v28  ;;  %v2884_v37 = vand.u32 2147483647, %v7690_v18 }
  0xe6   : > { %v2885_v38 = vmul.f32 0.0625, %v7690_v18  ;;  %v2881_v40 = vand.u32 128, %v2880_v33  ;;  %vm2887_vm12 = vweird.f32 %v7690_v18  ;;  %v794_v41 = vmul.f32 %v8502_v3, %v280_v30  ;;  %v305_v33 = vld [vmem:[%s8493_s9 + $0x2c8] sm:$0xff] }
  0xe7   : > { %v2879_v39 = vsel %vm2878_vm10, 127, %v2877_v32  ;;  %7400 = vst [vmem:[%s8554_s27 + $0x70] sm:$0xff] %v2864_v35  ;;  %v2874_v42 = vsel %vm9004_vm9, %v2872_v31, %v2870_v36  ;;  %v2889_v44 = vshrl.u32 %v7690_v18, 24  ;;  %v2893_v45 = vand.u32 2147483647, %v7698_v19  ;;  %v297_v32 = vld [vmem:[%s8493_s9 + $0x288] sm:$0xff] }
  0xe8   : > { %v2886_v43 = vcvt.f32.f8e4m3b11 %v2885_v38  ;;  %v2883_v48 = vsel %vm9009_vm11, %v2881_v40, %v2879_v39  ;;  %vm9021_vm13 = vcmp.le.f32.partialorder %v2884_v37, 0.0009765625  ;;  %v2894_v50 = vmul.f32 0.0625, %v7698_v19 }
  0xe9   : > { %v2898_v51 = vshrl.u32 %v7698_v19, 24  ;;  %v2890_v54 = vand.u32 128, %v2889_v44  ;;  %vm2896_vm14 = vweird.f32 %v7698_v19  ;;  %vm9026_vm15 = vcmp.le.f32.partialorder %v2893_v45, 0.0009765625 }
  0xea   : > { %v2888_v53 = vsel %vm2887_vm12, 127, %v2886_v43  ;;  %v2895_v57 = vcvt.f32.f8e4m3b11 %v2894_v50  ;;  %v802_v59 = vmul.f32 %v8502_v3, %v288_v46  ;;  %v810_v60 = vmul.f32 %v8502_v3, %v296_v47 }
  0xeb   : > { %v2899_v58 = vand.u32 128, %v2898_v51  ;;  %v2892_v61 = vsel %vm9021_vm13, %v2890_v54, %v2888_v53  ;;  %v2902_v62 = vpack.c.b16 %v2883_v48, %v2874_v42  ;;  %v818_v63 = vmul.f32 %v8502_v3, %v304_v52 }
  0xec   : > { %v7699_v0 = vclamps-f32 %v794_v41, 448.0  ;;  %v2897_v1 = vsel %vm2896_vm14, 127, %v2895_v57  ;;  %v7707_v2 = vclamps-f32 %v802_v59, 448.0  ;;  %v7715_v4 = vclamps-f32 %v810_v60, 448.0  ;;  %v282_v41 = vld [vmem:[%s8493_s9 + $0x210] sm:$0xff] }
  0xed   : > { %v795_v5 = vmul.f32 %v8502_v3, %v281_v56  ;;  %v2901_v6 = vsel %vm9026_vm15, %v2899_v58, %v2897_v1  ;;  %v7723_v7 = vclamps-f32 %v818_v63, 448.0  ;;  %v803_v27 = vmul.f32 %v8502_v3, %v289_v16 }
  0xee   : > { %v2906_v8 = vand.u32 2147483647, %v7699_v0  ;;  %v2907_v9 = vmul.f32 0.0625, %v7699_v0  ;;  %v2903_v10 = vpack.c.b16 %v2901_v6, %v2892_v61  ;;  %vm2909_vm0 = vweird.f32 %v7699_v0 }
  0xef   : > { %v2911_v11 = vshrl.u32 %v7699_v0, 24  ;;  %v2915_v12 = vand.u32 2147483647, %v7707_v2  ;;  %v2916_v15 = vmul.f32 0.0625, %v7707_v2  ;;  %vm2918_vm2 = vweird.f32 %v7707_v2  ;;  %v290_v0 = vld [vmem:[%s8493_s9 + $0x250] sm:$0xff] }
  0xf0   : > { %v2908_v13 = vcvt.f32.f8e4m3b11 %v2907_v9  ;;  %vm9039_vm1 = vcmp.le.f32.partialorder %v2906_v8, 0.0009765625  ;;  %v2904_v17 = vpack.c.b8 %v2903_v10, %v2902_v62  ;;  %v2920_v19 = vshrl.u32 %v7707_v2, 24 }
  0xf1   : > { %v2912_v18 = vand.u32 128, %v2911_v11  ;;  %vm9044_vm3 = vcmp.le.f32.partialorder %v2915_v12, 0.0009765625  ;;  %v2917_v22 = vcvt.f32.f8e4m3b11 %v2916_v15  ;;  %v2924_v23 = vand.u32 2147483647, %v7715_v4  ;;  %v298_v12 = vld [vmem:[%s8493_s9 + $0x290] sm:$0xff] }
  0xf2   : > { %v2910_v21 = vsel %vm2909_vm0, 127, %v2908_v13  ;;  %v2925_v24 = vmul.f32 0.0625, %v7715_v4  ;;  %7401 = vst [vmem:[%s8554_s27 + $0x78] sm:$0xff] %v2904_v17  ;;  %v2921_v25 = vand.u32 128, %v2920_v19  ;;  %vm2927_vm4 = vweird.f32 %v7715_v4 }
  0xf3   : > { %v2929_v26 = vshrl.u32 %v7715_v4, 24  ;;  %v2914_v28 = vsel %vm9039_vm1, %v2912_v18, %v2910_v21  ;;  %v2919_v29 = vsel %vm2918_vm2, 127, %v2917_v22  ;;  %v2933_v31 = vand.u32 2147483647, %v7723_v7  ;;  %v306_v18 = vld [vmem:[%s8493_s9 + $0x2d0] sm:$0xff] }
  0xf4   : > { %v2926_v30 = vcvt.f32.f8e4m3b11 %v2925_v24  ;;  %v2923_v34 = vsel %vm9044_vm3, %v2921_v25, %v2919_v29  ;;  %vm9057_vm5 = vcmp.le.f32.partialorder %v2924_v23, 0.0009765625  ;;  %v2934_v37 = vmul.f32 0.0625, %v7723_v7 }
  0xf5   : > { %v2930_v35 = vand.u32 128, %v2929_v26  ;;  %vm2936_vm6 = vweird.f32 %v7723_v7  ;;  %v2938_v39 = vshrl.u32 %v7723_v7, 24  ;;  %vm9061_vm7 = vcmp.le.f32.partialorder %v2933_v31, 0.0009765625  ;;  %v283_v26 = vld [vmem:[%s8493_s9 + $0x218] sm:$0xff] }
  0xf6   : > { %v2928_v38 = vsel %vm2927_vm4, 127, %v2926_v30  ;;  %v2935_v42 = vcvt.f32.f8e4m3b11 %v2934_v37  ;;  %v2942_v43 = vpack.c.b16 %v2923_v34, %v2914_v28  ;;  %v811_v44 = vmul.f32 %v8502_v3, %v297_v32 }
  0xf7   : > { %v819_v45 = vmul.f32 %v8502_v3, %v305_v33  ;;  %v2932_v46 = vsel %vm9057_vm5, %v2930_v35, %v2928_v38  ;;  %v2939_v47 = vand.u32 128, %v2938_v39  ;;  %v7700_v48 = vclamps-f32 %v795_v5, 448.0 }
  0xf8   : > { %v7708_v49 = vclamps-f32 %v803_v27, 448.0  ;;  %v2937_v50 = vsel %vm2936_vm6, 127, %v2935_v42  ;;  %v7716_v51 = vclamps-f32 %v811_v44, 448.0  ;;  %v796_v53 = vmul.f32 %v8502_v3, %v282_v41  ;;  %v291_v27 = vld [vmem:[%s8493_s9 + $0x258] sm:$0xff] }
  0xf9   : > { %v7724_v52 = vclamps-f32 %v819_v45, 448.0  ;;  %v2941_v54 = vsel %vm9061_vm7, %v2939_v47, %v2937_v50  ;;  %v2946_v55 = vand.u32 2147483647, %v7700_v48  ;;  %v2947_v56 = vmul.f32 0.0625, %v7700_v48  ;;  %v299_v50 = vld [vmem:[%s8493_s9 + $0x298] sm:$0xff] }
  0xfa   : > { %vm2949_vm8 = vweird.f32 %v7700_v48  ;;  %v2943_v57 = vpack.c.b16 %v2941_v54, %v2932_v46  ;;  %v2951_v58 = vshrl.u32 %v7700_v48, 24  ;;  %v2955_v59 = vand.u32 2147483647, %v7708_v49 }
  0xfb   : > { %v2956_v60 = vmul.f32 0.0625, %v7708_v49  ;;  %v2948_v61 = vcvt.f32.f8e4m3b11 %v2947_v56  ;;  %vm9073_vm9 = vcmp.le.f32.partialorder %v2946_v55, 0.0009765625  ;;  %vm2958_vm10 = vweird.f32 %v7708_v49 }
  0xfc   : > { %v2960_v63 = vshrl.u32 %v7708_v49, 24  ;;  %v2944_v1 = vpack.c.b8 %v2943_v57, %v2942_v43  ;;  %v2952_v2 = vand.u32 128, %v2951_v58  ;;  %vm9078_vm11 = vcmp.le.f32.partialorder %v2955_v59, 0.0009765625 }
  0xfd   : > { %v2957_v4 = vcvt.f32.f8e4m3b11 %v2956_v60  ;;  %v2950_v6 = vsel %vm2949_vm8, 127, %v2948_v61  ;;  %v2964_v8 = vand.u32 2147483647, %v7716_v51  ;;  %v2965_v9 = vmul.f32 0.0625, %v7716_v51  ;;  %v307_v61 = vld [vmem:[%s8493_s9 + $0x2d8] sm:$0xff] }
  0xfe   : > { %v2961_v7 = vand.u32 128, %v2960_v63  ;;  %7402 = vst [vmem:[%s8554_s27 + $0x80] sm:$0xff] %v2944_v1  ;;  %vm2967_vm12 = vweird.f32 %v7716_v51  ;;  %v2969_v11 = vshrl.u32 %v7716_v51, 24  ;;  %v804_v13 = vmul.f32 %v8502_v3, %v290_v0 }
  0xff   : > { %v2959_v10 = vsel %vm2958_vm10, 127, %v2957_v4  ;;  %v2954_v14 = vsel %vm9073_vm9, %v2952_v2, %v2950_v6  ;;  %v2966_v16 = vcvt.f32.f8e4m3b11 %v2965_v9  ;;  %v2973_v17 = vand.u32 2147483647, %v7724_v52 }
 0x100   : > { %v2963_v15 = vsel %vm9078_vm11, %v2961_v7, %v2959_v10  ;;  %v2970_v19 = vand.u32 128, %v2969_v11  ;;  %vm9090_vm13 = vcmp.le.f32.partialorder %v2964_v8, 0.0009765625  ;;  %v2974_v21 = vmul.f32 0.0625, %v7724_v52 }
 0x101   : > { %v2978_v22 = vshrl.u32 %v7724_v52, 24  ;;  %v2968_v23 = vsel %vm2967_vm12, 127, %v2966_v16  ;;  %vm2976_vm14 = vweird.f32 %v7724_v52  ;;  %vm9094_vm15 = vcmp.le.f32.partialorder %v2973_v17, 0.0009765625 }
 0x102   : > { %v812_v25 = vmul.f32 %v8502_v3, %v298_v12  ;;  %v2975_v28 = vcvt.f32.f8e4m3b11 %v2974_v21  ;;  %v2982_v30 = vpack.c.b16 %v2963_v15, %v2954_v14  ;;  %v820_v31 = vmul.f32 %v8502_v3, %v306_v18 }
 0x103   : > { %v2979_v29 = vand.u32 128, %v2978_v22  ;;  %v2972_v32 = vsel %vm9090_vm13, %v2970_v19, %v2968_v23  ;;  %v7701_v33 = vclamps-f32 %v796_v53, 448.0  ;;  %v7709_v34 = vclamps-f32 %v804_v13, 448.0 }
 0x104   : > { %v7717_v35 = vclamps-f32 %v812_v25, 448.0  ;;  %v2977_v36 = vsel %vm2976_vm14, 127, %v2975_v28  ;;  %v7725_v37 = vclamps-f32 %v820_v31, 448.0  ;;  %v797_v38 = vmul.f32 %v8502_v3, %v283_v26 }
 0x105   : > { %v805_v39 = vmul.f32 %v8502_v3, %v291_v27  ;;  %v2981_v40 = vsel %vm9094_vm15, %v2979_v29, %v2977_v36  ;;  %v2986_v41 = vand.u32 2147483647, %v7701_v33  ;;  %v2987_v42 = vmul.f32 0.0625, %v7701_v33  ;;  %v284_v29 = vld [vmem:[%s8493_s9 + $0x220] sm:$0xff] }
 0x106   : > { %vm2989_vm0 = vweird.f32 %v7701_v33  ;;  %v2983_v43 = vpack.c.b16 %v2981_v40, %v2972_v32  ;;  %v2991_v44 = vshrl.u32 %v7701_v33, 24  ;;  %v2995_v45 = vand.u32 2147483647, %v7709_v34 }
 0x107   : > { %v2996_v46 = vmul.f32 0.0625, %v7709_v34  ;;  %v2988_v47 = vcvt.f32.f8e4m3b11 %v2987_v42  ;;  %vm9108_vm1 = vcmp.le.f32.partialorder %v2986_v41, 0.0009765625  ;;  %vm2998_vm2 = vweird.f32 %v7709_v34 }
 0x108   : > { %v3000_v49 = vshrl.u32 %v7709_v34, 24  ;;  %v2984_v51 = vpack.c.b8 %v2983_v43, %v2982_v30  ;;  %v2992_v52 = vand.u32 128, %v2991_v44  ;;  %vm9113_vm3 = vcmp.le.f32.partialorder %v2995_v45, 0.0009765625  ;;  %v292_v45 = vld [vmem:[%s8493_s9 + $0x260] sm:$0xff] }
 0x109   : > { %v2997_v53 = vcvt.f32.f8e4m3b11 %v2996_v46  ;;  %v2990_v55 = vsel %vm2989_vm0, 127, %v2988_v47  ;;  %v3004_v57 = vand.u32 2147483647, %v7717_v35  ;;  %v3005_v58 = vmul.f32 0.0625, %v7717_v35  ;;  %v300_v46 = vld [vmem:[%s8493_s9 + $0x2a0] sm:$0xff] }
 0x10a   : > { %v3001_v56 = vand.u32 128, %v3000_v49  ;;  %7403 = vst [vmem:[%s8554_s27 + $0x88] sm:$0xff] %v2984_v51  ;;  %vm3007_vm4 = vweird.f32 %v7717_v35  ;;  %v3009_v60 = vshrl.u32 %v7717_v35, 24  ;;  %v813_v62 = vmul.f32 %v8502_v3, %v299_v50  ;;  %v308_v51 = vld [vmem:[%s8493_s9 + $0x2e0] sm:$0xff] }
 0x10b   : > { %v2999_v59 = vsel %vm2998_vm2, 127, %v2997_v53  ;;  %v2994_v63 = vsel %vm9108_vm1, %v2992_v52, %v2990_v55  ;;  %v3006_v1 = vcvt.f32.f8e4m3b11 %v3005_v58  ;;  %v3013_v2 = vand.u32 2147483647, %v7725_v37  ;;  %v285_v55 = vld [vmem:[%s8493_s9 + $0x228] sm:$0xff] }
 0x10c   : > { %v3003_v0 = vsel %vm9113_vm3, %v3001_v56, %v2999_v59  ;;  %v3010_v4 = vand.u32 128, %v3009_v60  ;;  %vm9124_vm5 = vcmp.le.f32.partialorder %v3004_v57, 0.0009765625  ;;  %v3014_v6 = vmul.f32 0.0625, %v7725_v37 }
 0x10d   : > { %v3018_v7 = vshrl.u32 %v7725_v37, 24  ;;  %v3008_v8 = vsel %vm3007_vm4, 127, %v3006_v1  ;;  %vm3016_vm6 = vweird.f32 %v7725_v37  ;;  %vm9128_vm7 = vcmp.le.f32.partialorder %v3013_v2, 0.0009765625 }
 0x10e   : > { %v821_v10 = vmul.f32 %v8502_v3, %v307_v61  ;;  %v3015_v11 = vcvt.f32.f8e4m3b11 %v3014_v6  ;;  %v3022_v13 = vpack.c.b16 %v3003_v0, %v2994_v63  ;;  %v7702_v14 = vclamps-f32 %v797_v38, 448.0 }
 0x10f   : > { %v3019_v12 = vand.u32 128, %v3018_v7  ;;  %v3012_v15 = vsel %vm9124_vm5, %v3010_v4, %v3008_v8  ;;  %v7710_v16 = vclamps-f32 %v805_v39, 448.0  ;;  %v7718_v17 = vclamps-f32 %v813_v62, 448.0 }
 0x110   : > { %v7726_v18 = vclamps-f32 %v821_v10, 448.0  ;;  %v3017_v19 = vsel %vm3016_vm6, 127, %v3015_v11  ;;  %v3026_v20 = vand.u32 2147483647, %v7702_v14  ;;  %v3027_v21 = vmul.f32 0.0625, %v7702_v14 }
 0x111   : > { %vm3029_vm8 = vweird.f32 %v7702_v14  ;;  %v3021_v22 = vsel %vm9128_vm7, %v3019_v12, %v3017_v19  ;;  %v3031_v23 = vshrl.u32 %v7702_v14, 24  ;;  %v3035_v24 = vand.u32 2147483647, %v7710_v16 }
 0x112   : > { %v3036_v25 = vmul.f32 0.0625, %v7710_v16  ;;  %v3023_v26 = vpack.c.b16 %v3021_v22, %v3012_v15  ;;  %v3028_v27 = vcvt.f32.f8e4m3b11 %v3027_v21  ;;  %vm9137_vm9 = vcmp.le.f32.partialorder %v3026_v20, 0.0009765625  ;;  %v293_v15 = vld [vmem:[%s8493_s9 + $0x268] sm:$0xff] }
 0x113   : > { %vm3038_vm10 = vweird.f32 %v7710_v16  ;;  %v3032_v30 = vand.u32 128, %v3031_v23  ;;  %v3040_v32 = vshrl.u32 %v7710_v16, 24  ;;  %vm9142_vm11 = vcmp.le.f32.partialorder %v3035_v24, 0.0009765625 }
 0x114   : > { %v3037_v31 = vcvt.f32.f8e4m3b11 %v3036_v25  ;;  %v3024_v34 = vpack.c.b8 %v3023_v26, %v3022_v13  ;;  %v3030_v35 = vsel %vm3029_vm8, 127, %v3028_v27  ;;  %v3044_v36 = vand.u32 2147483647, %v7718_v17 }
 0x115   : > { %v3045_v37 = vmul.f32 0.0625, %v7718_v17  ;;  %v3041_v39 = vand.u32 128, %v3040_v32  ;;  %vm3047_vm12 = vweird.f32 %v7718_v17  ;;  %v798_v40 = vmul.f32 %v8502_v3, %v284_v29  ;;  %v309_v32 = vld [vmem:[%s8493_s9 + $0x2e8] sm:$0xff] }
 0x116   : > { %v3039_v38 = vsel %vm3038_vm10, 127, %v3037_v31  ;;  %7404 = vst [vmem:[%s8554_s27 + $0x90] sm:$0xff] %v3024_v34  ;;  %v3034_v41 = vsel %vm9137_vm9, %v3032_v30, %v3030_v35  ;;  %v3049_v43 = vshrl.u32 %v7718_v17, 24  ;;  %v3053_v44 = vand.u32 2147483647, %v7726_v18  ;;  %v301_v31 = vld [vmem:[%s8493_s9 + $0x2a8] sm:$0xff] }
 0x117   : > { %v3046_v42 = vcvt.f32.f8e4m3b11 %v3045_v37  ;;  %v3043_v47 = vsel %vm9142_vm11, %v3041_v39, %v3039_v38  ;;  %vm9154_vm13 = vcmp.le.f32.partialorder %v3044_v36, 0.0009765625  ;;  %v3054_v49 = vmul.f32 0.0625, %v7726_v18 }
 0x118   : > { %v3058_v50 = vshrl.u32 %v7726_v18, 24  ;;  %v3050_v53 = vand.u32 128, %v3049_v43  ;;  %vm3056_vm14 = vweird.f32 %v7726_v18  ;;  %vm9159_vm15 = vcmp.le.f32.partialorder %v3053_v44, 0.0009765625 }
 0x119   : > { %v3048_v52 = vsel %vm3047_vm12, 127, %v3046_v42  ;;  %v3055_v56 = vcvt.f32.f8e4m3b11 %v3054_v49  ;;  %v806_v58 = vmul.f32 %v8502_v3, %v292_v45  ;;  %v814_v59 = vmul.f32 %v8502_v3, %v300_v46 }
 0x11a   : > { %v3059_v57 = vand.u32 128, %v3058_v50  ;;  %v3052_v60 = vsel %vm9154_vm13, %v3050_v53, %v3048_v52  ;;  %v3062_v61 = vpack.c.b16 %v3043_v47, %v3034_v41  ;;  %v822_v62 = vmul.f32 %v8502_v3, %v308_v51 }
 0x11b   : > { %v7703_v63 = vclamps-f32 %v798_v40, 448.0  ;;  %v3057_v0 = vsel %vm3056_vm14, 127, %v3055_v56  ;;  %v7711_v1 = vclamps-f32 %v806_v58, 448.0  ;;  %v7719_v2 = vclamps-f32 %v814_v59, 448.0  ;;  %v286_v40 = vld [vmem:[%s8493_s9 + $0x230] sm:$0xff] }
 0x11c   : > { %v799_v4 = vmul.f32 %v8502_v3, %v285_v55  ;;  %v3061_v5 = vsel %vm9159_vm15, %v3059_v57, %v3057_v0  ;;  %v7727_v6 = vclamps-f32 %v822_v62, 448.0  ;;  %v807_v26 = vmul.f32 %v8502_v3, %v293_v15 }
 0x11d   : > { %v3066_v7 = vand.u32 2147483647, %v7703_v63  ;;  %v3067_v8 = vmul.f32 0.0625, %v7703_v63  ;;  %v3063_v9 = vpack.c.b16 %v3061_v5, %v3052_v60  ;;  %vm3069_vm0 = vweird.f32 %v7703_v63 }
 0x11e   : > { %v3071_v10 = vshrl.u32 %v7703_v63, 24  ;;  %v3075_v11 = vand.u32 2147483647, %v7711_v1  ;;  %v3076_v14 = vmul.f32 0.0625, %v7711_v1  ;;  %vm3078_vm2 = vweird.f32 %v7711_v1  ;;  %v294_v63 = vld [vmem:[%s8493_s9 + $0x270] sm:$0xff] }
 0x11f   : > { %v3068_v12 = vcvt.f32.f8e4m3b11 %v3067_v8  ;;  %vm9172_vm1 = vcmp.le.f32.partialorder %v3066_v7, 0.0009765625  ;;  %v3064_v16 = vpack.c.b8 %v3063_v9, %v3062_v61  ;;  %v3080_v18 = vshrl.u32 %v7711_v1, 24 }
 0x120   : > { %v3072_v17 = vand.u32 128, %v3071_v10  ;;  %vm9177_vm3 = vcmp.le.f32.partialorder %v3075_v11, 0.0009765625  ;;  %v3077_v21 = vcvt.f32.f8e4m3b11 %v3076_v14  ;;  %v3084_v22 = vand.u32 2147483647, %v7719_v2  ;;  %v302_v11 = vld [vmem:[%s8493_s9 + $0x2b0] sm:$0xff] }
 0x121   : > { %v3070_v20 = vsel %vm3069_vm0, 127, %v3068_v12  ;;  %v3085_v23 = vmul.f32 0.0625, %v7719_v2  ;;  %7405 = vst [vmem:[%s8554_s27 + $0x98] sm:$0xff] %v3064_v16  ;;  %v3081_v24 = vand.u32 128, %v3080_v18  ;;  %vm3087_vm4 = vweird.f32 %v7719_v2 }
 0x122   : > { %v3089_v25 = vshrl.u32 %v7719_v2, 24  ;;  %v3074_v27 = vsel %vm9172_vm1, %v3072_v17, %v3070_v20  ;;  %v3079_v28 = vsel %vm3078_vm2, 127, %v3077_v21  ;;  %v3093_v30 = vand.u32 2147483647, %v7727_v6  ;;  %v310_v17 = vld [vmem:[%s8493_s9 + $0x2f0] sm:$0xff] }
 0x123   : > { %v3086_v29 = vcvt.f32.f8e4m3b11 %v3085_v23  ;;  %v3083_v33 = vsel %vm9177_vm3, %v3081_v24, %v3079_v28  ;;  %vm9190_vm5 = vcmp.le.f32.partialorder %v3084_v22, 0.0009765625  ;;  %v3094_v36 = vmul.f32 0.0625, %v7727_v6 }
 0x124   : > { %v3090_v34 = vand.u32 128, %v3089_v25  ;;  %vm3096_vm6 = vweird.f32 %v7727_v6  ;;  %v3098_v38 = vshrl.u32 %v7727_v6, 24  ;;  %vm9194_vm7 = vcmp.le.f32.partialorder %v3093_v30, 0.0009765625  ;;  %v287_v25 = vld [vmem:[%s8493_s9 + $0x238] sm:$0xff] }
 0x125   : > { %v3088_v37 = vsel %vm3087_vm4, 127, %v3086_v29  ;;  %v3095_v41 = vcvt.f32.f8e4m3b11 %v3094_v36  ;;  %v3102_v42 = vpack.c.b16 %v3083_v33, %v3074_v27  ;;  %v815_v43 = vmul.f32 %v8502_v3, %v301_v31 }
 0x126   : > { %v823_v44 = vmul.f32 %v8502_v3, %v309_v32  ;;  %v3092_v45 = vsel %vm9190_vm5, %v3090_v34, %v3088_v37  ;;  %v3099_v46 = vand.u32 128, %v3098_v38  ;;  %v7704_v47 = vclamps-f32 %v799_v4, 448.0 }
 0x127   : > { %v7712_v48 = vclamps-f32 %v807_v26, 448.0  ;;  %v3097_v49 = vsel %vm3096_vm6, 127, %v3095_v41  ;;  %v7720_v50 = vclamps-f32 %v815_v43, 448.0  ;;  %v800_v52 = vmul.f32 %v8502_v3, %v286_v40  ;;  %v295_v26 = vld [vmem:[%s8493_s9 + $0x278] sm:$0xff] }
 0x128   : > { %v7728_v51 = vclamps-f32 %v823_v44, 448.0  ;;  %v3101_v53 = vsel %vm9194_vm7, %v3099_v46, %v3097_v49  ;;  %v3106_v54 = vand.u32 2147483647, %v7704_v47  ;;  %v3107_v55 = vmul.f32 0.0625, %v7704_v47  ;;  %v303_v49 = vld [vmem:[%s8493_s9 + $0x2b8] sm:$0xff] }
 0x129   : > { %vm3109_vm8 = vweird.f32 %v7704_v47  ;;  %v3103_v56 = vpack.c.b16 %v3101_v53, %v3092_v45  ;;  %v3111_v57 = vshrl.u32 %v7704_v47, 24  ;;  %v3115_v58 = vand.u32 2147483647, %v7712_v48 }
 0x12a   : > { %v3116_v59 = vmul.f32 0.0625, %v7712_v48  ;;  %v3108_v60 = vcvt.f32.f8e4m3b11 %v3107_v55  ;;  %vm9206_vm9 = vcmp.le.f32.partialorder %v3106_v54, 0.0009765625  ;;  %vm3118_vm10 = vweird.f32 %v7712_v48 }
 0x12b   : > { %v3120_v62 = vshrl.u32 %v7712_v48, 24  ;;  %v3104_v0 = vpack.c.b8 %v3103_v56, %v3102_v42  ;;  %v3112_v1 = vand.u32 128, %v3111_v57  ;;  %vm9211_vm11 = vcmp.le.f32.partialorder %v3115_v58, 0.0009765625 }
 0x12c   : > { %v3117_v2 = vcvt.f32.f8e4m3b11 %v3116_v59  ;;  %v3110_v5 = vsel %vm3109_vm8, 127, %v3108_v60  ;;  %v3124_v7 = vand.u32 2147483647, %v7720_v50  ;;  %v3125_v8 = vmul.f32 0.0625, %v7720_v50  ;;  %v311_v60 = vld [vmem:[%s8493_s9 + $0x2f8] sm:$0xff] }
 0x12d   : > { %v3121_v6 = vand.u32 128, %v3120_v62  ;;  %7406 = vst [vmem:[%s8554_s27 + $0xa0] sm:$0xff] %v3104_v0  ;;  %vm3127_vm12 = vweird.f32 %v7720_v50  ;;  %v3129_v10 = vshrl.u32 %v7720_v50, 24  ;;  %v808_v12 = vmul.f32 %v8502_v3, %v294_v63 }
 0x12e   : > { %v3119_v9 = vsel %vm3118_vm10, 127, %v3117_v2  ;;  %v3114_v13 = vsel %vm9206_vm9, %v3112_v1, %v3110_v5  ;;  %v3126_v15 = vcvt.f32.f8e4m3b11 %v3125_v8  ;;  %v3133_v16 = vand.u32 2147483647, %v7728_v51 }
 0x12f   : > { %v3123_v14 = vsel %vm9211_vm11, %v3121_v6, %v3119_v9  ;;  %v3130_v18 = vand.u32 128, %v3129_v10  ;;  %vm9223_vm13 = vcmp.le.f32.partialorder %v3124_v7, 0.0009765625  ;;  %v3134_v20 = vmul.f32 0.0625, %v7728_v51 }
 0x130   : > { %v3138_v21 = vshrl.u32 %v7728_v51, 24  ;;  %v3128_v22 = vsel %vm3127_vm12, 127, %v3126_v15  ;;  %vm3136_vm14 = vweird.f32 %v7728_v51  ;;  %vm9227_vm15 = vcmp.le.f32.partialorder %v3133_v16, 0.0009765625 }
 0x131   : > { %v816_v24 = vmul.f32 %v8502_v3, %v302_v11  ;;  %v3135_v27 = vcvt.f32.f8e4m3b11 %v3134_v20  ;;  %v3142_v29 = vpack.c.b16 %v3123_v14, %v3114_v13  ;;  %v824_v30 = vmul.f32 %v8502_v3, %v310_v17 }
 0x132   : > { %v3139_v28 = vand.u32 128, %v3138_v21  ;;  %v3132_v31 = vsel %vm9223_vm13, %v3130_v18, %v3128_v22  ;;  %v7705_v32 = vclamps-f32 %v800_v52, 448.0  ;;  %v7713_v33 = vclamps-f32 %v808_v12, 448.0 }
 0x133   : > { %v7721_v34 = vclamps-f32 %v816_v24, 448.0  ;;  %v3137_v35 = vsel %vm3136_vm14, 127, %v3135_v27  ;;  %v7729_v36 = vclamps-f32 %v824_v30, 448.0  ;;  %v801_v37 = vmul.f32 %v8502_v3, %v287_v25 }
 0x134   : > { %v809_v38 = vmul.f32 %v8502_v3, %v295_v26  ;;  %v3141_v39 = vsel %vm9227_vm15, %v3139_v28, %v3137_v35  ;;  %v3146_v40 = vand.u32 2147483647, %v7705_v32  ;;  %v3147_v41 = vmul.f32 0.0625, %v7705_v32  ;;  %v312_v28 = vld [vmem:[%s8493_s9 + $0x300] sm:$0xff] }
 0x135   : > { %vm3149_vm0 = vweird.f32 %v7705_v32  ;;  %v3143_v42 = vpack.c.b16 %v3141_v39, %v3132_v31  ;;  %v3151_v43 = vshrl.u32 %v7705_v32, 24  ;;  %v3155_v44 = vand.u32 2147483647, %v7713_v33 }
 0x136   : > { %v3156_v45 = vmul.f32 0.0625, %v7713_v33  ;;  %v3148_v46 = vcvt.f32.f8e4m3b11 %v3147_v41  ;;  %vm9241_vm1 = vcmp.le.f32.partialorder %v3146_v40, 0.0009765625  ;;  %vm3158_vm2 = vweird.f32 %v7713_v33 }
 0x137   : > { %v3160_v48 = vshrl.u32 %v7713_v33, 24  ;;  %v3144_v50 = vpack.c.b8 %v3143_v42, %v3142_v29  ;;  %v3152_v51 = vand.u32 128, %v3151_v43  ;;  %vm9246_vm3 = vcmp.le.f32.partialorder %v3155_v44, 0.0009765625  ;;  %v320_v44 = vld [vmem:[%s8493_s9 + $0x340] sm:$0xff] }
 0x138   : > { %v3157_v52 = vcvt.f32.f8e4m3b11 %v3156_v45  ;;  %v3150_v54 = vsel %vm3149_vm0, 127, %v3148_v46  ;;  %v3164_v56 = vand.u32 2147483647, %v7721_v34  ;;  %v3165_v57 = vmul.f32 0.0625, %v7721_v34  ;;  %v328_v45 = vld [vmem:[%s8493_s9 + $0x380] sm:$0xff] }
 0x139   : > { %v3161_v55 = vand.u32 128, %v3160_v48  ;;  %7407 = vst [vmem:[%s8554_s27 + $0xa8] sm:$0xff] %v3144_v50  ;;  %vm3167_vm4 = vweird.f32 %v7721_v34  ;;  %v3169_v59 = vshrl.u32 %v7721_v34, 24  ;;  %v817_v61 = vmul.f32 %v8502_v3, %v303_v49  ;;  %v336_v50 = vld [vmem:[%s8493_s9 + $0x3c0] sm:$0xff] }
 0x13a   : > { %v3159_v58 = vsel %vm3158_vm2, 127, %v3157_v52  ;;  %v3154_v62 = vsel %vm9241_vm1, %v3152_v51, %v3150_v54  ;;  %v3166_v0 = vcvt.f32.f8e4m3b11 %v3165_v57  ;;  %v3173_v1 = vand.u32 2147483647, %v7729_v36  ;;  %v313_v54 = vld [vmem:[%s8493_s9 + $0x308] sm:$0xff] }
 0x13b   : > { %v3163_v63 = vsel %vm9246_vm3, %v3161_v55, %v3159_v58  ;;  %v3170_v2 = vand.u32 128, %v3169_v59  ;;  %vm9257_vm5 = vcmp.le.f32.partialorder %v3164_v56, 0.0009765625  ;;  %v3174_v5 = vmul.f32 0.0625, %v7729_v36 }
 0x13c   : > { %v3178_v6 = vshrl.u32 %v7729_v36, 24  ;;  %v3168_v7 = vsel %vm3167_vm4, 127, %v3166_v0  ;;  %vm3176_vm6 = vweird.f32 %v7729_v36  ;;  %vm9261_vm7 = vcmp.le.f32.partialorder %v3173_v1, 0.0009765625 }
 0x13d   : > { %v825_v9 = vmul.f32 %v8502_v3, %v311_v60  ;;  %v3175_v10 = vcvt.f32.f8e4m3b11 %v3174_v5  ;;  %v3182_v12 = vpack.c.b16 %v3163_v63, %v3154_v62  ;;  %v7706_v13 = vclamps-f32 %v801_v37, 448.0 }
 0x13e   : > { %v3179_v11 = vand.u32 128, %v3178_v6  ;;  %v3172_v14 = vsel %vm9257_vm5, %v3170_v2, %v3168_v7  ;;  %v7714_v15 = vclamps-f32 %v809_v38, 448.0  ;;  %v7722_v16 = vclamps-f32 %v817_v61, 448.0 }
 0x13f   : > { %v7730_v17 = vclamps-f32 %v825_v9, 448.0  ;;  %v3177_v18 = vsel %vm3176_vm6, 127, %v3175_v10  ;;  %v3186_v19 = vand.u32 2147483647, %v7706_v13  ;;  %v3187_v20 = vmul.f32 0.0625, %v7706_v13 }
 0x140   : > { %vm3189_vm8 = vweird.f32 %v7706_v13  ;;  %v3181_v21 = vsel %vm9261_vm7, %v3179_v11, %v3177_v18  ;;  %v3191_v22 = vshrl.u32 %v7706_v13, 24  ;;  %v3195_v23 = vand.u32 2147483647, %v7714_v15 }
 0x141   : > { %v3196_v24 = vmul.f32 0.0625, %v7714_v15  ;;  %v3183_v25 = vpack.c.b16 %v3181_v21, %v3172_v14  ;;  %v3188_v26 = vcvt.f32.f8e4m3b11 %v3187_v20  ;;  %vm9270_vm9 = vcmp.le.f32.partialorder %v3186_v19, 0.0009765625  ;;  %v321_v14 = vld [vmem:[%s8493_s9 + $0x348] sm:$0xff] }
 0x142   : > { %vm3198_vm10 = vweird.f32 %v7714_v15  ;;  %v3192_v29 = vand.u32 128, %v3191_v22  ;;  %v3200_v31 = vshrl.u32 %v7714_v15, 24  ;;  %vm9275_vm11 = vcmp.le.f32.partialorder %v3195_v23, 0.0009765625 }
 0x143   : > { %v3197_v30 = vcvt.f32.f8e4m3b11 %v3196_v24  ;;  %v3184_v33 = vpack.c.b8 %v3183_v25, %v3182_v12  ;;  %v3190_v34 = vsel %vm3189_vm8, 127, %v3188_v26  ;;  %v3204_v35 = vand.u32 2147483647, %v7722_v16 }
 0x144   : > { %v3205_v36 = vmul.f32 0.0625, %v7722_v16  ;;  %v3201_v38 = vand.u32 128, %v3200_v31  ;;  %vm3207_vm12 = vweird.f32 %v7722_v16  ;;  %v826_v39 = vmul.f32 %v8502_v3, %v312_v28  ;;  %v337_v31 = vld [vmem:[%s8493_s9 + $0x3c8] sm:$0xff] }
 0x145   : > { %v3199_v37 = vsel %vm3198_vm10, 127, %v3197_v30  ;;  %7408 = vst [vmem:[%s8554_s27 + $0xb0] sm:$0xff] %v3184_v33  ;;  %v3194_v40 = vsel %vm9270_vm9, %v3192_v29, %v3190_v34  ;;  %v3209_v42 = vshrl.u32 %v7722_v16, 24  ;;  %v3213_v43 = vand.u32 2147483647, %v7730_v17  ;;  %v329_v30 = vld [vmem:[%s8493_s9 + $0x388] sm:$0xff] }
 0x146   : > { %v3206_v41 = vcvt.f32.f8e4m3b11 %v3205_v36  ;;  %v3203_v46 = vsel %vm9275_vm11, %v3201_v38, %v3199_v37  ;;  %vm9287_vm13 = vcmp.le.f32.partialorder %v3204_v35, 0.0009765625  ;;  %v3214_v48 = vmul.f32 0.0625, %v7730_v17 }
 0x147   : > { %v3218_v49 = vshrl.u32 %v7730_v17, 24  ;;  %v3210_v52 = vand.u32 128, %v3209_v42  ;;  %vm3216_vm14 = vweird.f32 %v7730_v17  ;;  %vm9292_vm15 = vcmp.le.f32.partialorder %v3213_v43, 0.0009765625 }
 0x148   : > { %v3208_v51 = vsel %vm3207_vm12, 127, %v3206_v41  ;;  %v3215_v55 = vcvt.f32.f8e4m3b11 %v3214_v48  ;;  %v834_v57 = vmul.f32 %v8502_v3, %v320_v44  ;;  %v842_v58 = vmul.f32 %v8502_v3, %v328_v45 }
 0x149   : > { %v3219_v56 = vand.u32 128, %v3218_v49  ;;  %v3212_v59 = vsel %vm9287_vm13, %v3210_v52, %v3208_v51  ;;  %v3222_v60 = vpack.c.b16 %v3203_v46, %v3194_v40  ;;  %v850_v61 = vmul.f32 %v8502_v3, %v336_v50 }
 0x14a   : > { %v7731_v62 = vclamps-f32 %v826_v39, 448.0  ;;  %v3217_v63 = vsel %vm3216_vm14, 127, %v3215_v55  ;;  %v7739_v0 = vclamps-f32 %v834_v57, 448.0  ;;  %v7747_v1 = vclamps-f32 %v842_v58, 448.0  ;;  %v314_v39 = vld [vmem:[%s8493_s9 + $0x310] sm:$0xff] }
 0x14b   : > { %v827_v2 = vmul.f32 %v8502_v3, %v313_v54  ;;  %v3221_v4 = vsel %vm9292_vm15, %v3219_v56, %v3217_v63  ;;  %v7755_v5 = vclamps-f32 %v850_v61, 448.0  ;;  %v835_v25 = vmul.f32 %v8502_v3, %v321_v14 }
 0x14c   : > { %v3226_v6 = vand.u32 2147483647, %v7731_v62  ;;  %v3227_v7 = vmul.f32 0.0625, %v7731_v62  ;;  %v3223_v8 = vpack.c.b16 %v3221_v4, %v3212_v59  ;;  %vm3229_vm0 = vweird.f32 %v7731_v62 }
 0x14d   : > { %v3231_v9 = vshrl.u32 %v7731_v62, 24  ;;  %v3235_v10 = vand.u32 2147483647, %v7739_v0  ;;  %v3236_v13 = vmul.f32 0.0625, %v7739_v0  ;;  %vm3238_vm2 = vweird.f32 %v7739_v0  ;;  %v322_v62 = vld [vmem:[%s8493_s9 + $0x350] sm:$0xff] }
 0x14e   : > { %v3228_v11 = vcvt.f32.f8e4m3b11 %v3227_v7  ;;  %vm9305_vm1 = vcmp.le.f32.partialorder %v3226_v6, 0.0009765625  ;;  %v3224_v15 = vpack.c.b8 %v3223_v8, %v3222_v60  ;;  %v3240_v17 = vshrl.u32 %v7739_v0, 24 }
 0x14f   : > { %v3232_v16 = vand.u32 128, %v3231_v9  ;;  %vm9310_vm3 = vcmp.le.f32.partialorder %v3235_v10, 0.0009765625  ;;  %v3237_v20 = vcvt.f32.f8e4m3b11 %v3236_v13  ;;  %v3244_v21 = vand.u32 2147483647, %v7747_v1  ;;  %v330_v10 = vld [vmem:[%s8493_s9 + $0x390] sm:$0xff] }
 0x150   : > { %v3230_v19 = vsel %vm3229_vm0, 127, %v3228_v11  ;;  %v3245_v22 = vmul.f32 0.0625, %v7747_v1  ;;  %7409 = vst [vmem:[%s8554_s27 + $0xb8] sm:$0xff] %v3224_v15  ;;  %v3241_v23 = vand.u32 128, %v3240_v17  ;;  %vm3247_vm4 = vweird.f32 %v7747_v1 }
 0x151   : > { %v3249_v24 = vshrl.u32 %v7747_v1, 24  ;;  %v3234_v26 = vsel %vm9305_vm1, %v3232_v16, %v3230_v19  ;;  %v3239_v27 = vsel %vm3238_vm2, 127, %v3237_v20  ;;  %v3253_v29 = vand.u32 2147483647, %v7755_v5  ;;  %v338_v16 = vld [vmem:[%s8493_s9 + $0x3d0] sm:$0xff] }
 0x152   : > { %v3246_v28 = vcvt.f32.f8e4m3b11 %v3245_v22  ;;  %v3243_v32 = vsel %vm9310_vm3, %v3241_v23, %v3239_v27  ;;  %vm9323_vm5 = vcmp.le.f32.partialorder %v3244_v21, 0.0009765625  ;;  %v3254_v35 = vmul.f32 0.0625, %v7755_v5 }
 0x153   : > { %v3250_v33 = vand.u32 128, %v3249_v24  ;;  %vm3256_vm6 = vweird.f32 %v7755_v5  ;;  %v3258_v37 = vshrl.u32 %v7755_v5, 24  ;;  %vm9327_vm7 = vcmp.le.f32.partialorder %v3253_v29, 0.0009765625  ;;  %v315_v24 = vld [vmem:[%s8493_s9 + $0x318] sm:$0xff] }
 0x154   : > { %v3248_v36 = vsel %vm3247_vm4, 127, %v3246_v28  ;;  %v3255_v40 = vcvt.f32.f8e4m3b11 %v3254_v35  ;;  %v3262_v41 = vpack.c.b16 %v3243_v32, %v3234_v26  ;;  %v843_v42 = vmul.f32 %v8502_v3, %v329_v30 }
 0x155   : > { %v851_v43 = vmul.f32 %v8502_v3, %v337_v31  ;;  %v3252_v44 = vsel %vm9323_vm5, %v3250_v33, %v3248_v36  ;;  %v3259_v45 = vand.u32 128, %v3258_v37  ;;  %v7732_v46 = vclamps-f32 %v827_v2, 448.0 }
 0x156   : > { %v7740_v47 = vclamps-f32 %v835_v25, 448.0  ;;  %v3257_v48 = vsel %vm3256_vm6, 127, %v3255_v40  ;;  %v7748_v49 = vclamps-f32 %v843_v42, 448.0  ;;  %v828_v51 = vmul.f32 %v8502_v3, %v314_v39  ;;  %v323_v25 = vld [vmem:[%s8493_s9 + $0x358] sm:$0xff] }
 0x157   : > { %v7756_v50 = vclamps-f32 %v851_v43, 448.0  ;;  %v3261_v52 = vsel %vm9327_vm7, %v3259_v45, %v3257_v48  ;;  %v3266_v53 = vand.u32 2147483647, %v7732_v46  ;;  %v3267_v54 = vmul.f32 0.0625, %v7732_v46  ;;  %v331_v48 = vld [vmem:[%s8493_s9 + $0x398] sm:$0xff] }
 0x158   : > { %vm3269_vm8 = vweird.f32 %v7732_v46  ;;  %v3263_v55 = vpack.c.b16 %v3261_v52, %v3252_v44  ;;  %v3271_v56 = vshrl.u32 %v7732_v46, 24  ;;  %v3275_v57 = vand.u32 2147483647, %v7740_v47 }
 0x159   : > { %v3276_v58 = vmul.f32 0.0625, %v7740_v47  ;;  %v3268_v59 = vcvt.f32.f8e4m3b11 %v3267_v54  ;;  %vm9339_vm9 = vcmp.le.f32.partialorder %v3266_v53, 0.0009765625  ;;  %vm3278_vm10 = vweird.f32 %v7740_v47 }
 0x15a   : > { %v3280_v61 = vshrl.u32 %v7740_v47, 24  ;;  %v3264_v63 = vpack.c.b8 %v3263_v55, %v3262_v41  ;;  %v3272_v0 = vand.u32 128, %v3271_v56  ;;  %vm9344_vm11 = vcmp.le.f32.partialorder %v3275_v57, 0.0009765625 }
 0x15b   : > { %v3277_v1 = vcvt.f32.f8e4m3b11 %v3276_v58  ;;  %v3270_v4 = vsel %vm3269_vm8, 127, %v3268_v59  ;;  %v3284_v6 = vand.u32 2147483647, %v7748_v49  ;;  %v3285_v7 = vmul.f32 0.0625, %v7748_v49  ;;  %v339_v59 = vld [vmem:[%s8493_s9 + $0x3d8] sm:$0xff] }
 0x15c   : > { %v3281_v5 = vand.u32 128, %v3280_v61  ;;  %7410 = vst [vmem:[%s8554_s27 + $0xc0] sm:$0xff] %v3264_v63  ;;  %vm3287_vm12 = vweird.f32 %v7748_v49  ;;  %v3289_v9 = vshrl.u32 %v7748_v49, 24  ;;  %v836_v11 = vmul.f32 %v8502_v3, %v322_v62 }
 0x15d   : > { %v3279_v8 = vsel %vm3278_vm10, 127, %v3277_v1  ;;  %v3274_v12 = vsel %vm9339_vm9, %v3272_v0, %v3270_v4  ;;  %v3286_v14 = vcvt.f32.f8e4m3b11 %v3285_v7  ;;  %v3293_v15 = vand.u32 2147483647, %v7756_v50 }
 0x15e   : > { %v3283_v13 = vsel %vm9344_vm11, %v3281_v5, %v3279_v8  ;;  %v3290_v17 = vand.u32 128, %v3289_v9  ;;  %vm9356_vm13 = vcmp.le.f32.partialorder %v3284_v6, 0.0009765625  ;;  %v3294_v19 = vmul.f32 0.0625, %v7756_v50 }
 0x15f   : > { %v3298_v20 = vshrl.u32 %v7756_v50, 24  ;;  %v3288_v21 = vsel %vm3287_vm12, 127, %v3286_v14  ;;  %vm3296_vm14 = vweird.f32 %v7756_v50  ;;  %vm9360_vm15 = vcmp.le.f32.partialorder %v3293_v15, 0.0009765625 }
 0x160   : > { %v844_v23 = vmul.f32 %v8502_v3, %v330_v10  ;;  %v3295_v26 = vcvt.f32.f8e4m3b11 %v3294_v19  ;;  %v3302_v28 = vpack.c.b16 %v3283_v13, %v3274_v12  ;;  %v852_v29 = vmul.f32 %v8502_v3, %v338_v16 }
 0x161   : > { %v3299_v27 = vand.u32 128, %v3298_v20  ;;  %v3292_v30 = vsel %vm9356_vm13, %v3290_v17, %v3288_v21  ;;  %v7733_v31 = vclamps-f32 %v828_v51, 448.0  ;;  %v7741_v32 = vclamps-f32 %v836_v11, 448.0 }
 0x162   : > { %v7749_v33 = vclamps-f32 %v844_v23, 448.0  ;;  %v3297_v34 = vsel %vm3296_vm14, 127, %v3295_v26  ;;  %v7757_v35 = vclamps-f32 %v852_v29, 448.0  ;;  %v829_v36 = vmul.f32 %v8502_v3, %v315_v24 }
 0x163   : > { %v837_v37 = vmul.f32 %v8502_v3, %v323_v25  ;;  %v3301_v38 = vsel %vm9360_vm15, %v3299_v27, %v3297_v34  ;;  %v3306_v39 = vand.u32 2147483647, %v7733_v31  ;;  %v3307_v40 = vmul.f32 0.0625, %v7733_v31  ;;  %v316_v27 = vld [vmem:[%s8493_s9 + $0x320] sm:$0xff] }
 0x164   : > { %vm3309_vm0 = vweird.f32 %v7733_v31  ;;  %v3303_v41 = vpack.c.b16 %v3301_v38, %v3292_v30  ;;  %v3311_v42 = vshrl.u32 %v7733_v31, 24  ;;  %v3315_v43 = vand.u32 2147483647, %v7741_v32 }
 0x165   : > { %v3316_v44 = vmul.f32 0.0625, %v7741_v32  ;;  %v3308_v45 = vcvt.f32.f8e4m3b11 %v3307_v40  ;;  %vm9374_vm1 = vcmp.le.f32.partialorder %v3306_v39, 0.0009765625  ;;  %vm3318_vm2 = vweird.f32 %v7741_v32 }
 0x166   : > { %v3320_v47 = vshrl.u32 %v7741_v32, 24  ;;  %v3304_v49 = vpack.c.b8 %v3303_v41, %v3302_v28  ;;  %v3312_v50 = vand.u32 128, %v3311_v42  ;;  %vm9379_vm3 = vcmp.le.f32.partialorder %v3315_v43, 0.0009765625  ;;  %v324_v43 = vld [vmem:[%s8493_s9 + $0x360] sm:$0xff] }
 0x167   : > { %v3317_v51 = vcvt.f32.f8e4m3b11 %v3316_v44  ;;  %v3310_v53 = vsel %vm3309_vm0, 127, %v3308_v45  ;;  %v3324_v55 = vand.u32 2147483647, %v7749_v33  ;;  %v3325_v56 = vmul.f32 0.0625, %v7749_v33  ;;  %v332_v44 = vld [vmem:[%s8493_s9 + $0x3a0] sm:$0xff] }
 0x168   : > { %v3321_v54 = vand.u32 128, %v3320_v47  ;;  %7411 = vst [vmem:[%s8554_s27 + $0xc8] sm:$0xff] %v3304_v49  ;;  %vm3327_vm4 = vweird.f32 %v7749_v33  ;;  %v3329_v58 = vshrl.u32 %v7749_v33, 24  ;;  %v845_v60 = vmul.f32 %v8502_v3, %v331_v48  ;;  %v340_v49 = vld [vmem:[%s8493_s9 + $0x3e0] sm:$0xff] }
 0x169   : > { %v3319_v57 = vsel %vm3318_vm2, 127, %v3317_v51  ;;  %v3314_v61 = vsel %vm9374_vm1, %v3312_v50, %v3310_v53  ;;  %v3326_v63 = vcvt.f32.f8e4m3b11 %v3325_v56  ;;  %v3333_v0 = vand.u32 2147483647, %v7757_v35  ;;  %v317_v53 = vld [vmem:[%s8493_s9 + $0x328] sm:$0xff] }
 0x16a   : > { %v3323_v62 = vsel %vm9379_vm3, %v3321_v54, %v3319_v57  ;;  %v3330_v1 = vand.u32 128, %v3329_v58  ;;  %vm9390_vm5 = vcmp.le.f32.partialorder %v3324_v55, 0.0009765625  ;;  %v3334_v4 = vmul.f32 0.0625, %v7757_v35 }
 0x16b   : > { %v3338_v5 = vshrl.u32 %v7757_v35, 24  ;;  %v3328_v6 = vsel %vm3327_vm4, 127, %v3326_v63  ;;  %vm3336_vm6 = vweird.f32 %v7757_v35  ;;  %vm9394_vm7 = vcmp.le.f32.partialorder %v3333_v0, 0.0009765625 }
 0x16c   : > { %v853_v8 = vmul.f32 %v8502_v3, %v339_v59  ;;  %v3335_v9 = vcvt.f32.f8e4m3b11 %v3334_v4  ;;  %v3342_v11 = vpack.c.b16 %v3323_v62, %v3314_v61  ;;  %v7734_v12 = vclamps-f32 %v829_v36, 448.0 }
 0x16d   : > { %v3339_v10 = vand.u32 128, %v3338_v5  ;;  %v3332_v13 = vsel %vm9390_vm5, %v3330_v1, %v3328_v6  ;;  %v7742_v14 = vclamps-f32 %v837_v37, 448.0  ;;  %v7750_v15 = vclamps-f32 %v845_v60, 448.0 }
 0x16e   : > { %v7758_v16 = vclamps-f32 %v853_v8, 448.0  ;;  %v3337_v17 = vsel %vm3336_vm6, 127, %v3335_v9  ;;  %v3346_v18 = vand.u32 2147483647, %v7734_v12  ;;  %v3347_v19 = vmul.f32 0.0625, %v7734_v12 }
 0x16f   : > { %vm3349_vm8 = vweird.f32 %v7734_v12  ;;  %v3341_v20 = vsel %vm9394_vm7, %v3339_v10, %v3337_v17  ;;  %v3351_v21 = vshrl.u32 %v7734_v12, 24  ;;  %v3355_v22 = vand.u32 2147483647, %v7742_v14 }
 0x170   : > { %v3356_v23 = vmul.f32 0.0625, %v7742_v14  ;;  %v3343_v24 = vpack.c.b16 %v3341_v20, %v3332_v13  ;;  %v3348_v25 = vcvt.f32.f8e4m3b11 %v3347_v19  ;;  %vm9403_vm9 = vcmp.le.f32.partialorder %v3346_v18, 0.0009765625  ;;  %v325_v13 = vld [vmem:[%s8493_s9 + $0x368] sm:$0xff] }
 0x171   : > { %vm3358_vm10 = vweird.f32 %v7742_v14  ;;  %v3352_v28 = vand.u32 128, %v3351_v21  ;;  %v3360_v30 = vshrl.u32 %v7742_v14, 24  ;;  %vm9408_vm11 = vcmp.le.f32.partialorder %v3355_v22, 0.0009765625 }
 0x172   : > { %v3357_v29 = vcvt.f32.f8e4m3b11 %v3356_v23  ;;  %v3344_v32 = vpack.c.b8 %v3343_v24, %v3342_v11  ;;  %v3350_v33 = vsel %vm3349_vm8, 127, %v3348_v25  ;;  %v3364_v34 = vand.u32 2147483647, %v7750_v15 }
 0x173   : > { %v3365_v35 = vmul.f32 0.0625, %v7750_v15  ;;  %v3361_v37 = vand.u32 128, %v3360_v30  ;;  %vm3367_vm12 = vweird.f32 %v7750_v15  ;;  %v830_v38 = vmul.f32 %v8502_v3, %v316_v27  ;;  %v341_v30 = vld [vmem:[%s8493_s9 + $0x3e8] sm:$0xff] }
 0x174   : > { %v3359_v36 = vsel %vm3358_vm10, 127, %v3357_v29  ;;  %7412 = vst [vmem:[%s8554_s27 + $0xd0] sm:$0xff] %v3344_v32  ;;  %v3354_v39 = vsel %vm9403_vm9, %v3352_v28, %v3350_v33  ;;  %v3369_v41 = vshrl.u32 %v7750_v15, 24  ;;  %v3373_v42 = vand.u32 2147483647, %v7758_v16  ;;  %v333_v29 = vld [vmem:[%s8493_s9 + $0x3a8] sm:$0xff] }
 0x175   : > { %v3366_v40 = vcvt.f32.f8e4m3b11 %v3365_v35  ;;  %v3363_v45 = vsel %vm9408_vm11, %v3361_v37, %v3359_v36  ;;  %vm9420_vm13 = vcmp.le.f32.partialorder %v3364_v34, 0.0009765625  ;;  %v3374_v47 = vmul.f32 0.0625, %v7758_v16 }
 0x176   : > { %v3378_v48 = vshrl.u32 %v7758_v16, 24  ;;  %v3370_v51 = vand.u32 128, %v3369_v41  ;;  %vm3376_vm14 = vweird.f32 %v7758_v16  ;;  %vm9425_vm15 = vcmp.le.f32.partialorder %v3373_v42, 0.0009765625 }
 0x177   : > { %v3368_v50 = vsel %vm3367_vm12, 127, %v3366_v40  ;;  %v3375_v54 = vcvt.f32.f8e4m3b11 %v3374_v47  ;;  %v838_v56 = vmul.f32 %v8502_v3, %v324_v43  ;;  %v846_v57 = vmul.f32 %v8502_v3, %v332_v44 }
 0x178   : > { %v3379_v55 = vand.u32 128, %v3378_v48  ;;  %v3372_v58 = vsel %vm9420_vm13, %v3370_v51, %v3368_v50  ;;  %v3382_v59 = vpack.c.b16 %v3363_v45, %v3354_v39  ;;  %v854_v60 = vmul.f32 %v8502_v3, %v340_v49 }
 0x179   : > { %v7735_v61 = vclamps-f32 %v830_v38, 448.0  ;;  %v3377_v62 = vsel %vm3376_vm14, 127, %v3375_v54  ;;  %v7743_v63 = vclamps-f32 %v838_v56, 448.0  ;;  %v7751_v0 = vclamps-f32 %v846_v57, 448.0  ;;  %v318_v38 = vld [vmem:[%s8493_s9 + $0x330] sm:$0xff] }
 0x17a   : > { %v831_v1 = vmul.f32 %v8502_v3, %v317_v53  ;;  %v3381_v2 = vsel %vm9425_vm15, %v3379_v55, %v3377_v62  ;;  %v7759_v4 = vclamps-f32 %v854_v60, 448.0  ;;  %v839_v24 = vmul.f32 %v8502_v3, %v325_v13 }
 0x17b   : > { %v3386_v5 = vand.u32 2147483647, %v7735_v61  ;;  %v3387_v6 = vmul.f32 0.0625, %v7735_v61  ;;  %v3383_v7 = vpack.c.b16 %v3381_v2, %v3372_v58  ;;  %vm3389_vm0 = vweird.f32 %v7735_v61 }
 0x17c   : > { %v3391_v8 = vshrl.u32 %v7735_v61, 24  ;;  %v3395_v9 = vand.u32 2147483647, %v7743_v63  ;;  %v3396_v12 = vmul.f32 0.0625, %v7743_v63  ;;  %vm3398_vm2 = vweird.f32 %v7743_v63  ;;  %v326_v61 = vld [vmem:[%s8493_s9 + $0x370] sm:$0xff] }
 0x17d   : > { %v3388_v10 = vcvt.f32.f8e4m3b11 %v3387_v6  ;;  %vm9438_vm1 = vcmp.le.f32.partialorder %v3386_v5, 0.0009765625  ;;  %v3384_v14 = vpack.c.b8 %v3383_v7, %v3382_v59  ;;  %v3400_v16 = vshrl.u32 %v7743_v63, 24 }
 0x17e   : > { %v3392_v15 = vand.u32 128, %v3391_v8  ;;  %vm9443_vm3 = vcmp.le.f32.partialorder %v3395_v9, 0.0009765625  ;;  %v3397_v19 = vcvt.f32.f8e4m3b11 %v3396_v12  ;;  %v3404_v20 = vand.u32 2147483647, %v7751_v0  ;;  %v334_v9 = vld [vmem:[%s8493_s9 + $0x3b0] sm:$0xff] }
 0x17f   : > { %v3390_v18 = vsel %vm3389_vm0, 127, %v3388_v10  ;;  %v3405_v21 = vmul.f32 0.0625, %v7751_v0  ;;  %7413 = vst [vmem:[%s8554_s27 + $0xd8] sm:$0xff] %v3384_v14  ;;  %v3401_v22 = vand.u32 128, %v3400_v16  ;;  %vm3407_vm4 = vweird.f32 %v7751_v0 }
 0x180   : > { %v3409_v23 = vshrl.u32 %v7751_v0, 24  ;;  %v3394_v25 = vsel %vm9438_vm1, %v3392_v15, %v3390_v18  ;;  %v3399_v26 = vsel %vm3398_vm2, 127, %v3397_v19  ;;  %v3413_v28 = vand.u32 2147483647, %v7759_v4  ;;  %v342_v15 = vld [vmem:[%s8493_s9 + $0x3f0] sm:$0xff] }
 0x181   : > { %v3406_v27 = vcvt.f32.f8e4m3b11 %v3405_v21  ;;  %v3403_v31 = vsel %vm9443_vm3, %v3401_v22, %v3399_v26  ;;  %vm9456_vm5 = vcmp.le.f32.partialorder %v3404_v20, 0.0009765625  ;;  %v3414_v34 = vmul.f32 0.0625, %v7759_v4 }
 0x182   : > { %v3410_v32 = vand.u32 128, %v3409_v23  ;;  %vm3416_vm6 = vweird.f32 %v7759_v4  ;;  %v3418_v36 = vshrl.u32 %v7759_v4, 24  ;;  %vm9460_vm7 = vcmp.le.f32.partialorder %v3413_v28, 0.0009765625  ;;  %v319_v23 = vld [vmem:[%s8493_s9 + $0x338] sm:$0xff] }
 0x183   : > { %v3408_v35 = vsel %vm3407_vm4, 127, %v3406_v27  ;;  %v3415_v39 = vcvt.f32.f8e4m3b11 %v3414_v34  ;;  %v3422_v40 = vpack.c.b16 %v3403_v31, %v3394_v25  ;;  %v847_v41 = vmul.f32 %v8502_v3, %v333_v29 }
 0x184   : > { %v855_v42 = vmul.f32 %v8502_v3, %v341_v30  ;;  %v3412_v43 = vsel %vm9456_vm5, %v3410_v32, %v3408_v35  ;;  %v3419_v44 = vand.u32 128, %v3418_v36  ;;  %v7736_v45 = vclamps-f32 %v831_v1, 448.0 }
 0x185   : > { %v7744_v46 = vclamps-f32 %v839_v24, 448.0  ;;  %v3417_v47 = vsel %vm3416_vm6, 127, %v3415_v39  ;;  %v7752_v48 = vclamps-f32 %v847_v41, 448.0  ;;  %v832_v50 = vmul.f32 %v8502_v3, %v318_v38  ;;  %v327_v24 = vld [vmem:[%s8493_s9 + $0x378] sm:$0xff] }
 0x186   : > { %v7760_v49 = vclamps-f32 %v855_v42, 448.0  ;;  %v3421_v51 = vsel %vm9460_vm7, %v3419_v44, %v3417_v47  ;;  %v3426_v52 = vand.u32 2147483647, %v7736_v45  ;;  %v3427_v53 = vmul.f32 0.0625, %v7736_v45  ;;  %v335_v47 = vld [vmem:[%s8493_s9 + $0x3b8] sm:$0xff] }
 0x187   : > { %vm3429_vm8 = vweird.f32 %v7736_v45  ;;  %v3423_v54 = vpack.c.b16 %v3421_v51, %v3412_v43  ;;  %v3431_v55 = vshrl.u32 %v7736_v45, 24  ;;  %v3435_v56 = vand.u32 2147483647, %v7744_v46 }
 0x188   : > { %v3436_v57 = vmul.f32 0.0625, %v7744_v46  ;;  %v3428_v58 = vcvt.f32.f8e4m3b11 %v3427_v53  ;;  %vm9472_vm9 = vcmp.le.f32.partialorder %v3426_v52, 0.0009765625  ;;  %vm3438_vm10 = vweird.f32 %v7744_v46 }
 0x189   : > { %v3440_v60 = vshrl.u32 %v7744_v46, 24  ;;  %v3424_v62 = vpack.c.b8 %v3423_v54, %v3422_v40  ;;  %v3432_v63 = vand.u32 128, %v3431_v55  ;;  %vm9477_vm11 = vcmp.le.f32.partialorder %v3435_v56, 0.0009765625 }
 0x18a   : > { %v3437_v0 = vcvt.f32.f8e4m3b11 %v3436_v57  ;;  %v3430_v2 = vsel %vm3429_vm8, 127, %v3428_v58  ;;  %v3444_v5 = vand.u32 2147483647, %v7752_v48  ;;  %v3445_v6 = vmul.f32 0.0625, %v7752_v48  ;;  %v343_v58 = vld [vmem:[%s8493_s9 + $0x3f8] sm:$0xff] }
 0x18b   : > { %v3441_v4 = vand.u32 128, %v3440_v60  ;;  %7414 = vst [vmem:[%s8554_s27 + $0xe0] sm:$0xff] %v3424_v62  ;;  %vm3447_vm12 = vweird.f32 %v7752_v48  ;;  %v3449_v8 = vshrl.u32 %v7752_v48, 24  ;;  %v840_v10 = vmul.f32 %v8502_v3, %v326_v61 }
 0x18c   : > { %v3439_v7 = vsel %vm3438_vm10, 127, %v3437_v0  ;;  %v3434_v11 = vsel %vm9472_vm9, %v3432_v63, %v3430_v2  ;;  %v3446_v13 = vcvt.f32.f8e4m3b11 %v3445_v6  ;;  %v3453_v14 = vand.u32 2147483647, %v7760_v49 }
 0x18d   : > { %v3443_v12 = vsel %vm9477_vm11, %v3441_v4, %v3439_v7  ;;  %v3450_v16 = vand.u32 128, %v3449_v8  ;;  %vm9489_vm13 = vcmp.le.f32.partialorder %v3444_v5, 0.0009765625  ;;  %v3454_v18 = vmul.f32 0.0625, %v7760_v49 }
 0x18e   : > { %v3458_v19 = vshrl.u32 %v7760_v49, 24  ;;  %v3448_v20 = vsel %vm3447_vm12, 127, %v3446_v13  ;;  %vm3456_vm14 = vweird.f32 %v7760_v49  ;;  %vm9493_vm15 = vcmp.le.f32.partialorder %v3453_v14, 0.0009765625 }
 0x18f   : > { %v848_v22 = vmul.f32 %v8502_v3, %v334_v9  ;;  %v3455_v25 = vcvt.f32.f8e4m3b11 %v3454_v18  ;;  %v3462_v27 = vpack.c.b16 %v3443_v12, %v3434_v11  ;;  %v856_v28 = vmul.f32 %v8502_v3, %v342_v15 }
 0x190   : > { %v3459_v26 = vand.u32 128, %v3458_v19  ;;  %v3452_v29 = vsel %vm9489_vm13, %v3450_v16, %v3448_v20  ;;  %v7737_v30 = vclamps-f32 %v832_v50, 448.0  ;;  %v7745_v31 = vclamps-f32 %v840_v10, 448.0 }
 0x191   : > { %v7753_v32 = vclamps-f32 %v848_v22, 448.0  ;;  %v3457_v33 = vsel %vm3456_vm14, 127, %v3455_v25  ;;  %v7761_v34 = vclamps-f32 %v856_v28, 448.0  ;;  %v833_v35 = vmul.f32 %v8502_v3, %v319_v23 }
 0x192   : > { %v841_v36 = vmul.f32 %v8502_v3, %v327_v24  ;;  %v3461_v37 = vsel %vm9493_vm15, %v3459_v26, %v3457_v33  ;;  %v3466_v38 = vand.u32 2147483647, %v7737_v30  ;;  %v3467_v39 = vmul.f32 0.0625, %v7737_v30  ;;  %v344_v26 = vld [vmem:[%s8493_s9 + $0x400] sm:$0xff] }
 0x193   : > { %vm3469_vm0 = vweird.f32 %v7737_v30  ;;  %v3463_v40 = vpack.c.b16 %v3461_v37, %v3452_v29  ;;  %v3471_v41 = vshrl.u32 %v7737_v30, 24  ;;  %v3475_v42 = vand.u32 2147483647, %v7745_v31 }
 0x194   : > { %v3476_v43 = vmul.f32 0.0625, %v7745_v31  ;;  %v3468_v44 = vcvt.f32.f8e4m3b11 %v3467_v39  ;;  %vm9507_vm1 = vcmp.le.f32.partialorder %v3466_v38, 0.0009765625  ;;  %vm3478_vm2 = vweird.f32 %v7745_v31 }
 0x195   : > { %v3480_v46 = vshrl.u32 %v7745_v31, 24  ;;  %v3464_v48 = vpack.c.b8 %v3463_v40, %v3462_v27  ;;  %v3472_v49 = vand.u32 128, %v3471_v41  ;;  %vm9512_vm3 = vcmp.le.f32.partialorder %v3475_v42, 0.0009765625  ;;  %v352_v42 = vld [vmem:[%s8493_s9 + $0x440] sm:$0xff] }
 0x196   : > { %v3477_v50 = vcvt.f32.f8e4m3b11 %v3476_v43  ;;  %v3470_v52 = vsel %vm3469_vm0, 127, %v3468_v44  ;;  %v3484_v54 = vand.u32 2147483647, %v7753_v32  ;;  %v3485_v55 = vmul.f32 0.0625, %v7753_v32  ;;  %v360_v43 = vld [vmem:[%s8493_s9 + $0x480] sm:$0xff] }
 0x197   : > { %v3481_v53 = vand.u32 128, %v3480_v46  ;;  %7415 = vst [vmem:[%s8554_s27 + $0xe8] sm:$0xff] %v3464_v48  ;;  %vm3487_vm4 = vweird.f32 %v7753_v32  ;;  %v3489_v57 = vshrl.u32 %v7753_v32, 24  ;;  %v849_v59 = vmul.f32 %v8502_v3, %v335_v47  ;;  %v368_v48 = vld [vmem:[%s8493_s9 + $0x4c0] sm:$0xff] }
 0x198   : > { %v3479_v56 = vsel %vm3478_vm2, 127, %v3477_v50  ;;  %v3474_v60 = vsel %vm9507_vm1, %v3472_v49, %v3470_v52  ;;  %v3486_v62 = vcvt.f32.f8e4m3b11 %v3485_v55  ;;  %v3493_v63 = vand.u32 2147483647, %v7761_v34  ;;  %v345_v52 = vld [vmem:[%s8493_s9 + $0x408] sm:$0xff] }
 0x199   : > { %v3483_v61 = vsel %vm9512_vm3, %v3481_v53, %v3479_v56  ;;  %v3490_v0 = vand.u32 128, %v3489_v57  ;;  %vm9523_vm5 = vcmp.le.f32.partialorder %v3484_v54, 0.0009765625  ;;  %v3494_v2 = vmul.f32 0.0625, %v7761_v34 }
 0x19a   : > { %v3498_v4 = vshrl.u32 %v7761_v34, 24  ;;  %v3488_v5 = vsel %vm3487_vm4, 127, %v3486_v62  ;;  %vm3496_vm6 = vweird.f32 %v7761_v34  ;;  %vm9527_vm7 = vcmp.le.f32.partialorder %v3493_v63, 0.0009765625 }
 0x19b   : > { %v857_v7 = vmul.f32 %v8502_v3, %v343_v58  ;;  %v3495_v8 = vcvt.f32.f8e4m3b11 %v3494_v2  ;;  %v3502_v10 = vpack.c.b16 %v3483_v61, %v3474_v60  ;;  %v7738_v11 = vclamps-f32 %v833_v35, 448.0 }
 0x19c   : > { %v3499_v9 = vand.u32 128, %v3498_v4  ;;  %v3492_v12 = vsel %vm9523_vm5, %v3490_v0, %v3488_v5  ;;  %v7746_v13 = vclamps-f32 %v841_v36, 448.0  ;;  %v7754_v14 = vclamps-f32 %v849_v59, 448.0 }
 0x19d   : > { %v7762_v15 = vclamps-f32 %v857_v7, 448.0  ;;  %v3497_v16 = vsel %vm3496_vm6, 127, %v3495_v8  ;;  %v3506_v17 = vand.u32 2147483647, %v7738_v11  ;;  %v3507_v18 = vmul.f32 0.0625, %v7738_v11 }
 0x19e   : > { %vm3509_vm8 = vweird.f32 %v7738_v11  ;;  %v3501_v19 = vsel %vm9527_vm7, %v3499_v9, %v3497_v16  ;;  %v3511_v20 = vshrl.u32 %v7738_v11, 24  ;;  %v3515_v21 = vand.u32 2147483647, %v7746_v13 }
 0x19f   : > { %v3516_v22 = vmul.f32 0.0625, %v7746_v13  ;;  %v3503_v23 = vpack.c.b16 %v3501_v19, %v3492_v12  ;;  %v3508_v24 = vcvt.f32.f8e4m3b11 %v3507_v18  ;;  %vm9536_vm9 = vcmp.le.f32.partialorder %v3506_v17, 0.0009765625  ;;  %v353_v12 = vld [vmem:[%s8493_s9 + $0x448] sm:$0xff] }
 0x1a0   : > { %vm3518_vm10 = vweird.f32 %v7746_v13  ;;  %v3512_v27 = vand.u32 128, %v3511_v20  ;;  %v3520_v29 = vshrl.u32 %v7746_v13, 24  ;;  %vm9541_vm11 = vcmp.le.f32.partialorder %v3515_v21, 0.0009765625 }
 0x1a1   : > { %v3517_v28 = vcvt.f32.f8e4m3b11 %v3516_v22  ;;  %v3504_v31 = vpack.c.b8 %v3503_v23, %v3502_v10  ;;  %v3510_v32 = vsel %vm3509_vm8, 127, %v3508_v24  ;;  %v3524_v33 = vand.u32 2147483647, %v7754_v14 }
 0x1a2   : > { %v3525_v34 = vmul.f32 0.0625, %v7754_v14  ;;  %v3521_v36 = vand.u32 128, %v3520_v29  ;;  %vm3527_vm12 = vweird.f32 %v7754_v14  ;;  %v858_v37 = vmul.f32 %v8502_v3, %v344_v26  ;;  %v369_v29 = vld [vmem:[%s8493_s9 + $0x4c8] sm:$0xff] }
 0x1a3   : > { %v3519_v35 = vsel %vm3518_vm10, 127, %v3517_v28  ;;  %7416 = vst [vmem:[%s8554_s27 + $0xf0] sm:$0xff] %v3504_v31  ;;  %v3514_v38 = vsel %vm9536_vm9, %v3512_v27, %v3510_v32  ;;  %v3529_v40 = vshrl.u32 %v7754_v14, 24  ;;  %v3533_v41 = vand.u32 2147483647, %v7762_v15  ;;  %v361_v28 = vld [vmem:[%s8493_s9 + $0x488] sm:$0xff] }
 0x1a4   : > { %v3526_v39 = vcvt.f32.f8e4m3b11 %v3525_v34  ;;  %v3523_v44 = vsel %vm9541_vm11, %v3521_v36, %v3519_v35  ;;  %vm9553_vm13 = vcmp.le.f32.partialorder %v3524_v33, 0.0009765625  ;;  %v3534_v46 = vmul.f32 0.0625, %v7762_v15 }
 0x1a5   : > { %v3538_v47 = vshrl.u32 %v7762_v15, 24  ;;  %v3530_v50 = vand.u32 128, %v3529_v40  ;;  %vm3536_vm14 = vweird.f32 %v7762_v15  ;;  %vm9558_vm15 = vcmp.le.f32.partialorder %v3533_v41, 0.0009765625 }
 0x1a6   : > { %v3528_v49 = vsel %vm3527_vm12, 127, %v3526_v39  ;;  %v3535_v53 = vcvt.f32.f8e4m3b11 %v3534_v46  ;;  %v866_v55 = vmul.f32 %v8502_v3, %v352_v42  ;;  %v874_v56 = vmul.f32 %v8502_v3, %v360_v43 }
 0x1a7   : > { %v3539_v54 = vand.u32 128, %v3538_v47  ;;  %v3532_v57 = vsel %vm9553_vm13, %v3530_v50, %v3528_v49  ;;  %v3542_v58 = vpack.c.b16 %v3523_v44, %v3514_v38  ;;  %v882_v59 = vmul.f32 %v8502_v3, %v368_v48 }
 0x1a8   : > { %v7763_v60 = vclamps-f32 %v858_v37, 448.0  ;;  %v3537_v61 = vsel %vm3536_vm14, 127, %v3535_v53  ;;  %v7771_v62 = vclamps-f32 %v866_v55, 448.0  ;;  %v7779_v63 = vclamps-f32 %v874_v56, 448.0  ;;  %v346_v37 = vld [vmem:[%s8493_s9 + $0x410] sm:$0xff] }
 0x1a9   : > { %v859_v0 = vmul.f32 %v8502_v3, %v345_v52  ;;  %v3541_v1 = vsel %vm9558_vm15, %v3539_v54, %v3537_v61  ;;  %v7787_v2 = vclamps-f32 %v882_v59, 448.0  ;;  %v867_v23 = vmul.f32 %v8502_v3, %v353_v12 }
 0x1aa   : > { %v3546_v4 = vand.u32 2147483647, %v7763_v60  ;;  %v3547_v5 = vmul.f32 0.0625, %v7763_v60  ;;  %v3543_v6 = vpack.c.b16 %v3541_v1, %v3532_v57  ;;  %vm3549_vm0 = vweird.f32 %v7763_v60 }
 0x1ab   : > { %v3551_v7 = vshrl.u32 %v7763_v60, 24  ;;  %v3555_v8 = vand.u32 2147483647, %v7771_v62  ;;  %v3556_v11 = vmul.f32 0.0625, %v7771_v62  ;;  %vm3558_vm2 = vweird.f32 %v7771_v62  ;;  %v354_v60 = vld [vmem:[%s8493_s9 + $0x450] sm:$0xff] }
 0x1ac   : > { %v3548_v9 = vcvt.f32.f8e4m3b11 %v3547_v5  ;;  %vm9571_vm1 = vcmp.le.f32.partialorder %v3546_v4, 0.0009765625  ;;  %v3544_v13 = vpack.c.b8 %v3543_v6, %v3542_v58  ;;  %v3560_v15 = vshrl.u32 %v7771_v62, 24 }
 0x1ad   : > { %v3552_v14 = vand.u32 128, %v3551_v7  ;;  %vm9576_vm3 = vcmp.le.f32.partialorder %v3555_v8, 0.0009765625  ;;  %v3557_v18 = vcvt.f32.f8e4m3b11 %v3556_v11  ;;  %v3564_v19 = vand.u32 2147483647, %v7779_v63  ;;  %v362_v8 = vld [vmem:[%s8493_s9 + $0x490] sm:$0xff] }
 0x1ae   : > { %v3550_v17 = vsel %vm3549_vm0, 127, %v3548_v9  ;;  %v3565_v20 = vmul.f32 0.0625, %v7779_v63  ;;  %7417 = vst [vmem:[%s8554_s27 + $0xf8] sm:$0xff] %v3544_v13  ;;  %v3561_v21 = vand.u32 128, %v3560_v15  ;;  %vm3567_vm4 = vweird.f32 %v7779_v63 }
 0x1af   : > { %v3569_v22 = vshrl.u32 %v7779_v63, 24  ;;  %v3554_v24 = vsel %vm9571_vm1, %v3552_v14, %v3550_v17  ;;  %v3559_v25 = vsel %vm3558_vm2, 127, %v3557_v18  ;;  %v3573_v27 = vand.u32 2147483647, %v7787_v2  ;;  %v370_v14 = vld [vmem:[%s8493_s9 + $0x4d0] sm:$0xff] }
 0x1b0   : > { %v3566_v26 = vcvt.f32.f8e4m3b11 %v3565_v20  ;;  %v3563_v30 = vsel %vm9576_vm3, %v3561_v21, %v3559_v25  ;;  %vm9589_vm5 = vcmp.le.f32.partialorder %v3564_v19, 0.0009765625  ;;  %v3574_v33 = vmul.f32 0.0625, %v7787_v2 }
 0x1b1   : > { %v3570_v31 = vand.u32 128, %v3569_v22  ;;  %vm3576_vm6 = vweird.f32 %v7787_v2  ;;  %v3578_v35 = vshrl.u32 %v7787_v2, 24  ;;  %vm9593_vm7 = vcmp.le.f32.partialorder %v3573_v27, 0.0009765625  ;;  %v347_v22 = vld [vmem:[%s8493_s9 + $0x418] sm:$0xff] }
 0x1b2   : > { %v3568_v34 = vsel %vm3567_vm4, 127, %v3566_v26  ;;  %v3575_v38 = vcvt.f32.f8e4m3b11 %v3574_v33  ;;  %v3582_v39 = vpack.c.b16 %v3563_v30, %v3554_v24  ;;  %v875_v40 = vmul.f32 %v8502_v3, %v361_v28 }
 0x1b3   : > { %v883_v41 = vmul.f32 %v8502_v3, %v369_v29  ;;  %v3572_v42 = vsel %vm9589_vm5, %v3570_v31, %v3568_v34  ;;  %v3579_v43 = vand.u32 128, %v3578_v35  ;;  %v7764_v44 = vclamps-f32 %v859_v0, 448.0 }
 0x1b4   : > { %v7772_v45 = vclamps-f32 %v867_v23, 448.0  ;;  %v3577_v46 = vsel %vm3576_vm6, 127, %v3575_v38  ;;  %v7780_v47 = vclamps-f32 %v875_v40, 448.0  ;;  %v860_v49 = vmul.f32 %v8502_v3, %v346_v37  ;;  %v355_v23 = vld [vmem:[%s8493_s9 + $0x458] sm:$0xff] }
 0x1b5   : > { %v7788_v48 = vclamps-f32 %v883_v41, 448.0  ;;  %v3581_v50 = vsel %vm9593_vm7, %v3579_v43, %v3577_v46  ;;  %v3586_v51 = vand.u32 2147483647, %v7764_v44  ;;  %v3587_v52 = vmul.f32 0.0625, %v7764_v44  ;;  %v363_v46 = vld [vmem:[%s8493_s9 + $0x498] sm:$0xff] }
 0x1b6   : > { %vm3589_vm8 = vweird.f32 %v7764_v44  ;;  %v3583_v53 = vpack.c.b16 %v3581_v50, %v3572_v42  ;;  %v3591_v54 = vshrl.u32 %v7764_v44, 24  ;;  %v3595_v55 = vand.u32 2147483647, %v7772_v45 }
 0x1b7   : > { %v3596_v56 = vmul.f32 0.0625, %v7772_v45  ;;  %v3588_v57 = vcvt.f32.f8e4m3b11 %v3587_v52  ;;  %vm9605_vm9 = vcmp.le.f32.partialorder %v3586_v51, 0.0009765625  ;;  %vm3598_vm10 = vweird.f32 %v7772_v45 }
 0x1b8   : > { %v3600_v59 = vshrl.u32 %v7772_v45, 24  ;;  %v3584_v61 = vpack.c.b8 %v3583_v53, %v3582_v39  ;;  %v3592_v62 = vand.u32 128, %v3591_v54  ;;  %vm9610_vm11 = vcmp.le.f32.partialorder %v3595_v55, 0.0009765625 }
 0x1b9   : > { %v3597_v63 = vcvt.f32.f8e4m3b11 %v3596_v56  ;;  %v3590_v1 = vsel %vm3589_vm8, 127, %v3588_v57  ;;  %v3604_v4 = vand.u32 2147483647, %v7780_v47  ;;  %v3605_v5 = vmul.f32 0.0625, %v7780_v47  ;;  %v371_v57 = vld [vmem:[%s8493_s9 + $0x4d8] sm:$0xff] }
 0x1ba   : > { %v3601_v2 = vand.u32 128, %v3600_v59  ;;  %7418 = vst [vmem:[%s8554_s27 + $0x100] sm:$0xff] %v3584_v61  ;;  %vm3607_vm12 = vweird.f32 %v7780_v47  ;;  %v3609_v7 = vshrl.u32 %v7780_v47, 24  ;;  %v868_v9 = vmul.f32 %v8502_v3, %v354_v60 }
 0x1bb   : > { %v3599_v6 = vsel %vm3598_vm10, 127, %v3597_v63  ;;  %v3594_v10 = vsel %vm9605_vm9, %v3592_v62, %v3590_v1  ;;  %v3606_v12 = vcvt.f32.f8e4m3b11 %v3605_v5  ;;  %v3613_v13 = vand.u32 2147483647, %v7788_v48 }
 0x1bc   : > { %v3603_v11 = vsel %vm9610_vm11, %v3601_v2, %v3599_v6  ;;  %v3610_v15 = vand.u32 128, %v3609_v7  ;;  %vm9622_vm13 = vcmp.le.f32.partialorder %v3604_v4, 0.0009765625  ;;  %v3614_v17 = vmul.f32 0.0625, %v7788_v48 }
 0x1bd   : > { %v3618_v18 = vshrl.u32 %v7788_v48, 24  ;;  %v3608_v19 = vsel %vm3607_vm12, 127, %v3606_v12  ;;  %vm3616_vm14 = vweird.f32 %v7788_v48  ;;  %vm9626_vm15 = vcmp.le.f32.partialorder %v3613_v13, 0.0009765625 }
 0x1be   : > { %v876_v21 = vmul.f32 %v8502_v3, %v362_v8  ;;  %v3615_v24 = vcvt.f32.f8e4m3b11 %v3614_v17  ;;  %v3622_v26 = vpack.c.b16 %v3603_v11, %v3594_v10  ;;  %v884_v27 = vmul.f32 %v8502_v3, %v370_v14 }
 0x1bf   : > { %v3619_v25 = vand.u32 128, %v3618_v18  ;;  %v3612_v28 = vsel %vm9622_vm13, %v3610_v15, %v3608_v19  ;;  %v7765_v29 = vclamps-f32 %v860_v49, 448.0  ;;  %v7773_v30 = vclamps-f32 %v868_v9, 448.0 }
 0x1c0   : > { %v7781_v31 = vclamps-f32 %v876_v21, 448.0  ;;  %v3617_v32 = vsel %vm3616_vm14, 127, %v3615_v24  ;;  %v7789_v33 = vclamps-f32 %v884_v27, 448.0  ;;  %v861_v34 = vmul.f32 %v8502_v3, %v347_v22 }
 0x1c1   : > { %v869_v35 = vmul.f32 %v8502_v3, %v355_v23  ;;  %v3621_v36 = vsel %vm9626_vm15, %v3619_v25, %v3617_v32  ;;  %v3626_v37 = vand.u32 2147483647, %v7765_v29  ;;  %v3627_v38 = vmul.f32 0.0625, %v7765_v29  ;;  %v348_v25 = vld [vmem:[%s8493_s9 + $0x420] sm:$0xff] }
 0x1c2   : > { %vm3629_vm0 = vweird.f32 %v7765_v29  ;;  %v3623_v39 = vpack.c.b16 %v3621_v36, %v3612_v28  ;;  %v3631_v40 = vshrl.u32 %v7765_v29, 24  ;;  %v3635_v41 = vand.u32 2147483647, %v7773_v30 }
 0x1c3   : > { %v3636_v42 = vmul.f32 0.0625, %v7773_v30  ;;  %v3628_v43 = vcvt.f32.f8e4m3b11 %v3627_v38  ;;  %vm9640_vm1 = vcmp.le.f32.partialorder %v3626_v37, 0.0009765625  ;;  %vm3638_vm2 = vweird.f32 %v7773_v30 }
 0x1c4   : > { %v3640_v45 = vshrl.u32 %v7773_v30, 24  ;;  %v3624_v47 = vpack.c.b8 %v3623_v39, %v3622_v26  ;;  %v3632_v48 = vand.u32 128, %v3631_v40  ;;  %vm9645_vm3 = vcmp.le.f32.partialorder %v3635_v41, 0.0009765625  ;;  %v356_v41 = vld [vmem:[%s8493_s9 + $0x460] sm:$0xff] }
 0x1c5   : > { %v3637_v49 = vcvt.f32.f8e4m3b11 %v3636_v42  ;;  %v3630_v51 = vsel %vm3629_vm0, 127, %v3628_v43  ;;  %v3644_v53 = vand.u32 2147483647, %v7781_v31  ;;  %v3645_v54 = vmul.f32 0.0625, %v7781_v31  ;;  %v364_v42 = vld [vmem:[%s8493_s9 + $0x4a0] sm:$0xff] }
 0x1c6   : > { %v3641_v52 = vand.u32 128, %v3640_v45  ;;  %7419 = vst [vmem:[%s8554_s27 + $0x108] sm:$0xff] %v3624_v47  ;;  %vm3647_vm4 = vweird.f32 %v7781_v31  ;;  %v3649_v56 = vshrl.u32 %v7781_v31, 24  ;;  %v877_v58 = vmul.f32 %v8502_v3, %v363_v46  ;;  %v372_v47 = vld [vmem:[%s8493_s9 + $0x4e0] sm:$0xff] }
 0x1c7   : > { %v3639_v55 = vsel %vm3638_vm2, 127, %v3637_v49  ;;  %v3634_v59 = vsel %vm9640_vm1, %v3632_v48, %v3630_v51  ;;  %v3646_v61 = vcvt.f32.f8e4m3b11 %v3645_v54  ;;  %v3653_v62 = vand.u32 2147483647, %v7789_v33  ;;  %v349_v51 = vld [vmem:[%s8493_s9 + $0x428] sm:$0xff] }
 0x1c8   : > { %v3643_v60 = vsel %vm9645_vm3, %v3641_v52, %v3639_v55  ;;  %v3650_v63 = vand.u32 128, %v3649_v56  ;;  %vm9656_vm5 = vcmp.le.f32.partialorder %v3644_v53, 0.0009765625  ;;  %v3654_v1 = vmul.f32 0.0625, %v7789_v33 }
 0x1c9   : > { %v3658_v2 = vshrl.u32 %v7789_v33, 24  ;;  %v3648_v4 = vsel %vm3647_vm4, 127, %v3646_v61  ;;  %vm3656_vm6 = vweird.f32 %v7789_v33  ;;  %vm9660_vm7 = vcmp.le.f32.partialorder %v3653_v62, 0.0009765625 }
 0x1ca   : > { %v885_v6 = vmul.f32 %v8502_v3, %v371_v57  ;;  %v3655_v7 = vcvt.f32.f8e4m3b11 %v3654_v1  ;;  %v3662_v9 = vpack.c.b16 %v3643_v60, %v3634_v59  ;;  %v7766_v10 = vclamps-f32 %v861_v34, 448.0 }
 0x1cb   : > { %v3659_v8 = vand.u32 128, %v3658_v2  ;;  %v3652_v11 = vsel %vm9656_vm5, %v3650_v63, %v3648_v4  ;;  %v7774_v12 = vclamps-f32 %v869_v35, 448.0  ;;  %v7782_v13 = vclamps-f32 %v877_v58, 448.0 }
 0x1cc   : > { %v7790_v14 = vclamps-f32 %v885_v6, 448.0  ;;  %v3657_v15 = vsel %vm3656_vm6, 127, %v3655_v7  ;;  %v3666_v16 = vand.u32 2147483647, %v7766_v10  ;;  %v3667_v17 = vmul.f32 0.0625, %v7766_v10 }
 0x1cd   : > { %vm3669_vm8 = vweird.f32 %v7766_v10  ;;  %v3661_v18 = vsel %vm9660_vm7, %v3659_v8, %v3657_v15  ;;  %v3671_v19 = vshrl.u32 %v7766_v10, 24  ;;  %v3675_v20 = vand.u32 2147483647, %v7774_v12 }
 0x1ce   : > { %v3676_v21 = vmul.f32 0.0625, %v7774_v12  ;;  %v3663_v22 = vpack.c.b16 %v3661_v18, %v3652_v11  ;;  %v3668_v23 = vcvt.f32.f8e4m3b11 %v3667_v17  ;;  %vm9669_vm9 = vcmp.le.f32.partialorder %v3666_v16, 0.0009765625  ;;  %v357_v11 = vld [vmem:[%s8493_s9 + $0x468] sm:$0xff] }
 0x1cf   : > { %vm3678_vm10 = vweird.f32 %v7774_v12  ;;  %v3672_v26 = vand.u32 128, %v3671_v19  ;;  %v3680_v28 = vshrl.u32 %v7774_v12, 24  ;;  %vm9674_vm11 = vcmp.le.f32.partialorder %v3675_v20, 0.0009765625 }
 0x1d0   : > { %v3677_v27 = vcvt.f32.f8e4m3b11 %v3676_v21  ;;  %v3664_v30 = vpack.c.b8 %v3663_v22, %v3662_v9  ;;  %v3670_v31 = vsel %vm3669_vm8, 127, %v3668_v23  ;;  %v3684_v32 = vand.u32 2147483647, %v7782_v13 }
 0x1d1   : > { %v3685_v33 = vmul.f32 0.0625, %v7782_v13  ;;  %v3681_v35 = vand.u32 128, %v3680_v28  ;;  %vm3687_vm12 = vweird.f32 %v7782_v13  ;;  %v862_v36 = vmul.f32 %v8502_v3, %v348_v25  ;;  %v373_v28 = vld [vmem:[%s8493_s9 + $0x4e8] sm:$0xff] }
 0x1d2   : > { %v3679_v34 = vsel %vm3678_vm10, 127, %v3677_v27  ;;  %7420 = vst [vmem:[%s8554_s27 + $0x110] sm:$0xff] %v3664_v30  ;;  %v3674_v37 = vsel %vm9669_vm9, %v3672_v26, %v3670_v31  ;;  %v3689_v39 = vshrl.u32 %v7782_v13, 24  ;;  %v3693_v40 = vand.u32 2147483647, %v7790_v14  ;;  %v365_v27 = vld [vmem:[%s8493_s9 + $0x4a8] sm:$0xff] }
 0x1d3   : > { %v3686_v38 = vcvt.f32.f8e4m3b11 %v3685_v33  ;;  %v3683_v43 = vsel %vm9674_vm11, %v3681_v35, %v3679_v34  ;;  %vm9686_vm13 = vcmp.le.f32.partialorder %v3684_v32, 0.0009765625  ;;  %v3694_v45 = vmul.f32 0.0625, %v7790_v14 }
 0x1d4   : > { %v3698_v46 = vshrl.u32 %v7790_v14, 24  ;;  %v3690_v49 = vand.u32 128, %v3689_v39  ;;  %vm3696_vm14 = vweird.f32 %v7790_v14  ;;  %vm9691_vm15 = vcmp.le.f32.partialorder %v3693_v40, 0.0009765625 }
 0x1d5   : > { %v3688_v48 = vsel %vm3687_vm12, 127, %v3686_v38  ;;  %v3695_v52 = vcvt.f32.f8e4m3b11 %v3694_v45  ;;  %v870_v54 = vmul.f32 %v8502_v3, %v356_v41  ;;  %v878_v55 = vmul.f32 %v8502_v3, %v364_v42 }
 0x1d6   : > { %v3699_v53 = vand.u32 128, %v3698_v46  ;;  %v3692_v56 = vsel %vm9686_vm13, %v3690_v49, %v3688_v48  ;;  %v3702_v57 = vpack.c.b16 %v3683_v43, %v3674_v37  ;;  %v886_v58 = vmul.f32 %v8502_v3, %v372_v47 }
 0x1d7   : > { %v7767_v59 = vclamps-f32 %v862_v36, 448.0  ;;  %v3697_v60 = vsel %vm3696_vm14, 127, %v3695_v52  ;;  %v7775_v61 = vclamps-f32 %v870_v54, 448.0  ;;  %v7783_v62 = vclamps-f32 %v878_v55, 448.0  ;;  %v350_v36 = vld [vmem:[%s8493_s9 + $0x430] sm:$0xff] }
 0x1d8   : > { %v863_v63 = vmul.f32 %v8502_v3, %v349_v51  ;;  %v3701_v0 = vsel %vm9691_vm15, %v3699_v53, %v3697_v60  ;;  %v7791_v1 = vclamps-f32 %v886_v58, 448.0  ;;  %v871_v22 = vmul.f32 %v8502_v3, %v357_v11 }
 0x1d9   : > { %v3706_v2 = vand.u32 2147483647, %v7767_v59  ;;  %v3707_v4 = vmul.f32 0.0625, %v7767_v59  ;;  %v3703_v5 = vpack.c.b16 %v3701_v0, %v3692_v56  ;;  %vm3709_vm0 = vweird.f32 %v7767_v59 }
 0x1da   : > { %v3711_v6 = vshrl.u32 %v7767_v59, 24  ;;  %v3715_v7 = vand.u32 2147483647, %v7775_v61  ;;  %v3716_v10 = vmul.f32 0.0625, %v7775_v61  ;;  %vm3718_vm2 = vweird.f32 %v7775_v61  ;;  %v358_v59 = vld [vmem:[%s8493_s9 + $0x470] sm:$0xff] }
 0x1db   : > { %v3708_v8 = vcvt.f32.f8e4m3b11 %v3707_v4  ;;  %vm9704_vm1 = vcmp.le.f32.partialorder %v3706_v2, 0.0009765625  ;;  %v3704_v12 = vpack.c.b8 %v3703_v5, %v3702_v57  ;;  %v3720_v14 = vshrl.u32 %v7775_v61, 24 }
 0x1dc   : > { %v3712_v13 = vand.u32 128, %v3711_v6  ;;  %vm9709_vm3 = vcmp.le.f32.partialorder %v3715_v7, 0.0009765625  ;;  %v3717_v17 = vcvt.f32.f8e4m3b11 %v3716_v10  ;;  %v3724_v18 = vand.u32 2147483647, %v7783_v62  ;;  %v366_v7 = vld [vmem:[%s8493_s9 + $0x4b0] sm:$0xff] }
 0x1dd   : > { %v3710_v16 = vsel %vm3709_vm0, 127, %v3708_v8  ;;  %v3725_v19 = vmul.f32 0.0625, %v7783_v62  ;;  %7421 = vst [vmem:[%s8554_s27 + $0x118] sm:$0xff] %v3704_v12  ;;  %v3721_v20 = vand.u32 128, %v3720_v14  ;;  %vm3727_vm4 = vweird.f32 %v7783_v62 }
 0x1de   : > { %v3729_v21 = vshrl.u32 %v7783_v62, 24  ;;  %v3714_v23 = vsel %vm9704_vm1, %v3712_v13, %v3710_v16  ;;  %v3719_v24 = vsel %vm3718_vm2, 127, %v3717_v17  ;;  %v3733_v26 = vand.u32 2147483647, %v7791_v1  ;;  %v374_v13 = vld [vmem:[%s8493_s9 + $0x4f0] sm:$0xff] }
 0x1df   : > { %v3726_v25 = vcvt.f32.f8e4m3b11 %v3725_v19  ;;  %v3723_v29 = vsel %vm9709_vm3, %v3721_v20, %v3719_v24  ;;  %vm9722_vm5 = vcmp.le.f32.partialorder %v3724_v18, 0.0009765625  ;;  %v3734_v32 = vmul.f32 0.0625, %v7791_v1 }
 0x1e0   : > { %v3730_v30 = vand.u32 128, %v3729_v21  ;;  %vm3736_vm6 = vweird.f32 %v7791_v1  ;;  %v3738_v34 = vshrl.u32 %v7791_v1, 24  ;;  %vm9726_vm7 = vcmp.le.f32.partialorder %v3733_v26, 0.0009765625  ;;  %v351_v21 = vld [vmem:[%s8493_s9 + $0x438] sm:$0xff] }
 0x1e1   : > { %v3728_v33 = vsel %vm3727_vm4, 127, %v3726_v25  ;;  %v3735_v37 = vcvt.f32.f8e4m3b11 %v3734_v32  ;;  %v3742_v38 = vpack.c.b16 %v3723_v29, %v3714_v23  ;;  %v879_v39 = vmul.f32 %v8502_v3, %v365_v27 }
 0x1e2   : > { %v887_v40 = vmul.f32 %v8502_v3, %v373_v28  ;;  %v3732_v41 = vsel %vm9722_vm5, %v3730_v30, %v3728_v33  ;;  %v3739_v42 = vand.u32 128, %v3738_v34  ;;  %v7768_v43 = vclamps-f32 %v863_v63, 448.0 }
 0x1e3   : > { %v7776_v44 = vclamps-f32 %v871_v22, 448.0  ;;  %v3737_v45 = vsel %vm3736_vm6, 127, %v3735_v37  ;;  %v7784_v46 = vclamps-f32 %v879_v39, 448.0  ;;  %v864_v48 = vmul.f32 %v8502_v3, %v350_v36  ;;  %v359_v22 = vld [vmem:[%s8493_s9 + $0x478] sm:$0xff] }
 0x1e4   : > { %v7792_v47 = vclamps-f32 %v887_v40, 448.0  ;;  %v3741_v49 = vsel %vm9726_vm7, %v3739_v42, %v3737_v45  ;;  %v3746_v50 = vand.u32 2147483647, %v7768_v43  ;;  %v3747_v51 = vmul.f32 0.0625, %v7768_v43  ;;  %v367_v45 = vld [vmem:[%s8493_s9 + $0x4b8] sm:$0xff] }
 0x1e5   : > { %vm3749_vm8 = vweird.f32 %v7768_v43  ;;  %v3743_v52 = vpack.c.b16 %v3741_v49, %v3732_v41  ;;  %v3751_v53 = vshrl.u32 %v7768_v43, 24  ;;  %v3755_v54 = vand.u32 2147483647, %v7776_v44 }
 0x1e6   : > { %v3756_v55 = vmul.f32 0.0625, %v7776_v44  ;;  %v3748_v56 = vcvt.f32.f8e4m3b11 %v3747_v51  ;;  %vm9738_vm9 = vcmp.le.f32.partialorder %v3746_v50, 0.0009765625  ;;  %vm3758_vm10 = vweird.f32 %v7776_v44 }
 0x1e7   : > { %v3760_v58 = vshrl.u32 %v7776_v44, 24  ;;  %v3744_v60 = vpack.c.b8 %v3743_v52, %v3742_v38  ;;  %v3752_v61 = vand.u32 128, %v3751_v53  ;;  %vm9743_vm11 = vcmp.le.f32.partialorder %v3755_v54, 0.0009765625 }
 0x1e8   : > { %v3757_v62 = vcvt.f32.f8e4m3b11 %v3756_v55  ;;  %v3750_v0 = vsel %vm3749_vm8, 127, %v3748_v56  ;;  %v3764_v2 = vand.u32 2147483647, %v7784_v46  ;;  %v3765_v4 = vmul.f32 0.0625, %v7784_v46  ;;  %v375_v56 = vld [vmem:[%s8493_s9 + $0x4f8] sm:$0xff] }
 0x1e9   : > { %v3761_v1 = vand.u32 128, %v3760_v58  ;;  %7422 = vst [vmem:[%s8554_s27 + $0x120] sm:$0xff] %v3744_v60  ;;  %vm3767_vm12 = vweird.f32 %v7784_v46  ;;  %v3769_v6 = vshrl.u32 %v7784_v46, 24  ;;  %v872_v8 = vmul.f32 %v8502_v3, %v358_v59 }
 0x1ea   : > { %v3759_v5 = vsel %vm3758_vm10, 127, %v3757_v62  ;;  %v3754_v9 = vsel %vm9738_vm9, %v3752_v61, %v3750_v0  ;;  %v3766_v11 = vcvt.f32.f8e4m3b11 %v3765_v4  ;;  %v3773_v12 = vand.u32 2147483647, %v7792_v47 }
 0x1eb   : > { %v3763_v10 = vsel %vm9743_vm11, %v3761_v1, %v3759_v5  ;;  %v3770_v14 = vand.u32 128, %v3769_v6  ;;  %vm9755_vm13 = vcmp.le.f32.partialorder %v3764_v2, 0.0009765625  ;;  %v3774_v16 = vmul.f32 0.0625, %v7792_v47 }
 0x1ec   : > { %v3778_v17 = vshrl.u32 %v7792_v47, 24  ;;  %v3768_v18 = vsel %vm3767_vm12, 127, %v3766_v11  ;;  %vm3776_vm14 = vweird.f32 %v7792_v47  ;;  %vm9759_vm15 = vcmp.le.f32.partialorder %v3773_v12, 0.0009765625 }
 0x1ed   : > { %v880_v20 = vmul.f32 %v8502_v3, %v366_v7  ;;  %v3775_v23 = vcvt.f32.f8e4m3b11 %v3774_v16  ;;  %v3782_v25 = vpack.c.b16 %v3763_v10, %v3754_v9  ;;  %v888_v26 = vmul.f32 %v8502_v3, %v374_v13 }
 0x1ee   : > { %v3779_v24 = vand.u32 128, %v3778_v17  ;;  %v3772_v27 = vsel %vm9755_vm13, %v3770_v14, %v3768_v18  ;;  %v7769_v28 = vclamps-f32 %v864_v48, 448.0  ;;  %v7777_v29 = vclamps-f32 %v872_v8, 448.0 }
 0x1ef   : > { %v7785_v30 = vclamps-f32 %v880_v20, 448.0  ;;  %v3777_v31 = vsel %vm3776_vm14, 127, %v3775_v23  ;;  %v7793_v32 = vclamps-f32 %v888_v26, 448.0  ;;  %v865_v33 = vmul.f32 %v8502_v3, %v351_v21 }
 0x1f0   : > { %v873_v34 = vmul.f32 %v8502_v3, %v359_v22  ;;  %v3781_v35 = vsel %vm9759_vm15, %v3779_v24, %v3777_v31  ;;  %v3786_v36 = vand.u32 2147483647, %v7769_v28  ;;  %v3787_v37 = vmul.f32 0.0625, %v7769_v28  ;;  %v376_v24 = vld [vmem:[%s8493_s9 + $0x500] sm:$0xff] }
 0x1f1   : > { %vm3789_vm0 = vweird.f32 %v7769_v28  ;;  %v3783_v38 = vpack.c.b16 %v3781_v35, %v3772_v27  ;;  %v3791_v39 = vshrl.u32 %v7769_v28, 24  ;;  %v3795_v40 = vand.u32 2147483647, %v7777_v29 }
 0x1f2   : > { %v3796_v41 = vmul.f32 0.0625, %v7777_v29  ;;  %v3788_v42 = vcvt.f32.f8e4m3b11 %v3787_v37  ;;  %vm9773_vm1 = vcmp.le.f32.partialorder %v3786_v36, 0.0009765625  ;;  %vm3798_vm2 = vweird.f32 %v7777_v29 }
 0x1f3   : > { %v3800_v44 = vshrl.u32 %v7777_v29, 24  ;;  %v3784_v46 = vpack.c.b8 %v3783_v38, %v3782_v25  ;;  %v3792_v47 = vand.u32 128, %v3791_v39  ;;  %vm9778_vm3 = vcmp.le.f32.partialorder %v3795_v40, 0.0009765625  ;;  %v384_v40 = vld [vmem:[%s8493_s9 + $0x540] sm:$0xff] }
 0x1f4   : > { %v3797_v48 = vcvt.f32.f8e4m3b11 %v3796_v41  ;;  %v3790_v50 = vsel %vm3789_vm0, 127, %v3788_v42  ;;  %v3804_v52 = vand.u32 2147483647, %v7785_v30  ;;  %v3805_v53 = vmul.f32 0.0625, %v7785_v30  ;;  %v392_v41 = vld [vmem:[%s8493_s9 + $0x580] sm:$0xff] }
 0x1f5   : > { %v3801_v51 = vand.u32 128, %v3800_v44  ;;  %7423 = vst [vmem:[%s8554_s27 + $0x128] sm:$0xff] %v3784_v46  ;;  %vm3807_vm4 = vweird.f32 %v7785_v30  ;;  %v3809_v55 = vshrl.u32 %v7785_v30, 24  ;;  %v881_v57 = vmul.f32 %v8502_v3, %v367_v45  ;;  %v400_v46 = vld [vmem:[%s8493_s9 + $0x5c0] sm:$0xff] }
 0x1f6   : > { %v3799_v54 = vsel %vm3798_vm2, 127, %v3797_v48  ;;  %v3794_v58 = vsel %vm9773_vm1, %v3792_v47, %v3790_v50  ;;  %v3806_v60 = vcvt.f32.f8e4m3b11 %v3805_v53  ;;  %v3813_v61 = vand.u32 2147483647, %v7793_v32  ;;  %v377_v50 = vld [vmem:[%s8493_s9 + $0x508] sm:$0xff] }
 0x1f7   : > { %v3803_v59 = vsel %vm9778_vm3, %v3801_v51, %v3799_v54  ;;  %v3810_v62 = vand.u32 128, %v3809_v55  ;;  %vm9789_vm5 = vcmp.le.f32.partialorder %v3804_v52, 0.0009765625  ;;  %v3814_v0 = vmul.f32 0.0625, %v7793_v32 }
 0x1f8   : > { %v3818_v1 = vshrl.u32 %v7793_v32, 24  ;;  %v3808_v2 = vsel %vm3807_vm4, 127, %v3806_v60  ;;  %vm3816_vm6 = vweird.f32 %v7793_v32  ;;  %vm9793_vm7 = vcmp.le.f32.partialorder %v3813_v61, 0.0009765625 }
 0x1f9   : > { %v889_v5 = vmul.f32 %v8502_v3, %v375_v56  ;;  %v3815_v6 = vcvt.f32.f8e4m3b11 %v3814_v0  ;;  %v3822_v8 = vpack.c.b16 %v3803_v59, %v3794_v58  ;;  %v7770_v9 = vclamps-f32 %v865_v33, 448.0 }
 0x1fa   : > { %v3819_v7 = vand.u32 128, %v3818_v1  ;;  %v3812_v10 = vsel %vm9789_vm5, %v3810_v62, %v3808_v2  ;;  %v7778_v11 = vclamps-f32 %v873_v34, 448.0  ;;  %v7786_v12 = vclamps-f32 %v881_v57, 448.0 }
 0x1fb   : > { %v7794_v13 = vclamps-f32 %v889_v5, 448.0  ;;  %v3817_v14 = vsel %vm3816_vm6, 127, %v3815_v6  ;;  %v3826_v15 = vand.u32 2147483647, %v7770_v9  ;;  %v3827_v16 = vmul.f32 0.0625, %v7770_v9 }
 0x1fc   : > { %vm3829_vm8 = vweird.f32 %v7770_v9  ;;  %v3821_v17 = vsel %vm9793_vm7, %v3819_v7, %v3817_v14  ;;  %v3831_v18 = vshrl.u32 %v7770_v9, 24  ;;  %v3835_v19 = vand.u32 2147483647, %v7778_v11 }
 0x1fd   : > { %v3836_v20 = vmul.f32 0.0625, %v7778_v11  ;;  %v3823_v21 = vpack.c.b16 %v3821_v17, %v3812_v10  ;;  %v3828_v22 = vcvt.f32.f8e4m3b11 %v3827_v16  ;;  %vm9802_vm9 = vcmp.le.f32.partialorder %v3826_v15, 0.0009765625  ;;  %v385_v10 = vld [vmem:[%s8493_s9 + $0x548] sm:$0xff] }
 0x1fe   : > { %vm3838_vm10 = vweird.f32 %v7778_v11  ;;  %v3832_v25 = vand.u32 128, %v3831_v18  ;;  %v3840_v27 = vshrl.u32 %v7778_v11, 24  ;;  %vm9807_vm11 = vcmp.le.f32.partialorder %v3835_v19, 0.0009765625 }
 0x1ff   : > { %v3837_v26 = vcvt.f32.f8e4m3b11 %v3836_v20  ;;  %v3824_v29 = vpack.c.b8 %v3823_v21, %v3822_v8  ;;  %v3830_v30 = vsel %vm3829_vm8, 127, %v3828_v22  ;;  %v3844_v31 = vand.u32 2147483647, %v7786_v12 }
 0x200   : > { %v3845_v32 = vmul.f32 0.0625, %v7786_v12  ;;  %v3841_v34 = vand.u32 128, %v3840_v27  ;;  %vm3847_vm12 = vweird.f32 %v7786_v12  ;;  %v890_v35 = vmul.f32 %v8502_v3, %v376_v24  ;;  %v401_v27 = vld [vmem:[%s8493_s9 + $0x5c8] sm:$0xff] }
 0x201   : > { %v3839_v33 = vsel %vm3838_vm10, 127, %v3837_v26  ;;  %7424 = vst [vmem:[%s8554_s27 + $0x130] sm:$0xff] %v3824_v29  ;;  %v3834_v36 = vsel %vm9802_vm9, %v3832_v25, %v3830_v30  ;;  %v3849_v38 = vshrl.u32 %v7786_v12, 24  ;;  %v3853_v39 = vand.u32 2147483647, %v7794_v13  ;;  %v393_v26 = vld [vmem:[%s8493_s9 + $0x588] sm:$0xff] }
 0x202   : > { %v3846_v37 = vcvt.f32.f8e4m3b11 %v3845_v32  ;;  %v3843_v42 = vsel %vm9807_vm11, %v3841_v34, %v3839_v33  ;;  %vm9819_vm13 = vcmp.le.f32.partialorder %v3844_v31, 0.0009765625  ;;  %v3854_v44 = vmul.f32 0.0625, %v7794_v13 }
 0x203   : > { %v3858_v45 = vshrl.u32 %v7794_v13, 24  ;;  %v3850_v48 = vand.u32 128, %v3849_v38  ;;  %vm3856_vm14 = vweird.f32 %v7794_v13  ;;  %vm9824_vm15 = vcmp.le.f32.partialorder %v3853_v39, 0.0009765625 }
 0x204   : > { %v3848_v47 = vsel %vm3847_vm12, 127, %v3846_v37  ;;  %v3855_v51 = vcvt.f32.f8e4m3b11 %v3854_v44  ;;  %v898_v53 = vmul.f32 %v8502_v3, %v384_v40  ;;  %v906_v54 = vmul.f32 %v8502_v3, %v392_v41 }
 0x205   : > { %v3859_v52 = vand.u32 128, %v3858_v45  ;;  %v3852_v55 = vsel %vm9819_vm13, %v3850_v48, %v3848_v47  ;;  %v3862_v56 = vpack.c.b16 %v3843_v42, %v3834_v36  ;;  %v914_v57 = vmul.f32 %v8502_v3, %v400_v46 }
 0x206   : > { %v7795_v58 = vclamps-f32 %v890_v35, 448.0  ;;  %v3857_v59 = vsel %vm3856_vm14, 127, %v3855_v51  ;;  %v7803_v60 = vclamps-f32 %v898_v53, 448.0  ;;  %v7811_v61 = vclamps-f32 %v906_v54, 448.0  ;;  %v378_v35 = vld [vmem:[%s8493_s9 + $0x510] sm:$0xff] }
 0x207   : > { %v891_v62 = vmul.f32 %v8502_v3, %v377_v50  ;;  %v3861_v63 = vsel %vm9824_vm15, %v3859_v52, %v3857_v59  ;;  %v7819_v0 = vclamps-f32 %v914_v57, 448.0  ;;  %v899_v21 = vmul.f32 %v8502_v3, %v385_v10 }
 0x208   : > { %v3866_v1 = vand.u32 2147483647, %v7795_v58  ;;  %v3867_v2 = vmul.f32 0.0625, %v7795_v58  ;;  %v3863_v4 = vpack.c.b16 %v3861_v63, %v3852_v55  ;;  %vm3869_vm0 = vweird.f32 %v7795_v58 }
 0x209   : > { %v3871_v5 = vshrl.u32 %v7795_v58, 24  ;;  %v3875_v6 = vand.u32 2147483647, %v7803_v60  ;;  %v3876_v9 = vmul.f32 0.0625, %v7803_v60  ;;  %vm3878_vm2 = vweird.f32 %v7803_v60  ;;  %v386_v58 = vld [vmem:[%s8493_s9 + $0x550] sm:$0xff] }
 0x20a   : > { %v3868_v7 = vcvt.f32.f8e4m3b11 %v3867_v2  ;;  %vm9837_vm1 = vcmp.le.f32.partialorder %v3866_v1, 0.0009765625  ;;  %v3864_v11 = vpack.c.b8 %v3863_v4, %v3862_v56  ;;  %v3880_v13 = vshrl.u32 %v7803_v60, 24 }
 0x20b   : > { %v3872_v12 = vand.u32 128, %v3871_v5  ;;  %vm9842_vm3 = vcmp.le.f32.partialorder %v3875_v6, 0.0009765625  ;;  %v3877_v16 = vcvt.f32.f8e4m3b11 %v3876_v9  ;;  %v3884_v17 = vand.u32 2147483647, %v7811_v61  ;;  %v394_v6 = vld [vmem:[%s8493_s9 + $0x590] sm:$0xff] }
 0x20c   : > { %v3870_v15 = vsel %vm3869_vm0, 127, %v3868_v7  ;;  %v3885_v18 = vmul.f32 0.0625, %v7811_v61  ;;  %7425 = vst [vmem:[%s8554_s27 + $0x138] sm:$0xff] %v3864_v11  ;;  %v3881_v19 = vand.u32 128, %v3880_v13  ;;  %vm3887_vm4 = vweird.f32 %v7811_v61 }
 0x20d   : > { %v3889_v20 = vshrl.u32 %v7811_v61, 24  ;;  %v3874_v22 = vsel %vm9837_vm1, %v3872_v12, %v3870_v15  ;;  %v3879_v23 = vsel %vm3878_vm2, 127, %v3877_v16  ;;  %v3893_v25 = vand.u32 2147483647, %v7819_v0  ;;  %v402_v12 = vld [vmem:[%s8493_s9 + $0x5d0] sm:$0xff] }
 0x20e   : > { %v3886_v24 = vcvt.f32.f8e4m3b11 %v3885_v18  ;;  %v3883_v28 = vsel %vm9842_vm3, %v3881_v19, %v3879_v23  ;;  %vm9855_vm5 = vcmp.le.f32.partialorder %v3884_v17, 0.0009765625  ;;  %v3894_v31 = vmul.f32 0.0625, %v7819_v0 }
 0x20f   : > { %v3890_v29 = vand.u32 128, %v3889_v20  ;;  %vm3896_vm6 = vweird.f32 %v7819_v0  ;;  %v3898_v33 = vshrl.u32 %v7819_v0, 24  ;;  %vm9859_vm7 = vcmp.le.f32.partialorder %v3893_v25, 0.0009765625  ;;  %v379_v20 = vld [vmem:[%s8493_s9 + $0x518] sm:$0xff] }
 0x210   : > { %v3888_v32 = vsel %vm3887_vm4, 127, %v3886_v24  ;;  %v3895_v36 = vcvt.f32.f8e4m3b11 %v3894_v31  ;;  %v3902_v37 = vpack.c.b16 %v3883_v28, %v3874_v22  ;;  %v907_v38 = vmul.f32 %v8502_v3, %v393_v26 }
 0x211   : > { %v915_v39 = vmul.f32 %v8502_v3, %v401_v27  ;;  %v3892_v40 = vsel %vm9855_vm5, %v3890_v29, %v3888_v32  ;;  %v3899_v41 = vand.u32 128, %v3898_v33  ;;  %v7796_v42 = vclamps-f32 %v891_v62, 448.0 }
 0x212   : > { %v7804_v43 = vclamps-f32 %v899_v21, 448.0  ;;  %v3897_v44 = vsel %vm3896_vm6, 127, %v3895_v36  ;;  %v7812_v45 = vclamps-f32 %v907_v38, 448.0  ;;  %v892_v47 = vmul.f32 %v8502_v3, %v378_v35  ;;  %v387_v21 = vld [vmem:[%s8493_s9 + $0x558] sm:$0xff] }
 0x213   : > { %v7820_v46 = vclamps-f32 %v915_v39, 448.0  ;;  %v3901_v48 = vsel %vm9859_vm7, %v3899_v41, %v3897_v44  ;;  %v3906_v49 = vand.u32 2147483647, %v7796_v42  ;;  %v3907_v50 = vmul.f32 0.0625, %v7796_v42  ;;  %v395_v44 = vld [vmem:[%s8493_s9 + $0x598] sm:$0xff] }
 0x214   : > { %vm3909_vm8 = vweird.f32 %v7796_v42  ;;  %v3903_v51 = vpack.c.b16 %v3901_v48, %v3892_v40  ;;  %v3911_v52 = vshrl.u32 %v7796_v42, 24  ;;  %v3915_v53 = vand.u32 2147483647, %v7804_v43 }
 0x215   : > { %v3916_v54 = vmul.f32 0.0625, %v7804_v43  ;;  %v3908_v55 = vcvt.f32.f8e4m3b11 %v3907_v50  ;;  %vm9871_vm9 = vcmp.le.f32.partialorder %v3906_v49, 0.0009765625  ;;  %vm3918_vm10 = vweird.f32 %v7804_v43 }
 0x216   : > { %v3920_v57 = vshrl.u32 %v7804_v43, 24  ;;  %v3904_v59 = vpack.c.b8 %v3903_v51, %v3902_v37  ;;  %v3912_v60 = vand.u32 128, %v3911_v52  ;;  %vm9876_vm11 = vcmp.le.f32.partialorder %v3915_v53, 0.0009765625 }
 0x217   : > { %v3917_v61 = vcvt.f32.f8e4m3b11 %v3916_v54  ;;  %v3910_v63 = vsel %vm3909_vm8, 127, %v3908_v55  ;;  %v3924_v1 = vand.u32 2147483647, %v7812_v45  ;;  %v3925_v2 = vmul.f32 0.0625, %v7812_v45  ;;  %v403_v55 = vld [vmem:[%s8493_s9 + $0x5d8] sm:$0xff] }
 0x218   : > { %v3921_v0 = vand.u32 128, %v3920_v57  ;;  %7426 = vst [vmem:[%s8554_s27 + $0x140] sm:$0xff] %v3904_v59  ;;  %vm3927_vm12 = vweird.f32 %v7812_v45  ;;  %v3929_v5 = vshrl.u32 %v7812_v45, 24  ;;  %v900_v7 = vmul.f32 %v8502_v3, %v386_v58 }
 0x219   : > { %v3919_v4 = vsel %vm3918_vm10, 127, %v3917_v61  ;;  %v3914_v8 = vsel %vm9871_vm9, %v3912_v60, %v3910_v63  ;;  %v3926_v10 = vcvt.f32.f8e4m3b11 %v3925_v2  ;;  %v3933_v11 = vand.u32 2147483647, %v7820_v46 }
 0x21a   : > { %v3923_v9 = vsel %vm9876_vm11, %v3921_v0, %v3919_v4  ;;  %v3930_v13 = vand.u32 128, %v3929_v5  ;;  %vm9888_vm13 = vcmp.le.f32.partialorder %v3924_v1, 0.0009765625  ;;  %v3934_v15 = vmul.f32 0.0625, %v7820_v46 }
 0x21b   : > { %v3938_v16 = vshrl.u32 %v7820_v46, 24  ;;  %v3928_v17 = vsel %vm3927_vm12, 127, %v3926_v10  ;;  %vm3936_vm14 = vweird.f32 %v7820_v46  ;;  %vm9892_vm15 = vcmp.le.f32.partialorder %v3933_v11, 0.0009765625 }
 0x21c   : > { %v908_v19 = vmul.f32 %v8502_v3, %v394_v6  ;;  %v3935_v22 = vcvt.f32.f8e4m3b11 %v3934_v15  ;;  %v3942_v24 = vpack.c.b16 %v3923_v9, %v3914_v8  ;;  %v916_v25 = vmul.f32 %v8502_v3, %v402_v12 }
 0x21d   : > { %v3939_v23 = vand.u32 128, %v3938_v16  ;;  %v3932_v26 = vsel %vm9888_vm13, %v3930_v13, %v3928_v17  ;;  %v7797_v27 = vclamps-f32 %v892_v47, 448.0  ;;  %v7805_v28 = vclamps-f32 %v900_v7, 448.0 }
 0x21e   : > { %v7813_v29 = vclamps-f32 %v908_v19, 448.0  ;;  %v3937_v30 = vsel %vm3936_vm14, 127, %v3935_v22  ;;  %v7821_v31 = vclamps-f32 %v916_v25, 448.0  ;;  %v893_v32 = vmul.f32 %v8502_v3, %v379_v20 }
 0x21f   : > { %v901_v33 = vmul.f32 %v8502_v3, %v387_v21  ;;  %v3941_v34 = vsel %vm9892_vm15, %v3939_v23, %v3937_v30  ;;  %v3946_v35 = vand.u32 2147483647, %v7797_v27  ;;  %v3947_v36 = vmul.f32 0.0625, %v7797_v27  ;;  %v380_v23 = vld [vmem:[%s8493_s9 + $0x520] sm:$0xff] }
 0x220   : > { %vm3949_vm0 = vweird.f32 %v7797_v27  ;;  %v3943_v37 = vpack.c.b16 %v3941_v34, %v3932_v26  ;;  %v3951_v38 = vshrl.u32 %v7797_v27, 24  ;;  %v3955_v39 = vand.u32 2147483647, %v7805_v28 }
 0x221   : > { %v3956_v40 = vmul.f32 0.0625, %v7805_v28  ;;  %v3948_v41 = vcvt.f32.f8e4m3b11 %v3947_v36  ;;  %vm9906_vm1 = vcmp.le.f32.partialorder %v3946_v35, 0.0009765625  ;;  %vm3958_vm2 = vweird.f32 %v7805_v28 }
 0x222   : > { %v3960_v43 = vshrl.u32 %v7805_v28, 24  ;;  %v3944_v45 = vpack.c.b8 %v3943_v37, %v3942_v24  ;;  %v3952_v46 = vand.u32 128, %v3951_v38  ;;  %vm9911_vm3 = vcmp.le.f32.partialorder %v3955_v39, 0.0009765625  ;;  %v388_v39 = vld [vmem:[%s8493_s9 + $0x560] sm:$0xff] }
 0x223   : > { %v3957_v47 = vcvt.f32.f8e4m3b11 %v3956_v40  ;;  %v3950_v49 = vsel %vm3949_vm0, 127, %v3948_v41  ;;  %v3964_v51 = vand.u32 2147483647, %v7813_v29  ;;  %v3965_v52 = vmul.f32 0.0625, %v7813_v29  ;;  %v396_v40 = vld [vmem:[%s8493_s9 + $0x5a0] sm:$0xff] }
 0x224   : > { %v3961_v50 = vand.u32 128, %v3960_v43  ;;  %7427 = vst [vmem:[%s8554_s27 + $0x148] sm:$0xff] %v3944_v45  ;;  %vm3967_vm4 = vweird.f32 %v7813_v29  ;;  %v3969_v54 = vshrl.u32 %v7813_v29, 24  ;;  %v909_v56 = vmul.f32 %v8502_v3, %v395_v44  ;;  %v404_v45 = vld [vmem:[%s8493_s9 + $0x5e0] sm:$0xff] }
 0x225   : > { %v3959_v53 = vsel %vm3958_vm2, 127, %v3957_v47  ;;  %v3954_v57 = vsel %vm9906_vm1, %v3952_v46, %v3950_v49  ;;  %v3966_v59 = vcvt.f32.f8e4m3b11 %v3965_v52  ;;  %v3973_v60 = vand.u32 2147483647, %v7821_v31  ;;  %v381_v49 = vld [vmem:[%s8493_s9 + $0x528] sm:$0xff] }
 0x226   : > { %v3963_v58 = vsel %vm9911_vm3, %v3961_v50, %v3959_v53  ;;  %v3970_v61 = vand.u32 128, %v3969_v54  ;;  %vm9922_vm5 = vcmp.le.f32.partialorder %v3964_v51, 0.0009765625  ;;  %v3974_v63 = vmul.f32 0.0625, %v7821_v31 }
 0x227   : > { %v3978_v0 = vshrl.u32 %v7821_v31, 24  ;;  %v3968_v1 = vsel %vm3967_vm4, 127, %v3966_v59  ;;  %vm3976_vm6 = vweird.f32 %v7821_v31  ;;  %vm9926_vm7 = vcmp.le.f32.partialorder %v3973_v60, 0.0009765625 }
 0x228   : > { %v917_v4 = vmul.f32 %v8502_v3, %v403_v55  ;;  %v3975_v5 = vcvt.f32.f8e4m3b11 %v3974_v63  ;;  %v3982_v7 = vpack.c.b16 %v3963_v58, %v3954_v57  ;;  %v7798_v8 = vclamps-f32 %v893_v32, 448.0 }
 0x229   : > { %v3979_v6 = vand.u32 128, %v3978_v0  ;;  %v3972_v9 = vsel %vm9922_vm5, %v3970_v61, %v3968_v1  ;;  %v7806_v10 = vclamps-f32 %v901_v33, 448.0  ;;  %v7814_v11 = vclamps-f32 %v909_v56, 448.0 }
 0x22a   : > { %v7822_v12 = vclamps-f32 %v917_v4, 448.0  ;;  %v3977_v13 = vsel %vm3976_vm6, 127, %v3975_v5  ;;  %v3986_v14 = vand.u32 2147483647, %v7798_v8  ;;  %v3987_v15 = vmul.f32 0.0625, %v7798_v8 }
 0x22b   : > { %vm3989_vm8 = vweird.f32 %v7798_v8  ;;  %v3981_v16 = vsel %vm9926_vm7, %v3979_v6, %v3977_v13  ;;  %v3991_v17 = vshrl.u32 %v7798_v8, 24  ;;  %v3995_v18 = vand.u32 2147483647, %v7806_v10 }
 0x22c   : > { %v3996_v19 = vmul.f32 0.0625, %v7806_v10  ;;  %v3983_v20 = vpack.c.b16 %v3981_v16, %v3972_v9  ;;  %v3988_v21 = vcvt.f32.f8e4m3b11 %v3987_v15  ;;  %vm9935_vm9 = vcmp.le.f32.partialorder %v3986_v14, 0.0009765625  ;;  %v389_v9 = vld [vmem:[%s8493_s9 + $0x568] sm:$0xff] }
 0x22d   : > { %vm3998_vm10 = vweird.f32 %v7806_v10  ;;  %v3992_v24 = vand.u32 128, %v3991_v17  ;;  %v4000_v26 = vshrl.u32 %v7806_v10, 24  ;;  %vm9940_vm11 = vcmp.le.f32.partialorder %v3995_v18, 0.0009765625 }
 0x22e   : > { %v3997_v25 = vcvt.f32.f8e4m3b11 %v3996_v19  ;;  %v3984_v28 = vpack.c.b8 %v3983_v20, %v3982_v7  ;;  %v3990_v29 = vsel %vm3989_vm8, 127, %v3988_v21  ;;  %v4004_v30 = vand.u32 2147483647, %v7814_v11 }
 0x22f   : > { %v4005_v31 = vmul.f32 0.0625, %v7814_v11  ;;  %v4001_v33 = vand.u32 128, %v4000_v26  ;;  %vm4007_vm12 = vweird.f32 %v7814_v11  ;;  %v894_v34 = vmul.f32 %v8502_v3, %v380_v23  ;;  %v405_v26 = vld [vmem:[%s8493_s9 + $0x5e8] sm:$0xff] }
 0x230   : > { %v3999_v32 = vsel %vm3998_vm10, 127, %v3997_v25  ;;  %7428 = vst [vmem:[%s8554_s27 + $0x150] sm:$0xff] %v3984_v28  ;;  %v3994_v35 = vsel %vm9935_vm9, %v3992_v24, %v3990_v29  ;;  %v4009_v37 = vshrl.u32 %v7814_v11, 24  ;;  %v4013_v38 = vand.u32 2147483647, %v7822_v12  ;;  %v397_v25 = vld [vmem:[%s8493_s9 + $0x5a8] sm:$0xff] }
 0x231   : > { %v4006_v36 = vcvt.f32.f8e4m3b11 %v4005_v31  ;;  %v4003_v41 = vsel %vm9940_vm11, %v4001_v33, %v3999_v32  ;;  %vm9952_vm13 = vcmp.le.f32.partialorder %v4004_v30, 0.0009765625  ;;  %v4014_v43 = vmul.f32 0.0625, %v7822_v12 }
 0x232   : > { %v4018_v44 = vshrl.u32 %v7822_v12, 24  ;;  %v4010_v47 = vand.u32 128, %v4009_v37  ;;  %vm4016_vm14 = vweird.f32 %v7822_v12  ;;  %vm9957_vm15 = vcmp.le.f32.partialorder %v4013_v38, 0.0009765625 }
 0x233   : > { %v4008_v46 = vsel %vm4007_vm12, 127, %v4006_v36  ;;  %v4015_v50 = vcvt.f32.f8e4m3b11 %v4014_v43  ;;  %v902_v52 = vmul.f32 %v8502_v3, %v388_v39  ;;  %v910_v53 = vmul.f32 %v8502_v3, %v396_v40 }
 0x234   : > { %v4019_v51 = vand.u32 128, %v4018_v44  ;;  %v4012_v54 = vsel %vm9952_vm13, %v4010_v47, %v4008_v46  ;;  %v4022_v55 = vpack.c.b16 %v4003_v41, %v3994_v35  ;;  %v918_v56 = vmul.f32 %v8502_v3, %v404_v45 }
 0x235   : > { %v7799_v57 = vclamps-f32 %v894_v34, 448.0  ;;  %v4017_v58 = vsel %vm4016_vm14, 127, %v4015_v50  ;;  %v7807_v59 = vclamps-f32 %v902_v52, 448.0  ;;  %v7815_v60 = vclamps-f32 %v910_v53, 448.0  ;;  %v382_v34 = vld [vmem:[%s8493_s9 + $0x530] sm:$0xff] }
 0x236   : > { %v895_v61 = vmul.f32 %v8502_v3, %v381_v49  ;;  %v4021_v62 = vsel %vm9957_vm15, %v4019_v51, %v4017_v58  ;;  %v7823_v63 = vclamps-f32 %v918_v56, 448.0  ;;  %v903_v20 = vmul.f32 %v8502_v3, %v389_v9 }
 0x237   : > { %v4026_v0 = vand.u32 2147483647, %v7799_v57  ;;  %v4027_v1 = vmul.f32 0.0625, %v7799_v57  ;;  %v4023_v2 = vpack.c.b16 %v4021_v62, %v4012_v54  ;;  %vm4029_vm0 = vweird.f32 %v7799_v57 }
 0x238   : > { %v4031_v4 = vshrl.u32 %v7799_v57, 24  ;;  %v4035_v5 = vand.u32 2147483647, %v7807_v59  ;;  %v4036_v8 = vmul.f32 0.0625, %v7807_v59  ;;  %vm4038_vm2 = vweird.f32 %v7807_v59  ;;  %v390_v57 = vld [vmem:[%s8493_s9 + $0x570] sm:$0xff] }
 0x239   : > { %v4028_v6 = vcvt.f32.f8e4m3b11 %v4027_v1  ;;  %vm9970_vm1 = vcmp.le.f32.partialorder %v4026_v0, 0.0009765625  ;;  %v4024_v10 = vpack.c.b8 %v4023_v2, %v4022_v55  ;;  %v4040_v12 = vshrl.u32 %v7807_v59, 24 }
 0x23a   : > { %v4032_v11 = vand.u32 128, %v4031_v4  ;;  %vm9975_vm3 = vcmp.le.f32.partialorder %v4035_v5, 0.0009765625  ;;  %v4037_v15 = vcvt.f32.f8e4m3b11 %v4036_v8  ;;  %v4044_v16 = vand.u32 2147483647, %v7815_v60  ;;  %v398_v5 = vld [vmem:[%s8493_s9 + $0x5b0] sm:$0xff] }
 0x23b   : > { %v4030_v14 = vsel %vm4029_vm0, 127, %v4028_v6  ;;  %v4045_v17 = vmul.f32 0.0625, %v7815_v60  ;;  %7429 = vst [vmem:[%s8554_s27 + $0x158] sm:$0xff] %v4024_v10  ;;  %v4041_v18 = vand.u32 128, %v4040_v12  ;;  %vm4047_vm4 = vweird.f32 %v7815_v60 }
 0x23c   : > { %v4049_v19 = vshrl.u32 %v7815_v60, 24  ;;  %v4034_v21 = vsel %vm9970_vm1, %v4032_v11, %v4030_v14  ;;  %v4039_v22 = vsel %vm4038_vm2, 127, %v4037_v15  ;;  %v4053_v24 = vand.u32 2147483647, %v7823_v63  ;;  %v406_v11 = vld [vmem:[%s8493_s9 + $0x5f0] sm:$0xff] }
 0x23d   : > { %v4046_v23 = vcvt.f32.f8e4m3b11 %v4045_v17  ;;  %v4043_v27 = vsel %vm9975_vm3, %v4041_v18, %v4039_v22  ;;  %vm9988_vm5 = vcmp.le.f32.partialorder %v4044_v16, 0.0009765625  ;;  %v4054_v30 = vmul.f32 0.0625, %v7823_v63 }
 0x23e   : > { %v4050_v28 = vand.u32 128, %v4049_v19  ;;  %vm4056_vm6 = vweird.f32 %v7823_v63  ;;  %v4058_v32 = vshrl.u32 %v7823_v63, 24  ;;  %vm9992_vm7 = vcmp.le.f32.partialorder %v4053_v24, 0.0009765625  ;;  %v383_v19 = vld [vmem:[%s8493_s9 + $0x538] sm:$0xff] }
 0x23f   : > { %v4048_v31 = vsel %vm4047_vm4, 127, %v4046_v23  ;;  %v4055_v35 = vcvt.f32.f8e4m3b11 %v4054_v30  ;;  %v4062_v36 = vpack.c.b16 %v4043_v27, %v4034_v21  ;;  %v911_v37 = vmul.f32 %v8502_v3, %v397_v25 }
 0x240   : > { %v919_v38 = vmul.f32 %v8502_v3, %v405_v26  ;;  %v4052_v39 = vsel %vm9988_vm5, %v4050_v28, %v4048_v31  ;;  %v4059_v40 = vand.u32 128, %v4058_v32  ;;  %v7800_v41 = vclamps-f32 %v895_v61, 448.0 }
 0x241   : > { %v7808_v42 = vclamps-f32 %v903_v20, 448.0  ;;  %v4057_v43 = vsel %vm4056_vm6, 127, %v4055_v35  ;;  %v7816_v44 = vclamps-f32 %v911_v37, 448.0  ;;  %v896_v46 = vmul.f32 %v8502_v3, %v382_v34  ;;  %v391_v20 = vld [vmem:[%s8493_s9 + $0x578] sm:$0xff] }
 0x242   : > { %v7824_v45 = vclamps-f32 %v919_v38, 448.0  ;;  %v4061_v47 = vsel %vm9992_vm7, %v4059_v40, %v4057_v43  ;;  %v4066_v48 = vand.u32 2147483647, %v7800_v41  ;;  %v4067_v49 = vmul.f32 0.0625, %v7800_v41  ;;  %v399_v43 = vld [vmem:[%s8493_s9 + $0x5b8] sm:$0xff] }
 0x243   : > { %vm4069_vm8 = vweird.f32 %v7800_v41  ;;  %v4063_v50 = vpack.c.b16 %v4061_v47, %v4052_v39  ;;  %v4071_v51 = vshrl.u32 %v7800_v41, 24  ;;  %v4075_v52 = vand.u32 2147483647, %v7808_v42 }
 0x244   : > { %v4076_v53 = vmul.f32 0.0625, %v7808_v42  ;;  %v4068_v54 = vcvt.f32.f8e4m3b11 %v4067_v49  ;;  %vm10004_vm9 = vcmp.le.f32.partialorder %v4066_v48, 0.0009765625  ;;  %vm4078_vm10 = vweird.f32 %v7808_v42 }
 0x245   : > { %v4080_v56 = vshrl.u32 %v7808_v42, 24  ;;  %v4064_v58 = vpack.c.b8 %v4063_v50, %v4062_v36  ;;  %v4072_v59 = vand.u32 128, %v4071_v51  ;;  %vm10009_vm11 = vcmp.le.f32.partialorder %v4075_v52, 0.0009765625 }
 0x246   : > { %v4077_v60 = vcvt.f32.f8e4m3b11 %v4076_v53  ;;  %v4070_v62 = vsel %vm4069_vm8, 127, %v4068_v54  ;;  %v4084_v0 = vand.u32 2147483647, %v7816_v44  ;;  %v4085_v1 = vmul.f32 0.0625, %v7816_v44  ;;  %v407_v54 = vld [vmem:[%s8493_s9 + $0x5f8] sm:$0xff] }
 0x247   : > { %v4081_v63 = vand.u32 128, %v4080_v56  ;;  %7430 = vst [vmem:[%s8554_s27 + $0x160] sm:$0xff] %v4064_v58  ;;  %vm4087_vm12 = vweird.f32 %v7816_v44  ;;  %v4089_v4 = vshrl.u32 %v7816_v44, 24  ;;  %v904_v6 = vmul.f32 %v8502_v3, %v390_v57 }
 0x248   : > { %v4079_v2 = vsel %vm4078_vm10, 127, %v4077_v60  ;;  %v4074_v7 = vsel %vm10004_vm9, %v4072_v59, %v4070_v62  ;;  %v4086_v9 = vcvt.f32.f8e4m3b11 %v4085_v1  ;;  %v4093_v10 = vand.u32 2147483647, %v7824_v45 }
 0x249   : > { %v4083_v8 = vsel %vm10009_vm11, %v4081_v63, %v4079_v2  ;;  %v4090_v12 = vand.u32 128, %v4089_v4  ;;  %vm10021_vm13 = vcmp.le.f32.partialorder %v4084_v0, 0.0009765625  ;;  %v4094_v14 = vmul.f32 0.0625, %v7824_v45 }
 0x24a   : > { %v4098_v15 = vshrl.u32 %v7824_v45, 24  ;;  %v4088_v16 = vsel %vm4087_vm12, 127, %v4086_v9  ;;  %vm4096_vm14 = vweird.f32 %v7824_v45  ;;  %vm10025_vm15 = vcmp.le.f32.partialorder %v4093_v10, 0.0009765625 }
 0x24b   : > { %v912_v18 = vmul.f32 %v8502_v3, %v398_v5  ;;  %v4095_v21 = vcvt.f32.f8e4m3b11 %v4094_v14  ;;  %v4102_v23 = vpack.c.b16 %v4083_v8, %v4074_v7  ;;  %v920_v24 = vmul.f32 %v8502_v3, %v406_v11 }
 0x24c   : > { %v4099_v22 = vand.u32 128, %v4098_v15  ;;  %v4092_v25 = vsel %vm10021_vm13, %v4090_v12, %v4088_v16  ;;  %v7801_v26 = vclamps-f32 %v896_v46, 448.0  ;;  %v7809_v27 = vclamps-f32 %v904_v6, 448.0 }
 0x24d   : > { %v7817_v28 = vclamps-f32 %v912_v18, 448.0  ;;  %v4097_v29 = vsel %vm4096_vm14, 127, %v4095_v21  ;;  %v7825_v30 = vclamps-f32 %v920_v24, 448.0  ;;  %v897_v31 = vmul.f32 %v8502_v3, %v383_v19 }
 0x24e   : > { %v905_v32 = vmul.f32 %v8502_v3, %v391_v20  ;;  %v4101_v33 = vsel %vm10025_vm15, %v4099_v22, %v4097_v29  ;;  %v4106_v34 = vand.u32 2147483647, %v7801_v26  ;;  %v4107_v35 = vmul.f32 0.0625, %v7801_v26  ;;  %v408_v22 = vld [vmem:[%s8493_s9 + $0x600] sm:$0xff] }
 0x24f   : > { %vm4109_vm0 = vweird.f32 %v7801_v26  ;;  %v4103_v36 = vpack.c.b16 %v4101_v33, %v4092_v25  ;;  %v4111_v37 = vshrl.u32 %v7801_v26, 24  ;;  %v4115_v38 = vand.u32 2147483647, %v7809_v27 }
 0x250   : > { %v4116_v39 = vmul.f32 0.0625, %v7809_v27  ;;  %v4108_v40 = vcvt.f32.f8e4m3b11 %v4107_v35  ;;  %vm10039_vm1 = vcmp.le.f32.partialorder %v4106_v34, 0.0009765625  ;;  %vm4118_vm2 = vweird.f32 %v7809_v27 }
 0x251   : > { %v4120_v42 = vshrl.u32 %v7809_v27, 24  ;;  %v4104_v44 = vpack.c.b8 %v4103_v36, %v4102_v23  ;;  %v4112_v45 = vand.u32 128, %v4111_v37  ;;  %vm10044_vm3 = vcmp.le.f32.partialorder %v4115_v38, 0.0009765625  ;;  %v416_v38 = vld [vmem:[%s8493_s9 + $0x640] sm:$0xff] }
 0x252   : > { %v4117_v46 = vcvt.f32.f8e4m3b11 %v4116_v39  ;;  %v4110_v48 = vsel %vm4109_vm0, 127, %v4108_v40  ;;  %v4124_v50 = vand.u32 2147483647, %v7817_v28  ;;  %v4125_v51 = vmul.f32 0.0625, %v7817_v28  ;;  %v424_v39 = vld [vmem:[%s8493_s9 + $0x680] sm:$0xff] }
 0x253   : > { %v4121_v49 = vand.u32 128, %v4120_v42  ;;  %7431 = vst [vmem:[%s8554_s27 + $0x168] sm:$0xff] %v4104_v44  ;;  %vm4127_vm4 = vweird.f32 %v7817_v28  ;;  %v4129_v53 = vshrl.u32 %v7817_v28, 24  ;;  %v913_v55 = vmul.f32 %v8502_v3, %v399_v43  ;;  %v432_v44 = vld [vmem:[%s8493_s9 + $0x6c0] sm:$0xff] }
 0x254   : > { %v4119_v52 = vsel %vm4118_vm2, 127, %v4117_v46  ;;  %v4114_v56 = vsel %vm10039_vm1, %v4112_v45, %v4110_v48  ;;  %v4126_v58 = vcvt.f32.f8e4m3b11 %v4125_v51  ;;  %v4133_v59 = vand.u32 2147483647, %v7825_v30  ;;  %v409_v48 = vld [vmem:[%s8493_s9 + $0x608] sm:$0xff] }
 0x255   : > { %v4123_v57 = vsel %vm10044_vm3, %v4121_v49, %v4119_v52  ;;  %v4130_v60 = vand.u32 128, %v4129_v53  ;;  %vm10055_vm5 = vcmp.le.f32.partialorder %v4124_v50, 0.0009765625  ;;  %v4134_v62 = vmul.f32 0.0625, %v7825_v30 }
 0x256   : > { %v4138_v63 = vshrl.u32 %v7825_v30, 24  ;;  %v4128_v0 = vsel %vm4127_vm4, 127, %v4126_v58  ;;  %vm4136_vm6 = vweird.f32 %v7825_v30  ;;  %vm10059_vm7 = vcmp.le.f32.partialorder %v4133_v59, 0.0009765625 }
 0x257   : > { %v921_v2 = vmul.f32 %v8502_v3, %v407_v54  ;;  %v4135_v4 = vcvt.f32.f8e4m3b11 %v4134_v62  ;;  %v4142_v6 = vpack.c.b16 %v4123_v57, %v4114_v56  ;;  %v7802_v7 = vclamps-f32 %v897_v31, 448.0 }
 0x258   : > { %v4139_v5 = vand.u32 128, %v4138_v63  ;;  %v4132_v8 = vsel %vm10055_vm5, %v4130_v60, %v4128_v0  ;;  %v7810_v9 = vclamps-f32 %v905_v32, 448.0  ;;  %v7818_v10 = vclamps-f32 %v913_v55, 448.0 }
 0x259   : > { %v7826_v11 = vclamps-f32 %v921_v2, 448.0  ;;  %v4137_v12 = vsel %vm4136_vm6, 127, %v4135_v4  ;;  %v4146_v13 = vand.u32 2147483647, %v7802_v7  ;;  %v4147_v14 = vmul.f32 0.0625, %v7802_v7 }
 0x25a   : > { %vm4149_vm8 = vweird.f32 %v7802_v7  ;;  %v4141_v15 = vsel %vm10059_vm7, %v4139_v5, %v4137_v12  ;;  %v4151_v16 = vshrl.u32 %v7802_v7, 24  ;;  %v4155_v17 = vand.u32 2147483647, %v7810_v9 }
 0x25b   : > { %v4156_v18 = vmul.f32 0.0625, %v7810_v9  ;;  %v4143_v19 = vpack.c.b16 %v4141_v15, %v4132_v8  ;;  %v4148_v20 = vcvt.f32.f8e4m3b11 %v4147_v14  ;;  %vm10068_vm9 = vcmp.le.f32.partialorder %v4146_v13, 0.0009765625  ;;  %v417_v8 = vld [vmem:[%s8493_s9 + $0x648] sm:$0xff] }
 0x25c   : > { %vm4158_vm10 = vweird.f32 %v7810_v9  ;;  %v4152_v23 = vand.u32 128, %v4151_v16  ;;  %v4160_v25 = vshrl.u32 %v7810_v9, 24  ;;  %vm10073_vm11 = vcmp.le.f32.partialorder %v4155_v17, 0.0009765625 }
 0x25d   : > { %v4157_v24 = vcvt.f32.f8e4m3b11 %v4156_v18  ;;  %v4144_v27 = vpack.c.b8 %v4143_v19, %v4142_v6  ;;  %v4150_v28 = vsel %vm4149_vm8, 127, %v4148_v20  ;;  %v4164_v29 = vand.u32 2147483647, %v7818_v10 }
 0x25e   : > { %v4165_v30 = vmul.f32 0.0625, %v7818_v10  ;;  %v4161_v32 = vand.u32 128, %v4160_v25  ;;  %vm4167_vm12 = vweird.f32 %v7818_v10  ;;  %v922_v33 = vmul.f32 %v8502_v3, %v408_v22  ;;  %v433_v25 = vld [vmem:[%s8493_s9 + $0x6c8] sm:$0xff] }
 0x25f   : > { %v4159_v31 = vsel %vm4158_vm10, 127, %v4157_v24  ;;  %7432 = vst [vmem:[%s8554_s27 + $0x170] sm:$0xff] %v4144_v27  ;;  %v4154_v34 = vsel %vm10068_vm9, %v4152_v23, %v4150_v28  ;;  %v4169_v36 = vshrl.u32 %v7818_v10, 24  ;;  %v4173_v37 = vand.u32 2147483647, %v7826_v11  ;;  %v425_v24 = vld [vmem:[%s8493_s9 + $0x688] sm:$0xff] }
 0x260   : > { %v4166_v35 = vcvt.f32.f8e4m3b11 %v4165_v30  ;;  %v4163_v40 = vsel %vm10073_vm11, %v4161_v32, %v4159_v31  ;;  %vm10085_vm13 = vcmp.le.f32.partialorder %v4164_v29, 0.0009765625  ;;  %v4174_v42 = vmul.f32 0.0625, %v7826_v11 }
 0x261   : > { %v4178_v43 = vshrl.u32 %v7826_v11, 24  ;;  %v4170_v46 = vand.u32 128, %v4169_v36  ;;  %vm4176_vm14 = vweird.f32 %v7826_v11  ;;  %vm10090_vm15 = vcmp.le.f32.partialorder %v4173_v37, 0.0009765625 }
 0x262   : > { %v4168_v45 = vsel %vm4167_vm12, 127, %v4166_v35  ;;  %v4175_v49 = vcvt.f32.f8e4m3b11 %v4174_v42  ;;  %v930_v51 = vmul.f32 %v8502_v3, %v416_v38  ;;  %v938_v52 = vmul.f32 %v8502_v3, %v424_v39 }
 0x263   : > { %v4179_v50 = vand.u32 128, %v4178_v43  ;;  %v4172_v53 = vsel %vm10085_vm13, %v4170_v46, %v4168_v45  ;;  %v4182_v54 = vpack.c.b16 %v4163_v40, %v4154_v34  ;;  %v946_v55 = vmul.f32 %v8502_v3, %v432_v44 }
 0x264   : > { %v7827_v56 = vclamps-f32 %v922_v33, 448.0  ;;  %v4177_v57 = vsel %vm4176_vm14, 127, %v4175_v49  ;;  %v7835_v58 = vclamps-f32 %v930_v51, 448.0  ;;  %v7843_v59 = vclamps-f32 %v938_v52, 448.0  ;;  %v410_v33 = vld [vmem:[%s8493_s9 + $0x610] sm:$0xff] }
 0x265   : > { %v923_v60 = vmul.f32 %v8502_v3, %v409_v48  ;;  %v4181_v61 = vsel %vm10090_vm15, %v4179_v50, %v4177_v57  ;;  %v7851_v62 = vclamps-f32 %v946_v55, 448.0  ;;  %v931_v19 = vmul.f32 %v8502_v3, %v417_v8 }
 0x266   : > { %v4186_v63 = vand.u32 2147483647, %v7827_v56  ;;  %v4187_v0 = vmul.f32 0.0625, %v7827_v56  ;;  %v4183_v1 = vpack.c.b16 %v4181_v61, %v4172_v53  ;;  %vm4189_vm0 = vweird.f32 %v7827_v56 }
 0x267   : > { %v4191_v2 = vshrl.u32 %v7827_v56, 24  ;;  %v4195_v4 = vand.u32 2147483647, %v7835_v58  ;;  %v4196_v7 = vmul.f32 0.0625, %v7835_v58  ;;  %vm4198_vm2 = vweird.f32 %v7835_v58  ;;  %v418_v56 = vld [vmem:[%s8493_s9 + $0x650] sm:$0xff] }
 0x268   : > { %v4188_v5 = vcvt.f32.f8e4m3b11 %v4187_v0  ;;  %vm10103_vm1 = vcmp.le.f32.partialorder %v4186_v63, 0.0009765625  ;;  %v4184_v9 = vpack.c.b8 %v4183_v1, %v4182_v54  ;;  %v4200_v11 = vshrl.u32 %v7835_v58, 24 }
 0x269   : > { %v4192_v10 = vand.u32 128, %v4191_v2  ;;  %vm10108_vm3 = vcmp.le.f32.partialorder %v4195_v4, 0.0009765625  ;;  %v4197_v14 = vcvt.f32.f8e4m3b11 %v4196_v7  ;;  %v4204_v15 = vand.u32 2147483647, %v7843_v59  ;;  %v426_v4 = vld [vmem:[%s8493_s9 + $0x690] sm:$0xff] }
 0x26a   : > { %v4190_v13 = vsel %vm4189_vm0, 127, %v4188_v5  ;;  %v4205_v16 = vmul.f32 0.0625, %v7843_v59  ;;  %7433 = vst [vmem:[%s8554_s27 + $0x178] sm:$0xff] %v4184_v9  ;;  %v4201_v17 = vand.u32 128, %v4200_v11  ;;  %vm4207_vm4 = vweird.f32 %v7843_v59 }
 0x26b   : > { %v4209_v18 = vshrl.u32 %v7843_v59, 24  ;;  %v4194_v20 = vsel %vm10103_vm1, %v4192_v10, %v4190_v13  ;;  %v4199_v21 = vsel %vm4198_vm2, 127, %v4197_v14  ;;  %v4213_v23 = vand.u32 2147483647, %v7851_v62  ;;  %v434_v10 = vld [vmem:[%s8493_s9 + $0x6d0] sm:$0xff] }
 0x26c   : > { %v4206_v22 = vcvt.f32.f8e4m3b11 %v4205_v16  ;;  %v4203_v26 = vsel %vm10108_vm3, %v4201_v17, %v4199_v21  ;;  %vm10121_vm5 = vcmp.le.f32.partialorder %v4204_v15, 0.0009765625  ;;  %v4214_v29 = vmul.f32 0.0625, %v7851_v62 }
 0x26d   : > { %v4210_v27 = vand.u32 128, %v4209_v18  ;;  %vm4216_vm6 = vweird.f32 %v7851_v62  ;;  %v4218_v31 = vshrl.u32 %v7851_v62, 24  ;;  %vm10125_vm7 = vcmp.le.f32.partialorder %v4213_v23, 0.0009765625  ;;  %v411_v18 = vld [vmem:[%s8493_s9 + $0x618] sm:$0xff] }
 0x26e   : > { %v4208_v30 = vsel %vm4207_vm4, 127, %v4206_v22  ;;  %v4215_v34 = vcvt.f32.f8e4m3b11 %v4214_v29  ;;  %v4222_v35 = vpack.c.b16 %v4203_v26, %v4194_v20  ;;  %v939_v36 = vmul.f32 %v8502_v3, %v425_v24 }
 0x26f   : > { %v947_v37 = vmul.f32 %v8502_v3, %v433_v25  ;;  %v4212_v38 = vsel %vm10121_vm5, %v4210_v27, %v4208_v30  ;;  %v4219_v39 = vand.u32 128, %v4218_v31  ;;  %v7828_v40 = vclamps-f32 %v923_v60, 448.0 }
 0x270   : > { %v7836_v41 = vclamps-f32 %v931_v19, 448.0  ;;  %v4217_v42 = vsel %vm4216_vm6, 127, %v4215_v34  ;;  %v7844_v43 = vclamps-f32 %v939_v36, 448.0  ;;  %v924_v45 = vmul.f32 %v8502_v3, %v410_v33  ;;  %v419_v19 = vld [vmem:[%s8493_s9 + $0x658] sm:$0xff] }
 0x271   : > { %v7852_v44 = vclamps-f32 %v947_v37, 448.0  ;;  %v4221_v46 = vsel %vm10125_vm7, %v4219_v39, %v4217_v42  ;;  %v4226_v47 = vand.u32 2147483647, %v7828_v40  ;;  %v4227_v48 = vmul.f32 0.0625, %v7828_v40  ;;  %v427_v42 = vld [vmem:[%s8493_s9 + $0x698] sm:$0xff] }
 0x272   : > { %vm4229_vm8 = vweird.f32 %v7828_v40  ;;  %v4223_v49 = vpack.c.b16 %v4221_v46, %v4212_v38  ;;  %v4231_v50 = vshrl.u32 %v7828_v40, 24  ;;  %v4235_v51 = vand.u32 2147483647, %v7836_v41 }
 0x273   : > { %v4236_v52 = vmul.f32 0.0625, %v7836_v41  ;;  %v4228_v53 = vcvt.f32.f8e4m3b11 %v4227_v48  ;;  %vm10137_vm9 = vcmp.le.f32.partialorder %v4226_v47, 0.0009765625  ;;  %vm4238_vm10 = vweird.f32 %v7836_v41 }
 0x274   : > { %v4240_v55 = vshrl.u32 %v7836_v41, 24  ;;  %v4224_v57 = vpack.c.b8 %v4223_v49, %v4222_v35  ;;  %v4232_v58 = vand.u32 128, %v4231_v50  ;;  %vm10142_vm11 = vcmp.le.f32.partialorder %v4235_v51, 0.0009765625 }
 0x275   : > { %v4237_v59 = vcvt.f32.f8e4m3b11 %v4236_v52  ;;  %v4230_v61 = vsel %vm4229_vm8, 127, %v4228_v53  ;;  %v4244_v63 = vand.u32 2147483647, %v7844_v43  ;;  %v4245_v0 = vmul.f32 0.0625, %v7844_v43  ;;  %v435_v53 = vld [vmem:[%s8493_s9 + $0x6d8] sm:$0xff] }
 0x276   : > { %v4241_v62 = vand.u32 128, %v4240_v55  ;;  %7434 = vst [vmem:[%s8554_s27 + $0x180] sm:$0xff] %v4224_v57  ;;  %vm4247_vm12 = vweird.f32 %v7844_v43  ;;  %v4249_v2 = vshrl.u32 %v7844_v43, 24  ;;  %v932_v5 = vmul.f32 %v8502_v3, %v418_v56 }
 0x277   : > { %v4239_v1 = vsel %vm4238_vm10, 127, %v4237_v59  ;;  %v4234_v6 = vsel %vm10137_vm9, %v4232_v58, %v4230_v61  ;;  %v4246_v8 = vcvt.f32.f8e4m3b11 %v4245_v0  ;;  %v4253_v9 = vand.u32 2147483647, %v7852_v44 }
 0x278   : > { %v4243_v7 = vsel %vm10142_vm11, %v4241_v62, %v4239_v1  ;;  %v4250_v11 = vand.u32 128, %v4249_v2  ;;  %vm10154_vm13 = vcmp.le.f32.partialorder %v4244_v63, 0.0009765625  ;;  %v4254_v13 = vmul.f32 0.0625, %v7852_v44 }
 0x279   : > { %v4258_v14 = vshrl.u32 %v7852_v44, 24  ;;  %v4248_v15 = vsel %vm4247_vm12, 127, %v4246_v8  ;;  %vm4256_vm14 = vweird.f32 %v7852_v44  ;;  %vm10158_vm15 = vcmp.le.f32.partialorder %v4253_v9, 0.0009765625 }
 0x27a   : > { %v940_v17 = vmul.f32 %v8502_v3, %v426_v4  ;;  %v4255_v20 = vcvt.f32.f8e4m3b11 %v4254_v13  ;;  %v4262_v22 = vpack.c.b16 %v4243_v7, %v4234_v6  ;;  %v948_v23 = vmul.f32 %v8502_v3, %v434_v10 }
 0x27b   : > { %v4259_v21 = vand.u32 128, %v4258_v14  ;;  %v4252_v24 = vsel %vm10154_vm13, %v4250_v11, %v4248_v15  ;;  %v7829_v25 = vclamps-f32 %v924_v45, 448.0  ;;  %v7837_v26 = vclamps-f32 %v932_v5, 448.0 }
 0x27c   : > { %v7845_v27 = vclamps-f32 %v940_v17, 448.0  ;;  %v4257_v28 = vsel %vm4256_vm14, 127, %v4255_v20  ;;  %v7853_v29 = vclamps-f32 %v948_v23, 448.0  ;;  %v925_v30 = vmul.f32 %v8502_v3, %v411_v18 }
 0x27d   : > { %v933_v31 = vmul.f32 %v8502_v3, %v419_v19  ;;  %v4261_v32 = vsel %vm10158_vm15, %v4259_v21, %v4257_v28  ;;  %v4266_v33 = vand.u32 2147483647, %v7829_v25  ;;  %v4267_v34 = vmul.f32 0.0625, %v7829_v25  ;;  %v412_v21 = vld [vmem:[%s8493_s9 + $0x620] sm:$0xff] }
 0x27e   : > { %vm4269_vm0 = vweird.f32 %v7829_v25  ;;  %v4263_v35 = vpack.c.b16 %v4261_v32, %v4252_v24  ;;  %v4271_v36 = vshrl.u32 %v7829_v25, 24  ;;  %v4275_v37 = vand.u32 2147483647, %v7837_v26 }
 0x27f   : > { %v4276_v38 = vmul.f32 0.0625, %v7837_v26  ;;  %v4268_v39 = vcvt.f32.f8e4m3b11 %v4267_v34  ;;  %vm10172_vm1 = vcmp.le.f32.partialorder %v4266_v33, 0.0009765625  ;;  %vm4278_vm2 = vweird.f32 %v7837_v26 }
 0x280   : > { %v4280_v41 = vshrl.u32 %v7837_v26, 24  ;;  %v4264_v43 = vpack.c.b8 %v4263_v35, %v4262_v22  ;;  %v4272_v44 = vand.u32 128, %v4271_v36  ;;  %vm10177_vm3 = vcmp.le.f32.partialorder %v4275_v37, 0.0009765625  ;;  %v420_v37 = vld [vmem:[%s8493_s9 + $0x660] sm:$0xff] }
 0x281   : > { %v4277_v45 = vcvt.f32.f8e4m3b11 %v4276_v38  ;;  %v4270_v47 = vsel %vm4269_vm0, 127, %v4268_v39  ;;  %v4284_v49 = vand.u32 2147483647, %v7845_v27  ;;  %v4285_v50 = vmul.f32 0.0625, %v7845_v27  ;;  %v428_v38 = vld [vmem:[%s8493_s9 + $0x6a0] sm:$0xff] }
 0x282   : > { %v4281_v48 = vand.u32 128, %v4280_v41  ;;  %7435 = vst [vmem:[%s8554_s27 + $0x188] sm:$0xff] %v4264_v43  ;;  %vm4287_vm4 = vweird.f32 %v7845_v27  ;;  %v4289_v52 = vshrl.u32 %v7845_v27, 24  ;;  %v941_v54 = vmul.f32 %v8502_v3, %v427_v42  ;;  %v436_v43 = vld [vmem:[%s8493_s9 + $0x6e0] sm:$0xff] }
 0x283   : > { %v4279_v51 = vsel %vm4278_vm2, 127, %v4277_v45  ;;  %v4274_v55 = vsel %vm10172_vm1, %v4272_v44, %v4270_v47  ;;  %v4286_v57 = vcvt.f32.f8e4m3b11 %v4285_v50  ;;  %v4293_v58 = vand.u32 2147483647, %v7853_v29  ;;  %v413_v47 = vld [vmem:[%s8493_s9 + $0x628] sm:$0xff] }
 0x284   : > { %v4283_v56 = vsel %vm10177_vm3, %v4281_v48, %v4279_v51  ;;  %v4290_v59 = vand.u32 128, %v4289_v52  ;;  %vm10188_vm5 = vcmp.le.f32.partialorder %v4284_v49, 0.0009765625  ;;  %v4294_v61 = vmul.f32 0.0625, %v7853_v29 }
 0x285   : > { %v4298_v62 = vshrl.u32 %v7853_v29, 24  ;;  %v4288_v63 = vsel %vm4287_vm4, 127, %v4286_v57  ;;  %vm4296_vm6 = vweird.f32 %v7853_v29  ;;  %vm10192_vm7 = vcmp.le.f32.partialorder %v4293_v58, 0.0009765625 }
 0x286   : > { %v949_v1 = vmul.f32 %v8502_v3, %v435_v53  ;;  %v4295_v2 = vcvt.f32.f8e4m3b11 %v4294_v61  ;;  %v4302_v5 = vpack.c.b16 %v4283_v56, %v4274_v55  ;;  %v7830_v6 = vclamps-f32 %v925_v30, 448.0 }
 0x287   : > { %v4299_v4 = vand.u32 128, %v4298_v62  ;;  %v4292_v7 = vsel %vm10188_vm5, %v4290_v59, %v4288_v63  ;;  %v7838_v8 = vclamps-f32 %v933_v31, 448.0  ;;  %v7846_v9 = vclamps-f32 %v941_v54, 448.0 }
 0x288   : > { %v7854_v10 = vclamps-f32 %v949_v1, 448.0  ;;  %v4297_v11 = vsel %vm4296_vm6, 127, %v4295_v2  ;;  %v4306_v12 = vand.u32 2147483647, %v7830_v6  ;;  %v4307_v13 = vmul.f32 0.0625, %v7830_v6 }
 0x289   : > { %vm4309_vm8 = vweird.f32 %v7830_v6  ;;  %v4301_v14 = vsel %vm10192_vm7, %v4299_v4, %v4297_v11  ;;  %v4311_v15 = vshrl.u32 %v7830_v6, 24  ;;  %v4315_v16 = vand.u32 2147483647, %v7838_v8 }
 0x28a   : > { %v4316_v17 = vmul.f32 0.0625, %v7838_v8  ;;  %v4303_v18 = vpack.c.b16 %v4301_v14, %v4292_v7  ;;  %v4308_v19 = vcvt.f32.f8e4m3b11 %v4307_v13  ;;  %vm10201_vm9 = vcmp.le.f32.partialorder %v4306_v12, 0.0009765625  ;;  %v421_v7 = vld [vmem:[%s8493_s9 + $0x668] sm:$0xff] }
 0x28b   : > { %vm4318_vm10 = vweird.f32 %v7838_v8  ;;  %v4312_v22 = vand.u32 128, %v4311_v15  ;;  %v4320_v24 = vshrl.u32 %v7838_v8, 24  ;;  %vm10206_vm11 = vcmp.le.f32.partialorder %v4315_v16, 0.0009765625 }
 0x28c   : > { %v4317_v23 = vcvt.f32.f8e4m3b11 %v4316_v17  ;;  %v4304_v26 = vpack.c.b8 %v4303_v18, %v4302_v5  ;;  %v4310_v27 = vsel %vm4309_vm8, 127, %v4308_v19  ;;  %v4324_v28 = vand.u32 2147483647, %v7846_v9 }
 0x28d   : > { %v4325_v29 = vmul.f32 0.0625, %v7846_v9  ;;  %v4321_v31 = vand.u32 128, %v4320_v24  ;;  %vm4327_vm12 = vweird.f32 %v7846_v9  ;;  %v926_v32 = vmul.f32 %v8502_v3, %v412_v21  ;;  %v437_v24 = vld [vmem:[%s8493_s9 + $0x6e8] sm:$0xff] }
 0x28e   : > { %v4319_v30 = vsel %vm4318_vm10, 127, %v4317_v23  ;;  %7436 = vst [vmem:[%s8554_s27 + $0x190] sm:$0xff] %v4304_v26  ;;  %v4314_v33 = vsel %vm10201_vm9, %v4312_v22, %v4310_v27  ;;  %v4329_v35 = vshrl.u32 %v7846_v9, 24  ;;  %v4333_v36 = vand.u32 2147483647, %v7854_v10  ;;  %v429_v23 = vld [vmem:[%s8493_s9 + $0x6a8] sm:$0xff] }
 0x28f   : > { %v4326_v34 = vcvt.f32.f8e4m3b11 %v4325_v29  ;;  %v4323_v39 = vsel %vm10206_vm11, %v4321_v31, %v4319_v30  ;;  %vm10218_vm13 = vcmp.le.f32.partialorder %v4324_v28, 0.0009765625  ;;  %v4334_v41 = vmul.f32 0.0625, %v7854_v10 }
 0x290   : > { %v4338_v42 = vshrl.u32 %v7854_v10, 24  ;;  %v4330_v45 = vand.u32 128, %v4329_v35  ;;  %vm4336_vm14 = vweird.f32 %v7854_v10  ;;  %vm10223_vm15 = vcmp.le.f32.partialorder %v4333_v36, 0.0009765625 }
 0x291   : > { %v4328_v44 = vsel %vm4327_vm12, 127, %v4326_v34  ;;  %v4335_v48 = vcvt.f32.f8e4m3b11 %v4334_v41  ;;  %v934_v50 = vmul.f32 %v8502_v3, %v420_v37  ;;  %v942_v51 = vmul.f32 %v8502_v3, %v428_v38 }
 0x292   : > { %v4339_v49 = vand.u32 128, %v4338_v42  ;;  %v4332_v52 = vsel %vm10218_vm13, %v4330_v45, %v4328_v44  ;;  %v4342_v53 = vpack.c.b16 %v4323_v39, %v4314_v33  ;;  %v950_v54 = vmul.f32 %v8502_v3, %v436_v43 }
 0x293   : > { %v7831_v55 = vclamps-f32 %v926_v32, 448.0  ;;  %v4337_v56 = vsel %vm4336_vm14, 127, %v4335_v48  ;;  %v7839_v57 = vclamps-f32 %v934_v50, 448.0  ;;  %v7847_v58 = vclamps-f32 %v942_v51, 448.0  ;;  %v414_v32 = vld [vmem:[%s8493_s9 + $0x630] sm:$0xff] }
 0x294   : > { %v927_v59 = vmul.f32 %v8502_v3, %v413_v47  ;;  %v4341_v60 = vsel %vm10223_vm15, %v4339_v49, %v4337_v56  ;;  %v7855_v61 = vclamps-f32 %v950_v54, 448.0  ;;  %v935_v18 = vmul.f32 %v8502_v3, %v421_v7 }
 0x295   : > { %v4346_v62 = vand.u32 2147483647, %v7831_v55  ;;  %v4347_v63 = vmul.f32 0.0625, %v7831_v55  ;;  %v4343_v0 = vpack.c.b16 %v4341_v60, %v4332_v52  ;;  %vm4349_vm0 = vweird.f32 %v7831_v55 }
 0x296   : > { %v4351_v1 = vshrl.u32 %v7831_v55, 24  ;;  %v4355_v2 = vand.u32 2147483647, %v7839_v57  ;;  %v4356_v6 = vmul.f32 0.0625, %v7839_v57  ;;  %vm4358_vm2 = vweird.f32 %v7839_v57  ;;  %v422_v55 = vld [vmem:[%s8493_s9 + $0x670] sm:$0xff] }
 0x297   : > { %v4348_v4 = vcvt.f32.f8e4m3b11 %v4347_v63  ;;  %vm10236_vm1 = vcmp.le.f32.partialorder %v4346_v62, 0.0009765625  ;;  %v4344_v8 = vpack.c.b8 %v4343_v0, %v4342_v53  ;;  %v4360_v10 = vshrl.u32 %v7839_v57, 24 }
 0x298   : > { %v4352_v9 = vand.u32 128, %v4351_v1  ;;  %vm10241_vm3 = vcmp.le.f32.partialorder %v4355_v2, 0.0009765625  ;;  %v4357_v13 = vcvt.f32.f8e4m3b11 %v4356_v6  ;;  %v4364_v14 = vand.u32 2147483647, %v7847_v58  ;;  %v430_v2 = vld [vmem:[%s8493_s9 + $0x6b0] sm:$0xff] }
 0x299   : > { %v4350_v12 = vsel %vm4349_vm0, 127, %v4348_v4  ;;  %v4365_v15 = vmul.f32 0.0625, %v7847_v58  ;;  %7437 = vst [vmem:[%s8554_s27 + $0x198] sm:$0xff] %v4344_v8  ;;  %v4361_v16 = vand.u32 128, %v4360_v10  ;;  %vm4367_vm4 = vweird.f32 %v7847_v58 }
 0x29a   : > { %v4369_v17 = vshrl.u32 %v7847_v58, 24  ;;  %v4354_v19 = vsel %vm10236_vm1, %v4352_v9, %v4350_v12  ;;  %v4359_v20 = vsel %vm4358_vm2, 127, %v4357_v13  ;;  %v4373_v22 = vand.u32 2147483647, %v7855_v61  ;;  %v438_v9 = vld [vmem:[%s8493_s9 + $0x6f0] sm:$0xff] }
 0x29b   : > { %v4366_v21 = vcvt.f32.f8e4m3b11 %v4365_v15  ;;  %v4363_v25 = vsel %vm10241_vm3, %v4361_v16, %v4359_v20  ;;  %vm10254_vm5 = vcmp.le.f32.partialorder %v4364_v14, 0.0009765625  ;;  %v4374_v28 = vmul.f32 0.0625, %v7855_v61 }
 0x29c   : > { %v4370_v26 = vand.u32 128, %v4369_v17  ;;  %vm4376_vm6 = vweird.f32 %v7855_v61  ;;  %v4378_v30 = vshrl.u32 %v7855_v61, 24  ;;  %vm10258_vm7 = vcmp.le.f32.partialorder %v4373_v22, 0.0009765625  ;;  %v415_v17 = vld [vmem:[%s8493_s9 + $0x638] sm:$0xff] }
 0x29d   : > { %v4368_v29 = vsel %vm4367_vm4, 127, %v4366_v21  ;;  %v4375_v33 = vcvt.f32.f8e4m3b11 %v4374_v28  ;;  %v4382_v34 = vpack.c.b16 %v4363_v25, %v4354_v19  ;;  %v943_v35 = vmul.f32 %v8502_v3, %v429_v23 }
 0x29e   : > { %v951_v36 = vmul.f32 %v8502_v3, %v437_v24  ;;  %v4372_v37 = vsel %vm10254_vm5, %v4370_v26, %v4368_v29  ;;  %v4379_v38 = vand.u32 128, %v4378_v30  ;;  %v7832_v39 = vclamps-f32 %v927_v59, 448.0 }
 0x29f   : > { %v7840_v40 = vclamps-f32 %v935_v18, 448.0  ;;  %v4377_v41 = vsel %vm4376_vm6, 127, %v4375_v33  ;;  %v7848_v42 = vclamps-f32 %v943_v35, 448.0  ;;  %v928_v44 = vmul.f32 %v8502_v3, %v414_v32  ;;  %v423_v18 = vld [vmem:[%s8493_s9 + $0x678] sm:$0xff] }
 0x2a0   : > { %v7856_v43 = vclamps-f32 %v951_v36, 448.0  ;;  %v4381_v45 = vsel %vm10258_vm7, %v4379_v38, %v4377_v41  ;;  %v4386_v46 = vand.u32 2147483647, %v7832_v39  ;;  %v4387_v47 = vmul.f32 0.0625, %v7832_v39  ;;  %v431_v41 = vld [vmem:[%s8493_s9 + $0x6b8] sm:$0xff] }
 0x2a1   : > { %vm4389_vm8 = vweird.f32 %v7832_v39  ;;  %v4383_v48 = vpack.c.b16 %v4381_v45, %v4372_v37  ;;  %v4391_v49 = vshrl.u32 %v7832_v39, 24  ;;  %v4395_v50 = vand.u32 2147483647, %v7840_v40 }
 0x2a2   : > { %v4396_v51 = vmul.f32 0.0625, %v7840_v40  ;;  %v4388_v52 = vcvt.f32.f8e4m3b11 %v4387_v47  ;;  %vm10270_vm9 = vcmp.le.f32.partialorder %v4386_v46, 0.0009765625  ;;  %vm4398_vm10 = vweird.f32 %v7840_v40 }
 0x2a3   : > { %v4400_v54 = vshrl.u32 %v7840_v40, 24  ;;  %v4384_v56 = vpack.c.b8 %v4383_v48, %v4382_v34  ;;  %v4392_v57 = vand.u32 128, %v4391_v49  ;;  %vm10275_vm11 = vcmp.le.f32.partialorder %v4395_v50, 0.0009765625 }
 0x2a4   : > { %v4397_v58 = vcvt.f32.f8e4m3b11 %v4396_v51  ;;  %v4390_v60 = vsel %vm4389_vm8, 127, %v4388_v52  ;;  %v4404_v62 = vand.u32 2147483647, %v7848_v42  ;;  %v4405_v63 = vmul.f32 0.0625, %v7848_v42  ;;  %v439_v52 = vld [vmem:[%s8493_s9 + $0x6f8] sm:$0xff] }
 0x2a5   : > { %v4401_v61 = vand.u32 128, %v4400_v54  ;;  %7438 = vst [vmem:[%s8554_s27 + $0x1a0] sm:$0xff] %v4384_v56  ;;  %vm4407_vm12 = vweird.f32 %v7848_v42  ;;  %v4409_v1 = vshrl.u32 %v7848_v42, 24  ;;  %v936_v4 = vmul.f32 %v8502_v3, %v422_v55 }
 0x2a6   : > { %v4399_v0 = vsel %vm4398_vm10, 127, %v4397_v58  ;;  %v4394_v5 = vsel %vm10270_vm9, %v4392_v57, %v4390_v60  ;;  %v4406_v7 = vcvt.f32.f8e4m3b11 %v4405_v63  ;;  %v4413_v8 = vand.u32 2147483647, %v7856_v43 }
 0x2a7   : > { %v4403_v6 = vsel %vm10275_vm11, %v4401_v61, %v4399_v0  ;;  %v4410_v10 = vand.u32 128, %v4409_v1  ;;  %vm10287_vm13 = vcmp.le.f32.partialorder %v4404_v62, 0.0009765625  ;;  %v4414_v12 = vmul.f32 0.0625, %v7856_v43 }
 0x2a8   : > { %v4418_v13 = vshrl.u32 %v7856_v43, 24  ;;  %v4408_v14 = vsel %vm4407_vm12, 127, %v4406_v7  ;;  %vm4416_vm14 = vweird.f32 %v7856_v43  ;;  %vm10291_vm15 = vcmp.le.f32.partialorder %v4413_v8, 0.0009765625 }
 0x2a9   : > { %v944_v16 = vmul.f32 %v8502_v3, %v430_v2  ;;  %v4415_v19 = vcvt.f32.f8e4m3b11 %v4414_v12  ;;  %v4422_v21 = vpack.c.b16 %v4403_v6, %v4394_v5  ;;  %v952_v22 = vmul.f32 %v8502_v3, %v438_v9 }
 0x2aa   : > { %v4419_v20 = vand.u32 128, %v4418_v13  ;;  %v4412_v23 = vsel %vm10287_vm13, %v4410_v10, %v4408_v14  ;;  %v7833_v24 = vclamps-f32 %v928_v44, 448.0  ;;  %v7841_v25 = vclamps-f32 %v936_v4, 448.0 }
 0x2ab   : > { %v7849_v26 = vclamps-f32 %v944_v16, 448.0  ;;  %v4417_v27 = vsel %vm4416_vm14, 127, %v4415_v19  ;;  %v7857_v28 = vclamps-f32 %v952_v22, 448.0  ;;  %v929_v29 = vmul.f32 %v8502_v3, %v415_v17 }
 0x2ac   : > { %v937_v30 = vmul.f32 %v8502_v3, %v423_v18  ;;  %v4421_v31 = vsel %vm10291_vm15, %v4419_v20, %v4417_v27  ;;  %v4426_v32 = vand.u32 2147483647, %v7833_v24  ;;  %v4427_v33 = vmul.f32 0.0625, %v7833_v24  ;;  %v440_v20 = vld [vmem:[%s8493_s9 + $0x700] sm:$0xff] }
 0x2ad   : > { %vm4429_vm0 = vweird.f32 %v7833_v24  ;;  %v4423_v34 = vpack.c.b16 %v4421_v31, %v4412_v23  ;;  %v4431_v35 = vshrl.u32 %v7833_v24, 24  ;;  %v4435_v36 = vand.u32 2147483647, %v7841_v25 }
 0x2ae   : > { %v4436_v37 = vmul.f32 0.0625, %v7841_v25  ;;  %v4428_v38 = vcvt.f32.f8e4m3b11 %v4427_v33  ;;  %vm10305_vm1 = vcmp.le.f32.partialorder %v4426_v32, 0.0009765625  ;;  %vm4438_vm2 = vweird.f32 %v7841_v25 }
 0x2af   : > { %v4440_v40 = vshrl.u32 %v7841_v25, 24  ;;  %v4424_v42 = vpack.c.b8 %v4423_v34, %v4422_v21  ;;  %v4432_v43 = vand.u32 128, %v4431_v35  ;;  %vm10310_vm3 = vcmp.le.f32.partialorder %v4435_v36, 0.0009765625  ;;  %v448_v36 = vld [vmem:[%s8493_s9 + $0x740] sm:$0xff] }
 0x2b0   : > { %v4437_v44 = vcvt.f32.f8e4m3b11 %v4436_v37  ;;  %v4430_v46 = vsel %vm4429_vm0, 127, %v4428_v38  ;;  %v4444_v48 = vand.u32 2147483647, %v7849_v26  ;;  %v4445_v49 = vmul.f32 0.0625, %v7849_v26  ;;  %v456_v37 = vld [vmem:[%s8493_s9 + $0x780] sm:$0xff] }
 0x2b1   : > { %v4441_v47 = vand.u32 128, %v4440_v40  ;;  %7439 = vst [vmem:[%s8554_s27 + $0x1a8] sm:$0xff] %v4424_v42  ;;  %vm4447_vm4 = vweird.f32 %v7849_v26  ;;  %v4449_v51 = vshrl.u32 %v7849_v26, 24  ;;  %v945_v53 = vmul.f32 %v8502_v3, %v431_v41  ;;  %v464_v42 = vld [vmem:[%s8493_s9 + $0x7c0] sm:$0xff] }
 0x2b2   : > { %v4439_v50 = vsel %vm4438_vm2, 127, %v4437_v44  ;;  %v4434_v54 = vsel %vm10305_vm1, %v4432_v43, %v4430_v46  ;;  %v4446_v56 = vcvt.f32.f8e4m3b11 %v4445_v49  ;;  %v4453_v57 = vand.u32 2147483647, %v7857_v28  ;;  %v441_v46 = vld [vmem:[%s8493_s9 + $0x708] sm:$0xff] }
 0x2b3   : > { %v4443_v55 = vsel %vm10310_vm3, %v4441_v47, %v4439_v50  ;;  %v4450_v58 = vand.u32 128, %v4449_v51  ;;  %vm10321_vm5 = vcmp.le.f32.partialorder %v4444_v48, 0.0009765625  ;;  %v4454_v60 = vmul.f32 0.0625, %v7857_v28 }
 0x2b4   : > { %v4458_v61 = vshrl.u32 %v7857_v28, 24  ;;  %v4448_v62 = vsel %vm4447_vm4, 127, %v4446_v56  ;;  %vm4456_vm6 = vweird.f32 %v7857_v28  ;;  %vm10325_vm7 = vcmp.le.f32.partialorder %v4453_v57, 0.0009765625 }
 0x2b5   : > { %v953_v0 = vmul.f32 %v8502_v3, %v439_v52  ;;  %v4455_v1 = vcvt.f32.f8e4m3b11 %v4454_v60  ;;  %v4462_v4 = vpack.c.b16 %v4443_v55, %v4434_v54  ;;  %v7834_v5 = vclamps-f32 %v929_v29, 448.0 }
 0x2b6   : > { %v4459_v2 = vand.u32 128, %v4458_v61  ;;  %v4452_v6 = vsel %vm10321_vm5, %v4450_v58, %v4448_v62  ;;  %v7842_v7 = vclamps-f32 %v937_v30, 448.0  ;;  %v7850_v8 = vclamps-f32 %v945_v53, 448.0 }
 0x2b7   : > { %v7858_v9 = vclamps-f32 %v953_v0, 448.0  ;;  %v4457_v10 = vsel %vm4456_vm6, 127, %v4455_v1  ;;  %v4466_v11 = vand.u32 2147483647, %v7834_v5  ;;  %v4467_v12 = vmul.f32 0.0625, %v7834_v5 }
 0x2b8   : > { %vm4469_vm8 = vweird.f32 %v7834_v5  ;;  %v4461_v13 = vsel %vm10325_vm7, %v4459_v2, %v4457_v10  ;;  %v4471_v14 = vshrl.u32 %v7834_v5, 24  ;;  %v4475_v15 = vand.u32 2147483647, %v7842_v7 }
 0x2b9   : > { %v4476_v16 = vmul.f32 0.0625, %v7842_v7  ;;  %v4463_v17 = vpack.c.b16 %v4461_v13, %v4452_v6  ;;  %v4468_v18 = vcvt.f32.f8e4m3b11 %v4467_v12  ;;  %vm10334_vm9 = vcmp.le.f32.partialorder %v4466_v11, 0.0009765625  ;;  %v449_v6 = vld [vmem:[%s8493_s9 + $0x748] sm:$0xff] }
 0x2ba   : > { %vm4478_vm10 = vweird.f32 %v7842_v7  ;;  %v4472_v21 = vand.u32 128, %v4471_v14  ;;  %v4480_v23 = vshrl.u32 %v7842_v7, 24  ;;  %vm10339_vm11 = vcmp.le.f32.partialorder %v4475_v15, 0.0009765625 }
 0x2bb   : > { %v4477_v22 = vcvt.f32.f8e4m3b11 %v4476_v16  ;;  %v4464_v25 = vpack.c.b8 %v4463_v17, %v4462_v4  ;;  %v4470_v26 = vsel %vm4469_vm8, 127, %v4468_v18  ;;  %v4484_v27 = vand.u32 2147483647, %v7850_v8 }
 0x2bc   : > { %v4485_v28 = vmul.f32 0.0625, %v7850_v8  ;;  %v4481_v30 = vand.u32 128, %v4480_v23  ;;  %vm4487_vm12 = vweird.f32 %v7850_v8  ;;  %v954_v31 = vmul.f32 %v8502_v3, %v440_v20  ;;  %v465_v23 = vld [vmem:[%s8493_s9 + $0x7c8] sm:$0xff] }
 0x2bd   : > { %v4479_v29 = vsel %vm4478_vm10, 127, %v4477_v22  ;;  %7440 = vst [vmem:[%s8554_s27 + $0x1b0] sm:$0xff] %v4464_v25  ;;  %v4474_v32 = vsel %vm10334_vm9, %v4472_v21, %v4470_v26  ;;  %v4489_v34 = vshrl.u32 %v7850_v8, 24  ;;  %v4493_v35 = vand.u32 2147483647, %v7858_v9  ;;  %v457_v22 = vld [vmem:[%s8493_s9 + $0x788] sm:$0xff] }
 0x2be   : > { %v4486_v33 = vcvt.f32.f8e4m3b11 %v4485_v28  ;;  %v4483_v38 = vsel %vm10339_vm11, %v4481_v30, %v4479_v29  ;;  %vm10351_vm13 = vcmp.le.f32.partialorder %v4484_v27, 0.0009765625  ;;  %v4494_v40 = vmul.f32 0.0625, %v7858_v9 }
 0x2bf   : > { %v4498_v41 = vshrl.u32 %v7858_v9, 24  ;;  %v4490_v44 = vand.u32 128, %v4489_v34  ;;  %vm4496_vm14 = vweird.f32 %v7858_v9  ;;  %vm10356_vm15 = vcmp.le.f32.partialorder %v4493_v35, 0.0009765625 }
 0x2c0   : > { %v4488_v43 = vsel %vm4487_vm12, 127, %v4486_v33  ;;  %v4495_v47 = vcvt.f32.f8e4m3b11 %v4494_v40  ;;  %v962_v49 = vmul.f32 %v8502_v3, %v448_v36  ;;  %v970_v50 = vmul.f32 %v8502_v3, %v456_v37 }
 0x2c1   : > { %v4499_v48 = vand.u32 128, %v4498_v41  ;;  %v4492_v51 = vsel %vm10351_vm13, %v4490_v44, %v4488_v43  ;;  %v4502_v52 = vpack.c.b16 %v4483_v38, %v4474_v32  ;;  %v978_v53 = vmul.f32 %v8502_v3, %v464_v42 }
 0x2c2   : > { %v7859_v54 = vclamps-f32 %v954_v31, 448.0  ;;  %v4497_v55 = vsel %vm4496_vm14, 127, %v4495_v47  ;;  %v7867_v56 = vclamps-f32 %v962_v49, 448.0  ;;  %v7875_v57 = vclamps-f32 %v970_v50, 448.0  ;;  %v442_v31 = vld [vmem:[%s8493_s9 + $0x710] sm:$0xff] }
 0x2c3   : > { %v955_v58 = vmul.f32 %v8502_v3, %v441_v46  ;;  %v4501_v59 = vsel %vm10356_vm15, %v4499_v48, %v4497_v55  ;;  %v7883_v60 = vclamps-f32 %v978_v53, 448.0  ;;  %v963_v17 = vmul.f32 %v8502_v3, %v449_v6 }
 0x2c4   : > { %v4506_v61 = vand.u32 2147483647, %v7859_v54  ;;  %v4507_v62 = vmul.f32 0.0625, %v7859_v54  ;;  %v4503_v63 = vpack.c.b16 %v4501_v59, %v4492_v51  ;;  %vm4509_vm0 = vweird.f32 %v7859_v54 }
 0x2c5   : > { %v4511_v0 = vshrl.u32 %v7859_v54, 24  ;;  %v4515_v1 = vand.u32 2147483647, %v7867_v56  ;;  %v4516_v5 = vmul.f32 0.0625, %v7867_v56  ;;  %vm4518_vm2 = vweird.f32 %v7867_v56  ;;  %v450_v54 = vld [vmem:[%s8493_s9 + $0x750] sm:$0xff] }
 0x2c6   : > { %v4508_v2 = vcvt.f32.f8e4m3b11 %v4507_v62  ;;  %vm10369_vm1 = vcmp.le.f32.partialorder %v4506_v61, 0.0009765625  ;;  %v4504_v7 = vpack.c.b8 %v4503_v63, %v4502_v52  ;;  %v4520_v9 = vshrl.u32 %v7867_v56, 24 }
 0x2c7   : > { %v4512_v8 = vand.u32 128, %v4511_v0  ;;  %vm10374_vm3 = vcmp.le.f32.partialorder %v4515_v1, 0.0009765625  ;;  %v4517_v12 = vcvt.f32.f8e4m3b11 %v4516_v5  ;;  %v4524_v13 = vand.u32 2147483647, %v7875_v57  ;;  %v458_v1 = vld [vmem:[%s8493_s9 + $0x790] sm:$0xff] }
 0x2c8   : > { %v4510_v11 = vsel %vm4509_vm0, 127, %v4508_v2  ;;  %v4525_v14 = vmul.f32 0.0625, %v7875_v57  ;;  %7441 = vst [vmem:[%s8554_s27 + $0x1b8] sm:$0xff] %v4504_v7  ;;  %v4521_v15 = vand.u32 128, %v4520_v9  ;;  %vm4527_vm4 = vweird.f32 %v7875_v57 }
 0x2c9   : > { %v4529_v16 = vshrl.u32 %v7875_v57, 24  ;;  %v4514_v18 = vsel %vm10369_vm1, %v4512_v8, %v4510_v11  ;;  %v4519_v19 = vsel %vm4518_vm2, 127, %v4517_v12  ;;  %v4533_v21 = vand.u32 2147483647, %v7883_v60  ;;  %v466_v8 = vld [vmem:[%s8493_s9 + $0x7d0] sm:$0xff] }
 0x2ca   : > { %v4526_v20 = vcvt.f32.f8e4m3b11 %v4525_v14  ;;  %v4523_v24 = vsel %vm10374_vm3, %v4521_v15, %v4519_v19  ;;  %vm10387_vm5 = vcmp.le.f32.partialorder %v4524_v13, 0.0009765625  ;;  %v4534_v27 = vmul.f32 0.0625, %v7883_v60 }
 0x2cb   : > { %v4530_v25 = vand.u32 128, %v4529_v16  ;;  %vm4536_vm6 = vweird.f32 %v7883_v60  ;;  %v4538_v29 = vshrl.u32 %v7883_v60, 24  ;;  %vm10391_vm7 = vcmp.le.f32.partialorder %v4533_v21, 0.0009765625  ;;  %v443_v16 = vld [vmem:[%s8493_s9 + $0x718] sm:$0xff] }
 0x2cc   : > { %v4528_v28 = vsel %vm4527_vm4, 127, %v4526_v20  ;;  %v4535_v32 = vcvt.f32.f8e4m3b11 %v4534_v27  ;;  %v4542_v33 = vpack.c.b16 %v4523_v24, %v4514_v18  ;;  %v971_v34 = vmul.f32 %v8502_v3, %v457_v22 }
 0x2cd   : > { %v979_v35 = vmul.f32 %v8502_v3, %v465_v23  ;;  %v4532_v36 = vsel %vm10387_vm5, %v4530_v25, %v4528_v28  ;;  %v4539_v37 = vand.u32 128, %v4538_v29  ;;  %v7860_v38 = vclamps-f32 %v955_v58, 448.0 }
 0x2ce   : > { %v7868_v39 = vclamps-f32 %v963_v17, 448.0  ;;  %v4537_v40 = vsel %vm4536_vm6, 127, %v4535_v32  ;;  %v7876_v41 = vclamps-f32 %v971_v34, 448.0  ;;  %v956_v43 = vmul.f32 %v8502_v3, %v442_v31  ;;  %v451_v17 = vld [vmem:[%s8493_s9 + $0x758] sm:$0xff] }
 0x2cf   : > { %v7884_v42 = vclamps-f32 %v979_v35, 448.0  ;;  %v4541_v44 = vsel %vm10391_vm7, %v4539_v37, %v4537_v40  ;;  %v4546_v45 = vand.u32 2147483647, %v7860_v38  ;;  %v4547_v46 = vmul.f32 0.0625, %v7860_v38  ;;  %v459_v40 = vld [vmem:[%s8493_s9 + $0x798] sm:$0xff] }
 0x2d0   : > { %vm4549_vm8 = vweird.f32 %v7860_v38  ;;  %v4543_v47 = vpack.c.b16 %v4541_v44, %v4532_v36  ;;  %v4551_v48 = vshrl.u32 %v7860_v38, 24  ;;  %v4555_v49 = vand.u32 2147483647, %v7868_v39 }
 0x2d1   : > { %v4556_v50 = vmul.f32 0.0625, %v7868_v39  ;;  %v4548_v51 = vcvt.f32.f8e4m3b11 %v4547_v46  ;;  %vm10403_vm9 = vcmp.le.f32.partialorder %v4546_v45, 0.0009765625  ;;  %vm4558_vm10 = vweird.f32 %v7868_v39 }
 0x2d2   : > { %v4560_v53 = vshrl.u32 %v7868_v39, 24  ;;  %v4544_v55 = vpack.c.b8 %v4543_v47, %v4542_v33  ;;  %v4552_v56 = vand.u32 128, %v4551_v48  ;;  %vm10408_vm11 = vcmp.le.f32.partialorder %v4555_v49, 0.0009765625 }
 0x2d3   : > { %v4557_v57 = vcvt.f32.f8e4m3b11 %v4556_v50  ;;  %v4550_v59 = vsel %vm4549_vm8, 127, %v4548_v51  ;;  %v4564_v61 = vand.u32 2147483647, %v7876_v41  ;;  %v4565_v62 = vmul.f32 0.0625, %v7876_v41  ;;  %v467_v51 = vld [vmem:[%s8493_s9 + $0x7d8] sm:$0xff] }
 0x2d4   : > { %v4561_v60 = vand.u32 128, %v4560_v53  ;;  %7442 = vst [vmem:[%s8554_s27 + $0x1c0] sm:$0xff] %v4544_v55  ;;  %vm4567_vm12 = vweird.f32 %v7876_v41  ;;  %v4569_v0 = vshrl.u32 %v7876_v41, 24  ;;  %v964_v2 = vmul.f32 %v8502_v3, %v450_v54 }
 0x2d5   : > { %v4559_v63 = vsel %vm4558_vm10, 127, %v4557_v57  ;;  %v4554_v4 = vsel %vm10403_vm9, %v4552_v56, %v4550_v59  ;;  %v4566_v6 = vcvt.f32.f8e4m3b11 %v4565_v62  ;;  %v4573_v7 = vand.u32 2147483647, %v7884_v42 }
 0x2d6   : > { %v4563_v5 = vsel %vm10408_vm11, %v4561_v60, %v4559_v63  ;;  %v4570_v9 = vand.u32 128, %v4569_v0  ;;  %vm10420_vm13 = vcmp.le.f32.partialorder %v4564_v61, 0.0009765625  ;;  %v4574_v11 = vmul.f32 0.0625, %v7884_v42 }
 0x2d7   : > { %v4578_v12 = vshrl.u32 %v7884_v42, 24  ;;  %v4568_v13 = vsel %vm4567_vm12, 127, %v4566_v6  ;;  %vm4576_vm14 = vweird.f32 %v7884_v42  ;;  %vm10424_vm15 = vcmp.le.f32.partialorder %v4573_v7, 0.0009765625 }
 0x2d8   : > { %v972_v15 = vmul.f32 %v8502_v3, %v458_v1  ;;  %v4575_v18 = vcvt.f32.f8e4m3b11 %v4574_v11  ;;  %v4582_v20 = vpack.c.b16 %v4563_v5, %v4554_v4  ;;  %v980_v21 = vmul.f32 %v8502_v3, %v466_v8 }
 0x2d9   : > { %v4579_v19 = vand.u32 128, %v4578_v12  ;;  %v4572_v22 = vsel %vm10420_vm13, %v4570_v9, %v4568_v13  ;;  %v7861_v23 = vclamps-f32 %v956_v43, 448.0  ;;  %v7869_v24 = vclamps-f32 %v964_v2, 448.0 }
 0x2da   : > { %v7877_v25 = vclamps-f32 %v972_v15, 448.0  ;;  %v4577_v26 = vsel %vm4576_vm14, 127, %v4575_v18  ;;  %v7885_v27 = vclamps-f32 %v980_v21, 448.0  ;;  %v957_v28 = vmul.f32 %v8502_v3, %v443_v16 }
 0x2db   : > { %v965_v29 = vmul.f32 %v8502_v3, %v451_v17  ;;  %v4581_v30 = vsel %vm10424_vm15, %v4579_v19, %v4577_v26  ;;  %v4586_v31 = vand.u32 2147483647, %v7861_v23  ;;  %v4587_v32 = vmul.f32 0.0625, %v7861_v23  ;;  %v444_v19 = vld [vmem:[%s8493_s9 + $0x720] sm:$0xff] }
 0x2dc   : > { %vm4589_vm0 = vweird.f32 %v7861_v23  ;;  %v4583_v33 = vpack.c.b16 %v4581_v30, %v4572_v22  ;;  %v4591_v34 = vshrl.u32 %v7861_v23, 24  ;;  %v4595_v35 = vand.u32 2147483647, %v7869_v24 }
 0x2dd   : > { %v4596_v36 = vmul.f32 0.0625, %v7869_v24  ;;  %v4588_v37 = vcvt.f32.f8e4m3b11 %v4587_v32  ;;  %vm10438_vm1 = vcmp.le.f32.partialorder %v4586_v31, 0.0009765625  ;;  %vm4598_vm2 = vweird.f32 %v7869_v24 }
 0x2de   : > { %v4600_v39 = vshrl.u32 %v7869_v24, 24  ;;  %v4584_v41 = vpack.c.b8 %v4583_v33, %v4582_v20  ;;  %v4592_v42 = vand.u32 128, %v4591_v34  ;;  %vm10443_vm3 = vcmp.le.f32.partialorder %v4595_v35, 0.0009765625  ;;  %v452_v35 = vld [vmem:[%s8493_s9 + $0x760] sm:$0xff] }
 0x2df   : > { %v4597_v43 = vcvt.f32.f8e4m3b11 %v4596_v36  ;;  %v4590_v45 = vsel %vm4589_vm0, 127, %v4588_v37  ;;  %v4604_v47 = vand.u32 2147483647, %v7877_v25  ;;  %v4605_v48 = vmul.f32 0.0625, %v7877_v25  ;;  %v460_v36 = vld [vmem:[%s8493_s9 + $0x7a0] sm:$0xff] }
 0x2e0   : > { %v4601_v46 = vand.u32 128, %v4600_v39  ;;  %7443 = vst [vmem:[%s8554_s27 + $0x1c8] sm:$0xff] %v4584_v41  ;;  %vm4607_vm4 = vweird.f32 %v7877_v25  ;;  %v4609_v50 = vshrl.u32 %v7877_v25, 24  ;;  %v973_v52 = vmul.f32 %v8502_v3, %v459_v40  ;;  %v468_v41 = vld [vmem:[%s8493_s9 + $0x7e0] sm:$0xff] }
 0x2e1   : > { %v4599_v49 = vsel %vm4598_vm2, 127, %v4597_v43  ;;  %v4594_v53 = vsel %vm10438_vm1, %v4592_v42, %v4590_v45  ;;  %v4606_v55 = vcvt.f32.f8e4m3b11 %v4605_v48  ;;  %v4613_v56 = vand.u32 2147483647, %v7885_v27  ;;  %v445_v45 = vld [vmem:[%s8493_s9 + $0x728] sm:$0xff] }
 0x2e2   : > { %v4603_v54 = vsel %vm10443_vm3, %v4601_v46, %v4599_v49  ;;  %v4610_v57 = vand.u32 128, %v4609_v50  ;;  %vm10454_vm5 = vcmp.le.f32.partialorder %v4604_v47, 0.0009765625  ;;  %v4614_v59 = vmul.f32 0.0625, %v7885_v27 }
 0x2e3   : > { %v4618_v60 = vshrl.u32 %v7885_v27, 24  ;;  %v4608_v61 = vsel %vm4607_vm4, 127, %v4606_v55  ;;  %vm4616_vm6 = vweird.f32 %v7885_v27  ;;  %vm10458_vm7 = vcmp.le.f32.partialorder %v4613_v56, 0.0009765625 }
 0x2e4   : > { %v981_v63 = vmul.f32 %v8502_v3, %v467_v51  ;;  %v4615_v0 = vcvt.f32.f8e4m3b11 %v4614_v59  ;;  %v4622_v2 = vpack.c.b16 %v4603_v54, %v4594_v53  ;;  %v7862_v4 = vclamps-f32 %v957_v28, 448.0 }
 0x2e5   : > { %v4619_v1 = vand.u32 128, %v4618_v60  ;;  %v4612_v5 = vsel %vm10454_vm5, %v4610_v57, %v4608_v61  ;;  %v7870_v6 = vclamps-f32 %v965_v29, 448.0  ;;  %v7878_v7 = vclamps-f32 %v973_v52, 448.0 }
 0x2e6   : > { %v7886_v8 = vclamps-f32 %v981_v63, 448.0  ;;  %v4617_v9 = vsel %vm4616_vm6, 127, %v4615_v0  ;;  %v4626_v10 = vand.u32 2147483647, %v7862_v4  ;;  %v4627_v11 = vmul.f32 0.0625, %v7862_v4 }
 0x2e7   : > { %vm4629_vm8 = vweird.f32 %v7862_v4  ;;  %v4621_v12 = vsel %vm10458_vm7, %v4619_v1, %v4617_v9  ;;  %v4631_v13 = vshrl.u32 %v7862_v4, 24  ;;  %v4635_v14 = vand.u32 2147483647, %v7870_v6 }
 0x2e8   : > { %v4636_v15 = vmul.f32 0.0625, %v7870_v6  ;;  %v4623_v16 = vpack.c.b16 %v4621_v12, %v4612_v5  ;;  %v4628_v17 = vcvt.f32.f8e4m3b11 %v4627_v11  ;;  %vm10467_vm9 = vcmp.le.f32.partialorder %v4626_v10, 0.0009765625  ;;  %v453_v5 = vld [vmem:[%s8493_s9 + $0x768] sm:$0xff] }
 0x2e9   : > { %vm4638_vm10 = vweird.f32 %v7870_v6  ;;  %v4632_v20 = vand.u32 128, %v4631_v13  ;;  %v4640_v22 = vshrl.u32 %v7870_v6, 24  ;;  %vm10472_vm11 = vcmp.le.f32.partialorder %v4635_v14, 0.0009765625 }
 0x2ea   : > { %v4637_v21 = vcvt.f32.f8e4m3b11 %v4636_v15  ;;  %v4624_v24 = vpack.c.b8 %v4623_v16, %v4622_v2  ;;  %v4630_v25 = vsel %vm4629_vm8, 127, %v4628_v17  ;;  %v4644_v26 = vand.u32 2147483647, %v7878_v7 }
 0x2eb   : > { %v4645_v27 = vmul.f32 0.0625, %v7878_v7  ;;  %v4641_v29 = vand.u32 128, %v4640_v22  ;;  %vm4647_vm12 = vweird.f32 %v7878_v7  ;;  %v958_v30 = vmul.f32 %v8502_v3, %v444_v19  ;;  %v469_v22 = vld [vmem:[%s8493_s9 + $0x7e8] sm:$0xff] }
 0x2ec   : > { %v4639_v28 = vsel %vm4638_vm10, 127, %v4637_v21  ;;  %7444 = vst [vmem:[%s8554_s27 + $0x1d0] sm:$0xff] %v4624_v24  ;;  %v4634_v31 = vsel %vm10467_vm9, %v4632_v20, %v4630_v25  ;;  %v4649_v33 = vshrl.u32 %v7878_v7, 24  ;;  %v4653_v34 = vand.u32 2147483647, %v7886_v8  ;;  %v461_v21 = vld [vmem:[%s8493_s9 + $0x7a8] sm:$0xff] }
 0x2ed   : > { %v4646_v32 = vcvt.f32.f8e4m3b11 %v4645_v27  ;;  %v4643_v37 = vsel %vm10472_vm11, %v4641_v29, %v4639_v28  ;;  %vm10484_vm13 = vcmp.le.f32.partialorder %v4644_v26, 0.0009765625  ;;  %v4654_v39 = vmul.f32 0.0625, %v7886_v8 }
 0x2ee   : > { %v4658_v40 = vshrl.u32 %v7886_v8, 24  ;;  %v4650_v43 = vand.u32 128, %v4649_v33  ;;  %vm4656_vm14 = vweird.f32 %v7886_v8  ;;  %vm10489_vm15 = vcmp.le.f32.partialorder %v4653_v34, 0.0009765625 }
 0x2ef   : > { %v4648_v42 = vsel %vm4647_vm12, 127, %v4646_v32  ;;  %v4655_v46 = vcvt.f32.f8e4m3b11 %v4654_v39  ;;  %v966_v48 = vmul.f32 %v8502_v3, %v452_v35  ;;  %v974_v49 = vmul.f32 %v8502_v3, %v460_v36 }
 0x2f0   : > { %v4659_v47 = vand.u32 128, %v4658_v40  ;;  %v4652_v50 = vsel %vm10484_vm13, %v4650_v43, %v4648_v42  ;;  %v4662_v51 = vpack.c.b16 %v4643_v37, %v4634_v31  ;;  %v982_v52 = vmul.f32 %v8502_v3, %v468_v41 }
 0x2f1   : > { %v7863_v53 = vclamps-f32 %v958_v30, 448.0  ;;  %v4657_v54 = vsel %vm4656_vm14, 127, %v4655_v46  ;;  %v7871_v55 = vclamps-f32 %v966_v48, 448.0  ;;  %v7879_v56 = vclamps-f32 %v974_v49, 448.0  ;;  %v446_v30 = vld [vmem:[%s8493_s9 + $0x730] sm:$0xff] }
 0x2f2   : > { %v959_v57 = vmul.f32 %v8502_v3, %v445_v45  ;;  %v4661_v58 = vsel %vm10489_vm15, %v4659_v47, %v4657_v54  ;;  %v7887_v59 = vclamps-f32 %v982_v52, 448.0  ;;  %v967_v16 = vmul.f32 %v8502_v3, %v453_v5 }
 0x2f3   : > { %v4666_v60 = vand.u32 2147483647, %v7863_v53  ;;  %v4667_v61 = vmul.f32 0.0625, %v7863_v53  ;;  %v4663_v62 = vpack.c.b16 %v4661_v58, %v4652_v50  ;;  %vm4669_vm0 = vweird.f32 %v7863_v53 }
 0x2f4   : > { %v4671_v63 = vshrl.u32 %v7863_v53, 24  ;;  %v4675_v0 = vand.u32 2147483647, %v7871_v55  ;;  %v4676_v4 = vmul.f32 0.0625, %v7871_v55  ;;  %vm4678_vm2 = vweird.f32 %v7871_v55  ;;  %v454_v53 = vld [vmem:[%s8493_s9 + $0x770] sm:$0xff] }
 0x2f5   : > { %v4668_v1 = vcvt.f32.f8e4m3b11 %v4667_v61  ;;  %vm10502_vm1 = vcmp.le.f32.partialorder %v4666_v60, 0.0009765625  ;;  %v4664_v6 = vpack.c.b8 %v4663_v62, %v4662_v51  ;;  %v4680_v8 = vshrl.u32 %v7871_v55, 24 }
 0x2f6   : > { %v4672_v7 = vand.u32 128, %v4671_v63  ;;  %vm10507_vm3 = vcmp.le.f32.partialorder %v4675_v0, 0.0009765625  ;;  %v4677_v11 = vcvt.f32.f8e4m3b11 %v4676_v4  ;;  %v4684_v12 = vand.u32 2147483647, %v7879_v56  ;;  %v462_v0 = vld [vmem:[%s8493_s9 + $0x7b0] sm:$0xff] }
 0x2f7   : > { %v4670_v10 = vsel %vm4669_vm0, 127, %v4668_v1  ;;  %v4685_v13 = vmul.f32 0.0625, %v7879_v56  ;;  %7445 = vst [vmem:[%s8554_s27 + $0x1d8] sm:$0xff] %v4664_v6  ;;  %v4681_v14 = vand.u32 128, %v4680_v8  ;;  %vm4687_vm4 = vweird.f32 %v7879_v56 }
 0x2f8   : > { %v4689_v15 = vshrl.u32 %v7879_v56, 24  ;;  %v4674_v17 = vsel %vm10502_vm1, %v4672_v7, %v4670_v10  ;;  %v4679_v18 = vsel %vm4678_vm2, 127, %v4677_v11  ;;  %v4693_v20 = vand.u32 2147483647, %v7887_v59  ;;  %v470_v7 = vld [vmem:[%s8493_s9 + $0x7f0] sm:$0xff] }
 0x2f9   : > { %v4686_v19 = vcvt.f32.f8e4m3b11 %v4685_v13  ;;  %v4683_v23 = vsel %vm10507_vm3, %v4681_v14, %v4679_v18  ;;  %vm10520_vm5 = vcmp.le.f32.partialorder %v4684_v12, 0.0009765625  ;;  %v4694_v26 = vmul.f32 0.0625, %v7887_v59 }
 0x2fa   : > { %v4690_v24 = vand.u32 128, %v4689_v15  ;;  %vm4696_vm6 = vweird.f32 %v7887_v59  ;;  %v4698_v28 = vshrl.u32 %v7887_v59, 24  ;;  %vm10524_vm7 = vcmp.le.f32.partialorder %v4693_v20, 0.0009765625  ;;  %v447_v15 = vld [vmem:[%s8493_s9 + $0x738] sm:$0xff] }
 0x2fb   : > { %v4688_v27 = vsel %vm4687_vm4, 127, %v4686_v19  ;;  %v4695_v31 = vcvt.f32.f8e4m3b11 %v4694_v26  ;;  %v4702_v32 = vpack.c.b16 %v4683_v23, %v4674_v17  ;;  %v975_v33 = vmul.f32 %v8502_v3, %v461_v21 }
 0x2fc   : > { %v983_v34 = vmul.f32 %v8502_v3, %v469_v22  ;;  %v4692_v35 = vsel %vm10520_vm5, %v4690_v24, %v4688_v27  ;;  %v4699_v36 = vand.u32 128, %v4698_v28  ;;  %v7864_v37 = vclamps-f32 %v959_v57, 448.0 }
 0x2fd   : > { %v7872_v38 = vclamps-f32 %v967_v16, 448.0  ;;  %v4697_v39 = vsel %vm4696_vm6, 127, %v4695_v31  ;;  %v7880_v40 = vclamps-f32 %v975_v33, 448.0  ;;  %v960_v42 = vmul.f32 %v8502_v3, %v446_v30  ;;  %v455_v16 = vld [vmem:[%s8493_s9 + $0x778] sm:$0xff] }
 0x2fe   : > { %v7888_v41 = vclamps-f32 %v983_v34, 448.0  ;;  %v4701_v43 = vsel %vm10524_vm7, %v4699_v36, %v4697_v39  ;;  %v4706_v44 = vand.u32 2147483647, %v7864_v37  ;;  %v4707_v45 = vmul.f32 0.0625, %v7864_v37  ;;  %v463_v39 = vld [vmem:[%s8493_s9 + $0x7b8] sm:$0xff] }
 0x2ff   : > { %vm4709_vm8 = vweird.f32 %v7864_v37  ;;  %v4703_v46 = vpack.c.b16 %v4701_v43, %v4692_v35  ;;  %v4711_v47 = vshrl.u32 %v7864_v37, 24  ;;  %v4715_v48 = vand.u32 2147483647, %v7872_v38 }
 0x300   : > { %v4716_v49 = vmul.f32 0.0625, %v7872_v38  ;;  %v4708_v50 = vcvt.f32.f8e4m3b11 %v4707_v45  ;;  %vm10536_vm9 = vcmp.le.f32.partialorder %v4706_v44, 0.0009765625  ;;  %vm4718_vm10 = vweird.f32 %v7872_v38 }
 0x301   : > { %v4720_v52 = vshrl.u32 %v7872_v38, 24  ;;  %v4704_v54 = vpack.c.b8 %v4703_v46, %v4702_v32  ;;  %v4712_v55 = vand.u32 128, %v4711_v47  ;;  %vm10541_vm11 = vcmp.le.f32.partialorder %v4715_v48, 0.0009765625 }
 0x302   : > { %v4717_v56 = vcvt.f32.f8e4m3b11 %v4716_v49  ;;  %v4710_v58 = vsel %vm4709_vm8, 127, %v4708_v50  ;;  %v4724_v60 = vand.u32 2147483647, %v7880_v40  ;;  %v4725_v61 = vmul.f32 0.0625, %v7880_v40  ;;  %v471_v50 = vld [vmem:[%s8493_s9 + $0x7f8] sm:$0xff] }
 0x303   : > { %v4721_v59 = vand.u32 128, %v4720_v52  ;;  %7446 = vst [vmem:[%s8554_s27 + $0x1e0] sm:$0xff] %v4704_v54  ;;  %vm4727_vm12 = vweird.f32 %v7880_v40  ;;  %v4729_v63 = vshrl.u32 %v7880_v40, 24  ;;  %v968_v1 = vmul.f32 %v8502_v3, %v454_v53 }
 0x304   : > { %v4719_v62 = vsel %vm4718_vm10, 127, %v4717_v56  ;;  %v4714_v2 = vsel %vm10536_vm9, %v4712_v55, %v4710_v58  ;;  %v4726_v5 = vcvt.f32.f8e4m3b11 %v4725_v61  ;;  %v4733_v6 = vand.u32 2147483647, %v7888_v41 }
 0x305   : > { %v4723_v4 = vsel %vm10541_vm11, %v4721_v59, %v4719_v62  ;;  %v4730_v8 = vand.u32 128, %v4729_v63  ;;  %vm10553_vm13 = vcmp.le.f32.partialorder %v4724_v60, 0.0009765625  ;;  %v4734_v10 = vmul.f32 0.0625, %v7888_v41 }
 0x306   : > { %v4738_v11 = vshrl.u32 %v7888_v41, 24  ;;  %v4728_v12 = vsel %vm4727_vm12, 127, %v4726_v5  ;;  %vm4736_vm14 = vweird.f32 %v7888_v41  ;;  %vm10557_vm15 = vcmp.le.f32.partialorder %v4733_v6, 0.0009765625 }
 0x307   : > { %v976_v14 = vmul.f32 %v8502_v3, %v462_v0  ;;  %v4735_v17 = vcvt.f32.f8e4m3b11 %v4734_v10  ;;  %v4742_v19 = vpack.c.b16 %v4723_v4, %v4714_v2  ;;  %v984_v20 = vmul.f32 %v8502_v3, %v470_v7 }
 0x308   : > { %v4739_v18 = vand.u32 128, %v4738_v11  ;;  %v4732_v21 = vsel %vm10553_vm13, %v4730_v8, %v4728_v12  ;;  %v7865_v22 = vclamps-f32 %v960_v42, 448.0  ;;  %v7873_v23 = vclamps-f32 %v968_v1, 448.0 }
 0x309   : > { %v7881_v24 = vclamps-f32 %v976_v14, 448.0  ;;  %v4737_v25 = vsel %vm4736_vm14, 127, %v4735_v17  ;;  %v7889_v26 = vclamps-f32 %v984_v20, 448.0  ;;  %v961_v27 = vmul.f32 %v8502_v3, %v447_v15 }
 0x30a   : > { %v969_v28 = vmul.f32 %v8502_v3, %v455_v16  ;;  %v4741_v29 = vsel %vm10557_vm15, %v4739_v18, %v4737_v25  ;;  %v4746_v30 = vand.u32 2147483647, %v7865_v22  ;;  %v4747_v31 = vmul.f32 0.0625, %v7865_v22  ;;  %v472_v18 = vld [vmem:[%s8493_s9 + $0x800] sm:$0xff] }
 0x30b   : > { %vm4749_vm0 = vweird.f32 %v7865_v22  ;;  %v4743_v32 = vpack.c.b16 %v4741_v29, %v4732_v21  ;;  %v4751_v33 = vshrl.u32 %v7865_v22, 24  ;;  %v4755_v34 = vand.u32 2147483647, %v7873_v23 }
 0x30c   : > { %v4756_v35 = vmul.f32 0.0625, %v7873_v23  ;;  %v4748_v36 = vcvt.f32.f8e4m3b11 %v4747_v31  ;;  %vm10571_vm1 = vcmp.le.f32.partialorder %v4746_v30, 0.0009765625  ;;  %vm4758_vm2 = vweird.f32 %v7873_v23 }
 0x30d   : > { %v4760_v38 = vshrl.u32 %v7873_v23, 24  ;;  %v4744_v40 = vpack.c.b8 %v4743_v32, %v4742_v19  ;;  %v4752_v41 = vand.u32 128, %v4751_v33  ;;  %vm10576_vm3 = vcmp.le.f32.partialorder %v4755_v34, 0.0009765625  ;;  %v480_v34 = vld [vmem:[%s8493_s9 + $0x840] sm:$0xff] }
 0x30e   : > { %v4757_v42 = vcvt.f32.f8e4m3b11 %v4756_v35  ;;  %v4750_v44 = vsel %vm4749_vm0, 127, %v4748_v36  ;;  %v4764_v46 = vand.u32 2147483647, %v7881_v24  ;;  %v4765_v47 = vmul.f32 0.0625, %v7881_v24  ;;  %v488_v35 = vld [vmem:[%s8493_s9 + $0x880] sm:$0xff] }
 0x30f   : > { %v4761_v45 = vand.u32 128, %v4760_v38  ;;  %7447 = vst [vmem:[%s8554_s27 + $0x1e8] sm:$0xff] %v4744_v40  ;;  %vm4767_vm4 = vweird.f32 %v7881_v24  ;;  %v4769_v49 = vshrl.u32 %v7881_v24, 24  ;;  %v977_v51 = vmul.f32 %v8502_v3, %v463_v39  ;;  %v496_v40 = vld [vmem:[%s8493_s9 + $0x8c0] sm:$0xff] }
 0x310   : > { %v4759_v48 = vsel %vm4758_vm2, 127, %v4757_v42  ;;  %v4754_v52 = vsel %vm10571_vm1, %v4752_v41, %v4750_v44  ;;  %v4766_v54 = vcvt.f32.f8e4m3b11 %v4765_v47  ;;  %v4773_v55 = vand.u32 2147483647, %v7889_v26  ;;  %v473_v44 = vld [vmem:[%s8493_s9 + $0x808] sm:$0xff] }
 0x311   : > { %v4763_v53 = vsel %vm10576_vm3, %v4761_v45, %v4759_v48  ;;  %v4770_v56 = vand.u32 128, %v4769_v49  ;;  %vm10587_vm5 = vcmp.le.f32.partialorder %v4764_v46, 0.0009765625  ;;  %v4774_v58 = vmul.f32 0.0625, %v7889_v26 }
 0x312   : > { %v4778_v59 = vshrl.u32 %v7889_v26, 24  ;;  %v4768_v60 = vsel %vm4767_vm4, 127, %v4766_v54  ;;  %vm4776_vm6 = vweird.f32 %v7889_v26  ;;  %vm10591_vm7 = vcmp.le.f32.partialorder %v4773_v55, 0.0009765625 }
 0x313   : > { %v985_v62 = vmul.f32 %v8502_v3, %v471_v50  ;;  %v4775_v63 = vcvt.f32.f8e4m3b11 %v4774_v58  ;;  %v4782_v1 = vpack.c.b16 %v4763_v53, %v4754_v52  ;;  %v7866_v2 = vclamps-f32 %v961_v27, 448.0 }
 0x314   : > { %v4779_v0 = vand.u32 128, %v4778_v59  ;;  %v4772_v4 = vsel %vm10587_vm5, %v4770_v56, %v4768_v60  ;;  %v7874_v5 = vclamps-f32 %v969_v28, 448.0  ;;  %v7882_v6 = vclamps-f32 %v977_v51, 448.0 }
 0x315   : > { %v7890_v7 = vclamps-f32 %v985_v62, 448.0  ;;  %v4777_v8 = vsel %vm4776_vm6, 127, %v4775_v63  ;;  %v4786_v9 = vand.u32 2147483647, %v7866_v2  ;;  %v4787_v10 = vmul.f32 0.0625, %v7866_v2 }
 0x316   : > { %vm4789_vm8 = vweird.f32 %v7866_v2  ;;  %v4781_v11 = vsel %vm10591_vm7, %v4779_v0, %v4777_v8  ;;  %v4791_v12 = vshrl.u32 %v7866_v2, 24  ;;  %v4795_v13 = vand.u32 2147483647, %v7874_v5 }
 0x317   : > { %v4796_v14 = vmul.f32 0.0625, %v7874_v5  ;;  %v4783_v15 = vpack.c.b16 %v4781_v11, %v4772_v4  ;;  %v4788_v16 = vcvt.f32.f8e4m3b11 %v4787_v10  ;;  %vm10600_vm9 = vcmp.le.f32.partialorder %v4786_v9, 0.0009765625  ;;  %v481_v4 = vld [vmem:[%s8493_s9 + $0x848] sm:$0xff] }
 0x318   : > { %vm4798_vm10 = vweird.f32 %v7874_v5  ;;  %v4792_v19 = vand.u32 128, %v4791_v12  ;;  %v4800_v21 = vshrl.u32 %v7874_v5, 24  ;;  %vm10605_vm11 = vcmp.le.f32.partialorder %v4795_v13, 0.0009765625 }
 0x319   : > { %v4797_v20 = vcvt.f32.f8e4m3b11 %v4796_v14  ;;  %v4784_v23 = vpack.c.b8 %v4783_v15, %v4782_v1  ;;  %v4790_v24 = vsel %vm4789_vm8, 127, %v4788_v16  ;;  %v4804_v25 = vand.u32 2147483647, %v7882_v6 }
 0x31a   : > { %v4805_v26 = vmul.f32 0.0625, %v7882_v6  ;;  %v4801_v28 = vand.u32 128, %v4800_v21  ;;  %vm4807_vm12 = vweird.f32 %v7882_v6  ;;  %v986_v29 = vmul.f32 %v8502_v3, %v472_v18  ;;  %v497_v21 = vld [vmem:[%s8493_s9 + $0x8c8] sm:$0xff] }
 0x31b   : > { %v4799_v27 = vsel %vm4798_vm10, 127, %v4797_v20  ;;  %7448 = vst [vmem:[%s8554_s27 + $0x1f0] sm:$0xff] %v4784_v23  ;;  %v4794_v30 = vsel %vm10600_vm9, %v4792_v19, %v4790_v24  ;;  %v4809_v32 = vshrl.u32 %v7882_v6, 24  ;;  %v4813_v33 = vand.u32 2147483647, %v7890_v7  ;;  %v489_v20 = vld [vmem:[%s8493_s9 + $0x888] sm:$0xff] }
 0x31c   : > { %v4806_v31 = vcvt.f32.f8e4m3b11 %v4805_v26  ;;  %v4803_v36 = vsel %vm10605_vm11, %v4801_v28, %v4799_v27  ;;  %vm10617_vm13 = vcmp.le.f32.partialorder %v4804_v25, 0.0009765625  ;;  %v4814_v38 = vmul.f32 0.0625, %v7890_v7 }
 0x31d   : > { %v4818_v39 = vshrl.u32 %v7890_v7, 24  ;;  %v4810_v42 = vand.u32 128, %v4809_v32  ;;  %vm4816_vm14 = vweird.f32 %v7890_v7  ;;  %vm10622_vm15 = vcmp.le.f32.partialorder %v4813_v33, 0.0009765625 }
 0x31e   : > { %v4808_v41 = vsel %vm4807_vm12, 127, %v4806_v31  ;;  %v4815_v45 = vcvt.f32.f8e4m3b11 %v4814_v38  ;;  %v994_v47 = vmul.f32 %v8502_v3, %v480_v34  ;;  %v1002_v48 = vmul.f32 %v8502_v3, %v488_v35 }
 0x31f   : > { %v4819_v46 = vand.u32 128, %v4818_v39  ;;  %v4812_v49 = vsel %vm10617_vm13, %v4810_v42, %v4808_v41  ;;  %v4822_v50 = vpack.c.b16 %v4803_v36, %v4794_v30  ;;  %v1010_v51 = vmul.f32 %v8502_v3, %v496_v40 }
 0x320   : > { %v7891_v52 = vclamps-f32 %v986_v29, 448.0  ;;  %v4817_v53 = vsel %vm4816_vm14, 127, %v4815_v45  ;;  %v7899_v54 = vclamps-f32 %v994_v47, 448.0  ;;  %v7907_v55 = vclamps-f32 %v1002_v48, 448.0  ;;  %v474_v29 = vld [vmem:[%s8493_s9 + $0x810] sm:$0xff] }
 0x321   : > { %v987_v56 = vmul.f32 %v8502_v3, %v473_v44  ;;  %v4821_v57 = vsel %vm10622_vm15, %v4819_v46, %v4817_v53  ;;  %v7915_v58 = vclamps-f32 %v1010_v51, 448.0  ;;  %v995_v15 = vmul.f32 %v8502_v3, %v481_v4 }
 0x322   : > { %v4826_v59 = vand.u32 2147483647, %v7891_v52  ;;  %v4827_v60 = vmul.f32 0.0625, %v7891_v52  ;;  %v4823_v61 = vpack.c.b16 %v4821_v57, %v4812_v49  ;;  %vm4829_vm0 = vweird.f32 %v7891_v52 }
 0x323   : > { %v4831_v62 = vshrl.u32 %v7891_v52, 24  ;;  %v4835_v63 = vand.u32 2147483647, %v7899_v54  ;;  %v4836_v2 = vmul.f32 0.0625, %v7899_v54  ;;  %vm4838_vm2 = vweird.f32 %v7899_v54  ;;  %v482_v52 = vld [vmem:[%s8493_s9 + $0x850] sm:$0xff] }
 0x324   : > { %v4828_v0 = vcvt.f32.f8e4m3b11 %v4827_v60  ;;  %vm10635_vm1 = vcmp.le.f32.partialorder %v4826_v59, 0.0009765625  ;;  %v4824_v5 = vpack.c.b8 %v4823_v61, %v4822_v50  ;;  %v4840_v7 = vshrl.u32 %v7899_v54, 24 }
 0x325   : > { %v4832_v6 = vand.u32 128, %v4831_v62  ;;  %vm10640_vm3 = vcmp.le.f32.partialorder %v4835_v63, 0.0009765625  ;;  %v4837_v10 = vcvt.f32.f8e4m3b11 %v4836_v2  ;;  %v4844_v11 = vand.u32 2147483647, %v7907_v55  ;;  %v490_v63 = vld [vmem:[%s8493_s9 + $0x890] sm:$0xff] }
 0x326   : > { %v4830_v9 = vsel %vm4829_vm0, 127, %v4828_v0  ;;  %v4845_v12 = vmul.f32 0.0625, %v7907_v55  ;;  %7449 = vst [vmem:[%s8554_s27 + $0x1f8] sm:$0xff] %v4824_v5  ;;  %v4841_v13 = vand.u32 128, %v4840_v7  ;;  %vm4847_vm4 = vweird.f32 %v7907_v55 }
 0x327   : > { %v4849_v14 = vshrl.u32 %v7907_v55, 24  ;;  %v4834_v16 = vsel %vm10635_vm1, %v4832_v6, %v4830_v9  ;;  %v4839_v17 = vsel %vm4838_vm2, 127, %v4837_v10  ;;  %v4853_v19 = vand.u32 2147483647, %v7915_v58  ;;  %v498_v6 = vld [vmem:[%s8493_s9 + $0x8d0] sm:$0xff] }
 0x328   : > { %v4846_v18 = vcvt.f32.f8e4m3b11 %v4845_v12  ;;  %v4843_v22 = vsel %vm10640_vm3, %v4841_v13, %v4839_v17  ;;  %vm10653_vm5 = vcmp.le.f32.partialorder %v4844_v11, 0.0009765625  ;;  %v4854_v25 = vmul.f32 0.0625, %v7915_v58 }
 0x329   : > { %v4850_v23 = vand.u32 128, %v4849_v14  ;;  %vm4856_vm6 = vweird.f32 %v7915_v58  ;;  %v4858_v27 = vshrl.u32 %v7915_v58, 24  ;;  %vm10657_vm7 = vcmp.le.f32.partialorder %v4853_v19, 0.0009765625  ;;  %v475_v14 = vld [vmem:[%s8493_s9 + $0x818] sm:$0xff] }
 0x32a   : > { %v4848_v26 = vsel %vm4847_vm4, 127, %v4846_v18  ;;  %v4855_v30 = vcvt.f32.f8e4m3b11 %v4854_v25  ;;  %v4862_v31 = vpack.c.b16 %v4843_v22, %v4834_v16  ;;  %v1003_v32 = vmul.f32 %v8502_v3, %v489_v20 }
 0x32b   : > { %v1011_v33 = vmul.f32 %v8502_v3, %v497_v21  ;;  %v4852_v34 = vsel %vm10653_vm5, %v4850_v23, %v4848_v26  ;;  %v4859_v35 = vand.u32 128, %v4858_v27  ;;  %v7892_v36 = vclamps-f32 %v987_v56, 448.0 }
 0x32c   : > { %v7900_v37 = vclamps-f32 %v995_v15, 448.0  ;;  %v4857_v38 = vsel %vm4856_vm6, 127, %v4855_v30  ;;  %v7908_v39 = vclamps-f32 %v1003_v32, 448.0  ;;  %v988_v41 = vmul.f32 %v8502_v3, %v474_v29  ;;  %v483_v15 = vld [vmem:[%s8493_s9 + $0x858] sm:$0xff] }
 0x32d   : > { %v7916_v40 = vclamps-f32 %v1011_v33, 448.0  ;;  %v4861_v42 = vsel %vm10657_vm7, %v4859_v35, %v4857_v38  ;;  %v4866_v43 = vand.u32 2147483647, %v7892_v36  ;;  %v4867_v44 = vmul.f32 0.0625, %v7892_v36  ;;  %v491_v38 = vld [vmem:[%s8493_s9 + $0x898] sm:$0xff] }
 0x32e   : > { %vm4869_vm8 = vweird.f32 %v7892_v36  ;;  %v4863_v45 = vpack.c.b16 %v4861_v42, %v4852_v34  ;;  %v4871_v46 = vshrl.u32 %v7892_v36, 24  ;;  %v4875_v47 = vand.u32 2147483647, %v7900_v37 }
 0x32f   : > { %v4876_v48 = vmul.f32 0.0625, %v7900_v37  ;;  %v4868_v49 = vcvt.f32.f8e4m3b11 %v4867_v44  ;;  %vm10669_vm9 = vcmp.le.f32.partialorder %v4866_v43, 0.0009765625  ;;  %vm4878_vm10 = vweird.f32 %v7900_v37 }
 0x330   : > { %v4880_v51 = vshrl.u32 %v7900_v37, 24  ;;  %v4864_v53 = vpack.c.b8 %v4863_v45, %v4862_v31  ;;  %v4872_v54 = vand.u32 128, %v4871_v46  ;;  %vm10674_vm11 = vcmp.le.f32.partialorder %v4875_v47, 0.0009765625 }
 0x331   : > { %v4877_v55 = vcvt.f32.f8e4m3b11 %v4876_v48  ;;  %v4870_v57 = vsel %vm4869_vm8, 127, %v4868_v49  ;;  %v4884_v59 = vand.u32 2147483647, %v7908_v39  ;;  %v4885_v60 = vmul.f32 0.0625, %v7908_v39  ;;  %v499_v49 = vld [vmem:[%s8493_s9 + $0x8d8] sm:$0xff] }
 0x332   : > { %v4881_v58 = vand.u32 128, %v4880_v51  ;;  %7450 = vst [vmem:[%s8554_s27 + $0x200] sm:$0xff] %v4864_v53  ;;  %vm4887_vm12 = vweird.f32 %v7908_v39  ;;  %v4889_v62 = vshrl.u32 %v7908_v39, 24  ;;  %v996_v0 = vmul.f32 %v8502_v3, %v482_v52 }
 0x333   : > { %v4879_v61 = vsel %vm4878_vm10, 127, %v4877_v55  ;;  %v4874_v1 = vsel %vm10669_vm9, %v4872_v54, %v4870_v57  ;;  %v4886_v4 = vcvt.f32.f8e4m3b11 %v4885_v60  ;;  %v4893_v5 = vand.u32 2147483647, %v7916_v40 }
 0x334   : > { %v4883_v2 = vsel %vm10674_vm11, %v4881_v58, %v4879_v61  ;;  %v4890_v7 = vand.u32 128, %v4889_v62  ;;  %vm10686_vm13 = vcmp.le.f32.partialorder %v4884_v59, 0.0009765625  ;;  %v4894_v9 = vmul.f32 0.0625, %v7916_v40 }
 0x335   : > { %v4898_v10 = vshrl.u32 %v7916_v40, 24  ;;  %v4888_v11 = vsel %vm4887_vm12, 127, %v4886_v4  ;;  %vm4896_vm14 = vweird.f32 %v7916_v40  ;;  %vm10690_vm15 = vcmp.le.f32.partialorder %v4893_v5, 0.0009765625 }
 0x336   : > { %v1004_v13 = vmul.f32 %v8502_v3, %v490_v63  ;;  %v4895_v16 = vcvt.f32.f8e4m3b11 %v4894_v9  ;;  %v4902_v18 = vpack.c.b16 %v4883_v2, %v4874_v1  ;;  %v1012_v19 = vmul.f32 %v8502_v3, %v498_v6 }
 0x337   : > { %v4899_v17 = vand.u32 128, %v4898_v10  ;;  %v4892_v20 = vsel %vm10686_vm13, %v4890_v7, %v4888_v11  ;;  %v7893_v21 = vclamps-f32 %v988_v41, 448.0  ;;  %v7901_v22 = vclamps-f32 %v996_v0, 448.0 }
 0x338   : > { %v7909_v23 = vclamps-f32 %v1004_v13, 448.0  ;;  %v4897_v24 = vsel %vm4896_vm14, 127, %v4895_v16  ;;  %v7917_v25 = vclamps-f32 %v1012_v19, 448.0  ;;  %v989_v26 = vmul.f32 %v8502_v3, %v475_v14 }
 0x339   : > { %v997_v27 = vmul.f32 %v8502_v3, %v483_v15  ;;  %v4901_v28 = vsel %vm10690_vm15, %v4899_v17, %v4897_v24  ;;  %v4906_v29 = vand.u32 2147483647, %v7893_v21  ;;  %v4907_v30 = vmul.f32 0.0625, %v7893_v21  ;;  %v476_v17 = vld [vmem:[%s8493_s9 + $0x820] sm:$0xff] }
 0x33a   : > { %vm4909_vm0 = vweird.f32 %v7893_v21  ;;  %v4903_v31 = vpack.c.b16 %v4901_v28, %v4892_v20  ;;  %v4911_v32 = vshrl.u32 %v7893_v21, 24  ;;  %v4915_v33 = vand.u32 2147483647, %v7901_v22 }
 0x33b   : > { %v4916_v34 = vmul.f32 0.0625, %v7901_v22  ;;  %v4908_v35 = vcvt.f32.f8e4m3b11 %v4907_v30  ;;  %vm10704_vm1 = vcmp.le.f32.partialorder %v4906_v29, 0.0009765625  ;;  %vm4918_vm2 = vweird.f32 %v7901_v22 }
 0x33c   : > { %v4920_v37 = vshrl.u32 %v7901_v22, 24  ;;  %v4904_v39 = vpack.c.b8 %v4903_v31, %v4902_v18  ;;  %v4912_v40 = vand.u32 128, %v4911_v32  ;;  %vm10709_vm3 = vcmp.le.f32.partialorder %v4915_v33, 0.0009765625  ;;  %v484_v33 = vld [vmem:[%s8493_s9 + $0x860] sm:$0xff] }
 0x33d   : > { %v4917_v41 = vcvt.f32.f8e4m3b11 %v4916_v34  ;;  %v4910_v43 = vsel %vm4909_vm0, 127, %v4908_v35  ;;  %v4924_v45 = vand.u32 2147483647, %v7909_v23  ;;  %v4925_v46 = vmul.f32 0.0625, %v7909_v23  ;;  %v492_v34 = vld [vmem:[%s8493_s9 + $0x8a0] sm:$0xff] }
 0x33e   : > { %v4921_v44 = vand.u32 128, %v4920_v37  ;;  %7451 = vst [vmem:[%s8554_s27 + $0x208] sm:$0xff] %v4904_v39  ;;  %vm4927_vm4 = vweird.f32 %v7909_v23  ;;  %v4929_v48 = vshrl.u32 %v7909_v23, 24  ;;  %v1005_v50 = vmul.f32 %v8502_v3, %v491_v38  ;;  %v500_v39 = vld [vmem:[%s8493_s9 + $0x8e0] sm:$0xff] }
 0x33f   : > { %v4919_v47 = vsel %vm4918_vm2, 127, %v4917_v41  ;;  %v4914_v51 = vsel %vm10704_vm1, %v4912_v40, %v4910_v43  ;;  %v4926_v53 = vcvt.f32.f8e4m3b11 %v4925_v46  ;;  %v4933_v54 = vand.u32 2147483647, %v7917_v25  ;;  %v477_v43 = vld [vmem:[%s8493_s9 + $0x828] sm:$0xff] }
 0x340   : > { %v4923_v52 = vsel %vm10709_vm3, %v4921_v44, %v4919_v47  ;;  %v4930_v55 = vand.u32 128, %v4929_v48  ;;  %vm10720_vm5 = vcmp.le.f32.partialorder %v4924_v45, 0.0009765625  ;;  %v4934_v57 = vmul.f32 0.0625, %v7917_v25 }
 0x341   : > { %v4938_v58 = vshrl.u32 %v7917_v25, 24  ;;  %v4928_v59 = vsel %vm4927_vm4, 127, %v4926_v53  ;;  %vm4936_vm6 = vweird.f32 %v7917_v25  ;;  %vm10724_vm7 = vcmp.le.f32.partialorder %v4933_v54, 0.0009765625 }
 0x342   : > { %v1013_v61 = vmul.f32 %v8502_v3, %v499_v49  ;;  %v4935_v62 = vcvt.f32.f8e4m3b11 %v4934_v57  ;;  %v4942_v0 = vpack.c.b16 %v4923_v52, %v4914_v51  ;;  %v7894_v1 = vclamps-f32 %v989_v26, 448.0 }
 0x343   : > { %v4939_v63 = vand.u32 128, %v4938_v58  ;;  %v4932_v2 = vsel %vm10720_vm5, %v4930_v55, %v4928_v59  ;;  %v7902_v4 = vclamps-f32 %v997_v27, 448.0  ;;  %v7910_v5 = vclamps-f32 %v1005_v50, 448.0 }
 0x344   : > { %v7918_v6 = vclamps-f32 %v1013_v61, 448.0  ;;  %v4937_v7 = vsel %vm4936_vm6, 127, %v4935_v62  ;;  %v4946_v8 = vand.u32 2147483647, %v7894_v1  ;;  %v4947_v9 = vmul.f32 0.0625, %v7894_v1 }
 0x345   : > { %vm4949_vm8 = vweird.f32 %v7894_v1  ;;  %v4941_v10 = vsel %vm10724_vm7, %v4939_v63, %v4937_v7  ;;  %v4951_v11 = vshrl.u32 %v7894_v1, 24  ;;  %v4955_v12 = vand.u32 2147483647, %v7902_v4 }
 0x346   : > { %v4956_v13 = vmul.f32 0.0625, %v7902_v4  ;;  %v4943_v14 = vpack.c.b16 %v4941_v10, %v4932_v2  ;;  %v4948_v15 = vcvt.f32.f8e4m3b11 %v4947_v9  ;;  %vm10733_vm9 = vcmp.le.f32.partialorder %v4946_v8, 0.0009765625  ;;  %v485_v2 = vld [vmem:[%s8493_s9 + $0x868] sm:$0xff] }
 0x347   : > { %vm4958_vm10 = vweird.f32 %v7902_v4  ;;  %v4952_v18 = vand.u32 128, %v4951_v11  ;;  %v4960_v20 = vshrl.u32 %v7902_v4, 24  ;;  %vm10738_vm11 = vcmp.le.f32.partialorder %v4955_v12, 0.0009765625 }
 0x348   : > { %v4957_v19 = vcvt.f32.f8e4m3b11 %v4956_v13  ;;  %v4944_v22 = vpack.c.b8 %v4943_v14, %v4942_v0  ;;  %v4950_v23 = vsel %vm4949_vm8, 127, %v4948_v15  ;;  %v4964_v24 = vand.u32 2147483647, %v7910_v5 }
 0x349   : > { %v4965_v25 = vmul.f32 0.0625, %v7910_v5  ;;  %v4961_v27 = vand.u32 128, %v4960_v20  ;;  %vm4967_vm12 = vweird.f32 %v7910_v5  ;;  %v990_v28 = vmul.f32 %v8502_v3, %v476_v17  ;;  %v501_v20 = vld [vmem:[%s8493_s9 + $0x8e8] sm:$0xff] }
 0x34a   : > { %v4959_v26 = vsel %vm4958_vm10, 127, %v4957_v19  ;;  %7452 = vst [vmem:[%s8554_s27 + $0x210] sm:$0xff] %v4944_v22  ;;  %v4954_v29 = vsel %vm10733_vm9, %v4952_v18, %v4950_v23  ;;  %v4969_v31 = vshrl.u32 %v7910_v5, 24  ;;  %v4973_v32 = vand.u32 2147483647, %v7918_v6  ;;  %v493_v19 = vld [vmem:[%s8493_s9 + $0x8a8] sm:$0xff] }
 0x34b   : > { %v4966_v30 = vcvt.f32.f8e4m3b11 %v4965_v25  ;;  %v4963_v35 = vsel %vm10738_vm11, %v4961_v27, %v4959_v26  ;;  %vm10750_vm13 = vcmp.le.f32.partialorder %v4964_v24, 0.0009765625  ;;  %v4974_v37 = vmul.f32 0.0625, %v7918_v6 }
 0x34c   : > { %v4978_v38 = vshrl.u32 %v7918_v6, 24  ;;  %v4970_v41 = vand.u32 128, %v4969_v31  ;;  %vm4976_vm14 = vweird.f32 %v7918_v6  ;;  %vm10755_vm15 = vcmp.le.f32.partialorder %v4973_v32, 0.0009765625 }
 0x34d   : > { %v4968_v40 = vsel %vm4967_vm12, 127, %v4966_v30  ;;  %v4975_v44 = vcvt.f32.f8e4m3b11 %v4974_v37  ;;  %v998_v46 = vmul.f32 %v8502_v3, %v484_v33  ;;  %v1006_v47 = vmul.f32 %v8502_v3, %v492_v34 }
 0x34e   : > { %v4979_v45 = vand.u32 128, %v4978_v38  ;;  %v4972_v48 = vsel %vm10750_vm13, %v4970_v41, %v4968_v40  ;;  %v4982_v49 = vpack.c.b16 %v4963_v35, %v4954_v29  ;;  %v1014_v50 = vmul.f32 %v8502_v3, %v500_v39 }
 0x34f   : > { %v7895_v51 = vclamps-f32 %v990_v28, 448.0  ;;  %v4977_v52 = vsel %vm4976_vm14, 127, %v4975_v44  ;;  %v7903_v53 = vclamps-f32 %v998_v46, 448.0  ;;  %v7911_v54 = vclamps-f32 %v1006_v47, 448.0  ;;  %v478_v28 = vld [vmem:[%s8493_s9 + $0x830] sm:$0xff] }
 0x350   : > { %v991_v55 = vmul.f32 %v8502_v3, %v477_v43  ;;  %v4981_v56 = vsel %vm10755_vm15, %v4979_v45, %v4977_v52  ;;  %v7919_v57 = vclamps-f32 %v1014_v50, 448.0  ;;  %v999_v14 = vmul.f32 %v8502_v3, %v485_v2 }
 0x351   : > { %v4986_v58 = vand.u32 2147483647, %v7895_v51  ;;  %v4987_v59 = vmul.f32 0.0625, %v7895_v51  ;;  %v4983_v60 = vpack.c.b16 %v4981_v56, %v4972_v48  ;;  %vm4989_vm0 = vweird.f32 %v7895_v51 }
 0x352   : > { %v4991_v61 = vshrl.u32 %v7895_v51, 24  ;;  %v4995_v62 = vand.u32 2147483647, %v7903_v53  ;;  %v4996_v1 = vmul.f32 0.0625, %v7903_v53  ;;  %vm4998_vm2 = vweird.f32 %v7903_v53  ;;  %v486_v51 = vld [vmem:[%s8493_s9 + $0x870] sm:$0xff] }
 0x353   : > { %v4988_v63 = vcvt.f32.f8e4m3b11 %v4987_v59  ;;  %vm10768_vm1 = vcmp.le.f32.partialorder %v4986_v58, 0.0009765625  ;;  %v4984_v4 = vpack.c.b8 %v4983_v60, %v4982_v49  ;;  %v5000_v6 = vshrl.u32 %v7903_v53, 24 }
 0x354   : > { %v4992_v5 = vand.u32 128, %v4991_v61  ;;  %vm10773_vm3 = vcmp.le.f32.partialorder %v4995_v62, 0.0009765625  ;;  %v4997_v9 = vcvt.f32.f8e4m3b11 %v4996_v1  ;;  %v5004_v10 = vand.u32 2147483647, %v7911_v54  ;;  %v494_v62 = vld [vmem:[%s8493_s9 + $0x8b0] sm:$0xff] }
 0x355   : > { %v4990_v8 = vsel %vm4989_vm0, 127, %v4988_v63  ;;  %v5005_v11 = vmul.f32 0.0625, %v7911_v54  ;;  %7453 = vst [vmem:[%s8554_s27 + $0x218] sm:$0xff] %v4984_v4  ;;  %v5001_v12 = vand.u32 128, %v5000_v6  ;;  %vm5007_vm4 = vweird.f32 %v7911_v54 }
 0x356   : > { %v5009_v13 = vshrl.u32 %v7911_v54, 24  ;;  %v4994_v15 = vsel %vm10768_vm1, %v4992_v5, %v4990_v8  ;;  %v4999_v16 = vsel %vm4998_vm2, 127, %v4997_v9  ;;  %v5013_v18 = vand.u32 2147483647, %v7919_v57  ;;  %v502_v5 = vld [vmem:[%s8493_s9 + $0x8f0] sm:$0xff] }
 0x357   : > { %v5006_v17 = vcvt.f32.f8e4m3b11 %v5005_v11  ;;  %v5003_v21 = vsel %vm10773_vm3, %v5001_v12, %v4999_v16  ;;  %vm10786_vm5 = vcmp.le.f32.partialorder %v5004_v10, 0.0009765625  ;;  %v5014_v24 = vmul.f32 0.0625, %v7919_v57 }
 0x358   : > { %v5010_v22 = vand.u32 128, %v5009_v13  ;;  %vm5016_vm6 = vweird.f32 %v7919_v57  ;;  %v5018_v26 = vshrl.u32 %v7919_v57, 24  ;;  %vm10790_vm7 = vcmp.le.f32.partialorder %v5013_v18, 0.0009765625  ;;  %v479_v13 = vld [vmem:[%s8493_s9 + $0x838] sm:$0xff] }
 0x359   : > { %v5008_v25 = vsel %vm5007_vm4, 127, %v5006_v17  ;;  %v5015_v29 = vcvt.f32.f8e4m3b11 %v5014_v24  ;;  %v5022_v30 = vpack.c.b16 %v5003_v21, %v4994_v15  ;;  %v1007_v31 = vmul.f32 %v8502_v3, %v493_v19 }
 0x35a   : > { %v1015_v32 = vmul.f32 %v8502_v3, %v501_v20  ;;  %v5012_v33 = vsel %vm10786_vm5, %v5010_v22, %v5008_v25  ;;  %v5019_v34 = vand.u32 128, %v5018_v26  ;;  %v7896_v35 = vclamps-f32 %v991_v55, 448.0 }
 0x35b   : > { %v7904_v36 = vclamps-f32 %v999_v14, 448.0  ;;  %v5017_v37 = vsel %vm5016_vm6, 127, %v5015_v29  ;;  %v7912_v38 = vclamps-f32 %v1007_v31, 448.0  ;;  %v992_v40 = vmul.f32 %v8502_v3, %v478_v28  ;;  %v487_v14 = vld [vmem:[%s8493_s9 + $0x878] sm:$0xff] }
 0x35c   : > { %v7920_v39 = vclamps-f32 %v1015_v32, 448.0  ;;  %v5021_v41 = vsel %vm10790_vm7, %v5019_v34, %v5017_v37  ;;  %v5026_v42 = vand.u32 2147483647, %v7896_v35  ;;  %v5027_v43 = vmul.f32 0.0625, %v7896_v35  ;;  %v495_v37 = vld [vmem:[%s8493_s9 + $0x8b8] sm:$0xff] }
 0x35d   : > { %vm5029_vm8 = vweird.f32 %v7896_v35  ;;  %v5023_v44 = vpack.c.b16 %v5021_v41, %v5012_v33  ;;  %v5031_v45 = vshrl.u32 %v7896_v35, 24  ;;  %v5035_v46 = vand.u32 2147483647, %v7904_v36 }
 0x35e   : > { %v5036_v47 = vmul.f32 0.0625, %v7904_v36  ;;  %v5028_v48 = vcvt.f32.f8e4m3b11 %v5027_v43  ;;  %vm10802_vm9 = vcmp.le.f32.partialorder %v5026_v42, 0.0009765625  ;;  %vm5038_vm10 = vweird.f32 %v7904_v36 }
 0x35f   : > { %v5040_v50 = vshrl.u32 %v7904_v36, 24  ;;  %v5024_v52 = vpack.c.b8 %v5023_v44, %v5022_v30  ;;  %v5032_v53 = vand.u32 128, %v5031_v45  ;;  %vm10807_vm11 = vcmp.le.f32.partialorder %v5035_v46, 0.0009765625 }
 0x360   : > { %v5037_v54 = vcvt.f32.f8e4m3b11 %v5036_v47  ;;  %v5030_v56 = vsel %vm5029_vm8, 127, %v5028_v48  ;;  %v5044_v58 = vand.u32 2147483647, %v7912_v38  ;;  %v5045_v59 = vmul.f32 0.0625, %v7912_v38  ;;  %v503_v48 = vld [vmem:[%s8493_s9 + $0x8f8] sm:$0xff] }
 0x361   : > { %v5041_v57 = vand.u32 128, %v5040_v50  ;;  %7454 = vst [vmem:[%s8554_s27 + $0x220] sm:$0xff] %v5024_v52  ;;  %vm5047_vm12 = vweird.f32 %v7912_v38  ;;  %v5049_v61 = vshrl.u32 %v7912_v38, 24  ;;  %v1000_v63 = vmul.f32 %v8502_v3, %v486_v51 }
 0x362   : > { %v5039_v60 = vsel %vm5038_vm10, 127, %v5037_v54  ;;  %v5034_v0 = vsel %vm10802_vm9, %v5032_v53, %v5030_v56  ;;  %v5046_v2 = vcvt.f32.f8e4m3b11 %v5045_v59  ;;  %v5053_v4 = vand.u32 2147483647, %v7920_v39 }
 0x363   : > { %v5043_v1 = vsel %vm10807_vm11, %v5041_v57, %v5039_v60  ;;  %v5050_v6 = vand.u32 128, %v5049_v61  ;;  %vm10819_vm13 = vcmp.le.f32.partialorder %v5044_v58, 0.0009765625  ;;  %v5054_v8 = vmul.f32 0.0625, %v7920_v39 }
 0x364   : > { %v5058_v9 = vshrl.u32 %v7920_v39, 24  ;;  %v5048_v10 = vsel %vm5047_vm12, 127, %v5046_v2  ;;  %vm5056_vm14 = vweird.f32 %v7920_v39  ;;  %vm10823_vm15 = vcmp.le.f32.partialorder %v5053_v4, 0.0009765625 }
 0x365   : > { %v1008_v12 = vmul.f32 %v8502_v3, %v494_v62  ;;  %v5055_v15 = vcvt.f32.f8e4m3b11 %v5054_v8  ;;  %v5062_v17 = vpack.c.b16 %v5043_v1, %v5034_v0  ;;  %v1016_v18 = vmul.f32 %v8502_v3, %v502_v5 }
 0x366   : > { %v5059_v16 = vand.u32 128, %v5058_v9  ;;  %v5052_v19 = vsel %vm10819_vm13, %v5050_v6, %v5048_v10  ;;  %v7897_v20 = vclamps-f32 %v992_v40, 448.0  ;;  %v7905_v21 = vclamps-f32 %v1000_v63, 448.0 }
 0x367   : > { %v7913_v22 = vclamps-f32 %v1008_v12, 448.0  ;;  %v5057_v23 = vsel %vm5056_vm14, 127, %v5055_v15  ;;  %v7921_v24 = vclamps-f32 %v1016_v18, 448.0  ;;  %v993_v25 = vmul.f32 %v8502_v3, %v479_v13 }
 0x368   : > { %v1001_v26 = vmul.f32 %v8502_v3, %v487_v14  ;;  %v5061_v27 = vsel %vm10823_vm15, %v5059_v16, %v5057_v23  ;;  %v5066_v28 = vand.u32 2147483647, %v7897_v20  ;;  %v5067_v29 = vmul.f32 0.0625, %v7897_v20  ;;  %v504_v16 = vld [vmem:[%s8493_s9 + $0x900] sm:$0xff] }
 0x369   : > { %vm5069_vm0 = vweird.f32 %v7897_v20  ;;  %v5063_v30 = vpack.c.b16 %v5061_v27, %v5052_v19  ;;  %v5071_v31 = vshrl.u32 %v7897_v20, 24  ;;  %v5075_v32 = vand.u32 2147483647, %v7905_v21 }
 0x36a   : > { %v5076_v33 = vmul.f32 0.0625, %v7905_v21  ;;  %v5068_v34 = vcvt.f32.f8e4m3b11 %v5067_v29  ;;  %vm10837_vm1 = vcmp.le.f32.partialorder %v5066_v28, 0.0009765625  ;;  %vm5078_vm2 = vweird.f32 %v7905_v21 }
 0x36b   : > { %v5080_v36 = vshrl.u32 %v7905_v21, 24  ;;  %v5064_v38 = vpack.c.b8 %v5063_v30, %v5062_v17  ;;  %v5072_v39 = vand.u32 128, %v5071_v31  ;;  %vm10842_vm3 = vcmp.le.f32.partialorder %v5075_v32, 0.0009765625  ;;  %v512_v32 = vld [vmem:[%s8493_s9 + $0x940] sm:$0xff] }
 0x36c   : > { %v5077_v40 = vcvt.f32.f8e4m3b11 %v5076_v33  ;;  %v5070_v42 = vsel %vm5069_vm0, 127, %v5068_v34  ;;  %v5084_v44 = vand.u32 2147483647, %v7913_v22  ;;  %v5085_v45 = vmul.f32 0.0625, %v7913_v22  ;;  %v520_v33 = vld [vmem:[%s8493_s9 + $0x980] sm:$0xff] }
 0x36d   : > { %v5081_v43 = vand.u32 128, %v5080_v36  ;;  %7455 = vst [vmem:[%s8554_s27 + $0x228] sm:$0xff] %v5064_v38  ;;  %vm5087_vm4 = vweird.f32 %v7913_v22  ;;  %v5089_v47 = vshrl.u32 %v7913_v22, 24  ;;  %v1009_v49 = vmul.f32 %v8502_v3, %v495_v37  ;;  %v528_v38 = vld [vmem:[%s8493_s9 + $0x9c0] sm:$0xff] }
 0x36e   : > { %v5079_v46 = vsel %vm5078_vm2, 127, %v5077_v40  ;;  %v5074_v50 = vsel %vm10837_vm1, %v5072_v39, %v5070_v42  ;;  %v5086_v52 = vcvt.f32.f8e4m3b11 %v5085_v45  ;;  %v5093_v53 = vand.u32 2147483647, %v7921_v24  ;;  %v505_v42 = vld [vmem:[%s8493_s9 + $0x908] sm:$0xff] }
 0x36f   : > { %v5083_v51 = vsel %vm10842_vm3, %v5081_v43, %v5079_v46  ;;  %v5090_v54 = vand.u32 128, %v5089_v47  ;;  %vm10853_vm5 = vcmp.le.f32.partialorder %v5084_v44, 0.0009765625  ;;  %v5094_v56 = vmul.f32 0.0625, %v7921_v24 }
 0x370   : > { %v5098_v57 = vshrl.u32 %v7921_v24, 24  ;;  %v5088_v58 = vsel %vm5087_vm4, 127, %v5086_v52  ;;  %vm5096_vm6 = vweird.f32 %v7921_v24  ;;  %vm10857_vm7 = vcmp.le.f32.partialorder %v5093_v53, 0.0009765625 }
 0x371   : > { %v1017_v60 = vmul.f32 %v8502_v3, %v503_v48  ;;  %v5095_v61 = vcvt.f32.f8e4m3b11 %v5094_v56  ;;  %v5102_v63 = vpack.c.b16 %v5083_v51, %v5074_v50  ;;  %v7898_v0 = vclamps-f32 %v993_v25, 448.0 }
 0x372   : > { %v5099_v62 = vand.u32 128, %v5098_v57  ;;  %v5092_v1 = vsel %vm10853_vm5, %v5090_v54, %v5088_v58  ;;  %v7906_v2 = vclamps-f32 %v1001_v26, 448.0  ;;  %v7914_v4 = vclamps-f32 %v1009_v49, 448.0 }
 0x373   : > { %v7922_v5 = vclamps-f32 %v1017_v60, 448.0  ;;  %v5097_v6 = vsel %vm5096_vm6, 127, %v5095_v61  ;;  %v5106_v7 = vand.u32 2147483647, %v7898_v0  ;;  %v5107_v8 = vmul.f32 0.0625, %v7898_v0 }
 0x374   : > { %vm5109_vm8 = vweird.f32 %v7898_v0  ;;  %v5101_v9 = vsel %vm10857_vm7, %v5099_v62, %v5097_v6  ;;  %v5111_v10 = vshrl.u32 %v7898_v0, 24  ;;  %v5115_v11 = vand.u32 2147483647, %v7906_v2 }
 0x375   : > { %v5116_v12 = vmul.f32 0.0625, %v7906_v2  ;;  %v5103_v13 = vpack.c.b16 %v5101_v9, %v5092_v1  ;;  %v5108_v14 = vcvt.f32.f8e4m3b11 %v5107_v8  ;;  %vm10866_vm9 = vcmp.le.f32.partialorder %v5106_v7, 0.0009765625  ;;  %v513_v1 = vld [vmem:[%s8493_s9 + $0x948] sm:$0xff] }
 0x376   : > { %vm5118_vm10 = vweird.f32 %v7906_v2  ;;  %v5112_v17 = vand.u32 128, %v5111_v10  ;;  %v5120_v19 = vshrl.u32 %v7906_v2, 24  ;;  %vm10871_vm11 = vcmp.le.f32.partialorder %v5115_v11, 0.0009765625 }
 0x377   : > { %v5117_v18 = vcvt.f32.f8e4m3b11 %v5116_v12  ;;  %v5104_v21 = vpack.c.b8 %v5103_v13, %v5102_v63  ;;  %v5110_v22 = vsel %vm5109_vm8, 127, %v5108_v14  ;;  %v5124_v23 = vand.u32 2147483647, %v7914_v4 }
 0x378   : > { %v5125_v24 = vmul.f32 0.0625, %v7914_v4  ;;  %v5121_v26 = vand.u32 128, %v5120_v19  ;;  %vm5127_vm12 = vweird.f32 %v7914_v4  ;;  %v1018_v27 = vmul.f32 %v8502_v3, %v504_v16  ;;  %v529_v19 = vld [vmem:[%s8493_s9 + $0x9c8] sm:$0xff] }
 0x379   : > { %v5119_v25 = vsel %vm5118_vm10, 127, %v5117_v18  ;;  %7456 = vst [vmem:[%s8554_s27 + $0x230] sm:$0xff] %v5104_v21  ;;  %v5114_v28 = vsel %vm10866_vm9, %v5112_v17, %v5110_v22  ;;  %v5129_v30 = vshrl.u32 %v7914_v4, 24  ;;  %v5133_v31 = vand.u32 2147483647, %v7922_v5  ;;  %v521_v18 = vld [vmem:[%s8493_s9 + $0x988] sm:$0xff] }
 0x37a   : > { %v5126_v29 = vcvt.f32.f8e4m3b11 %v5125_v24  ;;  %v5123_v34 = vsel %vm10871_vm11, %v5121_v26, %v5119_v25  ;;  %vm10883_vm13 = vcmp.le.f32.partialorder %v5124_v23, 0.0009765625  ;;  %v5134_v36 = vmul.f32 0.0625, %v7922_v5 }
 0x37b   : > { %v5138_v37 = vshrl.u32 %v7922_v5, 24  ;;  %v5130_v40 = vand.u32 128, %v5129_v30  ;;  %vm5136_vm14 = vweird.f32 %v7922_v5  ;;  %vm10888_vm15 = vcmp.le.f32.partialorder %v5133_v31, 0.0009765625 }
 0x37c   : > { %v5128_v39 = vsel %vm5127_vm12, 127, %v5126_v29  ;;  %v5135_v43 = vcvt.f32.f8e4m3b11 %v5134_v36  ;;  %v1026_v45 = vmul.f32 %v8502_v3, %v512_v32  ;;  %v1034_v46 = vmul.f32 %v8502_v3, %v520_v33 }
 0x37d   : > { %v5139_v44 = vand.u32 128, %v5138_v37  ;;  %v5132_v47 = vsel %vm10883_vm13, %v5130_v40, %v5128_v39  ;;  %v5142_v48 = vpack.c.b16 %v5123_v34, %v5114_v28  ;;  %v1042_v49 = vmul.f32 %v8502_v3, %v528_v38 }
 0x37e   : > { %v7923_v50 = vclamps-f32 %v1018_v27, 448.0  ;;  %v5137_v51 = vsel %vm5136_vm14, 127, %v5135_v43  ;;  %v7931_v52 = vclamps-f32 %v1026_v45, 448.0  ;;  %v7939_v53 = vclamps-f32 %v1034_v46, 448.0  ;;  %v506_v27 = vld [vmem:[%s8493_s9 + $0x910] sm:$0xff] }
 0x37f   : > { %v1019_v54 = vmul.f32 %v8502_v3, %v505_v42  ;;  %v5141_v55 = vsel %vm10888_vm15, %v5139_v44, %v5137_v51  ;;  %v7947_v56 = vclamps-f32 %v1042_v49, 448.0  ;;  %v1027_v13 = vmul.f32 %v8502_v3, %v513_v1 }
 0x380   : > { %v5146_v57 = vand.u32 2147483647, %v7923_v50  ;;  %v5147_v58 = vmul.f32 0.0625, %v7923_v50  ;;  %v5143_v59 = vpack.c.b16 %v5141_v55, %v5132_v47  ;;  %vm5149_vm0 = vweird.f32 %v7923_v50 }
 0x381   : > { %v5151_v60 = vshrl.u32 %v7923_v50, 24  ;;  %v5155_v61 = vand.u32 2147483647, %v7931_v52  ;;  %v5156_v0 = vmul.f32 0.0625, %v7931_v52  ;;  %vm5158_vm2 = vweird.f32 %v7931_v52  ;;  %v514_v50 = vld [vmem:[%s8493_s9 + $0x950] sm:$0xff] }
 0x382   : > { %v5148_v62 = vcvt.f32.f8e4m3b11 %v5147_v58  ;;  %vm10901_vm1 = vcmp.le.f32.partialorder %v5146_v57, 0.0009765625  ;;  %v5144_v2 = vpack.c.b8 %v5143_v59, %v5142_v48  ;;  %v5160_v5 = vshrl.u32 %v7931_v52, 24 }
 0x383   : > { %v5152_v4 = vand.u32 128, %v5151_v60  ;;  %vm10906_vm3 = vcmp.le.f32.partialorder %v5155_v61, 0.0009765625  ;;  %v5157_v8 = vcvt.f32.f8e4m3b11 %v5156_v0  ;;  %v5164_v9 = vand.u32 2147483647, %v7939_v53  ;;  %v522_v61 = vld [vmem:[%s8493_s9 + $0x990] sm:$0xff] }
 0x384   : > { %v5150_v7 = vsel %vm5149_vm0, 127, %v5148_v62  ;;  %v5165_v10 = vmul.f32 0.0625, %v7939_v53  ;;  %7457 = vst [vmem:[%s8554_s27 + $0x238] sm:$0xff] %v5144_v2  ;;  %v5161_v11 = vand.u32 128, %v5160_v5  ;;  %vm5167_vm4 = vweird.f32 %v7939_v53 }
 0x385   : > { %v5169_v12 = vshrl.u32 %v7939_v53, 24  ;;  %v5154_v14 = vsel %vm10901_vm1, %v5152_v4, %v5150_v7  ;;  %v5159_v15 = vsel %vm5158_vm2, 127, %v5157_v8  ;;  %v5173_v17 = vand.u32 2147483647, %v7947_v56  ;;  %v530_v4 = vld [vmem:[%s8493_s9 + $0x9d0] sm:$0xff] }
 0x386   : > { %v5166_v16 = vcvt.f32.f8e4m3b11 %v5165_v10  ;;  %v5163_v20 = vsel %vm10906_vm3, %v5161_v11, %v5159_v15  ;;  %vm10919_vm5 = vcmp.le.f32.partialorder %v5164_v9, 0.0009765625  ;;  %v5174_v23 = vmul.f32 0.0625, %v7947_v56 }
 0x387   : > { %v5170_v21 = vand.u32 128, %v5169_v12  ;;  %vm5176_vm6 = vweird.f32 %v7947_v56  ;;  %v5178_v25 = vshrl.u32 %v7947_v56, 24  ;;  %vm10923_vm7 = vcmp.le.f32.partialorder %v5173_v17, 0.0009765625  ;;  %v507_v12 = vld [vmem:[%s8493_s9 + $0x918] sm:$0xff] }
 0x388   : > { %v5168_v24 = vsel %vm5167_vm4, 127, %v5166_v16  ;;  %v5175_v28 = vcvt.f32.f8e4m3b11 %v5174_v23  ;;  %v5182_v29 = vpack.c.b16 %v5163_v20, %v5154_v14  ;;  %v1035_v30 = vmul.f32 %v8502_v3, %v521_v18 }
 0x389   : > { %v1043_v31 = vmul.f32 %v8502_v3, %v529_v19  ;;  %v5172_v32 = vsel %vm10919_vm5, %v5170_v21, %v5168_v24  ;;  %v5179_v33 = vand.u32 128, %v5178_v25  ;;  %v7924_v34 = vclamps-f32 %v1019_v54, 448.0 }
 0x38a   : > { %v7932_v35 = vclamps-f32 %v1027_v13, 448.0  ;;  %v5177_v36 = vsel %vm5176_vm6, 127, %v5175_v28  ;;  %v7940_v37 = vclamps-f32 %v1035_v30, 448.0  ;;  %v1020_v39 = vmul.f32 %v8502_v3, %v506_v27  ;;  %v515_v13 = vld [vmem:[%s8493_s9 + $0x958] sm:$0xff] }
 0x38b   : > { %v7948_v38 = vclamps-f32 %v1043_v31, 448.0  ;;  %v5181_v40 = vsel %vm10923_vm7, %v5179_v33, %v5177_v36  ;;  %v5186_v41 = vand.u32 2147483647, %v7924_v34  ;;  %v5187_v42 = vmul.f32 0.0625, %v7924_v34  ;;  %v523_v36 = vld [vmem:[%s8493_s9 + $0x998] sm:$0xff] }
 0x38c   : > { %vm5189_vm8 = vweird.f32 %v7924_v34  ;;  %v5183_v43 = vpack.c.b16 %v5181_v40, %v5172_v32  ;;  %v5191_v44 = vshrl.u32 %v7924_v34, 24  ;;  %v5195_v45 = vand.u32 2147483647, %v7932_v35 }
 0x38d   : > { %v5196_v46 = vmul.f32 0.0625, %v7932_v35  ;;  %v5188_v47 = vcvt.f32.f8e4m3b11 %v5187_v42  ;;  %vm10935_vm9 = vcmp.le.f32.partialorder %v5186_v41, 0.0009765625  ;;  %vm5198_vm10 = vweird.f32 %v7932_v35 }
 0x38e   : > { %v5200_v49 = vshrl.u32 %v7932_v35, 24  ;;  %v5184_v51 = vpack.c.b8 %v5183_v43, %v5182_v29  ;;  %v5192_v52 = vand.u32 128, %v5191_v44  ;;  %vm10940_vm11 = vcmp.le.f32.partialorder %v5195_v45, 0.0009765625 }
 0x38f   : > { %v5197_v53 = vcvt.f32.f8e4m3b11 %v5196_v46  ;;  %v5190_v55 = vsel %vm5189_vm8, 127, %v5188_v47  ;;  %v5204_v57 = vand.u32 2147483647, %v7940_v37  ;;  %v5205_v58 = vmul.f32 0.0625, %v7940_v37  ;;  %v531_v47 = vld [vmem:[%s8493_s9 + $0x9d8] sm:$0xff] }
 0x390   : > { %v5201_v56 = vand.u32 128, %v5200_v49  ;;  %7458 = vst [vmem:[%s8554_s27 + $0x240] sm:$0xff] %v5184_v51  ;;  %vm5207_vm12 = vweird.f32 %v7940_v37  ;;  %v5209_v60 = vshrl.u32 %v7940_v37, 24  ;;  %v1028_v62 = vmul.f32 %v8502_v3, %v514_v50 }
 0x391   : > { %v5199_v59 = vsel %vm5198_vm10, 127, %v5197_v53  ;;  %v5194_v63 = vsel %vm10935_vm9, %v5192_v52, %v5190_v55  ;;  %v5206_v1 = vcvt.f32.f8e4m3b11 %v5205_v58  ;;  %v5213_v2 = vand.u32 2147483647, %v7948_v38 }
 0x392   : > { %v5203_v0 = vsel %vm10940_vm11, %v5201_v56, %v5199_v59  ;;  %v5210_v5 = vand.u32 128, %v5209_v60  ;;  %vm10952_vm13 = vcmp.le.f32.partialorder %v5204_v57, 0.0009765625  ;;  %v5214_v7 = vmul.f32 0.0625, %v7948_v38 }
 0x393   : > { %v5218_v8 = vshrl.u32 %v7948_v38, 24  ;;  %v5208_v9 = vsel %vm5207_vm12, 127, %v5206_v1  ;;  %vm5216_vm14 = vweird.f32 %v7948_v38  ;;  %vm10956_vm15 = vcmp.le.f32.partialorder %v5213_v2, 0.0009765625 }
 0x394   : > { %v1036_v11 = vmul.f32 %v8502_v3, %v522_v61  ;;  %v5215_v14 = vcvt.f32.f8e4m3b11 %v5214_v7  ;;  %v5222_v16 = vpack.c.b16 %v5203_v0, %v5194_v63  ;;  %v1044_v17 = vmul.f32 %v8502_v3, %v530_v4 }
 0x395   : > { %v5219_v15 = vand.u32 128, %v5218_v8  ;;  %v5212_v18 = vsel %vm10952_vm13, %v5210_v5, %v5208_v9  ;;  %v7925_v19 = vclamps-f32 %v1020_v39, 448.0  ;;  %v7933_v20 = vclamps-f32 %v1028_v62, 448.0 }
 0x396   : > { %v7941_v21 = vclamps-f32 %v1036_v11, 448.0  ;;  %v5217_v22 = vsel %vm5216_vm14, 127, %v5215_v14  ;;  %v7949_v23 = vclamps-f32 %v1044_v17, 448.0  ;;  %v1021_v24 = vmul.f32 %v8502_v3, %v507_v12 }
 0x397   : > { %v1029_v25 = vmul.f32 %v8502_v3, %v515_v13  ;;  %v5221_v26 = vsel %vm10956_vm15, %v5219_v15, %v5217_v22  ;;  %v5226_v27 = vand.u32 2147483647, %v7925_v19  ;;  %v5227_v28 = vmul.f32 0.0625, %v7925_v19  ;;  %v508_v15 = vld [vmem:[%s8493_s9 + $0x920] sm:$0xff] }
 0x398   : > { %vm5229_vm0 = vweird.f32 %v7925_v19  ;;  %v5223_v29 = vpack.c.b16 %v5221_v26, %v5212_v18  ;;  %v5231_v30 = vshrl.u32 %v7925_v19, 24  ;;  %v5235_v31 = vand.u32 2147483647, %v7933_v20 }
 0x399   : > { %v5236_v32 = vmul.f32 0.0625, %v7933_v20  ;;  %v5228_v33 = vcvt.f32.f8e4m3b11 %v5227_v28  ;;  %vm10970_vm1 = vcmp.le.f32.partialorder %v5226_v27, 0.0009765625  ;;  %vm5238_vm2 = vweird.f32 %v7933_v20 }
 0x39a   : > { %v5240_v35 = vshrl.u32 %v7933_v20, 24  ;;  %v5224_v37 = vpack.c.b8 %v5223_v29, %v5222_v16  ;;  %v5232_v38 = vand.u32 128, %v5231_v30  ;;  %vm10975_vm3 = vcmp.le.f32.partialorder %v5235_v31, 0.0009765625  ;;  %v516_v31 = vld [vmem:[%s8493_s9 + $0x960] sm:$0xff] }
 0x39b   : > { %v5237_v39 = vcvt.f32.f8e4m3b11 %v5236_v32  ;;  %v5230_v41 = vsel %vm5229_vm0, 127, %v5228_v33  ;;  %v5244_v43 = vand.u32 2147483647, %v7941_v21  ;;  %v5245_v44 = vmul.f32 0.0625, %v7941_v21  ;;  %v524_v32 = vld [vmem:[%s8493_s9 + $0x9a0] sm:$0xff] }
 0x39c   : > { %v5241_v42 = vand.u32 128, %v5240_v35  ;;  %7459 = vst [vmem:[%s8554_s27 + $0x248] sm:$0xff] %v5224_v37  ;;  %vm5247_vm4 = vweird.f32 %v7941_v21  ;;  %v5249_v46 = vshrl.u32 %v7941_v21, 24  ;;  %v1037_v48 = vmul.f32 %v8502_v3, %v523_v36  ;;  %v532_v37 = vld [vmem:[%s8493_s9 + $0x9e0] sm:$0xff] }
 0x39d   : > { %v5239_v45 = vsel %vm5238_vm2, 127, %v5237_v39  ;;  %v5234_v49 = vsel %vm10970_vm1, %v5232_v38, %v5230_v41  ;;  %v5246_v51 = vcvt.f32.f8e4m3b11 %v5245_v44  ;;  %v5253_v52 = vand.u32 2147483647, %v7949_v23  ;;  %v509_v41 = vld [vmem:[%s8493_s9 + $0x928] sm:$0xff] }
 0x39e   : > { %v5243_v50 = vsel %vm10975_vm3, %v5241_v42, %v5239_v45  ;;  %v5250_v53 = vand.u32 128, %v5249_v46  ;;  %vm10986_vm5 = vcmp.le.f32.partialorder %v5244_v43, 0.0009765625  ;;  %v5254_v55 = vmul.f32 0.0625, %v7949_v23 }
 0x39f   : > { %v5258_v56 = vshrl.u32 %v7949_v23, 24  ;;  %v5248_v57 = vsel %vm5247_vm4, 127, %v5246_v51  ;;  %vm5256_vm6 = vweird.f32 %v7949_v23  ;;  %vm10990_vm7 = vcmp.le.f32.partialorder %v5253_v52, 0.0009765625 }
 0x3a0   : > { %v1045_v59 = vmul.f32 %v8502_v3, %v531_v47  ;;  %v5255_v60 = vcvt.f32.f8e4m3b11 %v5254_v55  ;;  %v5262_v62 = vpack.c.b16 %v5243_v50, %v5234_v49  ;;  %v7926_v63 = vclamps-f32 %v1021_v24, 448.0 }
 0x3a1   : > { %v5259_v61 = vand.u32 128, %v5258_v56  ;;  %v5252_v0 = vsel %vm10986_vm5, %v5250_v53, %v5248_v57  ;;  %v7934_v1 = vclamps-f32 %v1029_v25, 448.0  ;;  %v7942_v2 = vclamps-f32 %v1037_v48, 448.0 }
 0x3a2   : > { %v7950_v4 = vclamps-f32 %v1045_v59, 448.0  ;;  %v5257_v5 = vsel %vm5256_vm6, 127, %v5255_v60  ;;  %v5266_v6 = vand.u32 2147483647, %v7926_v63  ;;  %v5267_v7 = vmul.f32 0.0625, %v7926_v63 }
 0x3a3   : > { %vm5269_vm8 = vweird.f32 %v7926_v63  ;;  %v5261_v8 = vsel %vm10990_vm7, %v5259_v61, %v5257_v5  ;;  %v5271_v9 = vshrl.u32 %v7926_v63, 24  ;;  %v5275_v10 = vand.u32 2147483647, %v7934_v1 }
 0x3a4   : > { %v5276_v11 = vmul.f32 0.0625, %v7934_v1  ;;  %v5263_v12 = vpack.c.b16 %v5261_v8, %v5252_v0  ;;  %v5268_v13 = vcvt.f32.f8e4m3b11 %v5267_v7  ;;  %vm10999_vm9 = vcmp.le.f32.partialorder %v5266_v6, 0.0009765625  ;;  %v517_v0 = vld [vmem:[%s8493_s9 + $0x968] sm:$0xff] }
 0x3a5   : > { %vm5278_vm10 = vweird.f32 %v7934_v1  ;;  %v5272_v16 = vand.u32 128, %v5271_v9  ;;  %v5280_v18 = vshrl.u32 %v7934_v1, 24  ;;  %vm11004_vm11 = vcmp.le.f32.partialorder %v5275_v10, 0.0009765625 }
 0x3a6   : > { %v5277_v17 = vcvt.f32.f8e4m3b11 %v5276_v11  ;;  %v5264_v20 = vpack.c.b8 %v5263_v12, %v5262_v62  ;;  %v5270_v21 = vsel %vm5269_vm8, 127, %v5268_v13  ;;  %v5284_v22 = vand.u32 2147483647, %v7942_v2 }
 0x3a7   : > { %v5285_v23 = vmul.f32 0.0625, %v7942_v2  ;;  %v5281_v25 = vand.u32 128, %v5280_v18  ;;  %vm5287_vm12 = vweird.f32 %v7942_v2  ;;  %v1022_v26 = vmul.f32 %v8502_v3, %v508_v15  ;;  %v533_v18 = vld [vmem:[%s8493_s9 + $0x9e8] sm:$0xff] }
 0x3a8   : > { %v5279_v24 = vsel %vm5278_vm10, 127, %v5277_v17  ;;  %7460 = vst [vmem:[%s8554_s27 + $0x250] sm:$0xff] %v5264_v20  ;;  %v5274_v27 = vsel %vm10999_vm9, %v5272_v16, %v5270_v21  ;;  %v5289_v29 = vshrl.u32 %v7942_v2, 24  ;;  %v5293_v30 = vand.u32 2147483647, %v7950_v4  ;;  %v525_v17 = vld [vmem:[%s8493_s9 + $0x9a8] sm:$0xff] }
 0x3a9   : > { %v5286_v28 = vcvt.f32.f8e4m3b11 %v5285_v23  ;;  %v5283_v33 = vsel %vm11004_vm11, %v5281_v25, %v5279_v24  ;;  %vm11016_vm13 = vcmp.le.f32.partialorder %v5284_v22, 0.0009765625  ;;  %v5294_v35 = vmul.f32 0.0625, %v7950_v4 }
 0x3aa   : > { %v5298_v36 = vshrl.u32 %v7950_v4, 24  ;;  %v5290_v39 = vand.u32 128, %v5289_v29  ;;  %vm5296_vm14 = vweird.f32 %v7950_v4  ;;  %vm11021_vm15 = vcmp.le.f32.partialorder %v5293_v30, 0.0009765625 }
 0x3ab   : > { %v5288_v38 = vsel %vm5287_vm12, 127, %v5286_v28  ;;  %v5295_v42 = vcvt.f32.f8e4m3b11 %v5294_v35  ;;  %v1030_v44 = vmul.f32 %v8502_v3, %v516_v31  ;;  %v1038_v45 = vmul.f32 %v8502_v3, %v524_v32 }
 0x3ac   : > { %v5299_v43 = vand.u32 128, %v5298_v36  ;;  %v5292_v46 = vsel %vm11016_vm13, %v5290_v39, %v5288_v38  ;;  %v5302_v47 = vpack.c.b16 %v5283_v33, %v5274_v27  ;;  %v1046_v48 = vmul.f32 %v8502_v3, %v532_v37 }
 0x3ad   : > { %v7927_v49 = vclamps-f32 %v1022_v26, 448.0  ;;  %v5297_v50 = vsel %vm5296_vm14, 127, %v5295_v42  ;;  %v7935_v51 = vclamps-f32 %v1030_v44, 448.0  ;;  %v7943_v52 = vclamps-f32 %v1038_v45, 448.0  ;;  %v510_v26 = vld [vmem:[%s8493_s9 + $0x930] sm:$0xff] }
 0x3ae   : > { %v1023_v53 = vmul.f32 %v8502_v3, %v509_v41  ;;  %v5301_v54 = vsel %vm11021_vm15, %v5299_v43, %v5297_v50  ;;  %v7951_v55 = vclamps-f32 %v1046_v48, 448.0  ;;  %v1031_v12 = vmul.f32 %v8502_v3, %v517_v0 }
 0x3af   : > { %v5306_v56 = vand.u32 2147483647, %v7927_v49  ;;  %v5307_v57 = vmul.f32 0.0625, %v7927_v49  ;;  %v5303_v58 = vpack.c.b16 %v5301_v54, %v5292_v46  ;;  %vm5309_vm0 = vweird.f32 %v7927_v49 }
 0x3b0   : > { %v5311_v59 = vshrl.u32 %v7927_v49, 24  ;;  %v5315_v60 = vand.u32 2147483647, %v7935_v51  ;;  %v5316_v63 = vmul.f32 0.0625, %v7935_v51  ;;  %vm5318_vm2 = vweird.f32 %v7935_v51  ;;  %v518_v49 = vld [vmem:[%s8493_s9 + $0x970] sm:$0xff] }
 0x3b1   : > { %v5308_v61 = vcvt.f32.f8e4m3b11 %v5307_v57  ;;  %vm11034_vm1 = vcmp.le.f32.partialorder %v5306_v56, 0.0009765625  ;;  %v5304_v1 = vpack.c.b8 %v5303_v58, %v5302_v47  ;;  %v5320_v4 = vshrl.u32 %v7935_v51, 24 }
 0x3b2   : > { %v5312_v2 = vand.u32 128, %v5311_v59  ;;  %vm11039_vm3 = vcmp.le.f32.partialorder %v5315_v60, 0.0009765625  ;;  %v5317_v7 = vcvt.f32.f8e4m3b11 %v5316_v63  ;;  %v5324_v8 = vand.u32 2147483647, %v7943_v52  ;;  %v526_v60 = vld [vmem:[%s8493_s9 + $0x9b0] sm:$0xff] }
 0x3b3   : > { %v5310_v6 = vsel %vm5309_vm0, 127, %v5308_v61  ;;  %v5325_v9 = vmul.f32 0.0625, %v7943_v52  ;;  %7461 = vst [vmem:[%s8554_s27 + $0x258] sm:$0xff] %v5304_v1  ;;  %v5321_v10 = vand.u32 128, %v5320_v4  ;;  %vm5327_vm4 = vweird.f32 %v7943_v52 }
 0x3b4   : > { %v5329_v11 = vshrl.u32 %v7943_v52, 24  ;;  %v5314_v13 = vsel %vm11034_vm1, %v5312_v2, %v5310_v6  ;;  %v5319_v14 = vsel %vm5318_vm2, 127, %v5317_v7  ;;  %v5333_v16 = vand.u32 2147483647, %v7951_v55  ;;  %v534_v2 = vld [vmem:[%s8493_s9 + $0x9f0] sm:$0xff] }
 0x3b5   : > { %v5326_v15 = vcvt.f32.f8e4m3b11 %v5325_v9  ;;  %v5323_v19 = vsel %vm11039_vm3, %v5321_v10, %v5319_v14  ;;  %vm11052_vm5 = vcmp.le.f32.partialorder %v5324_v8, 0.0009765625  ;;  %v5334_v22 = vmul.f32 0.0625, %v7951_v55 }
 0x3b6   : > { %v5330_v20 = vand.u32 128, %v5329_v11  ;;  %vm5336_vm6 = vweird.f32 %v7951_v55  ;;  %v5338_v24 = vshrl.u32 %v7951_v55, 24  ;;  %vm11056_vm7 = vcmp.le.f32.partialorder %v5333_v16, 0.0009765625  ;;  %v511_v11 = vld [vmem:[%s8493_s9 + $0x938] sm:$0xff] }
 0x3b7   : > { %v5328_v23 = vsel %vm5327_vm4, 127, %v5326_v15  ;;  %v5335_v27 = vcvt.f32.f8e4m3b11 %v5334_v22  ;;  %v5342_v28 = vpack.c.b16 %v5323_v19, %v5314_v13  ;;  %v1039_v29 = vmul.f32 %v8502_v3, %v525_v17 }
 0x3b8   : > { %v1047_v30 = vmul.f32 %v8502_v3, %v533_v18  ;;  %v5332_v31 = vsel %vm11052_vm5, %v5330_v20, %v5328_v23  ;;  %v5339_v32 = vand.u32 128, %v5338_v24  ;;  %v7928_v33 = vclamps-f32 %v1023_v53, 448.0 }
 0x3b9   : > { %v7936_v34 = vclamps-f32 %v1031_v12, 448.0  ;;  %v5337_v35 = vsel %vm5336_vm6, 127, %v5335_v27  ;;  %v7944_v36 = vclamps-f32 %v1039_v29, 448.0  ;;  %v1024_v38 = vmul.f32 %v8502_v3, %v510_v26  ;;  %v519_v12 = vld [vmem:[%s8493_s9 + $0x978] sm:$0xff] }
 0x3ba   : > { %v7952_v37 = vclamps-f32 %v1047_v30, 448.0  ;;  %v5341_v39 = vsel %vm11056_vm7, %v5339_v32, %v5337_v35  ;;  %v5346_v40 = vand.u32 2147483647, %v7928_v33  ;;  %v5347_v41 = vmul.f32 0.0625, %v7928_v33  ;;  %v527_v35 = vld [vmem:[%s8493_s9 + $0x9b8] sm:$0xff] }
 0x3bb   : > { %vm5349_vm8 = vweird.f32 %v7928_v33  ;;  %v5343_v42 = vpack.c.b16 %v5341_v39, %v5332_v31  ;;  %v5351_v43 = vshrl.u32 %v7928_v33, 24  ;;  %v5355_v44 = vand.u32 2147483647, %v7936_v34 }
 0x3bc   : > { %v5356_v45 = vmul.f32 0.0625, %v7936_v34  ;;  %v5348_v46 = vcvt.f32.f8e4m3b11 %v5347_v41  ;;  %vm11068_vm9 = vcmp.le.f32.partialorder %v5346_v40, 0.0009765625  ;;  %vm5358_vm10 = vweird.f32 %v7936_v34 }
 0x3bd   : > { %v5360_v48 = vshrl.u32 %v7936_v34, 24  ;;  %v5344_v50 = vpack.c.b8 %v5343_v42, %v5342_v28  ;;  %v5352_v51 = vand.u32 128, %v5351_v43  ;;  %vm11073_vm11 = vcmp.le.f32.partialorder %v5355_v44, 0.0009765625 }
 0x3be   : > { %v5357_v52 = vcvt.f32.f8e4m3b11 %v5356_v45  ;;  %v5350_v54 = vsel %vm5349_vm8, 127, %v5348_v46  ;;  %v5364_v56 = vand.u32 2147483647, %v7944_v36  ;;  %v5365_v57 = vmul.f32 0.0625, %v7944_v36  ;;  %v535_v46 = vld [vmem:[%s8493_s9 + $0x9f8] sm:$0xff] }
 0x3bf   : > { %v5361_v55 = vand.u32 128, %v5360_v48  ;;  %7462 = vst [vmem:[%s8554_s27 + $0x260] sm:$0xff] %v5344_v50  ;;  %vm5367_vm12 = vweird.f32 %v7944_v36  ;;  %v5369_v59 = vshrl.u32 %v7944_v36, 24  ;;  %v1032_v61 = vmul.f32 %v8502_v3, %v518_v49 }
 0x3c0   : > { %v5359_v58 = vsel %vm5358_vm10, 127, %v5357_v52  ;;  %v5354_v62 = vsel %vm11068_vm9, %v5352_v51, %v5350_v54  ;;  %v5366_v0 = vcvt.f32.f8e4m3b11 %v5365_v57  ;;  %v5373_v1 = vand.u32 2147483647, %v7952_v37 }
 0x3c1   : > { %v5363_v63 = vsel %vm11073_vm11, %v5361_v55, %v5359_v58  ;;  %v5370_v4 = vand.u32 128, %v5369_v59  ;;  %vm11085_vm13 = vcmp.le.f32.partialorder %v5364_v56, 0.0009765625  ;;  %v5374_v6 = vmul.f32 0.0625, %v7952_v37 }
 0x3c2   : > { %v5378_v7 = vshrl.u32 %v7952_v37, 24  ;;  %v5368_v8 = vsel %vm5367_vm12, 127, %v5366_v0  ;;  %vm5376_vm14 = vweird.f32 %v7952_v37  ;;  %vm11089_vm15 = vcmp.le.f32.partialorder %v5373_v1, 0.0009765625 }
 0x3c3   : > { %v1040_v10 = vmul.f32 %v8502_v3, %v526_v60  ;;  %v5375_v13 = vcvt.f32.f8e4m3b11 %v5374_v6  ;;  %v5382_v15 = vpack.c.b16 %v5363_v63, %v5354_v62  ;;  %v1048_v16 = vmul.f32 %v8502_v3, %v534_v2 }
 0x3c4   : > { %v5379_v14 = vand.u32 128, %v5378_v7  ;;  %v5372_v17 = vsel %vm11085_vm13, %v5370_v4, %v5368_v8  ;;  %v7929_v18 = vclamps-f32 %v1024_v38, 448.0  ;;  %v7937_v19 = vclamps-f32 %v1032_v61, 448.0 }
 0x3c5   : > { %v7945_v20 = vclamps-f32 %v1040_v10, 448.0  ;;  %v5377_v21 = vsel %vm5376_vm14, 127, %v5375_v13  ;;  %v7953_v22 = vclamps-f32 %v1048_v16, 448.0  ;;  %v1025_v23 = vmul.f32 %v8502_v3, %v511_v11 }
 0x3c6   : > { %v1033_v24 = vmul.f32 %v8502_v3, %v519_v12  ;;  %v5381_v25 = vsel %vm11089_vm15, %v5379_v14, %v5377_v21  ;;  %v5386_v26 = vand.u32 2147483647, %v7929_v18  ;;  %v5387_v27 = vmul.f32 0.0625, %v7929_v18  ;;  %v536_v14 = vld [vmem:[%s8493_s9 + $0xa00] sm:$0xff] }
 0x3c7   : > { %vm5389_vm0 = vweird.f32 %v7929_v18  ;;  %v5383_v28 = vpack.c.b16 %v5381_v25, %v5372_v17  ;;  %v5391_v29 = vshrl.u32 %v7929_v18, 24  ;;  %v5395_v30 = vand.u32 2147483647, %v7937_v19 }
 0x3c8   : > { %v5396_v31 = vmul.f32 0.0625, %v7937_v19  ;;  %v5388_v32 = vcvt.f32.f8e4m3b11 %v5387_v27  ;;  %vm11103_vm1 = vcmp.le.f32.partialorder %v5386_v26, 0.0009765625  ;;  %vm5398_vm2 = vweird.f32 %v7937_v19 }
 0x3c9   : > { %v5400_v34 = vshrl.u32 %v7937_v19, 24  ;;  %v5384_v36 = vpack.c.b8 %v5383_v28, %v5382_v15  ;;  %v5392_v37 = vand.u32 128, %v5391_v29  ;;  %vm11108_vm3 = vcmp.le.f32.partialorder %v5395_v30, 0.0009765625  ;;  %v544_v30 = vld [vmem:[%s8493_s9 + $0xa40] sm:$0xff] }
 0x3ca   : > { %v5397_v38 = vcvt.f32.f8e4m3b11 %v5396_v31  ;;  %v5390_v40 = vsel %vm5389_vm0, 127, %v5388_v32  ;;  %v5404_v42 = vand.u32 2147483647, %v7945_v20  ;;  %v5405_v43 = vmul.f32 0.0625, %v7945_v20  ;;  %v552_v31 = vld [vmem:[%s8493_s9 + $0xa80] sm:$0xff] }
 0x3cb   : > { %v5401_v41 = vand.u32 128, %v5400_v34  ;;  %7463 = vst [vmem:[%s8554_s27 + $0x268] sm:$0xff] %v5384_v36  ;;  %vm5407_vm4 = vweird.f32 %v7945_v20  ;;  %v5409_v45 = vshrl.u32 %v7945_v20, 24  ;;  %v1041_v47 = vmul.f32 %v8502_v3, %v527_v35  ;;  %v560_v36 = vld [vmem:[%s8493_s9 + $0xac0] sm:$0xff] }
 0x3cc   : > { %v5399_v44 = vsel %vm5398_vm2, 127, %v5397_v38  ;;  %v5394_v48 = vsel %vm11103_vm1, %v5392_v37, %v5390_v40  ;;  %v5406_v50 = vcvt.f32.f8e4m3b11 %v5405_v43  ;;  %v5413_v51 = vand.u32 2147483647, %v7953_v22  ;;  %v537_v40 = vld [vmem:[%s8493_s9 + $0xa08] sm:$0xff] }
 0x3cd   : > { %v5403_v49 = vsel %vm11108_vm3, %v5401_v41, %v5399_v44  ;;  %v5410_v52 = vand.u32 128, %v5409_v45  ;;  %vm11119_vm5 = vcmp.le.f32.partialorder %v5404_v42, 0.0009765625  ;;  %v5414_v54 = vmul.f32 0.0625, %v7953_v22 }
 0x3ce   : > { %v5418_v55 = vshrl.u32 %v7953_v22, 24  ;;  %v5408_v56 = vsel %vm5407_vm4, 127, %v5406_v50  ;;  %vm5416_vm6 = vweird.f32 %v7953_v22  ;;  %vm11123_vm7 = vcmp.le.f32.partialorder %v5413_v51, 0.0009765625 }
 0x3cf   : > { %v1049_v58 = vmul.f32 %v8502_v3, %v535_v46  ;;  %v5415_v59 = vcvt.f32.f8e4m3b11 %v5414_v54  ;;  %v5422_v61 = vpack.c.b16 %v5403_v49, %v5394_v48  ;;  %v7930_v62 = vclamps-f32 %v1025_v23, 448.0 }
 0x3d0   : > { %v5419_v60 = vand.u32 128, %v5418_v55  ;;  %v5412_v63 = vsel %vm11119_vm5, %v5410_v52, %v5408_v56  ;;  %v7938_v0 = vclamps-f32 %v1033_v24, 448.0  ;;  %v7946_v1 = vclamps-f32 %v1041_v47, 448.0 }
 0x3d1   : > { %v7954_v2 = vclamps-f32 %v1049_v58, 448.0  ;;  %v5417_v4 = vsel %vm5416_vm6, 127, %v5415_v59  ;;  %v5426_v5 = vand.u32 2147483647, %v7930_v62  ;;  %v5427_v6 = vmul.f32 0.0625, %v7930_v62 }
 0x3d2   : > { %vm5429_vm8 = vweird.f32 %v7930_v62  ;;  %v5421_v7 = vsel %vm11123_vm7, %v5419_v60, %v5417_v4  ;;  %v5431_v8 = vshrl.u32 %v7930_v62, 24  ;;  %v5435_v9 = vand.u32 2147483647, %v7938_v0 }
 0x3d3   : > { %v5436_v10 = vmul.f32 0.0625, %v7938_v0  ;;  %v5423_v11 = vpack.c.b16 %v5421_v7, %v5412_v63  ;;  %v5428_v12 = vcvt.f32.f8e4m3b11 %v5427_v6  ;;  %vm11132_vm9 = vcmp.le.f32.partialorder %v5426_v5, 0.0009765625  ;;  %v545_v63 = vld [vmem:[%s8493_s9 + $0xa48] sm:$0xff] }
 0x3d4   : > { %vm5438_vm10 = vweird.f32 %v7938_v0  ;;  %v5432_v15 = vand.u32 128, %v5431_v8  ;;  %v5440_v17 = vshrl.u32 %v7938_v0, 24  ;;  %vm11137_vm11 = vcmp.le.f32.partialorder %v5435_v9, 0.0009765625 }
 0x3d5   : > { %v5437_v16 = vcvt.f32.f8e4m3b11 %v5436_v10  ;;  %v5424_v19 = vpack.c.b8 %v5423_v11, %v5422_v61  ;;  %v5430_v20 = vsel %vm5429_vm8, 127, %v5428_v12  ;;  %v5444_v21 = vand.u32 2147483647, %v7946_v1 }
 0x3d6   : > { %v5445_v22 = vmul.f32 0.0625, %v7946_v1  ;;  %v5441_v24 = vand.u32 128, %v5440_v17  ;;  %vm5447_vm12 = vweird.f32 %v7946_v1  ;;  %v1050_v25 = vmul.f32 %v8502_v3, %v536_v14  ;;  %v561_v17 = vld [vmem:[%s8493_s9 + $0xac8] sm:$0xff] }
 0x3d7   : > { %v5439_v23 = vsel %vm5438_vm10, 127, %v5437_v16  ;;  %7464 = vst [vmem:[%s8554_s27 + $0x270] sm:$0xff] %v5424_v19  ;;  %v5434_v26 = vsel %vm11132_vm9, %v5432_v15, %v5430_v20  ;;  %v5449_v28 = vshrl.u32 %v7946_v1, 24  ;;  %v5453_v29 = vand.u32 2147483647, %v7954_v2  ;;  %v553_v16 = vld [vmem:[%s8493_s9 + $0xa88] sm:$0xff] }
 0x3d8   : > { %v5446_v27 = vcvt.f32.f8e4m3b11 %v5445_v22  ;;  %v5443_v32 = vsel %vm11137_vm11, %v5441_v24, %v5439_v23  ;;  %vm11149_vm13 = vcmp.le.f32.partialorder %v5444_v21, 0.0009765625  ;;  %v5454_v34 = vmul.f32 0.0625, %v7954_v2 }
 0x3d9   : > { %v5458_v35 = vshrl.u32 %v7954_v2, 24  ;;  %v5450_v38 = vand.u32 128, %v5449_v28  ;;  %vm5456_vm14 = vweird.f32 %v7954_v2  ;;  %vm11154_vm15 = vcmp.le.f32.partialorder %v5453_v29, 0.0009765625 }
 0x3da   : > { %v5448_v37 = vsel %vm5447_vm12, 127, %v5446_v27  ;;  %v5455_v41 = vcvt.f32.f8e4m3b11 %v5454_v34  ;;  %v1058_v43 = vmul.f32 %v8502_v3, %v544_v30  ;;  %v1066_v44 = vmul.f32 %v8502_v3, %v552_v31 }
 0x3db   : > { %v5459_v42 = vand.u32 128, %v5458_v35  ;;  %v5452_v45 = vsel %vm11149_vm13, %v5450_v38, %v5448_v37  ;;  %v5462_v46 = vpack.c.b16 %v5443_v32, %v5434_v26  ;;  %v1074_v47 = vmul.f32 %v8502_v3, %v560_v36 }
 0x3dc   : > { %v7955_v48 = vclamps-f32 %v1050_v25, 448.0  ;;  %v5457_v49 = vsel %vm5456_vm14, 127, %v5455_v41  ;;  %v7963_v50 = vclamps-f32 %v1058_v43, 448.0  ;;  %v7971_v51 = vclamps-f32 %v1066_v44, 448.0  ;;  %v538_v25 = vld [vmem:[%s8493_s9 + $0xa10] sm:$0xff] }
 0x3dd   : > { %v1051_v52 = vmul.f32 %v8502_v3, %v537_v40  ;;  %v5461_v53 = vsel %vm11154_vm15, %v5459_v42, %v5457_v49  ;;  %v7979_v54 = vclamps-f32 %v1074_v47, 448.0  ;;  %v1059_v11 = vmul.f32 %v8502_v3, %v545_v63 }
 0x3de   : > { %v5466_v55 = vand.u32 2147483647, %v7955_v48  ;;  %v5467_v56 = vmul.f32 0.0625, %v7955_v48  ;;  %v5463_v57 = vpack.c.b16 %v5461_v53, %v5452_v45  ;;  %vm5469_vm0 = vweird.f32 %v7955_v48 }
 0x3df   : > { %v5471_v58 = vshrl.u32 %v7955_v48, 24  ;;  %v5475_v59 = vand.u32 2147483647, %v7963_v50  ;;  %v5476_v62 = vmul.f32 0.0625, %v7963_v50  ;;  %vm5478_vm2 = vweird.f32 %v7963_v50  ;;  %v546_v48 = vld [vmem:[%s8493_s9 + $0xa50] sm:$0xff] }
 0x3e0   : > { %v5468_v60 = vcvt.f32.f8e4m3b11 %v5467_v56  ;;  %vm11167_vm1 = vcmp.le.f32.partialorder %v5466_v55, 0.0009765625  ;;  %v5464_v0 = vpack.c.b8 %v5463_v57, %v5462_v46  ;;  %v5480_v2 = vshrl.u32 %v7963_v50, 24 }
 0x3e1   : > { %v5472_v1 = vand.u32 128, %v5471_v58  ;;  %vm11172_vm3 = vcmp.le.f32.partialorder %v5475_v59, 0.0009765625  ;;  %v5477_v6 = vcvt.f32.f8e4m3b11 %v5476_v62  ;;  %v5484_v7 = vand.u32 2147483647, %v7971_v51  ;;  %v554_v59 = vld [vmem:[%s8493_s9 + $0xa90] sm:$0xff] }
 0x3e2   : > { %v5470_v5 = vsel %vm5469_vm0, 127, %v5468_v60  ;;  %v5485_v8 = vmul.f32 0.0625, %v7971_v51  ;;  %7465 = vst [vmem:[%s8554_s27 + $0x278] sm:$0xff] %v5464_v0  ;;  %v5481_v9 = vand.u32 128, %v5480_v2  ;;  %vm5487_vm4 = vweird.f32 %v7971_v51 }
 0x3e3   : > { %v5489_v10 = vshrl.u32 %v7971_v51, 24  ;;  %v5474_v12 = vsel %vm11167_vm1, %v5472_v1, %v5470_v5  ;;  %v5479_v13 = vsel %vm5478_vm2, 127, %v5477_v6  ;;  %v5493_v15 = vand.u32 2147483647, %v7979_v54  ;;  %v562_v1 = vld [vmem:[%s8493_s9 + $0xad0] sm:$0xff] }
 0x3e4   : > { %v5486_v14 = vcvt.f32.f8e4m3b11 %v5485_v8  ;;  %v5483_v18 = vsel %vm11172_vm3, %v5481_v9, %v5479_v13  ;;  %vm11185_vm5 = vcmp.le.f32.partialorder %v5484_v7, 0.0009765625  ;;  %v5494_v21 = vmul.f32 0.0625, %v7979_v54 }
 0x3e5   : > { %v5490_v19 = vand.u32 128, %v5489_v10  ;;  %vm5496_vm6 = vweird.f32 %v7979_v54  ;;  %v5498_v23 = vshrl.u32 %v7979_v54, 24  ;;  %vm11189_vm7 = vcmp.le.f32.partialorder %v5493_v15, 0.0009765625  ;;  %v539_v10 = vld [vmem:[%s8493_s9 + $0xa18] sm:$0xff] }
 0x3e6   : > { %v5488_v22 = vsel %vm5487_vm4, 127, %v5486_v14  ;;  %v5495_v26 = vcvt.f32.f8e4m3b11 %v5494_v21  ;;  %v5502_v27 = vpack.c.b16 %v5483_v18, %v5474_v12  ;;  %v1067_v28 = vmul.f32 %v8502_v3, %v553_v16 }
 0x3e7   : > { %v1075_v29 = vmul.f32 %v8502_v3, %v561_v17  ;;  %v5492_v30 = vsel %vm11185_vm5, %v5490_v19, %v5488_v22  ;;  %v5499_v31 = vand.u32 128, %v5498_v23  ;;  %v7956_v32 = vclamps-f32 %v1051_v52, 448.0 }
 0x3e8   : > { %v7964_v33 = vclamps-f32 %v1059_v11, 448.0  ;;  %v5497_v34 = vsel %vm5496_vm6, 127, %v5495_v26  ;;  %v7972_v35 = vclamps-f32 %v1067_v28, 448.0  ;;  %v1052_v37 = vmul.f32 %v8502_v3, %v538_v25  ;;  %v547_v11 = vld [vmem:[%s8493_s9 + $0xa58] sm:$0xff] }
 0x3e9   : > { %v7980_v36 = vclamps-f32 %v1075_v29, 448.0  ;;  %v5501_v38 = vsel %vm11189_vm7, %v5499_v31, %v5497_v34  ;;  %v5506_v39 = vand.u32 2147483647, %v7956_v32  ;;  %v5507_v40 = vmul.f32 0.0625, %v7956_v32  ;;  %v555_v34 = vld [vmem:[%s8493_s9 + $0xa98] sm:$0xff] }
 0x3ea   : > { %vm5509_vm8 = vweird.f32 %v7956_v32  ;;  %v5503_v41 = vpack.c.b16 %v5501_v38, %v5492_v30  ;;  %v5511_v42 = vshrl.u32 %v7956_v32, 24  ;;  %v5515_v43 = vand.u32 2147483647, %v7964_v33 }
 0x3eb   : > { %v5516_v44 = vmul.f32 0.0625, %v7964_v33  ;;  %v5508_v45 = vcvt.f32.f8e4m3b11 %v5507_v40  ;;  %vm11201_vm9 = vcmp.le.f32.partialorder %v5506_v39, 0.0009765625  ;;  %vm5518_vm10 = vweird.f32 %v7964_v33 }
 0x3ec   : > { %v5520_v47 = vshrl.u32 %v7964_v33, 24  ;;  %v5504_v49 = vpack.c.b8 %v5503_v41, %v5502_v27  ;;  %v5512_v50 = vand.u32 128, %v5511_v42  ;;  %vm11206_vm11 = vcmp.le.f32.partialorder %v5515_v43, 0.0009765625 }
 0x3ed   : > { %v5517_v51 = vcvt.f32.f8e4m3b11 %v5516_v44  ;;  %v5510_v53 = vsel %vm5509_vm8, 127, %v5508_v45  ;;  %v5524_v55 = vand.u32 2147483647, %v7972_v35  ;;  %v5525_v56 = vmul.f32 0.0625, %v7972_v35  ;;  %v563_v45 = vld [vmem:[%s8493_s9 + $0xad8] sm:$0xff] }
 0x3ee   : > { %v5521_v54 = vand.u32 128, %v5520_v47  ;;  %7466 = vst [vmem:[%s8554_s27 + $0x280] sm:$0xff] %v5504_v49  ;;  %vm5527_vm12 = vweird.f32 %v7972_v35  ;;  %v5529_v58 = vshrl.u32 %v7972_v35, 24  ;;  %v1060_v60 = vmul.f32 %v8502_v3, %v546_v48 }
 0x3ef   : > { %v5519_v57 = vsel %vm5518_vm10, 127, %v5517_v51  ;;  %v5514_v61 = vsel %vm11201_vm9, %v5512_v50, %v5510_v53  ;;  %v5526_v63 = vcvt.f32.f8e4m3b11 %v5525_v56  ;;  %v5533_v0 = vand.u32 2147483647, %v7980_v36 }
 0x3f0   : > { %v5523_v62 = vsel %vm11206_vm11, %v5521_v54, %v5519_v57  ;;  %v5530_v2 = vand.u32 128, %v5529_v58  ;;  %vm11218_vm13 = vcmp.le.f32.partialorder %v5524_v55, 0.0009765625  ;;  %v5534_v5 = vmul.f32 0.0625, %v7980_v36 }
 0x3f1   : > { %v5538_v6 = vshrl.u32 %v7980_v36, 24  ;;  %v5528_v7 = vsel %vm5527_vm12, 127, %v5526_v63  ;;  %vm5536_vm14 = vweird.f32 %v7980_v36  ;;  %vm11222_vm15 = vcmp.le.f32.partialorder %v5533_v0, 0.0009765625 }
 0x3f2   : > { %v1068_v9 = vmul.f32 %v8502_v3, %v554_v59  ;;  %v5535_v12 = vcvt.f32.f8e4m3b11 %v5534_v5  ;;  %v5542_v14 = vpack.c.b16 %v5523_v62, %v5514_v61  ;;  %v1076_v15 = vmul.f32 %v8502_v3, %v562_v1 }
 0x3f3   : > { %v5539_v13 = vand.u32 128, %v5538_v6  ;;  %v5532_v16 = vsel %vm11218_vm13, %v5530_v2, %v5528_v7  ;;  %v7957_v17 = vclamps-f32 %v1052_v37, 448.0  ;;  %v7965_v18 = vclamps-f32 %v1060_v60, 448.0 }
 0x3f4   : > { %v7973_v19 = vclamps-f32 %v1068_v9, 448.0  ;;  %v5537_v20 = vsel %vm5536_vm14, 127, %v5535_v12  ;;  %v7981_v21 = vclamps-f32 %v1076_v15, 448.0  ;;  %v1053_v22 = vmul.f32 %v8502_v3, %v539_v10 }
 0x3f5   : > { %v1061_v23 = vmul.f32 %v8502_v3, %v547_v11  ;;  %v5541_v24 = vsel %vm11222_vm15, %v5539_v13, %v5537_v20  ;;  %v5546_v25 = vand.u32 2147483647, %v7957_v17  ;;  %v5547_v26 = vmul.f32 0.0625, %v7957_v17  ;;  %v540_v13 = vld [vmem:[%s8493_s9 + $0xa20] sm:$0xff] }
 0x3f6   : > { %vm5549_vm0 = vweird.f32 %v7957_v17  ;;  %v5543_v27 = vpack.c.b16 %v5541_v24, %v5532_v16  ;;  %v5551_v28 = vshrl.u32 %v7957_v17, 24  ;;  %v5555_v29 = vand.u32 2147483647, %v7965_v18 }
 0x3f7   : > { %v5556_v30 = vmul.f32 0.0625, %v7965_v18  ;;  %v5548_v31 = vcvt.f32.f8e4m3b11 %v5547_v26  ;;  %vm11236_vm1 = vcmp.le.f32.partialorder %v5546_v25, 0.0009765625  ;;  %vm5558_vm2 = vweird.f32 %v7965_v18 }
 0x3f8   : > { %v5560_v33 = vshrl.u32 %v7965_v18, 24  ;;  %v5544_v35 = vpack.c.b8 %v5543_v27, %v5542_v14  ;;  %v5552_v36 = vand.u32 128, %v5551_v28  ;;  %vm11241_vm3 = vcmp.le.f32.partialorder %v5555_v29, 0.0009765625  ;;  %v548_v29 = vld [vmem:[%s8493_s9 + $0xa60] sm:$0xff] }
 0x3f9   : > { %v5557_v37 = vcvt.f32.f8e4m3b11 %v5556_v30  ;;  %v5550_v39 = vsel %vm5549_vm0, 127, %v5548_v31  ;;  %v5564_v41 = vand.u32 2147483647, %v7973_v19  ;;  %v5565_v42 = vmul.f32 0.0625, %v7973_v19  ;;  %v556_v30 = vld [vmem:[%s8493_s9 + $0xaa0] sm:$0xff] }
 0x3fa   : > { %v5561_v40 = vand.u32 128, %v5560_v33  ;;  %7467 = vst [vmem:[%s8554_s27 + $0x288] sm:$0xff] %v5544_v35  ;;  %vm5567_vm4 = vweird.f32 %v7973_v19  ;;  %v5569_v44 = vshrl.u32 %v7973_v19, 24  ;;  %v1069_v46 = vmul.f32 %v8502_v3, %v555_v34  ;;  %v564_v35 = vld [vmem:[%s8493_s9 + $0xae0] sm:$0xff] }
 0x3fb   : > { %v5559_v43 = vsel %vm5558_vm2, 127, %v5557_v37  ;;  %v5554_v47 = vsel %vm11236_vm1, %v5552_v36, %v5550_v39  ;;  %v5566_v49 = vcvt.f32.f8e4m3b11 %v5565_v42  ;;  %v5573_v50 = vand.u32 2147483647, %v7981_v21  ;;  %v541_v39 = vld [vmem:[%s8493_s9 + $0xa28] sm:$0xff] }
 0x3fc   : > { %v5563_v48 = vsel %vm11241_vm3, %v5561_v40, %v5559_v43  ;;  %v5570_v51 = vand.u32 128, %v5569_v44  ;;  %vm11252_vm5 = vcmp.le.f32.partialorder %v5564_v41, 0.0009765625  ;;  %v5574_v53 = vmul.f32 0.0625, %v7981_v21 }
 0x3fd   : > { %v5578_v54 = vshrl.u32 %v7981_v21, 24  ;;  %v5568_v55 = vsel %vm5567_vm4, 127, %v5566_v49  ;;  %vm5576_vm6 = vweird.f32 %v7981_v21  ;;  %vm11256_vm7 = vcmp.le.f32.partialorder %v5573_v50, 0.0009765625 }
 0x3fe   : > { %v1077_v57 = vmul.f32 %v8502_v3, %v563_v45  ;;  %v5575_v58 = vcvt.f32.f8e4m3b11 %v5574_v53  ;;  %v5582_v60 = vpack.c.b16 %v5563_v48, %v5554_v47  ;;  %v7958_v61 = vclamps-f32 %v1053_v22, 448.0 }
 0x3ff   : > { %v5579_v59 = vand.u32 128, %v5578_v54  ;;  %v5572_v62 = vsel %vm11252_vm5, %v5570_v51, %v5568_v55  ;;  %v7966_v63 = vclamps-f32 %v1061_v23, 448.0  ;;  %v7974_v0 = vclamps-f32 %v1069_v46, 448.0 }
 0x400   : > { %v7982_v1 = vclamps-f32 %v1077_v57, 448.0  ;;  %v5577_v2 = vsel %vm5576_vm6, 127, %v5575_v58  ;;  %v5586_v4 = vand.u32 2147483647, %v7958_v61  ;;  %v5587_v5 = vmul.f32 0.0625, %v7958_v61 }
 0x401   : > { %vm5589_vm8 = vweird.f32 %v7958_v61  ;;  %v5581_v6 = vsel %vm11256_vm7, %v5579_v59, %v5577_v2  ;;  %v5591_v7 = vshrl.u32 %v7958_v61, 24  ;;  %v5595_v8 = vand.u32 2147483647, %v7966_v63 }
 0x402   : > { %v5596_v9 = vmul.f32 0.0625, %v7966_v63  ;;  %v5583_v10 = vpack.c.b16 %v5581_v6, %v5572_v62  ;;  %v5588_v11 = vcvt.f32.f8e4m3b11 %v5587_v5  ;;  %vm11265_vm9 = vcmp.le.f32.partialorder %v5586_v4, 0.0009765625  ;;  %v549_v62 = vld [vmem:[%s8493_s9 + $0xa68] sm:$0xff] }
 0x403   : > { %vm5598_vm10 = vweird.f32 %v7966_v63  ;;  %v5592_v14 = vand.u32 128, %v5591_v7  ;;  %v5600_v16 = vshrl.u32 %v7966_v63, 24  ;;  %vm11270_vm11 = vcmp.le.f32.partialorder %v5595_v8, 0.0009765625 }
 0x404   : > { %v5597_v15 = vcvt.f32.f8e4m3b11 %v5596_v9  ;;  %v5584_v18 = vpack.c.b8 %v5583_v10, %v5582_v60  ;;  %v5590_v19 = vsel %vm5589_vm8, 127, %v5588_v11  ;;  %v5604_v20 = vand.u32 2147483647, %v7974_v0 }
 0x405   : > { %v5605_v21 = vmul.f32 0.0625, %v7974_v0  ;;  %v5601_v23 = vand.u32 128, %v5600_v16  ;;  %vm5607_vm12 = vweird.f32 %v7974_v0  ;;  %v1054_v24 = vmul.f32 %v8502_v3, %v540_v13  ;;  %v565_v16 = vld [vmem:[%s8493_s9 + $0xae8] sm:$0xff] }
 0x406   : > { %v5599_v22 = vsel %vm5598_vm10, 127, %v5597_v15  ;;  %7468 = vst [vmem:[%s8554_s27 + $0x290] sm:$0xff] %v5584_v18  ;;  %v5594_v25 = vsel %vm11265_vm9, %v5592_v14, %v5590_v19  ;;  %v5609_v27 = vshrl.u32 %v7974_v0, 24  ;;  %v5613_v28 = vand.u32 2147483647, %v7982_v1  ;;  %v557_v15 = vld [vmem:[%s8493_s9 + $0xaa8] sm:$0xff] }
 0x407   : > { %v5606_v26 = vcvt.f32.f8e4m3b11 %v5605_v21  ;;  %v5603_v31 = vsel %vm11270_vm11, %v5601_v23, %v5599_v22  ;;  %vm11282_vm13 = vcmp.le.f32.partialorder %v5604_v20, 0.0009765625  ;;  %v5614_v33 = vmul.f32 0.0625, %v7982_v1 }
 0x408   : > { %v5618_v34 = vshrl.u32 %v7982_v1, 24  ;;  %v5610_v37 = vand.u32 128, %v5609_v27  ;;  %vm5616_vm14 = vweird.f32 %v7982_v1  ;;  %vm11287_vm15 = vcmp.le.f32.partialorder %v5613_v28, 0.0009765625 }
 0x409   : > { %v5608_v36 = vsel %vm5607_vm12, 127, %v5606_v26  ;;  %v5615_v40 = vcvt.f32.f8e4m3b11 %v5614_v33  ;;  %v1062_v42 = vmul.f32 %v8502_v3, %v548_v29  ;;  %v1070_v43 = vmul.f32 %v8502_v3, %v556_v30 }
 0x40a   : > { %v5619_v41 = vand.u32 128, %v5618_v34  ;;  %v5612_v44 = vsel %vm11282_vm13, %v5610_v37, %v5608_v36  ;;  %v5622_v45 = vpack.c.b16 %v5603_v31, %v5594_v25  ;;  %v1078_v46 = vmul.f32 %v8502_v3, %v564_v35 }
 0x40b   : > { %v7959_v47 = vclamps-f32 %v1054_v24, 448.0  ;;  %v5617_v48 = vsel %vm5616_vm14, 127, %v5615_v40  ;;  %v7967_v49 = vclamps-f32 %v1062_v42, 448.0  ;;  %v7975_v50 = vclamps-f32 %v1070_v43, 448.0  ;;  %v542_v24 = vld [vmem:[%s8493_s9 + $0xa30] sm:$0xff] }
 0x40c   : > { %v1055_v51 = vmul.f32 %v8502_v3, %v541_v39  ;;  %v5621_v52 = vsel %vm11287_vm15, %v5619_v41, %v5617_v48  ;;  %v7983_v53 = vclamps-f32 %v1078_v46, 448.0  ;;  %v1063_v10 = vmul.f32 %v8502_v3, %v549_v62 }
 0x40d   : > { %v5626_v54 = vand.u32 2147483647, %v7959_v47  ;;  %v5627_v55 = vmul.f32 0.0625, %v7959_v47  ;;  %v5623_v56 = vpack.c.b16 %v5621_v52, %v5612_v44  ;;  %vm5629_vm0 = vweird.f32 %v7959_v47 }
 0x40e   : > { %v5631_v57 = vshrl.u32 %v7959_v47, 24  ;;  %v5635_v58 = vand.u32 2147483647, %v7967_v49  ;;  %v5636_v61 = vmul.f32 0.0625, %v7967_v49  ;;  %vm5638_vm2 = vweird.f32 %v7967_v49  ;;  %v550_v47 = vld [vmem:[%s8493_s9 + $0xa70] sm:$0xff] }
 0x40f   : > { %v5628_v59 = vcvt.f32.f8e4m3b11 %v5627_v55  ;;  %vm11300_vm1 = vcmp.le.f32.partialorder %v5626_v54, 0.0009765625  ;;  %v5624_v63 = vpack.c.b8 %v5623_v56, %v5622_v45  ;;  %v5640_v1 = vshrl.u32 %v7967_v49, 24 }
 0x410   : > { %v5632_v0 = vand.u32 128, %v5631_v57  ;;  %vm11305_vm3 = vcmp.le.f32.partialorder %v5635_v58, 0.0009765625  ;;  %v5637_v5 = vcvt.f32.f8e4m3b11 %v5636_v61  ;;  %v5644_v6 = vand.u32 2147483647, %v7975_v50  ;;  %v558_v58 = vld [vmem:[%s8493_s9 + $0xab0] sm:$0xff] }
 0x411   : > { %v5630_v4 = vsel %vm5629_vm0, 127, %v5628_v59  ;;  %v5645_v7 = vmul.f32 0.0625, %v7975_v50  ;;  %7469 = vst [vmem:[%s8554_s27 + $0x298] sm:$0xff] %v5624_v63  ;;  %v5641_v8 = vand.u32 128, %v5640_v1  ;;  %vm5647_vm4 = vweird.f32 %v7975_v50 }
 0x412   : > { %v5649_v9 = vshrl.u32 %v7975_v50, 24  ;;  %v5634_v11 = vsel %vm11300_vm1, %v5632_v0, %v5630_v4  ;;  %v5639_v12 = vsel %vm5638_vm2, 127, %v5637_v5  ;;  %v5653_v14 = vand.u32 2147483647, %v7983_v53  ;;  %v566_v0 = vld [vmem:[%s8493_s9 + $0xaf0] sm:$0xff] }
 0x413   : > { %v5646_v13 = vcvt.f32.f8e4m3b11 %v5645_v7  ;;  %v5643_v17 = vsel %vm11305_vm3, %v5641_v8, %v5639_v12  ;;  %vm11318_vm5 = vcmp.le.f32.partialorder %v5644_v6, 0.0009765625  ;;  %v5654_v20 = vmul.f32 0.0625, %v7983_v53 }
 0x414   : > { %v5650_v18 = vand.u32 128, %v5649_v9  ;;  %vm5656_vm6 = vweird.f32 %v7983_v53  ;;  %v5658_v22 = vshrl.u32 %v7983_v53, 24  ;;  %vm11322_vm7 = vcmp.le.f32.partialorder %v5653_v14, 0.0009765625  ;;  %v543_v9 = vld [vmem:[%s8493_s9 + $0xa38] sm:$0xff] }
 0x415   : > { %v5648_v21 = vsel %vm5647_vm4, 127, %v5646_v13  ;;  %v5655_v25 = vcvt.f32.f8e4m3b11 %v5654_v20  ;;  %v5662_v26 = vpack.c.b16 %v5643_v17, %v5634_v11  ;;  %v1071_v27 = vmul.f32 %v8502_v3, %v557_v15 }
 0x416   : > { %v1079_v28 = vmul.f32 %v8502_v3, %v565_v16  ;;  %v5652_v29 = vsel %vm11318_vm5, %v5650_v18, %v5648_v21  ;;  %v5659_v30 = vand.u32 128, %v5658_v22  ;;  %v7960_v31 = vclamps-f32 %v1055_v51, 448.0 }
 0x417   : > { %v7968_v32 = vclamps-f32 %v1063_v10, 448.0  ;;  %v5657_v33 = vsel %vm5656_vm6, 127, %v5655_v25  ;;  %v7976_v34 = vclamps-f32 %v1071_v27, 448.0  ;;  %v1056_v36 = vmul.f32 %v8502_v3, %v542_v24  ;;  %v551_v10 = vld [vmem:[%s8493_s9 + $0xa78] sm:$0xff] }
 0x418   : > { %v7984_v35 = vclamps-f32 %v1079_v28, 448.0  ;;  %v5661_v37 = vsel %vm11322_vm7, %v5659_v30, %v5657_v33  ;;  %v5666_v38 = vand.u32 2147483647, %v7960_v31  ;;  %v5667_v39 = vmul.f32 0.0625, %v7960_v31  ;;  %v559_v33 = vld [vmem:[%s8493_s9 + $0xab8] sm:$0xff] }
 0x419   : > { %vm5669_vm8 = vweird.f32 %v7960_v31  ;;  %v5663_v40 = vpack.c.b16 %v5661_v37, %v5652_v29  ;;  %v5671_v41 = vshrl.u32 %v7960_v31, 24  ;;  %v5675_v42 = vand.u32 2147483647, %v7968_v32 }
 0x41a   : > { %v5676_v43 = vmul.f32 0.0625, %v7968_v32  ;;  %v5668_v44 = vcvt.f32.f8e4m3b11 %v5667_v39  ;;  %vm11334_vm9 = vcmp.le.f32.partialorder %v5666_v38, 0.0009765625  ;;  %vm5678_vm10 = vweird.f32 %v7968_v32 }
 0x41b   : > { %v5680_v46 = vshrl.u32 %v7968_v32, 24  ;;  %v5664_v48 = vpack.c.b8 %v5663_v40, %v5662_v26  ;;  %v5672_v49 = vand.u32 128, %v5671_v41  ;;  %vm11339_vm11 = vcmp.le.f32.partialorder %v5675_v42, 0.0009765625 }
 0x41c   : > { %v5677_v50 = vcvt.f32.f8e4m3b11 %v5676_v43  ;;  %v5670_v52 = vsel %vm5669_vm8, 127, %v5668_v44  ;;  %v5684_v54 = vand.u32 2147483647, %v7976_v34  ;;  %v5685_v55 = vmul.f32 0.0625, %v7976_v34  ;;  %v567_v44 = vld [vmem:[%s8493_s9 + $0xaf8] sm:$0xff] }
 0x41d   : > { %v5681_v53 = vand.u32 128, %v5680_v46  ;;  %7470 = vst [vmem:[%s8554_s27 + $0x2a0] sm:$0xff] %v5664_v48  ;;  %vm5687_vm12 = vweird.f32 %v7976_v34  ;;  %v5689_v57 = vshrl.u32 %v7976_v34, 24  ;;  %v1064_v59 = vmul.f32 %v8502_v3, %v550_v47 }
 0x41e   : > { %v5679_v56 = vsel %vm5678_vm10, 127, %v5677_v50  ;;  %v5674_v60 = vsel %vm11334_vm9, %v5672_v49, %v5670_v52  ;;  %v5686_v62 = vcvt.f32.f8e4m3b11 %v5685_v55  ;;  %v5693_v63 = vand.u32 2147483647, %v7984_v35 }
 0x41f   : > { %v5683_v61 = vsel %vm11339_vm11, %v5681_v53, %v5679_v56  ;;  %v5690_v1 = vand.u32 128, %v5689_v57  ;;  %vm11351_vm13 = vcmp.le.f32.partialorder %v5684_v54, 0.0009765625  ;;  %v5694_v4 = vmul.f32 0.0625, %v7984_v35 }
 0x420   : > { %v5698_v5 = vshrl.u32 %v7984_v35, 24  ;;  %v5688_v6 = vsel %vm5687_vm12, 127, %v5686_v62  ;;  %vm5696_vm14 = vweird.f32 %v7984_v35  ;;  %vm11355_vm15 = vcmp.le.f32.partialorder %v5693_v63, 0.0009765625 }
 0x421   : > { %v1072_v8 = vmul.f32 %v8502_v3, %v558_v58  ;;  %v5695_v11 = vcvt.f32.f8e4m3b11 %v5694_v4  ;;  %v5702_v13 = vpack.c.b16 %v5683_v61, %v5674_v60  ;;  %v1080_v14 = vmul.f32 %v8502_v3, %v566_v0 }
 0x422   : > { %v5699_v12 = vand.u32 128, %v5698_v5  ;;  %v5692_v15 = vsel %vm11351_vm13, %v5690_v1, %v5688_v6  ;;  %v7961_v16 = vclamps-f32 %v1056_v36, 448.0  ;;  %v7969_v17 = vclamps-f32 %v1064_v59, 448.0 }
 0x423   : > { %v7977_v18 = vclamps-f32 %v1072_v8, 448.0  ;;  %v5697_v19 = vsel %vm5696_vm14, 127, %v5695_v11  ;;  %v7985_v20 = vclamps-f32 %v1080_v14, 448.0  ;;  %v1057_v21 = vmul.f32 %v8502_v3, %v543_v9 }
 0x424   : > { %v1065_v22 = vmul.f32 %v8502_v3, %v551_v10  ;;  %v5701_v23 = vsel %vm11355_vm15, %v5699_v12, %v5697_v19  ;;  %v5706_v24 = vand.u32 2147483647, %v7961_v16  ;;  %v5707_v25 = vmul.f32 0.0625, %v7961_v16  ;;  %v568_v12 = vld [vmem:[%s8493_s9 + $0xb00] sm:$0xff] }
 0x425   : > { %vm5709_vm0 = vweird.f32 %v7961_v16  ;;  %v5703_v26 = vpack.c.b16 %v5701_v23, %v5692_v15  ;;  %v5711_v27 = vshrl.u32 %v7961_v16, 24  ;;  %v5715_v28 = vand.u32 2147483647, %v7969_v17 }
 0x426   : > { %v5716_v29 = vmul.f32 0.0625, %v7969_v17  ;;  %v5708_v30 = vcvt.f32.f8e4m3b11 %v5707_v25  ;;  %vm11369_vm1 = vcmp.le.f32.partialorder %v5706_v24, 0.0009765625  ;;  %vm5718_vm2 = vweird.f32 %v7969_v17 }
 0x427   : > { %v5720_v32 = vshrl.u32 %v7969_v17, 24  ;;  %v5704_v34 = vpack.c.b8 %v5703_v26, %v5702_v13  ;;  %v5712_v35 = vand.u32 128, %v5711_v27  ;;  %vm11374_vm3 = vcmp.le.f32.partialorder %v5715_v28, 0.0009765625  ;;  %v576_v28 = vld [vmem:[%s8493_s9 + $0xb40] sm:$0xff] }
 0x428   : > { %v5717_v36 = vcvt.f32.f8e4m3b11 %v5716_v29  ;;  %v5710_v38 = vsel %vm5709_vm0, 127, %v5708_v30  ;;  %v5724_v40 = vand.u32 2147483647, %v7977_v18  ;;  %v5725_v41 = vmul.f32 0.0625, %v7977_v18  ;;  %v584_v29 = vld [vmem:[%s8493_s9 + $0xb80] sm:$0xff] }
 0x429   : > { %v5721_v39 = vand.u32 128, %v5720_v32  ;;  %7471 = vst [vmem:[%s8554_s27 + $0x2a8] sm:$0xff] %v5704_v34  ;;  %vm5727_vm4 = vweird.f32 %v7977_v18  ;;  %v5729_v43 = vshrl.u32 %v7977_v18, 24  ;;  %v1073_v45 = vmul.f32 %v8502_v3, %v559_v33  ;;  %v592_v34 = vld [vmem:[%s8493_s9 + $0xbc0] sm:$0xff] }
 0x42a   : > { %v5719_v42 = vsel %vm5718_vm2, 127, %v5717_v36  ;;  %v5714_v46 = vsel %vm11369_vm1, %v5712_v35, %v5710_v38  ;;  %v5726_v48 = vcvt.f32.f8e4m3b11 %v5725_v41  ;;  %v5733_v49 = vand.u32 2147483647, %v7985_v20  ;;  %v569_v38 = vld [vmem:[%s8493_s9 + $0xb08] sm:$0xff] }
 0x42b   : > { %v5723_v47 = vsel %vm11374_vm3, %v5721_v39, %v5719_v42  ;;  %v5730_v50 = vand.u32 128, %v5729_v43  ;;  %vm11385_vm5 = vcmp.le.f32.partialorder %v5724_v40, 0.0009765625  ;;  %v5734_v52 = vmul.f32 0.0625, %v7985_v20 }
 0x42c   : > { %v5738_v53 = vshrl.u32 %v7985_v20, 24  ;;  %v5728_v54 = vsel %vm5727_vm4, 127, %v5726_v48  ;;  %vm5736_vm6 = vweird.f32 %v7985_v20  ;;  %vm11389_vm7 = vcmp.le.f32.partialorder %v5733_v49, 0.0009765625 }
 0x42d   : > { %v1081_v56 = vmul.f32 %v8502_v3, %v567_v44  ;;  %v5735_v57 = vcvt.f32.f8e4m3b11 %v5734_v52  ;;  %v5742_v59 = vpack.c.b16 %v5723_v47, %v5714_v46  ;;  %v7962_v60 = vclamps-f32 %v1057_v21, 448.0 }
 0x42e   : > { %v5739_v58 = vand.u32 128, %v5738_v53  ;;  %v5732_v61 = vsel %vm11385_vm5, %v5730_v50, %v5728_v54  ;;  %v7970_v62 = vclamps-f32 %v1065_v22, 448.0  ;;  %v7978_v63 = vclamps-f32 %v1073_v45, 448.0 }
 0x42f   : > { %v7986_v0 = vclamps-f32 %v1081_v56, 448.0  ;;  %v5737_v1 = vsel %vm5736_vm6, 127, %v5735_v57  ;;  %v5746_v2 = vand.u32 2147483647, %v7962_v60  ;;  %v5747_v4 = vmul.f32 0.0625, %v7962_v60 }
 0x430   : > { %vm5749_vm8 = vweird.f32 %v7962_v60  ;;  %v5741_v5 = vsel %vm11389_vm7, %v5739_v58, %v5737_v1  ;;  %v5751_v6 = vshrl.u32 %v7962_v60, 24  ;;  %v5755_v7 = vand.u32 2147483647, %v7970_v62 }
 0x431   : > { %v5756_v8 = vmul.f32 0.0625, %v7970_v62  ;;  %v5743_v9 = vpack.c.b16 %v5741_v5, %v5732_v61  ;;  %v5748_v10 = vcvt.f32.f8e4m3b11 %v5747_v4  ;;  %vm11398_vm9 = vcmp.le.f32.partialorder %v5746_v2, 0.0009765625  ;;  %v577_v61 = vld [vmem:[%s8493_s9 + $0xb48] sm:$0xff] }
 0x432   : > { %vm5758_vm10 = vweird.f32 %v7970_v62  ;;  %v5752_v13 = vand.u32 128, %v5751_v6  ;;  %v5760_v15 = vshrl.u32 %v7970_v62, 24  ;;  %vm11403_vm11 = vcmp.le.f32.partialorder %v5755_v7, 0.0009765625 }
 0x433   : > { %v5757_v14 = vcvt.f32.f8e4m3b11 %v5756_v8  ;;  %v5744_v17 = vpack.c.b8 %v5743_v9, %v5742_v59  ;;  %v5750_v18 = vsel %vm5749_vm8, 127, %v5748_v10  ;;  %v5764_v19 = vand.u32 2147483647, %v7978_v63 }
 0x434   : > { %v5765_v20 = vmul.f32 0.0625, %v7978_v63  ;;  %v5761_v22 = vand.u32 128, %v5760_v15  ;;  %vm5767_vm12 = vweird.f32 %v7978_v63  ;;  %v1082_v23 = vmul.f32 %v8502_v3, %v568_v12  ;;  %v593_v15 = vld [vmem:[%s8493_s9 + $0xbc8] sm:$0xff] }
 0x435   : > { %v5759_v21 = vsel %vm5758_vm10, 127, %v5757_v14  ;;  %7472 = vst [vmem:[%s8554_s27 + $0x2b0] sm:$0xff] %v5744_v17  ;;  %v5754_v24 = vsel %vm11398_vm9, %v5752_v13, %v5750_v18  ;;  %v5769_v26 = vshrl.u32 %v7978_v63, 24  ;;  %v5773_v27 = vand.u32 2147483647, %v7986_v0  ;;  %v585_v14 = vld [vmem:[%s8493_s9 + $0xb88] sm:$0xff] }
 0x436   : > { %v5766_v25 = vcvt.f32.f8e4m3b11 %v5765_v20  ;;  %v5763_v30 = vsel %vm11403_vm11, %v5761_v22, %v5759_v21  ;;  %vm11415_vm13 = vcmp.le.f32.partialorder %v5764_v19, 0.0009765625  ;;  %v5774_v32 = vmul.f32 0.0625, %v7986_v0 }
 0x437   : > { %v5778_v33 = vshrl.u32 %v7986_v0, 24  ;;  %v5770_v36 = vand.u32 128, %v5769_v26  ;;  %vm5776_vm14 = vweird.f32 %v7986_v0  ;;  %vm11420_vm15 = vcmp.le.f32.partialorder %v5773_v27, 0.0009765625 }
 0x438   : > { %v5768_v35 = vsel %vm5767_vm12, 127, %v5766_v25  ;;  %v5775_v39 = vcvt.f32.f8e4m3b11 %v5774_v32  ;;  %v1090_v41 = vmul.f32 %v8502_v3, %v576_v28  ;;  %v1098_v42 = vmul.f32 %v8502_v3, %v584_v29 }
 0x439   : > { %v5779_v40 = vand.u32 128, %v5778_v33  ;;  %v5772_v43 = vsel %vm11415_vm13, %v5770_v36, %v5768_v35  ;;  %v5782_v44 = vpack.c.b16 %v5763_v30, %v5754_v24  ;;  %v1106_v45 = vmul.f32 %v8502_v3, %v592_v34 }
 0x43a   : > { %v7987_v46 = vclamps-f32 %v1082_v23, 448.0  ;;  %v5777_v47 = vsel %vm5776_vm14, 127, %v5775_v39  ;;  %v7995_v48 = vclamps-f32 %v1090_v41, 448.0  ;;  %v8003_v49 = vclamps-f32 %v1098_v42, 448.0  ;;  %v570_v23 = vld [vmem:[%s8493_s9 + $0xb10] sm:$0xff] }
 0x43b   : > { %v1083_v50 = vmul.f32 %v8502_v3, %v569_v38  ;;  %v5781_v51 = vsel %vm11420_vm15, %v5779_v40, %v5777_v47  ;;  %v8011_v52 = vclamps-f32 %v1106_v45, 448.0  ;;  %v1091_v9 = vmul.f32 %v8502_v3, %v577_v61 }
 0x43c   : > { %v5786_v53 = vand.u32 2147483647, %v7987_v46  ;;  %v5787_v54 = vmul.f32 0.0625, %v7987_v46  ;;  %v5783_v55 = vpack.c.b16 %v5781_v51, %v5772_v43  ;;  %vm5789_vm0 = vweird.f32 %v7987_v46 }
 0x43d   : > { %v5791_v56 = vshrl.u32 %v7987_v46, 24  ;;  %v5795_v57 = vand.u32 2147483647, %v7995_v48  ;;  %v5796_v60 = vmul.f32 0.0625, %v7995_v48  ;;  %vm5798_vm2 = vweird.f32 %v7995_v48  ;;  %v578_v46 = vld [vmem:[%s8493_s9 + $0xb50] sm:$0xff] }
 0x43e   : > { %v5788_v58 = vcvt.f32.f8e4m3b11 %v5787_v54  ;;  %vm11433_vm1 = vcmp.le.f32.partialorder %v5786_v53, 0.0009765625  ;;  %v5784_v62 = vpack.c.b8 %v5783_v55, %v5782_v44  ;;  %v5800_v0 = vshrl.u32 %v7995_v48, 24 }
 0x43f   : > { %v5792_v63 = vand.u32 128, %v5791_v56  ;;  %vm11438_vm3 = vcmp.le.f32.partialorder %v5795_v57, 0.0009765625  ;;  %v5797_v4 = vcvt.f32.f8e4m3b11 %v5796_v60  ;;  %v5804_v5 = vand.u32 2147483647, %v8003_v49  ;;  %v586_v57 = vld [vmem:[%s8493_s9 + $0xb90] sm:$0xff] }
 0x440   : > { %v5790_v2 = vsel %vm5789_vm0, 127, %v5788_v58  ;;  %v5805_v6 = vmul.f32 0.0625, %v8003_v49  ;;  %7473 = vst [vmem:[%s8554_s27 + $0x2b8] sm:$0xff] %v5784_v62  ;;  %v5801_v7 = vand.u32 128, %v5800_v0  ;;  %vm5807_vm4 = vweird.f32 %v8003_v49 }
 0x441   : > { %v5809_v8 = vshrl.u32 %v8003_v49, 24  ;;  %v5794_v10 = vsel %vm11433_vm1, %v5792_v63, %v5790_v2  ;;  %v5799_v11 = vsel %vm5798_vm2, 127, %v5797_v4  ;;  %v5813_v13 = vand.u32 2147483647, %v8011_v52  ;;  %v594_v63 = vld [vmem:[%s8493_s9 + $0xbd0] sm:$0xff] }
 0x442   : > { %v5806_v12 = vcvt.f32.f8e4m3b11 %v5805_v6  ;;  %v5803_v16 = vsel %vm11438_vm3, %v5801_v7, %v5799_v11  ;;  %vm11451_vm5 = vcmp.le.f32.partialorder %v5804_v5, 0.0009765625  ;;  %v5814_v19 = vmul.f32 0.0625, %v8011_v52 }
 0x443   : > { %v5810_v17 = vand.u32 128, %v5809_v8  ;;  %vm5816_vm6 = vweird.f32 %v8011_v52  ;;  %v5818_v21 = vshrl.u32 %v8011_v52, 24  ;;  %vm11455_vm7 = vcmp.le.f32.partialorder %v5813_v13, 0.0009765625  ;;  %v571_v8 = vld [vmem:[%s8493_s9 + $0xb18] sm:$0xff] }
 0x444   : > { %v5808_v20 = vsel %vm5807_vm4, 127, %v5806_v12  ;;  %v5815_v24 = vcvt.f32.f8e4m3b11 %v5814_v19  ;;  %v5822_v25 = vpack.c.b16 %v5803_v16, %v5794_v10  ;;  %v1099_v26 = vmul.f32 %v8502_v3, %v585_v14 }
 0x445   : > { %v1107_v27 = vmul.f32 %v8502_v3, %v593_v15  ;;  %v5812_v28 = vsel %vm11451_vm5, %v5810_v17, %v5808_v20  ;;  %v5819_v29 = vand.u32 128, %v5818_v21  ;;  %v7988_v30 = vclamps-f32 %v1083_v50, 448.0 }
 0x446   : > { %v7996_v31 = vclamps-f32 %v1091_v9, 448.0  ;;  %v5817_v32 = vsel %vm5816_vm6, 127, %v5815_v24  ;;  %v8004_v33 = vclamps-f32 %v1099_v26, 448.0  ;;  %v1084_v35 = vmul.f32 %v8502_v3, %v570_v23  ;;  %v579_v9 = vld [vmem:[%s8493_s9 + $0xb58] sm:$0xff] }
 0x447   : > { %v8012_v34 = vclamps-f32 %v1107_v27, 448.0  ;;  %v5821_v36 = vsel %vm11455_vm7, %v5819_v29, %v5817_v32  ;;  %v5826_v37 = vand.u32 2147483647, %v7988_v30  ;;  %v5827_v38 = vmul.f32 0.0625, %v7988_v30  ;;  %v587_v32 = vld [vmem:[%s8493_s9 + $0xb98] sm:$0xff] }
 0x448   : > { %vm5829_vm8 = vweird.f32 %v7988_v30  ;;  %v5823_v39 = vpack.c.b16 %v5821_v36, %v5812_v28  ;;  %v5831_v40 = vshrl.u32 %v7988_v30, 24  ;;  %v5835_v41 = vand.u32 2147483647, %v7996_v31 }
 0x449   : > { %v5836_v42 = vmul.f32 0.0625, %v7996_v31  ;;  %v5828_v43 = vcvt.f32.f8e4m3b11 %v5827_v38  ;;  %vm11467_vm9 = vcmp.le.f32.partialorder %v5826_v37, 0.0009765625  ;;  %vm5838_vm10 = vweird.f32 %v7996_v31 }
 0x44a   : > { %v5840_v45 = vshrl.u32 %v7996_v31, 24  ;;  %v5824_v47 = vpack.c.b8 %v5823_v39, %v5822_v25  ;;  %v5832_v48 = vand.u32 128, %v5831_v40  ;;  %vm11472_vm11 = vcmp.le.f32.partialorder %v5835_v41, 0.0009765625 }
 0x44b   : > { %v5837_v49 = vcvt.f32.f8e4m3b11 %v5836_v42  ;;  %v5830_v51 = vsel %vm5829_vm8, 127, %v5828_v43  ;;  %v5844_v53 = vand.u32 2147483647, %v8004_v33  ;;  %v5845_v54 = vmul.f32 0.0625, %v8004_v33  ;;  %v595_v43 = vld [vmem:[%s8493_s9 + $0xbd8] sm:$0xff] }
 0x44c   : > { %v5841_v52 = vand.u32 128, %v5840_v45  ;;  %7474 = vst [vmem:[%s8554_s27 + $0x2c0] sm:$0xff] %v5824_v47  ;;  %vm5847_vm12 = vweird.f32 %v8004_v33  ;;  %v5849_v56 = vshrl.u32 %v8004_v33, 24  ;;  %v1092_v58 = vmul.f32 %v8502_v3, %v578_v46 }
 0x44d   : > { %v5839_v55 = vsel %vm5838_vm10, 127, %v5837_v49  ;;  %v5834_v59 = vsel %vm11467_vm9, %v5832_v48, %v5830_v51  ;;  %v5846_v61 = vcvt.f32.f8e4m3b11 %v5845_v54  ;;  %v5853_v62 = vand.u32 2147483647, %v8012_v34 }
 0x44e   : > { %v5843_v60 = vsel %vm11472_vm11, %v5841_v52, %v5839_v55  ;;  %v5850_v0 = vand.u32 128, %v5849_v56  ;;  %vm11484_vm13 = vcmp.le.f32.partialorder %v5844_v53, 0.0009765625  ;;  %v5854_v2 = vmul.f32 0.0625, %v8012_v34 }
 0x44f   : > { %v5858_v4 = vshrl.u32 %v8012_v34, 24  ;;  %v5848_v5 = vsel %vm5847_vm12, 127, %v5846_v61  ;;  %vm5856_vm14 = vweird.f32 %v8012_v34  ;;  %vm11488_vm15 = vcmp.le.f32.partialorder %v5853_v62, 0.0009765625 }
 0x450   : > { %v1100_v7 = vmul.f32 %v8502_v3, %v586_v57  ;;  %v5855_v10 = vcvt.f32.f8e4m3b11 %v5854_v2  ;;  %v5862_v12 = vpack.c.b16 %v5843_v60, %v5834_v59  ;;  %v1108_v13 = vmul.f32 %v8502_v3, %v594_v63 }
 0x451   : > { %v5859_v11 = vand.u32 128, %v5858_v4  ;;  %v5852_v14 = vsel %vm11484_vm13, %v5850_v0, %v5848_v5  ;;  %v7989_v15 = vclamps-f32 %v1084_v35, 448.0  ;;  %v7997_v16 = vclamps-f32 %v1092_v58, 448.0 }
 0x452   : > { %v8005_v17 = vclamps-f32 %v1100_v7, 448.0  ;;  %v5857_v18 = vsel %vm5856_vm14, 127, %v5855_v10  ;;  %v8013_v19 = vclamps-f32 %v1108_v13, 448.0  ;;  %v1085_v20 = vmul.f32 %v8502_v3, %v571_v8 }
 0x453   : > { %v1093_v21 = vmul.f32 %v8502_v3, %v579_v9  ;;  %v5861_v22 = vsel %vm11488_vm15, %v5859_v11, %v5857_v18  ;;  %v5866_v23 = vand.u32 2147483647, %v7989_v15  ;;  %v5867_v24 = vmul.f32 0.0625, %v7989_v15  ;;  %v572_v11 = vld [vmem:[%s8493_s9 + $0xb20] sm:$0xff] }
 0x454   : > { %vm5869_vm0 = vweird.f32 %v7989_v15  ;;  %v5863_v25 = vpack.c.b16 %v5861_v22, %v5852_v14  ;;  %v5871_v26 = vshrl.u32 %v7989_v15, 24  ;;  %v5875_v27 = vand.u32 2147483647, %v7997_v16 }
 0x455   : > { %v5876_v28 = vmul.f32 0.0625, %v7997_v16  ;;  %v5868_v29 = vcvt.f32.f8e4m3b11 %v5867_v24  ;;  %vm11502_vm1 = vcmp.le.f32.partialorder %v5866_v23, 0.0009765625  ;;  %vm5878_vm2 = vweird.f32 %v7997_v16 }
 0x456   : > { %v5880_v31 = vshrl.u32 %v7997_v16, 24  ;;  %v5864_v33 = vpack.c.b8 %v5863_v25, %v5862_v12  ;;  %v5872_v34 = vand.u32 128, %v5871_v26  ;;  %vm11507_vm3 = vcmp.le.f32.partialorder %v5875_v27, 0.0009765625  ;;  %v580_v27 = vld [vmem:[%s8493_s9 + $0xb60] sm:$0xff] }
 0x457   : > { %v5877_v35 = vcvt.f32.f8e4m3b11 %v5876_v28  ;;  %v5870_v37 = vsel %vm5869_vm0, 127, %v5868_v29  ;;  %v5884_v39 = vand.u32 2147483647, %v8005_v17  ;;  %v5885_v40 = vmul.f32 0.0625, %v8005_v17  ;;  %v588_v28 = vld [vmem:[%s8493_s9 + $0xba0] sm:$0xff] }
 0x458   : > { %v5881_v38 = vand.u32 128, %v5880_v31  ;;  %7475 = vst [vmem:[%s8554_s27 + $0x2c8] sm:$0xff] %v5864_v33  ;;  %vm5887_vm4 = vweird.f32 %v8005_v17  ;;  %v5889_v42 = vshrl.u32 %v8005_v17, 24  ;;  %v1101_v44 = vmul.f32 %v8502_v3, %v587_v32  ;;  %v596_v33 = vld [vmem:[%s8493_s9 + $0xbe0] sm:$0xff] }
 0x459   : > { %v5879_v41 = vsel %vm5878_vm2, 127, %v5877_v35  ;;  %v5874_v45 = vsel %vm11502_vm1, %v5872_v34, %v5870_v37  ;;  %v5886_v47 = vcvt.f32.f8e4m3b11 %v5885_v40  ;;  %v5893_v48 = vand.u32 2147483647, %v8013_v19  ;;  %v573_v37 = vld [vmem:[%s8493_s9 + $0xb28] sm:$0xff] }
 0x45a   : > { %v5883_v46 = vsel %vm11507_vm3, %v5881_v38, %v5879_v41  ;;  %v5890_v49 = vand.u32 128, %v5889_v42  ;;  %vm11518_vm5 = vcmp.le.f32.partialorder %v5884_v39, 0.0009765625  ;;  %v5894_v51 = vmul.f32 0.0625, %v8013_v19 }
 0x45b   : > { %v5898_v52 = vshrl.u32 %v8013_v19, 24  ;;  %v5888_v53 = vsel %vm5887_vm4, 127, %v5886_v47  ;;  %vm5896_vm6 = vweird.f32 %v8013_v19  ;;  %vm11522_vm7 = vcmp.le.f32.partialorder %v5893_v48, 0.0009765625 }
 0x45c   : > { %v1109_v55 = vmul.f32 %v8502_v3, %v595_v43  ;;  %v5895_v56 = vcvt.f32.f8e4m3b11 %v5894_v51  ;;  %v5902_v58 = vpack.c.b16 %v5883_v46, %v5874_v45  ;;  %v7990_v59 = vclamps-f32 %v1085_v20, 448.0 }
 0x45d   : > { %v5899_v57 = vand.u32 128, %v5898_v52  ;;  %v5892_v60 = vsel %vm11518_vm5, %v5890_v49, %v5888_v53  ;;  %v7998_v61 = vclamps-f32 %v1093_v21, 448.0  ;;  %v8006_v62 = vclamps-f32 %v1101_v44, 448.0 }
 0x45e   : > { %v8014_v63 = vclamps-f32 %v1109_v55, 448.0  ;;  %v5897_v0 = vsel %vm5896_vm6, 127, %v5895_v56  ;;  %v5906_v1 = vand.u32 2147483647, %v7990_v59  ;;  %v5907_v2 = vmul.f32 0.0625, %v7990_v59 }
 0x45f   : > { %vm5909_vm8 = vweird.f32 %v7990_v59  ;;  %v5901_v4 = vsel %vm11522_vm7, %v5899_v57, %v5897_v0  ;;  %v5911_v5 = vshrl.u32 %v7990_v59, 24  ;;  %v5915_v6 = vand.u32 2147483647, %v7998_v61 }
 0x460   : > { %v5916_v7 = vmul.f32 0.0625, %v7998_v61  ;;  %v5903_v8 = vpack.c.b16 %v5901_v4, %v5892_v60  ;;  %v5908_v9 = vcvt.f32.f8e4m3b11 %v5907_v2  ;;  %vm11531_vm9 = vcmp.le.f32.partialorder %v5906_v1, 0.0009765625  ;;  %v581_v60 = vld [vmem:[%s8493_s9 + $0xb68] sm:$0xff] }
 0x461   : > { %vm5918_vm10 = vweird.f32 %v7998_v61  ;;  %v5912_v12 = vand.u32 128, %v5911_v5  ;;  %v5920_v14 = vshrl.u32 %v7998_v61, 24  ;;  %vm11536_vm11 = vcmp.le.f32.partialorder %v5915_v6, 0.0009765625 }
 0x462   : > { %v5917_v13 = vcvt.f32.f8e4m3b11 %v5916_v7  ;;  %v5904_v16 = vpack.c.b8 %v5903_v8, %v5902_v58  ;;  %v5910_v17 = vsel %vm5909_vm8, 127, %v5908_v9  ;;  %v5924_v18 = vand.u32 2147483647, %v8006_v62 }
 0x463   : > { %v5925_v19 = vmul.f32 0.0625, %v8006_v62  ;;  %v5921_v21 = vand.u32 128, %v5920_v14  ;;  %vm5927_vm12 = vweird.f32 %v8006_v62  ;;  %v1086_v22 = vmul.f32 %v8502_v3, %v572_v11  ;;  %v597_v14 = vld [vmem:[%s8493_s9 + $0xbe8] sm:$0xff] }
 0x464   : > { %v5919_v20 = vsel %vm5918_vm10, 127, %v5917_v13  ;;  %7476 = vst [vmem:[%s8554_s27 + $0x2d0] sm:$0xff] %v5904_v16  ;;  %v5914_v23 = vsel %vm11531_vm9, %v5912_v12, %v5910_v17  ;;  %v5929_v25 = vshrl.u32 %v8006_v62, 24  ;;  %v5933_v26 = vand.u32 2147483647, %v8014_v63  ;;  %v589_v13 = vld [vmem:[%s8493_s9 + $0xba8] sm:$0xff] }
 0x465   : > { %v5926_v24 = vcvt.f32.f8e4m3b11 %v5925_v19  ;;  %v5923_v29 = vsel %vm11536_vm11, %v5921_v21, %v5919_v20  ;;  %vm11548_vm13 = vcmp.le.f32.partialorder %v5924_v18, 0.0009765625  ;;  %v5934_v31 = vmul.f32 0.0625, %v8014_v63 }
 0x466   : > { %v5938_v32 = vshrl.u32 %v8014_v63, 24  ;;  %v5930_v35 = vand.u32 128, %v5929_v25  ;;  %vm5936_vm14 = vweird.f32 %v8014_v63  ;;  %vm11553_vm15 = vcmp.le.f32.partialorder %v5933_v26, 0.0009765625 }
 0x467   : > { %v5928_v34 = vsel %vm5927_vm12, 127, %v5926_v24  ;;  %v5935_v38 = vcvt.f32.f8e4m3b11 %v5934_v31  ;;  %v1094_v40 = vmul.f32 %v8502_v3, %v580_v27  ;;  %v1102_v41 = vmul.f32 %v8502_v3, %v588_v28 }
 0x468   : > { %v5939_v39 = vand.u32 128, %v5938_v32  ;;  %v5932_v42 = vsel %vm11548_vm13, %v5930_v35, %v5928_v34  ;;  %v5942_v43 = vpack.c.b16 %v5923_v29, %v5914_v23  ;;  %v1110_v44 = vmul.f32 %v8502_v3, %v596_v33 }
 0x469   : > { %v7991_v45 = vclamps-f32 %v1086_v22, 448.0  ;;  %v5937_v46 = vsel %vm5936_vm14, 127, %v5935_v38  ;;  %v7999_v47 = vclamps-f32 %v1094_v40, 448.0  ;;  %v8007_v48 = vclamps-f32 %v1102_v41, 448.0  ;;  %v574_v22 = vld [vmem:[%s8493_s9 + $0xb30] sm:$0xff] }
 0x46a   : > { %v1087_v49 = vmul.f32 %v8502_v3, %v573_v37  ;;  %v5941_v50 = vsel %vm11553_vm15, %v5939_v39, %v5937_v46  ;;  %v8015_v51 = vclamps-f32 %v1110_v44, 448.0  ;;  %v1095_v8 = vmul.f32 %v8502_v3, %v581_v60 }
 0x46b   : > { %v5946_v52 = vand.u32 2147483647, %v7991_v45  ;;  %v5947_v53 = vmul.f32 0.0625, %v7991_v45  ;;  %v5943_v54 = vpack.c.b16 %v5941_v50, %v5932_v42  ;;  %vm5949_vm0 = vweird.f32 %v7991_v45 }
 0x46c   : > { %v5951_v55 = vshrl.u32 %v7991_v45, 24  ;;  %v5955_v56 = vand.u32 2147483647, %v7999_v47  ;;  %v5956_v59 = vmul.f32 0.0625, %v7999_v47  ;;  %vm5958_vm2 = vweird.f32 %v7999_v47  ;;  %v582_v45 = vld [vmem:[%s8493_s9 + $0xb70] sm:$0xff] }
 0x46d   : > { %v5948_v57 = vcvt.f32.f8e4m3b11 %v5947_v53  ;;  %vm11566_vm1 = vcmp.le.f32.partialorder %v5946_v52, 0.0009765625  ;;  %v5944_v61 = vpack.c.b8 %v5943_v54, %v5942_v43  ;;  %v5960_v63 = vshrl.u32 %v7999_v47, 24 }
 0x46e   : > { %v5952_v62 = vand.u32 128, %v5951_v55  ;;  %vm11571_vm3 = vcmp.le.f32.partialorder %v5955_v56, 0.0009765625  ;;  %v5957_v2 = vcvt.f32.f8e4m3b11 %v5956_v59  ;;  %v5964_v4 = vand.u32 2147483647, %v8007_v48  ;;  %v590_v56 = vld [vmem:[%s8493_s9 + $0xbb0] sm:$0xff] }
 0x46f   : > { %v5950_v1 = vsel %vm5949_vm0, 127, %v5948_v57  ;;  %v5965_v5 = vmul.f32 0.0625, %v8007_v48  ;;  %7477 = vst [vmem:[%s8554_s27 + $0x2d8] sm:$0xff] %v5944_v61  ;;  %v5961_v6 = vand.u32 128, %v5960_v63  ;;  %vm5967_vm4 = vweird.f32 %v8007_v48 }
 0x470   : > { %v5969_v7 = vshrl.u32 %v8007_v48, 24  ;;  %v5954_v9 = vsel %vm11566_vm1, %v5952_v62, %v5950_v1  ;;  %v5959_v10 = vsel %vm5958_vm2, 127, %v5957_v2  ;;  %v5973_v12 = vand.u32 2147483647, %v8015_v51  ;;  %v598_v62 = vld [vmem:[%s8493_s9 + $0xbf0] sm:$0xff] }
 0x471   : > { %v5966_v11 = vcvt.f32.f8e4m3b11 %v5965_v5  ;;  %v5963_v15 = vsel %vm11571_vm3, %v5961_v6, %v5959_v10  ;;  %vm11584_vm5 = vcmp.le.f32.partialorder %v5964_v4, 0.0009765625  ;;  %v5974_v18 = vmul.f32 0.0625, %v8015_v51 }
 0x472   : > { %v5970_v16 = vand.u32 128, %v5969_v7  ;;  %vm5976_vm6 = vweird.f32 %v8015_v51  ;;  %v5978_v20 = vshrl.u32 %v8015_v51, 24  ;;  %vm11588_vm7 = vcmp.le.f32.partialorder %v5973_v12, 0.0009765625  ;;  %v575_v7 = vld [vmem:[%s8493_s9 + $0xb38] sm:$0xff] }
 0x473   : > { %v5968_v19 = vsel %vm5967_vm4, 127, %v5966_v11  ;;  %v5975_v23 = vcvt.f32.f8e4m3b11 %v5974_v18  ;;  %v5982_v24 = vpack.c.b16 %v5963_v15, %v5954_v9  ;;  %v1103_v25 = vmul.f32 %v8502_v3, %v589_v13 }
 0x474   : > { %v1111_v26 = vmul.f32 %v8502_v3, %v597_v14  ;;  %v5972_v27 = vsel %vm11584_vm5, %v5970_v16, %v5968_v19  ;;  %v5979_v28 = vand.u32 128, %v5978_v20  ;;  %v7992_v29 = vclamps-f32 %v1087_v49, 448.0 }
 0x475   : > { %v8000_v30 = vclamps-f32 %v1095_v8, 448.0  ;;  %v5977_v31 = vsel %vm5976_vm6, 127, %v5975_v23  ;;  %v8008_v32 = vclamps-f32 %v1103_v25, 448.0  ;;  %v1088_v34 = vmul.f32 %v8502_v3, %v574_v22  ;;  %v583_v8 = vld [vmem:[%s8493_s9 + $0xb78] sm:$0xff] }
 0x476   : > { %v8016_v33 = vclamps-f32 %v1111_v26, 448.0  ;;  %v5981_v35 = vsel %vm11588_vm7, %v5979_v28, %v5977_v31  ;;  %v5986_v36 = vand.u32 2147483647, %v7992_v29  ;;  %v5987_v37 = vmul.f32 0.0625, %v7992_v29  ;;  %v591_v31 = vld [vmem:[%s8493_s9 + $0xbb8] sm:$0xff] }
 0x477   : > { %vm5989_vm8 = vweird.f32 %v7992_v29  ;;  %v5983_v38 = vpack.c.b16 %v5981_v35, %v5972_v27  ;;  %v5991_v39 = vshrl.u32 %v7992_v29, 24  ;;  %v5995_v40 = vand.u32 2147483647, %v8000_v30 }
 0x478   : > { %v5996_v41 = vmul.f32 0.0625, %v8000_v30  ;;  %v5988_v42 = vcvt.f32.f8e4m3b11 %v5987_v37  ;;  %vm11600_vm9 = vcmp.le.f32.partialorder %v5986_v36, 0.0009765625  ;;  %vm5998_vm10 = vweird.f32 %v8000_v30 }
 0x479   : > { %v6000_v44 = vshrl.u32 %v8000_v30, 24  ;;  %v5984_v46 = vpack.c.b8 %v5983_v38, %v5982_v24  ;;  %v5992_v47 = vand.u32 128, %v5991_v39  ;;  %vm11605_vm11 = vcmp.le.f32.partialorder %v5995_v40, 0.0009765625 }
 0x47a   : > { %v5997_v48 = vcvt.f32.f8e4m3b11 %v5996_v41  ;;  %v5990_v50 = vsel %vm5989_vm8, 127, %v5988_v42  ;;  %v6004_v52 = vand.u32 2147483647, %v8008_v32  ;;  %v6005_v53 = vmul.f32 0.0625, %v8008_v32  ;;  %v599_v42 = vld [vmem:[%s8493_s9 + $0xbf8] sm:$0xff] }
 0x47b   : > { %v6001_v51 = vand.u32 128, %v6000_v44  ;;  %7478 = vst [vmem:[%s8554_s27 + $0x2e0] sm:$0xff] %v5984_v46  ;;  %vm6007_vm12 = vweird.f32 %v8008_v32  ;;  %v6009_v55 = vshrl.u32 %v8008_v32, 24  ;;  %v1096_v57 = vmul.f32 %v8502_v3, %v582_v45 }
 0x47c   : > { %v5999_v54 = vsel %vm5998_vm10, 127, %v5997_v48  ;;  %v5994_v58 = vsel %vm11600_vm9, %v5992_v47, %v5990_v50  ;;  %v6006_v60 = vcvt.f32.f8e4m3b11 %v6005_v53  ;;  %v6013_v61 = vand.u32 2147483647, %v8016_v33 }
 0x47d   : > { %v6003_v59 = vsel %vm11605_vm11, %v6001_v51, %v5999_v54  ;;  %v6010_v63 = vand.u32 128, %v6009_v55  ;;  %vm11617_vm13 = vcmp.le.f32.partialorder %v6004_v52, 0.0009765625  ;;  %v6014_v1 = vmul.f32 0.0625, %v8016_v33 }
 0x47e   : > { %v6018_v2 = vshrl.u32 %v8016_v33, 24  ;;  %v6008_v4 = vsel %vm6007_vm12, 127, %v6006_v60  ;;  %vm6016_vm14 = vweird.f32 %v8016_v33  ;;  %vm11621_vm15 = vcmp.le.f32.partialorder %v6013_v61, 0.0009765625 }
 0x47f   : > { %v1104_v6 = vmul.f32 %v8502_v3, %v590_v56  ;;  %v6015_v9 = vcvt.f32.f8e4m3b11 %v6014_v1  ;;  %v6022_v11 = vpack.c.b16 %v6003_v59, %v5994_v58  ;;  %v1112_v12 = vmul.f32 %v8502_v3, %v598_v62 }
 0x480   : > { %v6019_v10 = vand.u32 128, %v6018_v2  ;;  %v6012_v13 = vsel %vm11617_vm13, %v6010_v63, %v6008_v4  ;;  %v7993_v14 = vclamps-f32 %v1088_v34, 448.0  ;;  %v8001_v15 = vclamps-f32 %v1096_v57, 448.0 }
 0x481   : > { %v8009_v16 = vclamps-f32 %v1104_v6, 448.0  ;;  %v6017_v17 = vsel %vm6016_vm14, 127, %v6015_v9  ;;  %v8017_v18 = vclamps-f32 %v1112_v12, 448.0  ;;  %v1089_v19 = vmul.f32 %v8502_v3, %v575_v7 }
 0x482   : > { %v1097_v20 = vmul.f32 %v8502_v3, %v583_v8  ;;  %v6021_v21 = vsel %vm11621_vm15, %v6019_v10, %v6017_v17  ;;  %v6026_v22 = vand.u32 2147483647, %v7993_v14  ;;  %v6027_v23 = vmul.f32 0.0625, %v7993_v14  ;;  %v600_v10 = vld [vmem:[%s8493_s9 + $0xc00] sm:$0xff] }
 0x483   : > { %vm6029_vm0 = vweird.f32 %v7993_v14  ;;  %v6023_v24 = vpack.c.b16 %v6021_v21, %v6012_v13  ;;  %v6031_v25 = vshrl.u32 %v7993_v14, 24  ;;  %v6035_v26 = vand.u32 2147483647, %v8001_v15 }
 0x484   : > { %v6036_v27 = vmul.f32 0.0625, %v8001_v15  ;;  %v6028_v28 = vcvt.f32.f8e4m3b11 %v6027_v23  ;;  %vm11635_vm1 = vcmp.le.f32.partialorder %v6026_v22, 0.0009765625  ;;  %vm6038_vm2 = vweird.f32 %v8001_v15 }
 0x485   : > { %v6040_v30 = vshrl.u32 %v8001_v15, 24  ;;  %v6024_v32 = vpack.c.b8 %v6023_v24, %v6022_v11  ;;  %v6032_v33 = vand.u32 128, %v6031_v25  ;;  %vm11640_vm3 = vcmp.le.f32.partialorder %v6035_v26, 0.0009765625  ;;  %v608_v26 = vld [vmem:[%s8493_s9 + $0xc40] sm:$0xff] }
 0x486   : > { %v6037_v34 = vcvt.f32.f8e4m3b11 %v6036_v27  ;;  %v6030_v36 = vsel %vm6029_vm0, 127, %v6028_v28  ;;  %v6044_v38 = vand.u32 2147483647, %v8009_v16  ;;  %v6045_v39 = vmul.f32 0.0625, %v8009_v16  ;;  %v616_v27 = vld [vmem:[%s8493_s9 + $0xc80] sm:$0xff] }
 0x487   : > { %v6041_v37 = vand.u32 128, %v6040_v30  ;;  %7479 = vst [vmem:[%s8554_s27 + $0x2e8] sm:$0xff] %v6024_v32  ;;  %vm6047_vm4 = vweird.f32 %v8009_v16  ;;  %v6049_v41 = vshrl.u32 %v8009_v16, 24  ;;  %v1105_v43 = vmul.f32 %v8502_v3, %v591_v31  ;;  %v624_v32 = vld [vmem:[%s8493_s9 + $0xcc0] sm:$0xff] }
 0x488   : > { %v6039_v40 = vsel %vm6038_vm2, 127, %v6037_v34  ;;  %v6034_v44 = vsel %vm11635_vm1, %v6032_v33, %v6030_v36  ;;  %v6046_v46 = vcvt.f32.f8e4m3b11 %v6045_v39  ;;  %v6053_v47 = vand.u32 2147483647, %v8017_v18  ;;  %v601_v36 = vld [vmem:[%s8493_s9 + $0xc08] sm:$0xff] }
 0x489   : > { %v6043_v45 = vsel %vm11640_vm3, %v6041_v37, %v6039_v40  ;;  %v6050_v48 = vand.u32 128, %v6049_v41  ;;  %vm11651_vm5 = vcmp.le.f32.partialorder %v6044_v38, 0.0009765625  ;;  %v6054_v50 = vmul.f32 0.0625, %v8017_v18 }
 0x48a   : > { %v6058_v51 = vshrl.u32 %v8017_v18, 24  ;;  %v6048_v52 = vsel %vm6047_vm4, 127, %v6046_v46  ;;  %vm6056_vm6 = vweird.f32 %v8017_v18  ;;  %vm11655_vm7 = vcmp.le.f32.partialorder %v6053_v47, 0.0009765625 }
 0x48b   : > { %v1113_v54 = vmul.f32 %v8502_v3, %v599_v42  ;;  %v6055_v55 = vcvt.f32.f8e4m3b11 %v6054_v50  ;;  %v6062_v57 = vpack.c.b16 %v6043_v45, %v6034_v44  ;;  %v7994_v58 = vclamps-f32 %v1089_v19, 448.0 }
 0x48c   : > { %v6059_v56 = vand.u32 128, %v6058_v51  ;;  %v6052_v59 = vsel %vm11651_vm5, %v6050_v48, %v6048_v52  ;;  %v8002_v60 = vclamps-f32 %v1097_v20, 448.0  ;;  %v8010_v61 = vclamps-f32 %v1105_v43, 448.0 }
 0x48d   : > { %v8018_v62 = vclamps-f32 %v1113_v54, 448.0  ;;  %v6057_v63 = vsel %vm6056_vm6, 127, %v6055_v55  ;;  %v6066_v0 = vand.u32 2147483647, %v7994_v58  ;;  %v6067_v1 = vmul.f32 0.0625, %v7994_v58 }
 0x48e   : > { %vm6069_vm8 = vweird.f32 %v7994_v58  ;;  %v6061_v2 = vsel %vm11655_vm7, %v6059_v56, %v6057_v63  ;;  %v6071_v4 = vshrl.u32 %v7994_v58, 24  ;;  %v6075_v5 = vand.u32 2147483647, %v8002_v60 }
 0x48f   : > { %v6076_v6 = vmul.f32 0.0625, %v8002_v60  ;;  %v6063_v7 = vpack.c.b16 %v6061_v2, %v6052_v59  ;;  %v6068_v8 = vcvt.f32.f8e4m3b11 %v6067_v1  ;;  %vm11664_vm9 = vcmp.le.f32.partialorder %v6066_v0, 0.0009765625  ;;  %v609_v59 = vld [vmem:[%s8493_s9 + $0xc48] sm:$0xff] }
 0x490   : > { %vm6078_vm10 = vweird.f32 %v8002_v60  ;;  %v6072_v11 = vand.u32 128, %v6071_v4  ;;  %v6080_v13 = vshrl.u32 %v8002_v60, 24  ;;  %vm11669_vm11 = vcmp.le.f32.partialorder %v6075_v5, 0.0009765625 }
 0x491   : > { %v6077_v12 = vcvt.f32.f8e4m3b11 %v6076_v6  ;;  %v6064_v15 = vpack.c.b8 %v6063_v7, %v6062_v57  ;;  %v6070_v16 = vsel %vm6069_vm8, 127, %v6068_v8  ;;  %v6084_v17 = vand.u32 2147483647, %v8010_v61 }
 0x492   : > { %v6085_v18 = vmul.f32 0.0625, %v8010_v61  ;;  %v6081_v20 = vand.u32 128, %v6080_v13  ;;  %vm6087_vm12 = vweird.f32 %v8010_v61  ;;  %v1114_v21 = vmul.f32 %v8502_v3, %v600_v10  ;;  %v625_v13 = vld [vmem:[%s8493_s9 + $0xcc8] sm:$0xff] }
 0x493   : > { %v6079_v19 = vsel %vm6078_vm10, 127, %v6077_v12  ;;  %7480 = vst [vmem:[%s8554_s27 + $0x2f0] sm:$0xff] %v6064_v15  ;;  %v6074_v22 = vsel %vm11664_vm9, %v6072_v11, %v6070_v16  ;;  %v6089_v24 = vshrl.u32 %v8010_v61, 24  ;;  %v6093_v25 = vand.u32 2147483647, %v8018_v62  ;;  %v617_v12 = vld [vmem:[%s8493_s9 + $0xc88] sm:$0xff] }
 0x494   : > { %v6086_v23 = vcvt.f32.f8e4m3b11 %v6085_v18  ;;  %v6083_v28 = vsel %vm11669_vm11, %v6081_v20, %v6079_v19  ;;  %vm11681_vm13 = vcmp.le.f32.partialorder %v6084_v17, 0.0009765625  ;;  %v6094_v30 = vmul.f32 0.0625, %v8018_v62 }
 0x495   : > { %v6098_v31 = vshrl.u32 %v8018_v62, 24  ;;  %v6090_v34 = vand.u32 128, %v6089_v24  ;;  %vm6096_vm14 = vweird.f32 %v8018_v62  ;;  %vm11686_vm15 = vcmp.le.f32.partialorder %v6093_v25, 0.0009765625 }
 0x496   : > { %v6088_v33 = vsel %vm6087_vm12, 127, %v6086_v23  ;;  %v6095_v37 = vcvt.f32.f8e4m3b11 %v6094_v30  ;;  %v1122_v39 = vmul.f32 %v8502_v3, %v608_v26  ;;  %v1130_v40 = vmul.f32 %v8502_v3, %v616_v27 }
 0x497   : > { %v6099_v38 = vand.u32 128, %v6098_v31  ;;  %v6092_v41 = vsel %vm11681_vm13, %v6090_v34, %v6088_v33  ;;  %v6102_v42 = vpack.c.b16 %v6083_v28, %v6074_v22  ;;  %v1138_v43 = vmul.f32 %v8502_v3, %v624_v32 }
 0x498   : > { %v8019_v44 = vclamps-f32 %v1114_v21, 448.0  ;;  %v6097_v45 = vsel %vm6096_vm14, 127, %v6095_v37  ;;  %v8027_v46 = vclamps-f32 %v1122_v39, 448.0  ;;  %v8035_v47 = vclamps-f32 %v1130_v40, 448.0  ;;  %v602_v21 = vld [vmem:[%s8493_s9 + $0xc10] sm:$0xff] }
 0x499   : > { %v1115_v48 = vmul.f32 %v8502_v3, %v601_v36  ;;  %v6101_v49 = vsel %vm11686_vm15, %v6099_v38, %v6097_v45  ;;  %v8043_v50 = vclamps-f32 %v1138_v43, 448.0  ;;  %v1123_v7 = vmul.f32 %v8502_v3, %v609_v59 }
 0x49a   : > { %v6106_v51 = vand.u32 2147483647, %v8019_v44  ;;  %v6107_v52 = vmul.f32 0.0625, %v8019_v44  ;;  %v6103_v53 = vpack.c.b16 %v6101_v49, %v6092_v41  ;;  %vm6109_vm0 = vweird.f32 %v8019_v44 }
 0x49b   : > { %v6111_v54 = vshrl.u32 %v8019_v44, 24  ;;  %v6115_v55 = vand.u32 2147483647, %v8027_v46  ;;  %v6116_v58 = vmul.f32 0.0625, %v8027_v46  ;;  %vm6118_vm2 = vweird.f32 %v8027_v46  ;;  %v610_v44 = vld [vmem:[%s8493_s9 + $0xc50] sm:$0xff] }
 0x49c   : > { %v6108_v56 = vcvt.f32.f8e4m3b11 %v6107_v52  ;;  %vm11699_vm1 = vcmp.le.f32.partialorder %v6106_v51, 0.0009765625  ;;  %v6104_v60 = vpack.c.b8 %v6103_v53, %v6102_v42  ;;  %v6120_v62 = vshrl.u32 %v8027_v46, 24 }
 0x49d   : > { %v6112_v61 = vand.u32 128, %v6111_v54  ;;  %vm11704_vm3 = vcmp.le.f32.partialorder %v6115_v55, 0.0009765625  ;;  %v6117_v1 = vcvt.f32.f8e4m3b11 %v6116_v58  ;;  %v6124_v2 = vand.u32 2147483647, %v8035_v47  ;;  %v618_v55 = vld [vmem:[%s8493_s9 + $0xc90] sm:$0xff] }
 0x49e   : > { %v6110_v0 = vsel %vm6109_vm0, 127, %v6108_v56  ;;  %v6125_v4 = vmul.f32 0.0625, %v8035_v47  ;;  %7481 = vst [vmem:[%s8554_s27 + $0x2f8] sm:$0xff] %v6104_v60  ;;  %v6121_v5 = vand.u32 128, %v6120_v62  ;;  %vm6127_vm4 = vweird.f32 %v8035_v47 }
 0x49f   : > { %v6129_v6 = vshrl.u32 %v8035_v47, 24  ;;  %v6114_v8 = vsel %vm11699_vm1, %v6112_v61, %v6110_v0  ;;  %v6119_v9 = vsel %vm6118_vm2, 127, %v6117_v1  ;;  %v6133_v11 = vand.u32 2147483647, %v8043_v50  ;;  %v626_v61 = vld [vmem:[%s8493_s9 + $0xcd0] sm:$0xff] }
 0x4a0   : > { %v6126_v10 = vcvt.f32.f8e4m3b11 %v6125_v4  ;;  %v6123_v14 = vsel %vm11704_vm3, %v6121_v5, %v6119_v9  ;;  %vm11717_vm5 = vcmp.le.f32.partialorder %v6124_v2, 0.0009765625  ;;  %v6134_v17 = vmul.f32 0.0625, %v8043_v50 }
 0x4a1   : > { %v6130_v15 = vand.u32 128, %v6129_v6  ;;  %vm6136_vm6 = vweird.f32 %v8043_v50  ;;  %v6138_v19 = vshrl.u32 %v8043_v50, 24  ;;  %vm11721_vm7 = vcmp.le.f32.partialorder %v6133_v11, 0.0009765625  ;;  %v603_v6 = vld [vmem:[%s8493_s9 + $0xc18] sm:$0xff] }
 0x4a2   : > { %v6128_v18 = vsel %vm6127_vm4, 127, %v6126_v10  ;;  %v6135_v22 = vcvt.f32.f8e4m3b11 %v6134_v17  ;;  %v6142_v23 = vpack.c.b16 %v6123_v14, %v6114_v8  ;;  %v1131_v24 = vmul.f32 %v8502_v3, %v617_v12 }
 0x4a3   : > { %v1139_v25 = vmul.f32 %v8502_v3, %v625_v13  ;;  %v6132_v26 = vsel %vm11717_vm5, %v6130_v15, %v6128_v18  ;;  %v6139_v27 = vand.u32 128, %v6138_v19  ;;  %v8020_v28 = vclamps-f32 %v1115_v48, 448.0 }
 0x4a4   : > { %v8028_v29 = vclamps-f32 %v1123_v7, 448.0  ;;  %v6137_v30 = vsel %vm6136_vm6, 127, %v6135_v22  ;;  %v8036_v31 = vclamps-f32 %v1131_v24, 448.0  ;;  %v1116_v33 = vmul.f32 %v8502_v3, %v602_v21  ;;  %v611_v7 = vld [vmem:[%s8493_s9 + $0xc58] sm:$0xff] }
 0x4a5   : > { %v8044_v32 = vclamps-f32 %v1139_v25, 448.0  ;;  %v6141_v34 = vsel %vm11721_vm7, %v6139_v27, %v6137_v30  ;;  %v6146_v35 = vand.u32 2147483647, %v8020_v28  ;;  %v6147_v36 = vmul.f32 0.0625, %v8020_v28  ;;  %v619_v30 = vld [vmem:[%s8493_s9 + $0xc98] sm:$0xff] }
 0x4a6   : > { %vm6149_vm8 = vweird.f32 %v8020_v28  ;;  %v6143_v37 = vpack.c.b16 %v6141_v34, %v6132_v26  ;;  %v6151_v38 = vshrl.u32 %v8020_v28, 24  ;;  %v6155_v39 = vand.u32 2147483647, %v8028_v29 }
 0x4a7   : > { %v6156_v40 = vmul.f32 0.0625, %v8028_v29  ;;  %v6148_v41 = vcvt.f32.f8e4m3b11 %v6147_v36  ;;  %vm11733_vm9 = vcmp.le.f32.partialorder %v6146_v35, 0.0009765625  ;;  %vm6158_vm10 = vweird.f32 %v8028_v29 }
 0x4a8   : > { %v6160_v43 = vshrl.u32 %v8028_v29, 24  ;;  %v6144_v45 = vpack.c.b8 %v6143_v37, %v6142_v23  ;;  %v6152_v46 = vand.u32 128, %v6151_v38  ;;  %vm11738_vm11 = vcmp.le.f32.partialorder %v6155_v39, 0.0009765625 }
 0x4a9   : > { %v6157_v47 = vcvt.f32.f8e4m3b11 %v6156_v40  ;;  %v6150_v49 = vsel %vm6149_vm8, 127, %v6148_v41  ;;  %v6164_v51 = vand.u32 2147483647, %v8036_v31  ;;  %v6165_v52 = vmul.f32 0.0625, %v8036_v31  ;;  %v627_v41 = vld [vmem:[%s8493_s9 + $0xcd8] sm:$0xff] }
 0x4aa   : > { %v6161_v50 = vand.u32 128, %v6160_v43  ;;  %7482 = vst [vmem:[%s8554_s27 + $0x300] sm:$0xff] %v6144_v45  ;;  %vm6167_vm12 = vweird.f32 %v8036_v31  ;;  %v6169_v54 = vshrl.u32 %v8036_v31, 24  ;;  %v1124_v56 = vmul.f32 %v8502_v3, %v610_v44 }
 0x4ab   : > { %v6159_v53 = vsel %vm6158_vm10, 127, %v6157_v47  ;;  %v6154_v57 = vsel %vm11733_vm9, %v6152_v46, %v6150_v49  ;;  %v6166_v59 = vcvt.f32.f8e4m3b11 %v6165_v52  ;;  %v6173_v60 = vand.u32 2147483647, %v8044_v32 }
 0x4ac   : > { %v6163_v58 = vsel %vm11738_vm11, %v6161_v50, %v6159_v53  ;;  %v6170_v62 = vand.u32 128, %v6169_v54  ;;  %vm11750_vm13 = vcmp.le.f32.partialorder %v6164_v51, 0.0009765625  ;;  %v6174_v0 = vmul.f32 0.0625, %v8044_v32 }
 0x4ad   : > { %v6178_v1 = vshrl.u32 %v8044_v32, 24  ;;  %v6168_v2 = vsel %vm6167_vm12, 127, %v6166_v59  ;;  %vm6176_vm14 = vweird.f32 %v8044_v32  ;;  %vm11754_vm15 = vcmp.le.f32.partialorder %v6173_v60, 0.0009765625 }
 0x4ae   : > { %v1132_v5 = vmul.f32 %v8502_v3, %v618_v55  ;;  %v6175_v8 = vcvt.f32.f8e4m3b11 %v6174_v0  ;;  %v6182_v10 = vpack.c.b16 %v6163_v58, %v6154_v57  ;;  %v1140_v11 = vmul.f32 %v8502_v3, %v626_v61 }
 0x4af   : > { %v6179_v9 = vand.u32 128, %v6178_v1  ;;  %v6172_v12 = vsel %vm11750_vm13, %v6170_v62, %v6168_v2  ;;  %v8021_v13 = vclamps-f32 %v1116_v33, 448.0  ;;  %v8029_v14 = vclamps-f32 %v1124_v56, 448.0 }
 0x4b0   : > { %v8037_v15 = vclamps-f32 %v1132_v5, 448.0  ;;  %v6177_v16 = vsel %vm6176_vm14, 127, %v6175_v8  ;;  %v8045_v17 = vclamps-f32 %v1140_v11, 448.0  ;;  %v1117_v18 = vmul.f32 %v8502_v3, %v603_v6 }
 0x4b1   : > { %v1125_v19 = vmul.f32 %v8502_v3, %v611_v7  ;;  %v6181_v20 = vsel %vm11754_vm15, %v6179_v9, %v6177_v16  ;;  %v6186_v21 = vand.u32 2147483647, %v8021_v13  ;;  %v6187_v22 = vmul.f32 0.0625, %v8021_v13  ;;  %v604_v9 = vld [vmem:[%s8493_s9 + $0xc20] sm:$0xff] }
 0x4b2   : > { %vm6189_vm0 = vweird.f32 %v8021_v13  ;;  %v6183_v23 = vpack.c.b16 %v6181_v20, %v6172_v12  ;;  %v6191_v24 = vshrl.u32 %v8021_v13, 24  ;;  %v6195_v25 = vand.u32 2147483647, %v8029_v14 }
 0x4b3   : > { %v6196_v26 = vmul.f32 0.0625, %v8029_v14  ;;  %v6188_v27 = vcvt.f32.f8e4m3b11 %v6187_v22  ;;  %vm11768_vm1 = vcmp.le.f32.partialorder %v6186_v21, 0.0009765625  ;;  %vm6198_vm2 = vweird.f32 %v8029_v14 }
 0x4b4   : > { %v6200_v29 = vshrl.u32 %v8029_v14, 24  ;;  %v6184_v31 = vpack.c.b8 %v6183_v23, %v6182_v10  ;;  %v6192_v32 = vand.u32 128, %v6191_v24  ;;  %vm11773_vm3 = vcmp.le.f32.partialorder %v6195_v25, 0.0009765625  ;;  %v612_v25 = vld [vmem:[%s8493_s9 + $0xc60] sm:$0xff] }
 0x4b5   : > { %v6197_v33 = vcvt.f32.f8e4m3b11 %v6196_v26  ;;  %v6190_v35 = vsel %vm6189_vm0, 127, %v6188_v27  ;;  %v6204_v37 = vand.u32 2147483647, %v8037_v15  ;;  %v6205_v38 = vmul.f32 0.0625, %v8037_v15  ;;  %v620_v26 = vld [vmem:[%s8493_s9 + $0xca0] sm:$0xff] }
 0x4b6   : > { %v6201_v36 = vand.u32 128, %v6200_v29  ;;  %7483 = vst [vmem:[%s8554_s27 + $0x308] sm:$0xff] %v6184_v31  ;;  %vm6207_vm4 = vweird.f32 %v8037_v15  ;;  %v6209_v40 = vshrl.u32 %v8037_v15, 24  ;;  %v1133_v42 = vmul.f32 %v8502_v3, %v619_v30  ;;  %v628_v31 = vld [vmem:[%s8493_s9 + $0xce0] sm:$0xff] }
 0x4b7   : > { %v6199_v39 = vsel %vm6198_vm2, 127, %v6197_v33  ;;  %v6194_v43 = vsel %vm11768_vm1, %v6192_v32, %v6190_v35  ;;  %v6206_v45 = vcvt.f32.f8e4m3b11 %v6205_v38  ;;  %v6213_v46 = vand.u32 2147483647, %v8045_v17  ;;  %v605_v35 = vld [vmem:[%s8493_s9 + $0xc28] sm:$0xff] }
 0x4b8   : > { %v6203_v44 = vsel %vm11773_vm3, %v6201_v36, %v6199_v39  ;;  %v6210_v47 = vand.u32 128, %v6209_v40  ;;  %vm11784_vm5 = vcmp.le.f32.partialorder %v6204_v37, 0.0009765625  ;;  %v6214_v49 = vmul.f32 0.0625, %v8045_v17 }
 0x4b9   : > { %v6218_v50 = vshrl.u32 %v8045_v17, 24  ;;  %v6208_v51 = vsel %vm6207_vm4, 127, %v6206_v45  ;;  %vm6216_vm6 = vweird.f32 %v8045_v17  ;;  %vm11788_vm7 = vcmp.le.f32.partialorder %v6213_v46, 0.0009765625 }
 0x4ba   : > { %v1141_v53 = vmul.f32 %v8502_v3, %v627_v41  ;;  %v6215_v54 = vcvt.f32.f8e4m3b11 %v6214_v49  ;;  %v6222_v56 = vpack.c.b16 %v6203_v44, %v6194_v43  ;;  %v8022_v57 = vclamps-f32 %v1117_v18, 448.0 }
 0x4bb   : > { %v6219_v55 = vand.u32 128, %v6218_v50  ;;  %v6212_v58 = vsel %vm11784_vm5, %v6210_v47, %v6208_v51  ;;  %v8030_v59 = vclamps-f32 %v1125_v19, 448.0  ;;  %v8038_v60 = vclamps-f32 %v1133_v42, 448.0 }
 0x4bc   : > { %v8046_v61 = vclamps-f32 %v1141_v53, 448.0  ;;  %v6217_v62 = vsel %vm6216_vm6, 127, %v6215_v54  ;;  %v6226_v63 = vand.u32 2147483647, %v8022_v57  ;;  %v6227_v0 = vmul.f32 0.0625, %v8022_v57 }
 0x4bd   : > { %vm6229_vm8 = vweird.f32 %v8022_v57  ;;  %v6221_v1 = vsel %vm11788_vm7, %v6219_v55, %v6217_v62  ;;  %v6231_v2 = vshrl.u32 %v8022_v57, 24  ;;  %v6235_v4 = vand.u32 2147483647, %v8030_v59 }
 0x4be   : > { %v6236_v5 = vmul.f32 0.0625, %v8030_v59  ;;  %v6223_v6 = vpack.c.b16 %v6221_v1, %v6212_v58  ;;  %v6228_v7 = vcvt.f32.f8e4m3b11 %v6227_v0  ;;  %vm11797_vm9 = vcmp.le.f32.partialorder %v6226_v63, 0.0009765625  ;;  %v613_v58 = vld [vmem:[%s8493_s9 + $0xc68] sm:$0xff] }
 0x4bf   : > { %vm6238_vm10 = vweird.f32 %v8030_v59  ;;  %v6232_v10 = vand.u32 128, %v6231_v2  ;;  %v6240_v12 = vshrl.u32 %v8030_v59, 24  ;;  %vm11802_vm11 = vcmp.le.f32.partialorder %v6235_v4, 0.0009765625 }
 0x4c0   : > { %v6237_v11 = vcvt.f32.f8e4m3b11 %v6236_v5  ;;  %v6224_v14 = vpack.c.b8 %v6223_v6, %v6222_v56  ;;  %v6230_v15 = vsel %vm6229_vm8, 127, %v6228_v7  ;;  %v6244_v16 = vand.u32 2147483647, %v8038_v60 }
 0x4c1   : > { %v6245_v17 = vmul.f32 0.0625, %v8038_v60  ;;  %v6241_v19 = vand.u32 128, %v6240_v12  ;;  %vm6247_vm12 = vweird.f32 %v8038_v60  ;;  %v1118_v20 = vmul.f32 %v8502_v3, %v604_v9  ;;  %v629_v12 = vld [vmem:[%s8493_s9 + $0xce8] sm:$0xff] }
 0x4c2   : > { %v6239_v18 = vsel %vm6238_vm10, 127, %v6237_v11  ;;  %7484 = vst [vmem:[%s8554_s27 + $0x310] sm:$0xff] %v6224_v14  ;;  %v6234_v21 = vsel %vm11797_vm9, %v6232_v10, %v6230_v15  ;;  %v6249_v23 = vshrl.u32 %v8038_v60, 24  ;;  %v6253_v24 = vand.u32 2147483647, %v8046_v61  ;;  %v621_v11 = vld [vmem:[%s8493_s9 + $0xca8] sm:$0xff] }
 0x4c3   : > { %v6246_v22 = vcvt.f32.f8e4m3b11 %v6245_v17  ;;  %v6243_v27 = vsel %vm11802_vm11, %v6241_v19, %v6239_v18  ;;  %vm11814_vm13 = vcmp.le.f32.partialorder %v6244_v16, 0.0009765625  ;;  %v6254_v29 = vmul.f32 0.0625, %v8046_v61 }
 0x4c4   : > { %v6258_v30 = vshrl.u32 %v8046_v61, 24  ;;  %v6250_v33 = vand.u32 128, %v6249_v23  ;;  %vm6256_vm14 = vweird.f32 %v8046_v61  ;;  %vm11819_vm15 = vcmp.le.f32.partialorder %v6253_v24, 0.0009765625 }
 0x4c5   : > { %v6248_v32 = vsel %vm6247_vm12, 127, %v6246_v22  ;;  %v6255_v36 = vcvt.f32.f8e4m3b11 %v6254_v29  ;;  %v1126_v38 = vmul.f32 %v8502_v3, %v612_v25  ;;  %v1134_v39 = vmul.f32 %v8502_v3, %v620_v26 }
 0x4c6   : > { %v6259_v37 = vand.u32 128, %v6258_v30  ;;  %v6252_v40 = vsel %vm11814_vm13, %v6250_v33, %v6248_v32  ;;  %v6262_v41 = vpack.c.b16 %v6243_v27, %v6234_v21  ;;  %v1142_v42 = vmul.f32 %v8502_v3, %v628_v31 }
 0x4c7   : > { %v8023_v43 = vclamps-f32 %v1118_v20, 448.0  ;;  %v6257_v44 = vsel %vm6256_vm14, 127, %v6255_v36  ;;  %v8031_v45 = vclamps-f32 %v1126_v38, 448.0  ;;  %v8039_v46 = vclamps-f32 %v1134_v39, 448.0  ;;  %v606_v20 = vld [vmem:[%s8493_s9 + $0xc30] sm:$0xff] }
 0x4c8   : > { %v1119_v47 = vmul.f32 %v8502_v3, %v605_v35  ;;  %v6261_v48 = vsel %vm11819_vm15, %v6259_v37, %v6257_v44  ;;  %v8047_v49 = vclamps-f32 %v1142_v42, 448.0  ;;  %v1127_v6 = vmul.f32 %v8502_v3, %v613_v58 }
 0x4c9   : > { %v6266_v50 = vand.u32 2147483647, %v8023_v43  ;;  %v6267_v51 = vmul.f32 0.0625, %v8023_v43  ;;  %v6263_v52 = vpack.c.b16 %v6261_v48, %v6252_v40  ;;  %vm6269_vm0 = vweird.f32 %v8023_v43 }
 0x4ca   : > { %v6271_v53 = vshrl.u32 %v8023_v43, 24  ;;  %v6275_v54 = vand.u32 2147483647, %v8031_v45  ;;  %v6276_v57 = vmul.f32 0.0625, %v8031_v45  ;;  %vm6278_vm2 = vweird.f32 %v8031_v45  ;;  %v614_v43 = vld [vmem:[%s8493_s9 + $0xc70] sm:$0xff] }
 0x4cb   : > { %v6268_v55 = vcvt.f32.f8e4m3b11 %v6267_v51  ;;  %vm11832_vm1 = vcmp.le.f32.partialorder %v6266_v50, 0.0009765625  ;;  %v6264_v59 = vpack.c.b8 %v6263_v52, %v6262_v41  ;;  %v6280_v61 = vshrl.u32 %v8031_v45, 24 }
 0x4cc   : > { %v6272_v60 = vand.u32 128, %v6271_v53  ;;  %vm11837_vm3 = vcmp.le.f32.partialorder %v6275_v54, 0.0009765625  ;;  %v6277_v0 = vcvt.f32.f8e4m3b11 %v6276_v57  ;;  %v6284_v1 = vand.u32 2147483647, %v8039_v46  ;;  %v622_v54 = vld [vmem:[%s8493_s9 + $0xcb0] sm:$0xff] }
 0x4cd   : > { %v6270_v63 = vsel %vm6269_vm0, 127, %v6268_v55  ;;  %v6285_v2 = vmul.f32 0.0625, %v8039_v46  ;;  %7485 = vst [vmem:[%s8554_s27 + $0x318] sm:$0xff] %v6264_v59  ;;  %v6281_v4 = vand.u32 128, %v6280_v61  ;;  %vm6287_vm4 = vweird.f32 %v8039_v46 }
 0x4ce   : > { %v6289_v5 = vshrl.u32 %v8039_v46, 24  ;;  %v6274_v7 = vsel %vm11832_vm1, %v6272_v60, %v6270_v63  ;;  %v6279_v8 = vsel %vm6278_vm2, 127, %v6277_v0  ;;  %v6293_v10 = vand.u32 2147483647, %v8047_v49  ;;  %v630_v60 = vld [vmem:[%s8493_s9 + $0xcf0] sm:$0xff] }
 0x4cf   : > { %v6286_v9 = vcvt.f32.f8e4m3b11 %v6285_v2  ;;  %v6283_v13 = vsel %vm11837_vm3, %v6281_v4, %v6279_v8  ;;  %vm11850_vm5 = vcmp.le.f32.partialorder %v6284_v1, 0.0009765625  ;;  %v6294_v16 = vmul.f32 0.0625, %v8047_v49 }
 0x4d0   : > { %v6290_v14 = vand.u32 128, %v6289_v5  ;;  %vm6296_vm6 = vweird.f32 %v8047_v49  ;;  %v6298_v18 = vshrl.u32 %v8047_v49, 24  ;;  %vm11854_vm7 = vcmp.le.f32.partialorder %v6293_v10, 0.0009765625  ;;  %v607_v5 = vld [vmem:[%s8493_s9 + $0xc38] sm:$0xff] }
 0x4d1   : > { %v6288_v17 = vsel %vm6287_vm4, 127, %v6286_v9  ;;  %v6295_v21 = vcvt.f32.f8e4m3b11 %v6294_v16  ;;  %v6302_v22 = vpack.c.b16 %v6283_v13, %v6274_v7  ;;  %v1135_v23 = vmul.f32 %v8502_v3, %v621_v11 }
 0x4d2   : > { %v1143_v24 = vmul.f32 %v8502_v3, %v629_v12  ;;  %v6292_v25 = vsel %vm11850_vm5, %v6290_v14, %v6288_v17  ;;  %v6299_v26 = vand.u32 128, %v6298_v18  ;;  %v8024_v27 = vclamps-f32 %v1119_v47, 448.0 }
 0x4d3   : > { %v8032_v28 = vclamps-f32 %v1127_v6, 448.0  ;;  %v6297_v29 = vsel %vm6296_vm6, 127, %v6295_v21  ;;  %v8040_v30 = vclamps-f32 %v1135_v23, 448.0  ;;  %v1120_v32 = vmul.f32 %v8502_v3, %v606_v20  ;;  %v615_v6 = vld [vmem:[%s8493_s9 + $0xc78] sm:$0xff] }
 0x4d4   : > { %v8048_v31 = vclamps-f32 %v1143_v24, 448.0  ;;  %v6301_v33 = vsel %vm11854_vm7, %v6299_v26, %v6297_v29  ;;  %v6306_v34 = vand.u32 2147483647, %v8024_v27  ;;  %v6307_v35 = vmul.f32 0.0625, %v8024_v27  ;;  %v623_v29 = vld [vmem:[%s8493_s9 + $0xcb8] sm:$0xff] }
 0x4d5   : > { %vm6309_vm8 = vweird.f32 %v8024_v27  ;;  %v6303_v36 = vpack.c.b16 %v6301_v33, %v6292_v25  ;;  %v6311_v37 = vshrl.u32 %v8024_v27, 24  ;;  %v6315_v38 = vand.u32 2147483647, %v8032_v28 }
 0x4d6   : > { %v6316_v39 = vmul.f32 0.0625, %v8032_v28  ;;  %v6308_v40 = vcvt.f32.f8e4m3b11 %v6307_v35  ;;  %vm11866_vm9 = vcmp.le.f32.partialorder %v6306_v34, 0.0009765625  ;;  %vm6318_vm10 = vweird.f32 %v8032_v28 }
 0x4d7   : > { %v6320_v42 = vshrl.u32 %v8032_v28, 24  ;;  %v6304_v44 = vpack.c.b8 %v6303_v36, %v6302_v22  ;;  %v6312_v45 = vand.u32 128, %v6311_v37  ;;  %vm11871_vm11 = vcmp.le.f32.partialorder %v6315_v38, 0.0009765625 }
 0x4d8   : > { %v6317_v46 = vcvt.f32.f8e4m3b11 %v6316_v39  ;;  %v6310_v48 = vsel %vm6309_vm8, 127, %v6308_v40  ;;  %v6324_v50 = vand.u32 2147483647, %v8040_v30  ;;  %v6325_v51 = vmul.f32 0.0625, %v8040_v30  ;;  %v631_v40 = vld [vmem:[%s8493_s9 + $0xcf8] sm:$0xff] }
 0x4d9   : > { %v6321_v49 = vand.u32 128, %v6320_v42  ;;  %7486 = vst [vmem:[%s8554_s27 + $0x320] sm:$0xff] %v6304_v44  ;;  %vm6327_vm12 = vweird.f32 %v8040_v30  ;;  %v6329_v53 = vshrl.u32 %v8040_v30, 24  ;;  %v1128_v55 = vmul.f32 %v8502_v3, %v614_v43 }
 0x4da   : > { %v6319_v52 = vsel %vm6318_vm10, 127, %v6317_v46  ;;  %v6314_v56 = vsel %vm11866_vm9, %v6312_v45, %v6310_v48  ;;  %v6326_v58 = vcvt.f32.f8e4m3b11 %v6325_v51  ;;  %v6333_v59 = vand.u32 2147483647, %v8048_v31 }
 0x4db   : > { %v6323_v57 = vsel %vm11871_vm11, %v6321_v49, %v6319_v52  ;;  %v6330_v61 = vand.u32 128, %v6329_v53  ;;  %vm11883_vm13 = vcmp.le.f32.partialorder %v6324_v50, 0.0009765625  ;;  %v6334_v63 = vmul.f32 0.0625, %v8048_v31 }
 0x4dc   : > { %v6338_v0 = vshrl.u32 %v8048_v31, 24  ;;  %v6328_v1 = vsel %vm6327_vm12, 127, %v6326_v58  ;;  %vm6336_vm14 = vweird.f32 %v8048_v31  ;;  %vm11887_vm15 = vcmp.le.f32.partialorder %v6333_v59, 0.0009765625 }
 0x4dd   : > { %v1136_v4 = vmul.f32 %v8502_v3, %v622_v54  ;;  %v6335_v7 = vcvt.f32.f8e4m3b11 %v6334_v63  ;;  %v6342_v9 = vpack.c.b16 %v6323_v57, %v6314_v56  ;;  %v1144_v10 = vmul.f32 %v8502_v3, %v630_v60 }
 0x4de   : > { %v6339_v8 = vand.u32 128, %v6338_v0  ;;  %v6332_v11 = vsel %vm11883_vm13, %v6330_v61, %v6328_v1  ;;  %v8025_v12 = vclamps-f32 %v1120_v32, 448.0  ;;  %v8033_v13 = vclamps-f32 %v1128_v55, 448.0 }
 0x4df   : > { %v8041_v14 = vclamps-f32 %v1136_v4, 448.0  ;;  %v6337_v15 = vsel %vm6336_vm14, 127, %v6335_v7  ;;  %v8049_v16 = vclamps-f32 %v1144_v10, 448.0  ;;  %v1121_v17 = vmul.f32 %v8502_v3, %v607_v5 }
 0x4e0   : > { %v1129_v18 = vmul.f32 %v8502_v3, %v615_v6  ;;  %v6341_v19 = vsel %vm11887_vm15, %v6339_v8, %v6337_v15  ;;  %v6346_v20 = vand.u32 2147483647, %v8025_v12  ;;  %v6347_v21 = vmul.f32 0.0625, %v8025_v12  ;;  %v632_v8 = vld [vmem:[%s8493_s9 + $0xd00] sm:$0xff] }
 0x4e1   : > { %vm6349_vm0 = vweird.f32 %v8025_v12  ;;  %v6343_v22 = vpack.c.b16 %v6341_v19, %v6332_v11  ;;  %v6351_v23 = vshrl.u32 %v8025_v12, 24  ;;  %v6355_v24 = vand.u32 2147483647, %v8033_v13 }
 0x4e2   : > { %v6356_v25 = vmul.f32 0.0625, %v8033_v13  ;;  %v6348_v26 = vcvt.f32.f8e4m3b11 %v6347_v21  ;;  %vm11901_vm1 = vcmp.le.f32.partialorder %v6346_v20, 0.0009765625  ;;  %vm6358_vm2 = vweird.f32 %v8033_v13 }
 0x4e3   : > { %v6360_v28 = vshrl.u32 %v8033_v13, 24  ;;  %v6344_v30 = vpack.c.b8 %v6343_v22, %v6342_v9  ;;  %v6352_v31 = vand.u32 128, %v6351_v23  ;;  %vm11906_vm3 = vcmp.le.f32.partialorder %v6355_v24, 0.0009765625  ;;  %v640_v24 = vld [vmem:[%s8493_s9 + $0xd40] sm:$0xff] }
 0x4e4   : > { %v6357_v32 = vcvt.f32.f8e4m3b11 %v6356_v25  ;;  %v6350_v34 = vsel %vm6349_vm0, 127, %v6348_v26  ;;  %v6364_v36 = vand.u32 2147483647, %v8041_v14  ;;  %v6365_v37 = vmul.f32 0.0625, %v8041_v14  ;;  %v648_v25 = vld [vmem:[%s8493_s9 + $0xd80] sm:$0xff] }
 0x4e5   : > { %v6361_v35 = vand.u32 128, %v6360_v28  ;;  %7487 = vst [vmem:[%s8554_s27 + $0x328] sm:$0xff] %v6344_v30  ;;  %vm6367_vm4 = vweird.f32 %v8041_v14  ;;  %v6369_v39 = vshrl.u32 %v8041_v14, 24  ;;  %v1137_v41 = vmul.f32 %v8502_v3, %v623_v29  ;;  %v656_v30 = vld [vmem:[%s8493_s9 + $0xdc0] sm:$0xff] }
 0x4e6   : > { %v6359_v38 = vsel %vm6358_vm2, 127, %v6357_v32  ;;  %v6354_v42 = vsel %vm11901_vm1, %v6352_v31, %v6350_v34  ;;  %v6366_v44 = vcvt.f32.f8e4m3b11 %v6365_v37  ;;  %v6373_v45 = vand.u32 2147483647, %v8049_v16  ;;  %v633_v34 = vld [vmem:[%s8493_s9 + $0xd08] sm:$0xff] }
 0x4e7   : > { %v6363_v43 = vsel %vm11906_vm3, %v6361_v35, %v6359_v38  ;;  %v6370_v46 = vand.u32 128, %v6369_v39  ;;  %vm11917_vm5 = vcmp.le.f32.partialorder %v6364_v36, 0.0009765625  ;;  %v6374_v48 = vmul.f32 0.0625, %v8049_v16 }
 0x4e8   : > { %v6378_v49 = vshrl.u32 %v8049_v16, 24  ;;  %v6368_v50 = vsel %vm6367_vm4, 127, %v6366_v44  ;;  %vm6376_vm6 = vweird.f32 %v8049_v16  ;;  %vm11921_vm7 = vcmp.le.f32.partialorder %v6373_v45, 0.0009765625 }
 0x4e9   : > { %v1145_v52 = vmul.f32 %v8502_v3, %v631_v40  ;;  %v6375_v53 = vcvt.f32.f8e4m3b11 %v6374_v48  ;;  %v6382_v55 = vpack.c.b16 %v6363_v43, %v6354_v42  ;;  %v8026_v56 = vclamps-f32 %v1121_v17, 448.0 }
 0x4ea   : > { %v6379_v54 = vand.u32 128, %v6378_v49  ;;  %v6372_v57 = vsel %vm11917_vm5, %v6370_v46, %v6368_v50  ;;  %v8034_v58 = vclamps-f32 %v1129_v18, 448.0  ;;  %v8042_v59 = vclamps-f32 %v1137_v41, 448.0 }
 0x4eb   : > { %v8050_v60 = vclamps-f32 %v1145_v52, 448.0  ;;  %v6377_v61 = vsel %vm6376_vm6, 127, %v6375_v53  ;;  %v6386_v62 = vand.u32 2147483647, %v8026_v56  ;;  %v6387_v63 = vmul.f32 0.0625, %v8026_v56 }
 0x4ec   : > { %vm6389_vm8 = vweird.f32 %v8026_v56  ;;  %v6381_v0 = vsel %vm11921_vm7, %v6379_v54, %v6377_v61  ;;  %v6391_v1 = vshrl.u32 %v8026_v56, 24  ;;  %v6395_v2 = vand.u32 2147483647, %v8034_v58 }
 0x4ed   : > { %v6396_v4 = vmul.f32 0.0625, %v8034_v58  ;;  %v6383_v5 = vpack.c.b16 %v6381_v0, %v6372_v57  ;;  %v6388_v6 = vcvt.f32.f8e4m3b11 %v6387_v63  ;;  %vm11930_vm9 = vcmp.le.f32.partialorder %v6386_v62, 0.0009765625  ;;  %v641_v57 = vld [vmem:[%s8493_s9 + $0xd48] sm:$0xff] }
 0x4ee   : > { %vm6398_vm10 = vweird.f32 %v8034_v58  ;;  %v6392_v9 = vand.u32 128, %v6391_v1  ;;  %v6400_v11 = vshrl.u32 %v8034_v58, 24  ;;  %vm11935_vm11 = vcmp.le.f32.partialorder %v6395_v2, 0.0009765625 }
 0x4ef   : > { %v6397_v10 = vcvt.f32.f8e4m3b11 %v6396_v4  ;;  %v6384_v13 = vpack.c.b8 %v6383_v5, %v6382_v55  ;;  %v6390_v14 = vsel %vm6389_vm8, 127, %v6388_v6  ;;  %v6404_v15 = vand.u32 2147483647, %v8042_v59 }
 0x4f0   : > { %v6405_v16 = vmul.f32 0.0625, %v8042_v59  ;;  %v6401_v18 = vand.u32 128, %v6400_v11  ;;  %vm6407_vm12 = vweird.f32 %v8042_v59  ;;  %v1146_v19 = vmul.f32 %v8502_v3, %v632_v8  ;;  %v657_v11 = vld [vmem:[%s8493_s9 + $0xdc8] sm:$0xff] }
 0x4f1   : > { %v6399_v17 = vsel %vm6398_vm10, 127, %v6397_v10  ;;  %7488 = vst [vmem:[%s8554_s27 + $0x330] sm:$0xff] %v6384_v13  ;;  %v6394_v20 = vsel %vm11930_vm9, %v6392_v9, %v6390_v14  ;;  %v6409_v22 = vshrl.u32 %v8042_v59, 24  ;;  %v6413_v23 = vand.u32 2147483647, %v8050_v60  ;;  %v649_v10 = vld [vmem:[%s8493_s9 + $0xd88] sm:$0xff] }
 0x4f2   : > { %v6406_v21 = vcvt.f32.f8e4m3b11 %v6405_v16  ;;  %v6403_v26 = vsel %vm11935_vm11, %v6401_v18, %v6399_v17  ;;  %vm11947_vm13 = vcmp.le.f32.partialorder %v6404_v15, 0.0009765625  ;;  %v6414_v28 = vmul.f32 0.0625, %v8050_v60 }
 0x4f3   : > { %v6418_v29 = vshrl.u32 %v8050_v60, 24  ;;  %v6410_v32 = vand.u32 128, %v6409_v22  ;;  %vm6416_vm14 = vweird.f32 %v8050_v60  ;;  %vm11952_vm15 = vcmp.le.f32.partialorder %v6413_v23, 0.0009765625 }
 0x4f4   : > { %v6408_v31 = vsel %vm6407_vm12, 127, %v6406_v21  ;;  %v6415_v35 = vcvt.f32.f8e4m3b11 %v6414_v28  ;;  %v1154_v37 = vmul.f32 %v8502_v3, %v640_v24  ;;  %v1162_v38 = vmul.f32 %v8502_v3, %v648_v25 }
 0x4f5   : > { %v6419_v36 = vand.u32 128, %v6418_v29  ;;  %v6412_v39 = vsel %vm11947_vm13, %v6410_v32, %v6408_v31  ;;  %v6422_v40 = vpack.c.b16 %v6403_v26, %v6394_v20  ;;  %v1170_v41 = vmul.f32 %v8502_v3, %v656_v30 }
 0x4f6   : > { %v8051_v42 = vclamps-f32 %v1146_v19, 448.0  ;;  %v6417_v43 = vsel %vm6416_vm14, 127, %v6415_v35  ;;  %v8059_v44 = vclamps-f32 %v1154_v37, 448.0  ;;  %v8067_v45 = vclamps-f32 %v1162_v38, 448.0  ;;  %v634_v19 = vld [vmem:[%s8493_s9 + $0xd10] sm:$0xff] }
 0x4f7   : > { %v1147_v46 = vmul.f32 %v8502_v3, %v633_v34  ;;  %v6421_v47 = vsel %vm11952_vm15, %v6419_v36, %v6417_v43  ;;  %v8075_v48 = vclamps-f32 %v1170_v41, 448.0  ;;  %v1155_v5 = vmul.f32 %v8502_v3, %v641_v57 }
 0x4f8   : > { %v6426_v49 = vand.u32 2147483647, %v8051_v42  ;;  %v6427_v50 = vmul.f32 0.0625, %v8051_v42  ;;  %v6423_v51 = vpack.c.b16 %v6421_v47, %v6412_v39  ;;  %vm6429_vm0 = vweird.f32 %v8051_v42 }
 0x4f9   : > { %v6431_v52 = vshrl.u32 %v8051_v42, 24  ;;  %v6435_v53 = vand.u32 2147483647, %v8059_v44  ;;  %v6436_v56 = vmul.f32 0.0625, %v8059_v44  ;;  %vm6438_vm2 = vweird.f32 %v8059_v44  ;;  %v642_v42 = vld [vmem:[%s8493_s9 + $0xd50] sm:$0xff] }
 0x4fa   : > { %v6428_v54 = vcvt.f32.f8e4m3b11 %v6427_v50  ;;  %vm11965_vm1 = vcmp.le.f32.partialorder %v6426_v49, 0.0009765625  ;;  %v6424_v58 = vpack.c.b8 %v6423_v51, %v6422_v40  ;;  %v6440_v60 = vshrl.u32 %v8059_v44, 24 }
 0x4fb   : > { %v6432_v59 = vand.u32 128, %v6431_v52  ;;  %vm11970_vm3 = vcmp.le.f32.partialorder %v6435_v53, 0.0009765625  ;;  %v6437_v63 = vcvt.f32.f8e4m3b11 %v6436_v56  ;;  %v6444_v0 = vand.u32 2147483647, %v8067_v45  ;;  %v650_v53 = vld [vmem:[%s8493_s9 + $0xd90] sm:$0xff] }
 0x4fc   : > { %v6430_v62 = vsel %vm6429_vm0, 127, %v6428_v54  ;;  %v6445_v1 = vmul.f32 0.0625, %v8067_v45  ;;  %7489 = vst [vmem:[%s8554_s27 + $0x338] sm:$0xff] %v6424_v58  ;;  %v6441_v2 = vand.u32 128, %v6440_v60  ;;  %vm6447_vm4 = vweird.f32 %v8067_v45 }
 0x4fd   : > { %v6449_v4 = vshrl.u32 %v8067_v45, 24  ;;  %v6434_v6 = vsel %vm11965_vm1, %v6432_v59, %v6430_v62  ;;  %v6439_v7 = vsel %vm6438_vm2, 127, %v6437_v63  ;;  %v6453_v9 = vand.u32 2147483647, %v8075_v48  ;;  %v658_v59 = vld [vmem:[%s8493_s9 + $0xdd0] sm:$0xff] }
 0x4fe   : > { %v6446_v8 = vcvt.f32.f8e4m3b11 %v6445_v1  ;;  %v6443_v12 = vsel %vm11970_vm3, %v6441_v2, %v6439_v7  ;;  %vm11983_vm5 = vcmp.le.f32.partialorder %v6444_v0, 0.0009765625  ;;  %v6454_v15 = vmul.f32 0.0625, %v8075_v48 }
 0x4ff   : > { %v6450_v13 = vand.u32 128, %v6449_v4  ;;  %vm6456_vm6 = vweird.f32 %v8075_v48  ;;  %v6458_v17 = vshrl.u32 %v8075_v48, 24  ;;  %vm11987_vm7 = vcmp.le.f32.partialorder %v6453_v9, 0.0009765625  ;;  %v635_v4 = vld [vmem:[%s8493_s9 + $0xd18] sm:$0xff] }
 0x500   : > { %v6448_v16 = vsel %vm6447_vm4, 127, %v6446_v8  ;;  %v6455_v20 = vcvt.f32.f8e4m3b11 %v6454_v15  ;;  %v6462_v21 = vpack.c.b16 %v6443_v12, %v6434_v6  ;;  %v1163_v22 = vmul.f32 %v8502_v3, %v649_v10 }
 0x501   : > { %v1171_v23 = vmul.f32 %v8502_v3, %v657_v11  ;;  %v6452_v24 = vsel %vm11983_vm5, %v6450_v13, %v6448_v16  ;;  %v6459_v25 = vand.u32 128, %v6458_v17  ;;  %v8052_v26 = vclamps-f32 %v1147_v46, 448.0 }
 0x502   : > { %v8060_v27 = vclamps-f32 %v1155_v5, 448.0  ;;  %v6457_v28 = vsel %vm6456_vm6, 127, %v6455_v20  ;;  %v8068_v29 = vclamps-f32 %v1163_v22, 448.0  ;;  %v1148_v31 = vmul.f32 %v8502_v3, %v634_v19  ;;  %v643_v5 = vld [vmem:[%s8493_s9 + $0xd58] sm:$0xff] }
 0x503   : > { %v8076_v30 = vclamps-f32 %v1171_v23, 448.0  ;;  %v6461_v32 = vsel %vm11987_vm7, %v6459_v25, %v6457_v28  ;;  %v6466_v33 = vand.u32 2147483647, %v8052_v26  ;;  %v6467_v34 = vmul.f32 0.0625, %v8052_v26  ;;  %v651_v28 = vld [vmem:[%s8493_s9 + $0xd98] sm:$0xff] }
 0x504   : > { %vm6469_vm8 = vweird.f32 %v8052_v26  ;;  %v6463_v35 = vpack.c.b16 %v6461_v32, %v6452_v24  ;;  %v6471_v36 = vshrl.u32 %v8052_v26, 24  ;;  %v6475_v37 = vand.u32 2147483647, %v8060_v27 }
 0x505   : > { %v6476_v38 = vmul.f32 0.0625, %v8060_v27  ;;  %v6468_v39 = vcvt.f32.f8e4m3b11 %v6467_v34  ;;  %vm11999_vm9 = vcmp.le.f32.partialorder %v6466_v33, 0.0009765625  ;;  %vm6478_vm10 = vweird.f32 %v8060_v27 }
 0x506   : > { %v6480_v41 = vshrl.u32 %v8060_v27, 24  ;;  %v6464_v43 = vpack.c.b8 %v6463_v35, %v6462_v21  ;;  %v6472_v44 = vand.u32 128, %v6471_v36  ;;  %vm12004_vm11 = vcmp.le.f32.partialorder %v6475_v37, 0.0009765625 }
 0x507   : > { %v6477_v45 = vcvt.f32.f8e4m3b11 %v6476_v38  ;;  %v6470_v47 = vsel %vm6469_vm8, 127, %v6468_v39  ;;  %v6484_v49 = vand.u32 2147483647, %v8068_v29  ;;  %v6485_v50 = vmul.f32 0.0625, %v8068_v29  ;;  %v659_v39 = vld [vmem:[%s8493_s9 + $0xdd8] sm:$0xff] }
 0x508   : > { %v6481_v48 = vand.u32 128, %v6480_v41  ;;  %7490 = vst [vmem:[%s8554_s27 + $0x340] sm:$0xff] %v6464_v43  ;;  %vm6487_vm12 = vweird.f32 %v8068_v29  ;;  %v6489_v52 = vshrl.u32 %v8068_v29, 24  ;;  %v1156_v54 = vmul.f32 %v8502_v3, %v642_v42 }
 0x509   : > { %v6479_v51 = vsel %vm6478_vm10, 127, %v6477_v45  ;;  %v6474_v55 = vsel %vm11999_vm9, %v6472_v44, %v6470_v47  ;;  %v6486_v57 = vcvt.f32.f8e4m3b11 %v6485_v50  ;;  %v6493_v58 = vand.u32 2147483647, %v8076_v30 }
 0x50a   : > { %v6483_v56 = vsel %vm12004_vm11, %v6481_v48, %v6479_v51  ;;  %v6490_v60 = vand.u32 128, %v6489_v52  ;;  %vm12016_vm13 = vcmp.le.f32.partialorder %v6484_v49, 0.0009765625  ;;  %v6494_v62 = vmul.f32 0.0625, %v8076_v30 }
 0x50b   : > { %v6498_v63 = vshrl.u32 %v8076_v30, 24  ;;  %v6488_v0 = vsel %vm6487_vm12, 127, %v6486_v57  ;;  %vm6496_vm14 = vweird.f32 %v8076_v30  ;;  %vm12020_vm15 = vcmp.le.f32.partialorder %v6493_v58, 0.0009765625 }
 0x50c   : > { %v1164_v2 = vmul.f32 %v8502_v3, %v650_v53  ;;  %v6495_v6 = vcvt.f32.f8e4m3b11 %v6494_v62  ;;  %v6502_v8 = vpack.c.b16 %v6483_v56, %v6474_v55  ;;  %v1172_v9 = vmul.f32 %v8502_v3, %v658_v59 }
 0x50d   : > { %v6499_v7 = vand.u32 128, %v6498_v63  ;;  %v6492_v10 = vsel %vm12016_vm13, %v6490_v60, %v6488_v0  ;;  %v8053_v11 = vclamps-f32 %v1148_v31, 448.0  ;;  %v8061_v12 = vclamps-f32 %v1156_v54, 448.0 }
 0x50e   : > { %v8069_v13 = vclamps-f32 %v1164_v2, 448.0  ;;  %v6497_v14 = vsel %vm6496_vm14, 127, %v6495_v6  ;;  %v8077_v15 = vclamps-f32 %v1172_v9, 448.0  ;;  %v1149_v16 = vmul.f32 %v8502_v3, %v635_v4 }
 0x50f   : > { %v1157_v17 = vmul.f32 %v8502_v3, %v643_v5  ;;  %v6501_v18 = vsel %vm12020_vm15, %v6499_v7, %v6497_v14  ;;  %v6506_v19 = vand.u32 2147483647, %v8053_v11  ;;  %v6507_v20 = vmul.f32 0.0625, %v8053_v11  ;;  %v636_v7 = vld [vmem:[%s8493_s9 + $0xd20] sm:$0xff] }
 0x510   : > { %vm6509_vm0 = vweird.f32 %v8053_v11  ;;  %v6503_v21 = vpack.c.b16 %v6501_v18, %v6492_v10  ;;  %v6511_v22 = vshrl.u32 %v8053_v11, 24  ;;  %v6515_v23 = vand.u32 2147483647, %v8061_v12 }
 0x511   : > { %v6516_v24 = vmul.f32 0.0625, %v8061_v12  ;;  %v6508_v25 = vcvt.f32.f8e4m3b11 %v6507_v20  ;;  %vm12034_vm1 = vcmp.le.f32.partialorder %v6506_v19, 0.0009765625  ;;  %vm6518_vm2 = vweird.f32 %v8061_v12 }
 0x512   : > { %v6520_v27 = vshrl.u32 %v8061_v12, 24  ;;  %v6504_v29 = vpack.c.b8 %v6503_v21, %v6502_v8  ;;  %v6512_v30 = vand.u32 128, %v6511_v22  ;;  %vm12039_vm3 = vcmp.le.f32.partialorder %v6515_v23, 0.0009765625  ;;  %v644_v23 = vld [vmem:[%s8493_s9 + $0xd60] sm:$0xff] }
 0x513   : > { %v6517_v31 = vcvt.f32.f8e4m3b11 %v6516_v24  ;;  %v6510_v33 = vsel %vm6509_vm0, 127, %v6508_v25  ;;  %v6524_v35 = vand.u32 2147483647, %v8069_v13  ;;  %v6525_v36 = vmul.f32 0.0625, %v8069_v13  ;;  %v652_v24 = vld [vmem:[%s8493_s9 + $0xda0] sm:$0xff] }
 0x514   : > { %v6521_v34 = vand.u32 128, %v6520_v27  ;;  %7491 = vst [vmem:[%s8554_s27 + $0x348] sm:$0xff] %v6504_v29  ;;  %vm6527_vm4 = vweird.f32 %v8069_v13  ;;  %v6529_v38 = vshrl.u32 %v8069_v13, 24  ;;  %v1165_v40 = vmul.f32 %v8502_v3, %v651_v28  ;;  %v660_v29 = vld [vmem:[%s8493_s9 + $0xde0] sm:$0xff] }
 0x515   : > { %v6519_v37 = vsel %vm6518_vm2, 127, %v6517_v31  ;;  %v6514_v41 = vsel %vm12034_vm1, %v6512_v30, %v6510_v33  ;;  %v6526_v43 = vcvt.f32.f8e4m3b11 %v6525_v36  ;;  %v6533_v44 = vand.u32 2147483647, %v8077_v15  ;;  %v637_v33 = vld [vmem:[%s8493_s9 + $0xd28] sm:$0xff] }
 0x516   : > { %v6523_v42 = vsel %vm12039_vm3, %v6521_v34, %v6519_v37  ;;  %v6530_v45 = vand.u32 128, %v6529_v38  ;;  %vm12050_vm5 = vcmp.le.f32.partialorder %v6524_v35, 0.0009765625  ;;  %v6534_v47 = vmul.f32 0.0625, %v8077_v15 }
 0x517   : > { %v6538_v48 = vshrl.u32 %v8077_v15, 24  ;;  %v6528_v49 = vsel %vm6527_vm4, 127, %v6526_v43  ;;  %vm6536_vm6 = vweird.f32 %v8077_v15  ;;  %vm12054_vm7 = vcmp.le.f32.partialorder %v6533_v44, 0.0009765625 }
 0x518   : > { %v1173_v51 = vmul.f32 %v8502_v3, %v659_v39  ;;  %v6535_v52 = vcvt.f32.f8e4m3b11 %v6534_v47  ;;  %v6542_v54 = vpack.c.b16 %v6523_v42, %v6514_v41  ;;  %v8054_v55 = vclamps-f32 %v1149_v16, 448.0 }
 0x519   : > { %v6539_v53 = vand.u32 128, %v6538_v48  ;;  %v6532_v56 = vsel %vm12050_vm5, %v6530_v45, %v6528_v49  ;;  %v8062_v57 = vclamps-f32 %v1157_v17, 448.0  ;;  %v8070_v58 = vclamps-f32 %v1165_v40, 448.0 }
 0x51a   : > { %v8078_v59 = vclamps-f32 %v1173_v51, 448.0  ;;  %v6537_v60 = vsel %vm6536_vm6, 127, %v6535_v52  ;;  %v6546_v61 = vand.u32 2147483647, %v8054_v55  ;;  %v6547_v62 = vmul.f32 0.0625, %v8054_v55 }
 0x51b   : > { %vm6549_vm8 = vweird.f32 %v8054_v55  ;;  %v6541_v63 = vsel %vm12054_vm7, %v6539_v53, %v6537_v60  ;;  %v6551_v0 = vshrl.u32 %v8054_v55, 24  ;;  %v6555_v1 = vand.u32 2147483647, %v8062_v57 }
 0x51c   : > { %v6556_v2 = vmul.f32 0.0625, %v8062_v57  ;;  %v6543_v4 = vpack.c.b16 %v6541_v63, %v6532_v56  ;;  %v6548_v5 = vcvt.f32.f8e4m3b11 %v6547_v62  ;;  %vm12063_vm9 = vcmp.le.f32.partialorder %v6546_v61, 0.0009765625  ;;  %v645_v56 = vld [vmem:[%s8493_s9 + $0xd68] sm:$0xff] }
 0x51d   : > { %vm6558_vm10 = vweird.f32 %v8062_v57  ;;  %v6552_v8 = vand.u32 128, %v6551_v0  ;;  %v6560_v10 = vshrl.u32 %v8062_v57, 24  ;;  %vm12068_vm11 = vcmp.le.f32.partialorder %v6555_v1, 0.0009765625 }
 0x51e   : > { %v6557_v9 = vcvt.f32.f8e4m3b11 %v6556_v2  ;;  %v6544_v12 = vpack.c.b8 %v6543_v4, %v6542_v54  ;;  %v6550_v13 = vsel %vm6549_vm8, 127, %v6548_v5  ;;  %v6564_v14 = vand.u32 2147483647, %v8070_v58 }
 0x51f   : > { %v6565_v15 = vmul.f32 0.0625, %v8070_v58  ;;  %v6561_v17 = vand.u32 128, %v6560_v10  ;;  %vm6567_vm12 = vweird.f32 %v8070_v58  ;;  %v1150_v18 = vmul.f32 %v8502_v3, %v636_v7  ;;  %v661_v10 = vld [vmem:[%s8493_s9 + $0xde8] sm:$0xff] }
 0x520   : > { %v6559_v16 = vsel %vm6558_vm10, 127, %v6557_v9  ;;  %7492 = vst [vmem:[%s8554_s27 + $0x350] sm:$0xff] %v6544_v12  ;;  %v6554_v19 = vsel %vm12063_vm9, %v6552_v8, %v6550_v13  ;;  %v6569_v21 = vshrl.u32 %v8070_v58, 24  ;;  %v6573_v22 = vand.u32 2147483647, %v8078_v59  ;;  %v653_v9 = vld [vmem:[%s8493_s9 + $0xda8] sm:$0xff] }
 0x521   : > { %v6566_v20 = vcvt.f32.f8e4m3b11 %v6565_v15  ;;  %v6563_v25 = vsel %vm12068_vm11, %v6561_v17, %v6559_v16  ;;  %vm12080_vm13 = vcmp.le.f32.partialorder %v6564_v14, 0.0009765625  ;;  %v6574_v27 = vmul.f32 0.0625, %v8078_v59 }
 0x522   : > { %v6578_v28 = vshrl.u32 %v8078_v59, 24  ;;  %v6570_v31 = vand.u32 128, %v6569_v21  ;;  %vm6576_vm14 = vweird.f32 %v8078_v59  ;;  %vm12085_vm15 = vcmp.le.f32.partialorder %v6573_v22, 0.0009765625 }
 0x523   : > { %v6568_v30 = vsel %vm6567_vm12, 127, %v6566_v20  ;;  %v6575_v34 = vcvt.f32.f8e4m3b11 %v6574_v27  ;;  %v1158_v36 = vmul.f32 %v8502_v3, %v644_v23  ;;  %v1166_v37 = vmul.f32 %v8502_v3, %v652_v24 }
 0x524   : > { %v6579_v35 = vand.u32 128, %v6578_v28  ;;  %v6572_v38 = vsel %vm12080_vm13, %v6570_v31, %v6568_v30  ;;  %v6582_v39 = vpack.c.b16 %v6563_v25, %v6554_v19  ;;  %v1174_v40 = vmul.f32 %v8502_v3, %v660_v29 }
 0x525   : > { %v8055_v41 = vclamps-f32 %v1150_v18, 448.0  ;;  %v6577_v42 = vsel %vm6576_vm14, 127, %v6575_v34  ;;  %v8063_v43 = vclamps-f32 %v1158_v36, 448.0  ;;  %v8071_v44 = vclamps-f32 %v1166_v37, 448.0  ;;  %v638_v18 = vld [vmem:[%s8493_s9 + $0xd30] sm:$0xff] }
 0x526   : > { %v1151_v45 = vmul.f32 %v8502_v3, %v637_v33  ;;  %v6581_v46 = vsel %vm12085_vm15, %v6579_v35, %v6577_v42  ;;  %v8079_v47 = vclamps-f32 %v1174_v40, 448.0  ;;  %v1159_v4 = vmul.f32 %v8502_v3, %v645_v56 }
 0x527   : > { %v6586_v48 = vand.u32 2147483647, %v8055_v41  ;;  %v6587_v49 = vmul.f32 0.0625, %v8055_v41  ;;  %v6583_v50 = vpack.c.b16 %v6581_v46, %v6572_v38  ;;  %vm6589_vm0 = vweird.f32 %v8055_v41 }
 0x528   : > { %v6591_v51 = vshrl.u32 %v8055_v41, 24  ;;  %v6595_v52 = vand.u32 2147483647, %v8063_v43  ;;  %v6596_v55 = vmul.f32 0.0625, %v8063_v43  ;;  %vm6598_vm2 = vweird.f32 %v8063_v43  ;;  %v646_v41 = vld [vmem:[%s8493_s9 + $0xd70] sm:$0xff] }
 0x529   : > { %v6588_v53 = vcvt.f32.f8e4m3b11 %v6587_v49  ;;  %vm12098_vm1 = vcmp.le.f32.partialorder %v6586_v48, 0.0009765625  ;;  %v6584_v57 = vpack.c.b8 %v6583_v50, %v6582_v39  ;;  %v6600_v59 = vshrl.u32 %v8063_v43, 24 }
 0x52a   : > { %v6592_v58 = vand.u32 128, %v6591_v51  ;;  %vm12103_vm3 = vcmp.le.f32.partialorder %v6595_v52, 0.0009765625  ;;  %v6597_v62 = vcvt.f32.f8e4m3b11 %v6596_v55  ;;  %v6604_v63 = vand.u32 2147483647, %v8071_v44  ;;  %v654_v52 = vld [vmem:[%s8493_s9 + $0xdb0] sm:$0xff] }
 0x52b   : > { %v6590_v61 = vsel %vm6589_vm0, 127, %v6588_v53  ;;  %v6605_v0 = vmul.f32 0.0625, %v8071_v44  ;;  %7493 = vst [vmem:[%s8554_s27 + $0x358] sm:$0xff] %v6584_v57  ;;  %v6601_v1 = vand.u32 128, %v6600_v59  ;;  %vm6607_vm4 = vweird.f32 %v8071_v44 }
 0x52c   : > { %v6609_v2 = vshrl.u32 %v8071_v44, 24  ;;  %v6594_v5 = vsel %vm12098_vm1, %v6592_v58, %v6590_v61  ;;  %v6599_v6 = vsel %vm6598_vm2, 127, %v6597_v62  ;;  %v6613_v8 = vand.u32 2147483647, %v8079_v47  ;;  %v662_v58 = vld [vmem:[%s8493_s9 + $0xdf0] sm:$0xff] }
 0x52d   : > { %v6606_v7 = vcvt.f32.f8e4m3b11 %v6605_v0  ;;  %v6603_v11 = vsel %vm12103_vm3, %v6601_v1, %v6599_v6  ;;  %vm12116_vm5 = vcmp.le.f32.partialorder %v6604_v63, 0.0009765625  ;;  %v6614_v14 = vmul.f32 0.0625, %v8079_v47 }
 0x52e   : > { %v6610_v12 = vand.u32 128, %v6609_v2  ;;  %vm6616_vm6 = vweird.f32 %v8079_v47  ;;  %v6618_v16 = vshrl.u32 %v8079_v47, 24  ;;  %vm12120_vm7 = vcmp.le.f32.partialorder %v6613_v8, 0.0009765625  ;;  %v639_v2 = vld [vmem:[%s8493_s9 + $0xd38] sm:$0xff] }
 0x52f   : > { %v6608_v15 = vsel %vm6607_vm4, 127, %v6606_v7  ;;  %v6615_v19 = vcvt.f32.f8e4m3b11 %v6614_v14  ;;  %v6622_v20 = vpack.c.b16 %v6603_v11, %v6594_v5  ;;  %v1167_v21 = vmul.f32 %v8502_v3, %v653_v9 }
 0x530   : > { %v1175_v22 = vmul.f32 %v8502_v3, %v661_v10  ;;  %v6612_v23 = vsel %vm12116_vm5, %v6610_v12, %v6608_v15  ;;  %v6619_v24 = vand.u32 128, %v6618_v16  ;;  %v8056_v25 = vclamps-f32 %v1151_v45, 448.0 }
 0x531   : > { %v8064_v26 = vclamps-f32 %v1159_v4, 448.0  ;;  %v6617_v27 = vsel %vm6616_vm6, 127, %v6615_v19  ;;  %v8072_v28 = vclamps-f32 %v1167_v21, 448.0  ;;  %v1152_v30 = vmul.f32 %v8502_v3, %v638_v18  ;;  %v647_v4 = vld [vmem:[%s8493_s9 + $0xd78] sm:$0xff] }
 0x532   : > { %v8080_v29 = vclamps-f32 %v1175_v22, 448.0  ;;  %v6621_v31 = vsel %vm12120_vm7, %v6619_v24, %v6617_v27  ;;  %v6626_v32 = vand.u32 2147483647, %v8056_v25  ;;  %v6627_v33 = vmul.f32 0.0625, %v8056_v25  ;;  %v655_v27 = vld [vmem:[%s8493_s9 + $0xdb8] sm:$0xff] }
 0x533   : > { %vm6629_vm8 = vweird.f32 %v8056_v25  ;;  %v6623_v34 = vpack.c.b16 %v6621_v31, %v6612_v23  ;;  %v6631_v35 = vshrl.u32 %v8056_v25, 24  ;;  %v6635_v36 = vand.u32 2147483647, %v8064_v26 }
 0x534   : > { %v6636_v37 = vmul.f32 0.0625, %v8064_v26  ;;  %v6628_v38 = vcvt.f32.f8e4m3b11 %v6627_v33  ;;  %vm12132_vm9 = vcmp.le.f32.partialorder %v6626_v32, 0.0009765625  ;;  %vm6638_vm10 = vweird.f32 %v8064_v26 }
 0x535   : > { %v6640_v40 = vshrl.u32 %v8064_v26, 24  ;;  %v6624_v42 = vpack.c.b8 %v6623_v34, %v6622_v20  ;;  %v6632_v43 = vand.u32 128, %v6631_v35  ;;  %vm12137_vm11 = vcmp.le.f32.partialorder %v6635_v36, 0.0009765625 }
 0x536   : > { %v6637_v44 = vcvt.f32.f8e4m3b11 %v6636_v37  ;;  %v6630_v46 = vsel %vm6629_vm8, 127, %v6628_v38  ;;  %v6644_v48 = vand.u32 2147483647, %v8072_v28  ;;  %v6645_v49 = vmul.f32 0.0625, %v8072_v28  ;;  %v663_v38 = vld [vmem:[%s8493_s9 + $0xdf8] sm:$0xff] }
 0x537   : > { %v6641_v47 = vand.u32 128, %v6640_v40  ;;  %7494 = vst [vmem:[%s8554_s27 + $0x360] sm:$0xff] %v6624_v42  ;;  %vm6647_vm12 = vweird.f32 %v8072_v28  ;;  %v6649_v51 = vshrl.u32 %v8072_v28, 24  ;;  %v1160_v53 = vmul.f32 %v8502_v3, %v646_v41 }
 0x538   : > { %v6639_v50 = vsel %vm6638_vm10, 127, %v6637_v44  ;;  %v6634_v54 = vsel %vm12132_vm9, %v6632_v43, %v6630_v46  ;;  %v6646_v56 = vcvt.f32.f8e4m3b11 %v6645_v49  ;;  %v6653_v57 = vand.u32 2147483647, %v8080_v29 }
 0x539   : > { %v6643_v55 = vsel %vm12137_vm11, %v6641_v47, %v6639_v50  ;;  %v6650_v59 = vand.u32 128, %v6649_v51  ;;  %vm12149_vm13 = vcmp.le.f32.partialorder %v6644_v48, 0.0009765625  ;;  %v6654_v61 = vmul.f32 0.0625, %v8080_v29 }
 0x53a   : > { %v6658_v62 = vshrl.u32 %v8080_v29, 24  ;;  %v6648_v63 = vsel %vm6647_vm12, 127, %v6646_v56  ;;  %vm6656_vm14 = vweird.f32 %v8080_v29  ;;  %vm12153_vm15 = vcmp.le.f32.partialorder %v6653_v57, 0.0009765625 }
 0x53b   : > { %v1168_v1 = vmul.f32 %v8502_v3, %v654_v52  ;;  %v6655_v5 = vcvt.f32.f8e4m3b11 %v6654_v61  ;;  %v6662_v7 = vpack.c.b16 %v6643_v55, %v6634_v54  ;;  %v1176_v8 = vmul.f32 %v8502_v3, %v662_v58 }
 0x53c   : > { %v6659_v6 = vand.u32 128, %v6658_v62  ;;  %v6652_v9 = vsel %vm12149_vm13, %v6650_v59, %v6648_v63  ;;  %v8057_v10 = vclamps-f32 %v1152_v30, 448.0  ;;  %v8065_v11 = vclamps-f32 %v1160_v53, 448.0 }
 0x53d   : > { %v8073_v12 = vclamps-f32 %v1168_v1, 448.0  ;;  %v6657_v13 = vsel %vm6656_vm14, 127, %v6655_v5  ;;  %v8081_v14 = vclamps-f32 %v1176_v8, 448.0  ;;  %v1153_v15 = vmul.f32 %v8502_v3, %v639_v2 }
 0x53e   : > { %v1161_v16 = vmul.f32 %v8502_v3, %v647_v4  ;;  %v6661_v17 = vsel %vm12153_vm15, %v6659_v6, %v6657_v13  ;;  %v6666_v18 = vand.u32 2147483647, %v8057_v10  ;;  %v6667_v19 = vmul.f32 0.0625, %v8057_v10  ;;  %v664_v6 = vld [vmem:[%s8493_s9 + $0xe00] sm:$0xff] }
 0x53f   : > { %vm6669_vm0 = vweird.f32 %v8057_v10  ;;  %v6663_v20 = vpack.c.b16 %v6661_v17, %v6652_v9  ;;  %v6671_v21 = vshrl.u32 %v8057_v10, 24  ;;  %v6675_v22 = vand.u32 2147483647, %v8065_v11 }
 0x540   : > { %v6676_v23 = vmul.f32 0.0625, %v8065_v11  ;;  %v6668_v24 = vcvt.f32.f8e4m3b11 %v6667_v19  ;;  %vm12167_vm1 = vcmp.le.f32.partialorder %v6666_v18, 0.0009765625  ;;  %vm6678_vm2 = vweird.f32 %v8065_v11 }
 0x541   : > { %v6680_v26 = vshrl.u32 %v8065_v11, 24  ;;  %v6664_v28 = vpack.c.b8 %v6663_v20, %v6662_v7  ;;  %v6672_v29 = vand.u32 128, %v6671_v21  ;;  %vm12172_vm3 = vcmp.le.f32.partialorder %v6675_v22, 0.0009765625  ;;  %v672_v22 = vld [vmem:[%s8493_s9 + $0xe40] sm:$0xff] }
 0x542   : > { %v6677_v30 = vcvt.f32.f8e4m3b11 %v6676_v23  ;;  %v6670_v32 = vsel %vm6669_vm0, 127, %v6668_v24  ;;  %v6684_v34 = vand.u32 2147483647, %v8073_v12  ;;  %v6685_v35 = vmul.f32 0.0625, %v8073_v12  ;;  %v680_v23 = vld [vmem:[%s8493_s9 + $0xe80] sm:$0xff] }
 0x543   : > { %v6681_v33 = vand.u32 128, %v6680_v26  ;;  %7495 = vst [vmem:[%s8554_s27 + $0x368] sm:$0xff] %v6664_v28  ;;  %vm6687_vm4 = vweird.f32 %v8073_v12  ;;  %v6689_v37 = vshrl.u32 %v8073_v12, 24  ;;  %v1169_v39 = vmul.f32 %v8502_v3, %v655_v27  ;;  %v688_v28 = vld [vmem:[%s8493_s9 + $0xec0] sm:$0xff] }
 0x544   : > { %v6679_v36 = vsel %vm6678_vm2, 127, %v6677_v30  ;;  %v6674_v40 = vsel %vm12167_vm1, %v6672_v29, %v6670_v32  ;;  %v6686_v42 = vcvt.f32.f8e4m3b11 %v6685_v35  ;;  %v6693_v43 = vand.u32 2147483647, %v8081_v14  ;;  %v665_v32 = vld [vmem:[%s8493_s9 + $0xe08] sm:$0xff] }
 0x545   : > { %v6683_v41 = vsel %vm12172_vm3, %v6681_v33, %v6679_v36  ;;  %v6690_v44 = vand.u32 128, %v6689_v37  ;;  %vm12183_vm5 = vcmp.le.f32.partialorder %v6684_v34, 0.0009765625  ;;  %v6694_v46 = vmul.f32 0.0625, %v8081_v14 }
 0x546   : > { %v6698_v47 = vshrl.u32 %v8081_v14, 24  ;;  %v6688_v48 = vsel %vm6687_vm4, 127, %v6686_v42  ;;  %vm6696_vm6 = vweird.f32 %v8081_v14  ;;  %vm12187_vm7 = vcmp.le.f32.partialorder %v6693_v43, 0.0009765625 }
 0x547   : > { %v1177_v50 = vmul.f32 %v8502_v3, %v663_v38  ;;  %v6695_v51 = vcvt.f32.f8e4m3b11 %v6694_v46  ;;  %v6702_v53 = vpack.c.b16 %v6683_v41, %v6674_v40  ;;  %v8058_v54 = vclamps-f32 %v1153_v15, 448.0 }
 0x548   : > { %v6699_v52 = vand.u32 128, %v6698_v47  ;;  %v6692_v55 = vsel %vm12183_vm5, %v6690_v44, %v6688_v48  ;;  %v8066_v56 = vclamps-f32 %v1161_v16, 448.0  ;;  %v8074_v57 = vclamps-f32 %v1169_v39, 448.0 }
 0x549   : > { %v8082_v58 = vclamps-f32 %v1177_v50, 448.0  ;;  %v6697_v59 = vsel %vm6696_vm6, 127, %v6695_v51  ;;  %v6706_v60 = vand.u32 2147483647, %v8058_v54  ;;  %v6707_v61 = vmul.f32 0.0625, %v8058_v54 }
 0x54a   : > { %vm6709_vm8 = vweird.f32 %v8058_v54  ;;  %v6701_v62 = vsel %vm12187_vm7, %v6699_v52, %v6697_v59  ;;  %v6711_v63 = vshrl.u32 %v8058_v54, 24  ;;  %v6715_v0 = vand.u32 2147483647, %v8066_v56 }
 0x54b   : > { %v6716_v1 = vmul.f32 0.0625, %v8066_v56  ;;  %v6703_v2 = vpack.c.b16 %v6701_v62, %v6692_v55  ;;  %v6708_v4 = vcvt.f32.f8e4m3b11 %v6707_v61  ;;  %vm12196_vm9 = vcmp.le.f32.partialorder %v6706_v60, 0.0009765625  ;;  %v673_v55 = vld [vmem:[%s8493_s9 + $0xe48] sm:$0xff] }
 0x54c   : > { %vm6718_vm10 = vweird.f32 %v8066_v56  ;;  %v6712_v7 = vand.u32 128, %v6711_v63  ;;  %v6720_v9 = vshrl.u32 %v8066_v56, 24  ;;  %vm12201_vm11 = vcmp.le.f32.partialorder %v6715_v0, 0.0009765625 }
 0x54d   : > { %v6717_v8 = vcvt.f32.f8e4m3b11 %v6716_v1  ;;  %v6704_v11 = vpack.c.b8 %v6703_v2, %v6702_v53  ;;  %v6710_v12 = vsel %vm6709_vm8, 127, %v6708_v4  ;;  %v6724_v13 = vand.u32 2147483647, %v8074_v57 }
 0x54e   : > { %v6725_v14 = vmul.f32 0.0625, %v8074_v57  ;;  %v6721_v16 = vand.u32 128, %v6720_v9  ;;  %vm6727_vm12 = vweird.f32 %v8074_v57  ;;  %v1178_v17 = vmul.f32 %v8502_v3, %v664_v6  ;;  %v689_v9 = vld [vmem:[%s8493_s9 + $0xec8] sm:$0xff] }
 0x54f   : > { %v6719_v15 = vsel %vm6718_vm10, 127, %v6717_v8  ;;  %7496 = vst [vmem:[%s8554_s27 + $0x370] sm:$0xff] %v6704_v11  ;;  %v6714_v18 = vsel %vm12196_vm9, %v6712_v7, %v6710_v12  ;;  %v6729_v20 = vshrl.u32 %v8074_v57, 24  ;;  %v6733_v21 = vand.u32 2147483647, %v8082_v58  ;;  %v681_v8 = vld [vmem:[%s8493_s9 + $0xe88] sm:$0xff] }
 0x550   : > { %v6726_v19 = vcvt.f32.f8e4m3b11 %v6725_v14  ;;  %v6723_v24 = vsel %vm12201_vm11, %v6721_v16, %v6719_v15  ;;  %vm12213_vm13 = vcmp.le.f32.partialorder %v6724_v13, 0.0009765625  ;;  %v6734_v26 = vmul.f32 0.0625, %v8082_v58 }
 0x551   : > { %v6738_v27 = vshrl.u32 %v8082_v58, 24  ;;  %v6730_v30 = vand.u32 128, %v6729_v20  ;;  %vm6736_vm14 = vweird.f32 %v8082_v58  ;;  %vm12218_vm15 = vcmp.le.f32.partialorder %v6733_v21, 0.0009765625 }
 0x552   : > { %v6728_v29 = vsel %vm6727_vm12, 127, %v6726_v19  ;;  %v6735_v33 = vcvt.f32.f8e4m3b11 %v6734_v26  ;;  %v1186_v35 = vmul.f32 %v8502_v3, %v672_v22  ;;  %v1194_v36 = vmul.f32 %v8502_v3, %v680_v23 }
 0x553   : > { %v6739_v34 = vand.u32 128, %v6738_v27  ;;  %v6732_v37 = vsel %vm12213_vm13, %v6730_v30, %v6728_v29  ;;  %v6742_v38 = vpack.c.b16 %v6723_v24, %v6714_v18  ;;  %v1202_v39 = vmul.f32 %v8502_v3, %v688_v28 }
 0x554   : > { %v8083_v40 = vclamps-f32 %v1178_v17, 448.0  ;;  %v6737_v41 = vsel %vm6736_vm14, 127, %v6735_v33  ;;  %v8091_v42 = vclamps-f32 %v1186_v35, 448.0  ;;  %v8099_v43 = vclamps-f32 %v1194_v36, 448.0  ;;  %v666_v17 = vld [vmem:[%s8493_s9 + $0xe10] sm:$0xff] }
 0x555   : > { %v1179_v44 = vmul.f32 %v8502_v3, %v665_v32  ;;  %v6741_v45 = vsel %vm12218_vm15, %v6739_v34, %v6737_v41  ;;  %v8107_v46 = vclamps-f32 %v1202_v39, 448.0  ;;  %v1187_v2 = vmul.f32 %v8502_v3, %v673_v55 }
 0x556   : > { %v6746_v47 = vand.u32 2147483647, %v8083_v40  ;;  %v6747_v48 = vmul.f32 0.0625, %v8083_v40  ;;  %v6743_v49 = vpack.c.b16 %v6741_v45, %v6732_v37  ;;  %vm6749_vm0 = vweird.f32 %v8083_v40 }
 0x557   : > { %v6751_v50 = vshrl.u32 %v8083_v40, 24  ;;  %v6755_v51 = vand.u32 2147483647, %v8091_v42  ;;  %v6756_v54 = vmul.f32 0.0625, %v8091_v42  ;;  %vm6758_vm2 = vweird.f32 %v8091_v42  ;;  %v674_v40 = vld [vmem:[%s8493_s9 + $0xe50] sm:$0xff] }
 0x558   : > { %v6748_v52 = vcvt.f32.f8e4m3b11 %v6747_v48  ;;  %vm12231_vm1 = vcmp.le.f32.partialorder %v6746_v47, 0.0009765625  ;;  %v6744_v56 = vpack.c.b8 %v6743_v49, %v6742_v38  ;;  %v6760_v58 = vshrl.u32 %v8091_v42, 24 }
 0x559   : > { %v6752_v57 = vand.u32 128, %v6751_v50  ;;  %vm12236_vm3 = vcmp.le.f32.partialorder %v6755_v51, 0.0009765625  ;;  %v6757_v61 = vcvt.f32.f8e4m3b11 %v6756_v54  ;;  %v6764_v62 = vand.u32 2147483647, %v8099_v43  ;;  %v682_v51 = vld [vmem:[%s8493_s9 + $0xe90] sm:$0xff] }
 0x55a   : > { %v6750_v60 = vsel %vm6749_vm0, 127, %v6748_v52  ;;  %v6765_v63 = vmul.f32 0.0625, %v8099_v43  ;;  %7497 = vst [vmem:[%s8554_s27 + $0x378] sm:$0xff] %v6744_v56  ;;  %v6761_v0 = vand.u32 128, %v6760_v58  ;;  %vm6767_vm4 = vweird.f32 %v8099_v43 }
 0x55b   : > { %v6769_v1 = vshrl.u32 %v8099_v43, 24  ;;  %v6754_v4 = vsel %vm12231_vm1, %v6752_v57, %v6750_v60  ;;  %v6759_v5 = vsel %vm6758_vm2, 127, %v6757_v61  ;;  %v6773_v7 = vand.u32 2147483647, %v8107_v46  ;;  %v690_v57 = vld [vmem:[%s8493_s9 + $0xed0] sm:$0xff] }
 0x55c   : > { %v6766_v6 = vcvt.f32.f8e4m3b11 %v6765_v63  ;;  %v6763_v10 = vsel %vm12236_vm3, %v6761_v0, %v6759_v5  ;;  %vm12249_vm5 = vcmp.le.f32.partialorder %v6764_v62, 0.0009765625  ;;  %v6774_v13 = vmul.f32 0.0625, %v8107_v46 }
 0x55d   : > { %v6770_v11 = vand.u32 128, %v6769_v1  ;;  %vm6776_vm6 = vweird.f32 %v8107_v46  ;;  %v6778_v15 = vshrl.u32 %v8107_v46, 24  ;;  %vm12253_vm7 = vcmp.le.f32.partialorder %v6773_v7, 0.0009765625  ;;  %v667_v1 = vld [vmem:[%s8493_s9 + $0xe18] sm:$0xff] }
 0x55e   : > { %v6768_v14 = vsel %vm6767_vm4, 127, %v6766_v6  ;;  %v6775_v18 = vcvt.f32.f8e4m3b11 %v6774_v13  ;;  %v6782_v19 = vpack.c.b16 %v6763_v10, %v6754_v4  ;;  %v1195_v20 = vmul.f32 %v8502_v3, %v681_v8 }
 0x55f   : > { %v1203_v21 = vmul.f32 %v8502_v3, %v689_v9  ;;  %v6772_v22 = vsel %vm12249_vm5, %v6770_v11, %v6768_v14  ;;  %v6779_v23 = vand.u32 128, %v6778_v15  ;;  %v8084_v24 = vclamps-f32 %v1179_v44, 448.0 }
 0x560   : > { %v8092_v25 = vclamps-f32 %v1187_v2, 448.0  ;;  %v6777_v26 = vsel %vm6776_vm6, 127, %v6775_v18  ;;  %v8100_v27 = vclamps-f32 %v1195_v20, 448.0  ;;  %v1180_v29 = vmul.f32 %v8502_v3, %v666_v17  ;;  %v675_v2 = vld [vmem:[%s8493_s9 + $0xe58] sm:$0xff] }
 0x561   : > { %v8108_v28 = vclamps-f32 %v1203_v21, 448.0  ;;  %v6781_v30 = vsel %vm12253_vm7, %v6779_v23, %v6777_v26  ;;  %v6786_v31 = vand.u32 2147483647, %v8084_v24  ;;  %v6787_v32 = vmul.f32 0.0625, %v8084_v24  ;;  %v683_v26 = vld [vmem:[%s8493_s9 + $0xe98] sm:$0xff] }
 0x562   : > { %vm6789_vm8 = vweird.f32 %v8084_v24  ;;  %v6783_v33 = vpack.c.b16 %v6781_v30, %v6772_v22  ;;  %v6791_v34 = vshrl.u32 %v8084_v24, 24  ;;  %v6795_v35 = vand.u32 2147483647, %v8092_v25 }
 0x563   : > { %v6796_v36 = vmul.f32 0.0625, %v8092_v25  ;;  %v6788_v37 = vcvt.f32.f8e4m3b11 %v6787_v32  ;;  %vm12265_vm9 = vcmp.le.f32.partialorder %v6786_v31, 0.0009765625  ;;  %vm6798_vm10 = vweird.f32 %v8092_v25 }
 0x564   : > { %v6800_v39 = vshrl.u32 %v8092_v25, 24  ;;  %v6784_v41 = vpack.c.b8 %v6783_v33, %v6782_v19  ;;  %v6792_v42 = vand.u32 128, %v6791_v34  ;;  %vm12270_vm11 = vcmp.le.f32.partialorder %v6795_v35, 0.0009765625 }
 0x565   : > { %v6797_v43 = vcvt.f32.f8e4m3b11 %v6796_v36  ;;  %v6790_v45 = vsel %vm6789_vm8, 127, %v6788_v37  ;;  %v6804_v47 = vand.u32 2147483647, %v8100_v27  ;;  %v6805_v48 = vmul.f32 0.0625, %v8100_v27  ;;  %v691_v37 = vld [vmem:[%s8493_s9 + $0xed8] sm:$0xff] }
 0x566   : > { %v6801_v46 = vand.u32 128, %v6800_v39  ;;  %7498 = vst [vmem:[%s8554_s27 + $0x380] sm:$0xff] %v6784_v41  ;;  %vm6807_vm12 = vweird.f32 %v8100_v27  ;;  %v6809_v50 = vshrl.u32 %v8100_v27, 24  ;;  %v1188_v52 = vmul.f32 %v8502_v3, %v674_v40 }
 0x567   : > { %v6799_v49 = vsel %vm6798_vm10, 127, %v6797_v43  ;;  %v6794_v53 = vsel %vm12265_vm9, %v6792_v42, %v6790_v45  ;;  %v6806_v55 = vcvt.f32.f8e4m3b11 %v6805_v48  ;;  %v6813_v56 = vand.u32 2147483647, %v8108_v28 }
 0x568   : > { %v6803_v54 = vsel %vm12270_vm11, %v6801_v46, %v6799_v49  ;;  %v6810_v58 = vand.u32 128, %v6809_v50  ;;  %vm12282_vm13 = vcmp.le.f32.partialorder %v6804_v47, 0.0009765625  ;;  %v6814_v60 = vmul.f32 0.0625, %v8108_v28 }
 0x569   : > { %v6818_v61 = vshrl.u32 %v8108_v28, 24  ;;  %v6808_v62 = vsel %vm6807_vm12, 127, %v6806_v55  ;;  %vm6816_vm14 = vweird.f32 %v8108_v28  ;;  %vm12286_vm15 = vcmp.le.f32.partialorder %v6813_v56, 0.0009765625 }
 0x56a   : > { %v1196_v0 = vmul.f32 %v8502_v3, %v682_v51  ;;  %v6815_v4 = vcvt.f32.f8e4m3b11 %v6814_v60  ;;  %v6822_v6 = vpack.c.b16 %v6803_v54, %v6794_v53  ;;  %v1204_v7 = vmul.f32 %v8502_v3, %v690_v57 }
 0x56b   : > { %v6819_v5 = vand.u32 128, %v6818_v61  ;;  %v6812_v8 = vsel %vm12282_vm13, %v6810_v58, %v6808_v62  ;;  %v8085_v9 = vclamps-f32 %v1180_v29, 448.0  ;;  %v8093_v10 = vclamps-f32 %v1188_v52, 448.0 }
 0x56c   : > { %v8101_v11 = vclamps-f32 %v1196_v0, 448.0  ;;  %v6817_v12 = vsel %vm6816_vm14, 127, %v6815_v4  ;;  %v8109_v13 = vclamps-f32 %v1204_v7, 448.0  ;;  %v1181_v14 = vmul.f32 %v8502_v3, %v667_v1 }
 0x56d   : > { %v1189_v15 = vmul.f32 %v8502_v3, %v675_v2  ;;  %v6821_v16 = vsel %vm12286_vm15, %v6819_v5, %v6817_v12  ;;  %v6826_v17 = vand.u32 2147483647, %v8085_v9  ;;  %v6827_v18 = vmul.f32 0.0625, %v8085_v9  ;;  %v668_v5 = vld [vmem:[%s8493_s9 + $0xe20] sm:$0xff] }
 0x56e   : > { %vm6829_vm0 = vweird.f32 %v8085_v9  ;;  %v6823_v19 = vpack.c.b16 %v6821_v16, %v6812_v8  ;;  %v6831_v20 = vshrl.u32 %v8085_v9, 24  ;;  %v6835_v21 = vand.u32 2147483647, %v8093_v10 }
 0x56f   : > { %v6836_v22 = vmul.f32 0.0625, %v8093_v10  ;;  %v6828_v23 = vcvt.f32.f8e4m3b11 %v6827_v18  ;;  %vm12300_vm1 = vcmp.le.f32.partialorder %v6826_v17, 0.0009765625  ;;  %vm6838_vm2 = vweird.f32 %v8093_v10 }
 0x570   : > { %v6840_v25 = vshrl.u32 %v8093_v10, 24  ;;  %v6824_v27 = vpack.c.b8 %v6823_v19, %v6822_v6  ;;  %v6832_v28 = vand.u32 128, %v6831_v20  ;;  %vm12305_vm3 = vcmp.le.f32.partialorder %v6835_v21, 0.0009765625  ;;  %v676_v21 = vld [vmem:[%s8493_s9 + $0xe60] sm:$0xff] }
 0x571   : > { %v6837_v29 = vcvt.f32.f8e4m3b11 %v6836_v22  ;;  %v6830_v31 = vsel %vm6829_vm0, 127, %v6828_v23  ;;  %v6844_v33 = vand.u32 2147483647, %v8101_v11  ;;  %v6845_v34 = vmul.f32 0.0625, %v8101_v11  ;;  %v684_v22 = vld [vmem:[%s8493_s9 + $0xea0] sm:$0xff] }
 0x572   : > { %v6841_v32 = vand.u32 128, %v6840_v25  ;;  %7499 = vst [vmem:[%s8554_s27 + $0x388] sm:$0xff] %v6824_v27  ;;  %vm6847_vm4 = vweird.f32 %v8101_v11  ;;  %v6849_v36 = vshrl.u32 %v8101_v11, 24  ;;  %v1197_v38 = vmul.f32 %v8502_v3, %v683_v26  ;;  %v692_v27 = vld [vmem:[%s8493_s9 + $0xee0] sm:$0xff] }
 0x573   : > { %v6839_v35 = vsel %vm6838_vm2, 127, %v6837_v29  ;;  %v6834_v39 = vsel %vm12300_vm1, %v6832_v28, %v6830_v31  ;;  %v6846_v41 = vcvt.f32.f8e4m3b11 %v6845_v34  ;;  %v6853_v42 = vand.u32 2147483647, %v8109_v13  ;;  %v669_v31 = vld [vmem:[%s8493_s9 + $0xe28] sm:$0xff] }
 0x574   : > { %v6843_v40 = vsel %vm12305_vm3, %v6841_v32, %v6839_v35  ;;  %v6850_v43 = vand.u32 128, %v6849_v36  ;;  %vm12316_vm5 = vcmp.le.f32.partialorder %v6844_v33, 0.0009765625  ;;  %v6854_v45 = vmul.f32 0.0625, %v8109_v13 }
 0x575   : > { %v6858_v46 = vshrl.u32 %v8109_v13, 24  ;;  %v6848_v47 = vsel %vm6847_vm4, 127, %v6846_v41  ;;  %vm6856_vm6 = vweird.f32 %v8109_v13  ;;  %vm12320_vm7 = vcmp.le.f32.partialorder %v6853_v42, 0.0009765625 }
 0x576   : > { %v1205_v49 = vmul.f32 %v8502_v3, %v691_v37  ;;  %v6855_v50 = vcvt.f32.f8e4m3b11 %v6854_v45  ;;  %v6862_v52 = vpack.c.b16 %v6843_v40, %v6834_v39  ;;  %v8086_v53 = vclamps-f32 %v1181_v14, 448.0 }
 0x577   : > { %v6859_v51 = vand.u32 128, %v6858_v46  ;;  %v6852_v54 = vsel %vm12316_vm5, %v6850_v43, %v6848_v47  ;;  %v8094_v55 = vclamps-f32 %v1189_v15, 448.0  ;;  %v8102_v56 = vclamps-f32 %v1197_v38, 448.0 }
 0x578   : > { %v8110_v57 = vclamps-f32 %v1205_v49, 448.0  ;;  %v6857_v58 = vsel %vm6856_vm6, 127, %v6855_v50  ;;  %v6866_v59 = vand.u32 2147483647, %v8086_v53  ;;  %v6867_v60 = vmul.f32 0.0625, %v8086_v53 }
 0x579   : > { %vm6869_vm8 = vweird.f32 %v8086_v53  ;;  %v6861_v61 = vsel %vm12320_vm7, %v6859_v51, %v6857_v58  ;;  %v6871_v62 = vshrl.u32 %v8086_v53, 24  ;;  %v6875_v63 = vand.u32 2147483647, %v8094_v55 }
 0x57a   : > { %v6876_v0 = vmul.f32 0.0625, %v8094_v55  ;;  %v6863_v1 = vpack.c.b16 %v6861_v61, %v6852_v54  ;;  %v6868_v2 = vcvt.f32.f8e4m3b11 %v6867_v60  ;;  %vm12329_vm9 = vcmp.le.f32.partialorder %v6866_v59, 0.0009765625  ;;  %v677_v54 = vld [vmem:[%s8493_s9 + $0xe68] sm:$0xff] }
 0x57b   : > { %vm6878_vm10 = vweird.f32 %v8094_v55  ;;  %v6872_v6 = vand.u32 128, %v6871_v62  ;;  %v6880_v8 = vshrl.u32 %v8094_v55, 24  ;;  %vm12334_vm11 = vcmp.le.f32.partialorder %v6875_v63, 0.0009765625 }
 0x57c   : > { %v6877_v7 = vcvt.f32.f8e4m3b11 %v6876_v0  ;;  %v6864_v10 = vpack.c.b8 %v6863_v1, %v6862_v52  ;;  %v6870_v11 = vsel %vm6869_vm8, 127, %v6868_v2  ;;  %v6884_v12 = vand.u32 2147483647, %v8102_v56 }
 0x57d   : > { %v6885_v13 = vmul.f32 0.0625, %v8102_v56  ;;  %v6881_v15 = vand.u32 128, %v6880_v8  ;;  %vm6887_vm12 = vweird.f32 %v8102_v56  ;;  %v1182_v16 = vmul.f32 %v8502_v3, %v668_v5  ;;  %v693_v8 = vld [vmem:[%s8493_s9 + $0xee8] sm:$0xff] }
 0x57e   : > { %v6879_v14 = vsel %vm6878_vm10, 127, %v6877_v7  ;;  %7500 = vst [vmem:[%s8554_s27 + $0x390] sm:$0xff] %v6864_v10  ;;  %v6874_v17 = vsel %vm12329_vm9, %v6872_v6, %v6870_v11  ;;  %v6889_v19 = vshrl.u32 %v8102_v56, 24  ;;  %v6893_v20 = vand.u32 2147483647, %v8110_v57  ;;  %v685_v7 = vld [vmem:[%s8493_s9 + $0xea8] sm:$0xff] }
 0x57f   : > { %v6886_v18 = vcvt.f32.f8e4m3b11 %v6885_v13  ;;  %v6883_v23 = vsel %vm12334_vm11, %v6881_v15, %v6879_v14  ;;  %vm12346_vm13 = vcmp.le.f32.partialorder %v6884_v12, 0.0009765625  ;;  %v6894_v25 = vmul.f32 0.0625, %v8110_v57 }
 0x580   : > { %v6898_v26 = vshrl.u32 %v8110_v57, 24  ;;  %v6890_v29 = vand.u32 128, %v6889_v19  ;;  %vm6896_vm14 = vweird.f32 %v8110_v57  ;;  %vm12351_vm15 = vcmp.le.f32.partialorder %v6893_v20, 0.0009765625 }
 0x581   : > { %v6888_v28 = vsel %vm6887_vm12, 127, %v6886_v18  ;;  %v6895_v32 = vcvt.f32.f8e4m3b11 %v6894_v25  ;;  %v1190_v34 = vmul.f32 %v8502_v3, %v676_v21  ;;  %v1198_v35 = vmul.f32 %v8502_v3, %v684_v22 }
 0x582   : > { %v6899_v33 = vand.u32 128, %v6898_v26  ;;  %v6892_v36 = vsel %vm12346_vm13, %v6890_v29, %v6888_v28  ;;  %v6902_v37 = vpack.c.b16 %v6883_v23, %v6874_v17  ;;  %v1206_v38 = vmul.f32 %v8502_v3, %v692_v27 }
 0x583   : > { %v8087_v39 = vclamps-f32 %v1182_v16, 448.0  ;;  %v6897_v40 = vsel %vm6896_vm14, 127, %v6895_v32  ;;  %v8095_v41 = vclamps-f32 %v1190_v34, 448.0  ;;  %v8103_v42 = vclamps-f32 %v1198_v35, 448.0  ;;  %v670_v16 = vld [vmem:[%s8493_s9 + $0xe30] sm:$0xff] }
 0x584   : > { %v1183_v43 = vmul.f32 %v8502_v3, %v669_v31  ;;  %v6901_v44 = vsel %vm12351_vm15, %v6899_v33, %v6897_v40  ;;  %v8111_v45 = vclamps-f32 %v1206_v38, 448.0  ;;  %v1191_v1 = vmul.f32 %v8502_v3, %v677_v54 }
 0x585   : > { %v6906_v46 = vand.u32 2147483647, %v8087_v39  ;;  %v6907_v47 = vmul.f32 0.0625, %v8087_v39  ;;  %v6903_v48 = vpack.c.b16 %v6901_v44, %v6892_v36  ;;  %vm6909_vm0 = vweird.f32 %v8087_v39 }
 0x586   : > { %v6911_v49 = vshrl.u32 %v8087_v39, 24  ;;  %v6915_v50 = vand.u32 2147483647, %v8095_v41  ;;  %v6916_v53 = vmul.f32 0.0625, %v8095_v41  ;;  %vm6918_vm2 = vweird.f32 %v8095_v41  ;;  %v678_v39 = vld [vmem:[%s8493_s9 + $0xe70] sm:$0xff] }
 0x587   : > { %v6908_v51 = vcvt.f32.f8e4m3b11 %v6907_v47  ;;  %vm12364_vm1 = vcmp.le.f32.partialorder %v6906_v46, 0.0009765625  ;;  %v6904_v55 = vpack.c.b8 %v6903_v48, %v6902_v37  ;;  %v6920_v57 = vshrl.u32 %v8095_v41, 24 }
 0x588   : > { %v6912_v56 = vand.u32 128, %v6911_v49  ;;  %vm12369_vm3 = vcmp.le.f32.partialorder %v6915_v50, 0.0009765625  ;;  %v6917_v60 = vcvt.f32.f8e4m3b11 %v6916_v53  ;;  %v6924_v61 = vand.u32 2147483647, %v8103_v42  ;;  %v686_v50 = vld [vmem:[%s8493_s9 + $0xeb0] sm:$0xff] }
 0x589   : > { %v6910_v59 = vsel %vm6909_vm0, 127, %v6908_v51  ;;  %v6925_v62 = vmul.f32 0.0625, %v8103_v42  ;;  %7501 = vst [vmem:[%s8554_s27 + $0x398] sm:$0xff] %v6904_v55  ;;  %v6921_v63 = vand.u32 128, %v6920_v57  ;;  %vm6927_vm4 = vweird.f32 %v8103_v42 }
 0x58a   : > { %v6929_v0 = vshrl.u32 %v8103_v42, 24  ;;  %v6914_v2 = vsel %vm12364_vm1, %v6912_v56, %v6910_v59  ;;  %v6919_v4 = vsel %vm6918_vm2, 127, %v6917_v60  ;;  %v6933_v6 = vand.u32 2147483647, %v8111_v45  ;;  %v694_v56 = vld [vmem:[%s8493_s9 + $0xef0] sm:$0xff] }
 0x58b   : > { %v6926_v5 = vcvt.f32.f8e4m3b11 %v6925_v62  ;;  %v6923_v9 = vsel %vm12369_vm3, %v6921_v63, %v6919_v4  ;;  %vm12382_vm5 = vcmp.le.f32.partialorder %v6924_v61, 0.0009765625  ;;  %v6934_v12 = vmul.f32 0.0625, %v8111_v45 }
 0x58c   : > { %v6930_v10 = vand.u32 128, %v6929_v0  ;;  %vm6936_vm6 = vweird.f32 %v8111_v45  ;;  %v6938_v14 = vshrl.u32 %v8111_v45, 24  ;;  %vm12386_vm7 = vcmp.le.f32.partialorder %v6933_v6, 0.0009765625  ;;  %v671_v0 = vld [vmem:[%s8493_s9 + $0xe38] sm:$0xff] }
 0x58d   : > { %v6928_v13 = vsel %vm6927_vm4, 127, %v6926_v5  ;;  %v6935_v17 = vcvt.f32.f8e4m3b11 %v6934_v12  ;;  %v6942_v18 = vpack.c.b16 %v6923_v9, %v6914_v2  ;;  %v1199_v19 = vmul.f32 %v8502_v3, %v685_v7 }
 0x58e   : > { %v1207_v20 = vmul.f32 %v8502_v3, %v693_v8  ;;  %v6932_v21 = vsel %vm12382_vm5, %v6930_v10, %v6928_v13  ;;  %v6939_v22 = vand.u32 128, %v6938_v14  ;;  %v8088_v23 = vclamps-f32 %v1183_v43, 448.0 }
 0x58f   : > { %v8096_v24 = vclamps-f32 %v1191_v1, 448.0  ;;  %v6937_v25 = vsel %vm6936_vm6, 127, %v6935_v17  ;;  %v8104_v26 = vclamps-f32 %v1199_v19, 448.0  ;;  %v1184_v28 = vmul.f32 %v8502_v3, %v670_v16  ;;  %v679_v1 = vld [vmem:[%s8493_s9 + $0xe78] sm:$0xff] }
 0x590   : > { %v8112_v27 = vclamps-f32 %v1207_v20, 448.0  ;;  %v6941_v29 = vsel %vm12386_vm7, %v6939_v22, %v6937_v25  ;;  %v6946_v30 = vand.u32 2147483647, %v8088_v23  ;;  %v6947_v31 = vmul.f32 0.0625, %v8088_v23  ;;  %v687_v25 = vld [vmem:[%s8493_s9 + $0xeb8] sm:$0xff] }
 0x591   : > { %vm6949_vm8 = vweird.f32 %v8088_v23  ;;  %v6943_v32 = vpack.c.b16 %v6941_v29, %v6932_v21  ;;  %v6951_v33 = vshrl.u32 %v8088_v23, 24  ;;  %v6955_v34 = vand.u32 2147483647, %v8096_v24 }
 0x592   : > { %v6956_v35 = vmul.f32 0.0625, %v8096_v24  ;;  %v6948_v36 = vcvt.f32.f8e4m3b11 %v6947_v31  ;;  %vm12398_vm9 = vcmp.le.f32.partialorder %v6946_v30, 0.0009765625  ;;  %vm6958_vm10 = vweird.f32 %v8096_v24 }
 0x593   : > { %v6960_v38 = vshrl.u32 %v8096_v24, 24  ;;  %v6944_v40 = vpack.c.b8 %v6943_v32, %v6942_v18  ;;  %v6952_v41 = vand.u32 128, %v6951_v33  ;;  %vm12403_vm11 = vcmp.le.f32.partialorder %v6955_v34, 0.0009765625 }
 0x594   : > { %v6957_v42 = vcvt.f32.f8e4m3b11 %v6956_v35  ;;  %v6950_v44 = vsel %vm6949_vm8, 127, %v6948_v36  ;;  %v6964_v46 = vand.u32 2147483647, %v8104_v26  ;;  %v6965_v47 = vmul.f32 0.0625, %v8104_v26  ;;  %v695_v36 = vld [vmem:[%s8493_s9 + $0xef8] sm:$0xff] }
 0x595   : > { %v6961_v45 = vand.u32 128, %v6960_v38  ;;  %7502 = vst [vmem:[%s8554_s27 + $0x3a0] sm:$0xff] %v6944_v40  ;;  %vm6967_vm12 = vweird.f32 %v8104_v26  ;;  %v6969_v49 = vshrl.u32 %v8104_v26, 24  ;;  %v1192_v51 = vmul.f32 %v8502_v3, %v678_v39 }
 0x596   : > { %v6959_v48 = vsel %vm6958_vm10, 127, %v6957_v42  ;;  %v6954_v52 = vsel %vm12398_vm9, %v6952_v41, %v6950_v44  ;;  %v6966_v54 = vcvt.f32.f8e4m3b11 %v6965_v47  ;;  %v6973_v55 = vand.u32 2147483647, %v8112_v27 }
 0x597   : > { %v6963_v53 = vsel %vm12403_vm11, %v6961_v45, %v6959_v48  ;;  %v6970_v57 = vand.u32 128, %v6969_v49  ;;  %vm12415_vm13 = vcmp.le.f32.partialorder %v6964_v46, 0.0009765625  ;;  %v6974_v59 = vmul.f32 0.0625, %v8112_v27 }
 0x598   : > { %v6978_v60 = vshrl.u32 %v8112_v27, 24  ;;  %v6968_v61 = vsel %vm6967_vm12, 127, %v6966_v54  ;;  %vm6976_vm14 = vweird.f32 %v8112_v27  ;;  %vm12419_vm15 = vcmp.le.f32.partialorder %v6973_v55, 0.0009765625 }
 0x599   : > { %v1200_v63 = vmul.f32 %v8502_v3, %v686_v50  ;;  %v6975_v2 = vcvt.f32.f8e4m3b11 %v6974_v59  ;;  %v6982_v5 = vpack.c.b16 %v6963_v53, %v6954_v52  ;;  %v1208_v6 = vmul.f32 %v8502_v3, %v694_v56 }
 0x59a   : > { %v6979_v4 = vand.u32 128, %v6978_v60  ;;  %v6972_v7 = vsel %vm12415_vm13, %v6970_v57, %v6968_v61  ;;  %v8089_v8 = vclamps-f32 %v1184_v28, 448.0  ;;  %v8097_v9 = vclamps-f32 %v1192_v51, 448.0 }
 0x59b   : > { %v8105_v10 = vclamps-f32 %v1200_v63, 448.0  ;;  %v6977_v11 = vsel %vm6976_vm14, 127, %v6975_v2  ;;  %v8113_v12 = vclamps-f32 %v1208_v6, 448.0  ;;  %v1185_v13 = vmul.f32 %v8502_v3, %v671_v0 }
 0x59c   : > { %v1193_v14 = vmul.f32 %v8502_v3, %v679_v1  ;;  %v6981_v15 = vsel %vm12419_vm15, %v6979_v4, %v6977_v11  ;;  %v6986_v16 = vand.u32 2147483647, %v8089_v8  ;;  %v6987_v17 = vmul.f32 0.0625, %v8089_v8  ;;  %v696_v4 = vld [vmem:[%s8493_s9 + $0xf00] sm:$0xff] }
 0x59d   : > { %vm6989_vm0 = vweird.f32 %v8089_v8  ;;  %v6983_v18 = vpack.c.b16 %v6981_v15, %v6972_v7  ;;  %v6991_v19 = vshrl.u32 %v8089_v8, 24  ;;  %v6995_v20 = vand.u32 2147483647, %v8097_v9 }
 0x59e   : > { %v6996_v21 = vmul.f32 0.0625, %v8097_v9  ;;  %v6988_v22 = vcvt.f32.f8e4m3b11 %v6987_v17  ;;  %vm12433_vm1 = vcmp.le.f32.partialorder %v6986_v16, 0.0009765625  ;;  %vm6998_vm2 = vweird.f32 %v8097_v9 }
 0x59f   : > { %v7000_v24 = vshrl.u32 %v8097_v9, 24  ;;  %v6984_v26 = vpack.c.b8 %v6983_v18, %v6982_v5  ;;  %v6992_v27 = vand.u32 128, %v6991_v19  ;;  %vm12438_vm3 = vcmp.le.f32.partialorder %v6995_v20, 0.0009765625  ;;  %v704_v20 = vld [vmem:[%s8493_s9 + $0xf40] sm:$0xff] }
 0x5a0   : > { %v6997_v28 = vcvt.f32.f8e4m3b11 %v6996_v21  ;;  %v6990_v30 = vsel %vm6989_vm0, 127, %v6988_v22  ;;  %v7004_v32 = vand.u32 2147483647, %v8105_v10  ;;  %v7005_v33 = vmul.f32 0.0625, %v8105_v10  ;;  %v712_v21 = vld [vmem:[%s8493_s9 + $0xf80] sm:$0xff] }
 0x5a1   : > { %v7001_v31 = vand.u32 128, %v7000_v24  ;;  %7503 = vst [vmem:[%s8554_s27 + $0x3a8] sm:$0xff] %v6984_v26  ;;  %vm7007_vm4 = vweird.f32 %v8105_v10  ;;  %v7009_v35 = vshrl.u32 %v8105_v10, 24  ;;  %v1201_v37 = vmul.f32 %v8502_v3, %v687_v25  ;;  %v720_v26 = vld [vmem:[%s8493_s9 + $0xfc0] sm:$0xff] }
 0x5a2   : > { %v6999_v34 = vsel %vm6998_vm2, 127, %v6997_v28  ;;  %v6994_v38 = vsel %vm12433_vm1, %v6992_v27, %v6990_v30  ;;  %v7006_v40 = vcvt.f32.f8e4m3b11 %v7005_v33  ;;  %v7013_v41 = vand.u32 2147483647, %v8113_v12  ;;  %v697_v30 = vld [vmem:[%s8493_s9 + $0xf08] sm:$0xff] }
 0x5a3   : > { %v7003_v39 = vsel %vm12438_vm3, %v7001_v31, %v6999_v34  ;;  %v7010_v42 = vand.u32 128, %v7009_v35  ;;  %vm12449_vm5 = vcmp.le.f32.partialorder %v7004_v32, 0.0009765625  ;;  %v7014_v44 = vmul.f32 0.0625, %v8113_v12 }
 0x5a4   : > { %v7018_v45 = vshrl.u32 %v8113_v12, 24  ;;  %v7008_v46 = vsel %vm7007_vm4, 127, %v7006_v40  ;;  %vm7016_vm6 = vweird.f32 %v8113_v12  ;;  %vm12453_vm7 = vcmp.le.f32.partialorder %v7013_v41, 0.0009765625 }
 0x5a5   : > { %v1209_v48 = vmul.f32 %v8502_v3, %v695_v36  ;;  %v7015_v49 = vcvt.f32.f8e4m3b11 %v7014_v44  ;;  %v7022_v51 = vpack.c.b16 %v7003_v39, %v6994_v38  ;;  %v8090_v52 = vclamps-f32 %v1185_v13, 448.0 }
 0x5a6   : > { %v7019_v50 = vand.u32 128, %v7018_v45  ;;  %v7012_v53 = vsel %vm12449_vm5, %v7010_v42, %v7008_v46  ;;  %v8098_v54 = vclamps-f32 %v1193_v14, 448.0  ;;  %v8106_v55 = vclamps-f32 %v1201_v37, 448.0 }
 0x5a7   : > { %v8114_v56 = vclamps-f32 %v1209_v48, 448.0  ;;  %v7017_v57 = vsel %vm7016_vm6, 127, %v7015_v49  ;;  %v7026_v58 = vand.u32 2147483647, %v8090_v52  ;;  %v7027_v59 = vmul.f32 0.0625, %v8090_v52 }
 0x5a8   : > { %vm7029_vm8 = vweird.f32 %v8090_v52  ;;  %v7021_v60 = vsel %vm12453_vm7, %v7019_v50, %v7017_v57  ;;  %v7031_v61 = vshrl.u32 %v8090_v52, 24  ;;  %v7035_v62 = vand.u32 2147483647, %v8098_v54 }
 0x5a9   : > { %v7036_v63 = vmul.f32 0.0625, %v8098_v54  ;;  %v7023_v0 = vpack.c.b16 %v7021_v60, %v7012_v53  ;;  %v7028_v1 = vcvt.f32.f8e4m3b11 %v7027_v59  ;;  %vm12462_vm9 = vcmp.le.f32.partialorder %v7026_v58, 0.0009765625  ;;  %v705_v53 = vld [vmem:[%s8493_s9 + $0xf48] sm:$0xff] }
 0x5aa   : > { %vm7038_vm10 = vweird.f32 %v8098_v54  ;;  %v7032_v5 = vand.u32 128, %v7031_v61  ;;  %v7040_v7 = vshrl.u32 %v8098_v54, 24  ;;  %vm12467_vm11 = vcmp.le.f32.partialorder %v7035_v62, 0.0009765625 }
 0x5ab   : > { %v7037_v6 = vcvt.f32.f8e4m3b11 %v7036_v63  ;;  %v7024_v9 = vpack.c.b8 %v7023_v0, %v7022_v51  ;;  %v7030_v10 = vsel %vm7029_vm8, 127, %v7028_v1  ;;  %v7044_v11 = vand.u32 2147483647, %v8106_v55 }
 0x5ac   : > { %v7045_v12 = vmul.f32 0.0625, %v8106_v55  ;;  %v7041_v14 = vand.u32 128, %v7040_v7  ;;  %vm7047_vm12 = vweird.f32 %v8106_v55  ;;  %v1210_v15 = vmul.f32 %v8502_v3, %v696_v4  ;;  %v721_v7 = vld [vmem:[%s8493_s9 + $0xfc8] sm:$0xff] }
 0x5ad   : > { %v7039_v13 = vsel %vm7038_vm10, 127, %v7037_v6  ;;  %7504 = vst [vmem:[%s8554_s27 + $0x3b0] sm:$0xff] %v7024_v9  ;;  %v7034_v16 = vsel %vm12462_vm9, %v7032_v5, %v7030_v10  ;;  %v7049_v18 = vshrl.u32 %v8106_v55, 24  ;;  %v7053_v19 = vand.u32 2147483647, %v8114_v56  ;;  %v713_v6 = vld [vmem:[%s8493_s9 + $0xf88] sm:$0xff] }
 0x5ae   : > { %v7046_v17 = vcvt.f32.f8e4m3b11 %v7045_v12  ;;  %v7043_v22 = vsel %vm12467_vm11, %v7041_v14, %v7039_v13  ;;  %vm12479_vm13 = vcmp.le.f32.partialorder %v7044_v11, 0.0009765625  ;;  %v7054_v24 = vmul.f32 0.0625, %v8114_v56 }
 0x5af   : > { %v7058_v25 = vshrl.u32 %v8114_v56, 24  ;;  %v7050_v28 = vand.u32 128, %v7049_v18  ;;  %vm7056_vm14 = vweird.f32 %v8114_v56  ;;  %vm12484_vm15 = vcmp.le.f32.partialorder %v7053_v19, 0.0009765625 }
 0x5b0   : > { %v7048_v27 = vsel %vm7047_vm12, 127, %v7046_v17  ;;  %v7055_v31 = vcvt.f32.f8e4m3b11 %v7054_v24  ;;  %v1218_v33 = vmul.f32 %v8502_v3, %v704_v20  ;;  %v1226_v34 = vmul.f32 %v8502_v3, %v712_v21 }
 0x5b1   : > { %v7059_v32 = vand.u32 128, %v7058_v25  ;;  %v7052_v35 = vsel %vm12479_vm13, %v7050_v28, %v7048_v27  ;;  %v7062_v36 = vpack.c.b16 %v7043_v22, %v7034_v16  ;;  %v1234_v37 = vmul.f32 %v8502_v3, %v720_v26 }
 0x5b2   : > { %v8115_v38 = vclamps-f32 %v1210_v15, 448.0  ;;  %v7057_v39 = vsel %vm7056_vm14, 127, %v7055_v31  ;;  %v8123_v40 = vclamps-f32 %v1218_v33, 448.0  ;;  %v8131_v41 = vclamps-f32 %v1226_v34, 448.0  ;;  %v698_v15 = vld [vmem:[%s8493_s9 + $0xf10] sm:$0xff] }
 0x5b3   : > { %v1211_v42 = vmul.f32 %v8502_v3, %v697_v30  ;;  %v7061_v43 = vsel %vm12484_vm15, %v7059_v32, %v7057_v39  ;;  %v8139_v44 = vclamps-f32 %v1234_v37, 448.0  ;;  %v1219_v0 = vmul.f32 %v8502_v3, %v705_v53 }
 0x5b4   : > { %v7066_v45 = vand.u32 2147483647, %v8115_v38  ;;  %v7067_v46 = vmul.f32 0.0625, %v8115_v38  ;;  %v7063_v47 = vpack.c.b16 %v7061_v43, %v7052_v35  ;;  %vm7069_vm0 = vweird.f32 %v8115_v38 }
 0x5b5   : > { %v7071_v48 = vshrl.u32 %v8115_v38, 24  ;;  %v7075_v49 = vand.u32 2147483647, %v8123_v40  ;;  %v7076_v52 = vmul.f32 0.0625, %v8123_v40  ;;  %vm7078_vm2 = vweird.f32 %v8123_v40  ;;  %v706_v38 = vld [vmem:[%s8493_s9 + $0xf50] sm:$0xff] }
 0x5b6   : > { %v7068_v50 = vcvt.f32.f8e4m3b11 %v7067_v46  ;;  %vm12497_vm1 = vcmp.le.f32.partialorder %v7066_v45, 0.0009765625  ;;  %v7064_v54 = vpack.c.b8 %v7063_v47, %v7062_v36  ;;  %v7080_v56 = vshrl.u32 %v8123_v40, 24 }
 0x5b7   : > { %v7072_v55 = vand.u32 128, %v7071_v48  ;;  %vm12502_vm3 = vcmp.le.f32.partialorder %v7075_v49, 0.0009765625  ;;  %v7077_v59 = vcvt.f32.f8e4m3b11 %v7076_v52  ;;  %v7084_v60 = vand.u32 2147483647, %v8131_v41  ;;  %v714_v49 = vld [vmem:[%s8493_s9 + $0xf90] sm:$0xff] }
 0x5b8   : > { %v7070_v58 = vsel %vm7069_vm0, 127, %v7068_v50  ;;  %v7085_v61 = vmul.f32 0.0625, %v8131_v41  ;;  %7505 = vst [vmem:[%s8554_s27 + $0x3b8] sm:$0xff] %v7064_v54  ;;  %v7081_v62 = vand.u32 128, %v7080_v56  ;;  %vm7087_vm4 = vweird.f32 %v8131_v41 }
 0x5b9   : > { %v7089_v63 = vshrl.u32 %v8131_v41, 24  ;;  %v7074_v1 = vsel %vm12497_vm1, %v7072_v55, %v7070_v58  ;;  %v7079_v2 = vsel %vm7078_vm2, 127, %v7077_v59  ;;  %v7093_v5 = vand.u32 2147483647, %v8139_v44  ;;  %v722_v55 = vld [vmem:[%s8493_s9 + $0xfd0] sm:$0xff] }
 0x5ba   : > { %v7086_v4 = vcvt.f32.f8e4m3b11 %v7085_v61  ;;  %v7083_v8 = vsel %vm12502_vm3, %v7081_v62, %v7079_v2  ;;  %vm12515_vm5 = vcmp.le.f32.partialorder %v7084_v60, 0.0009765625  ;;  %v7094_v11 = vmul.f32 0.0625, %v8139_v44 }
 0x5bb   : > { %v7090_v9 = vand.u32 128, %v7089_v63  ;;  %vm7096_vm6 = vweird.f32 %v8139_v44  ;;  %v7098_v13 = vshrl.u32 %v8139_v44, 24  ;;  %vm12519_vm7 = vcmp.le.f32.partialorder %v7093_v5, 0.0009765625  ;;  %v699_v63 = vld [vmem:[%s8493_s9 + $0xf18] sm:$0xff] }
 0x5bc   : > { %v7088_v12 = vsel %vm7087_vm4, 127, %v7086_v4  ;;  %v7095_v16 = vcvt.f32.f8e4m3b11 %v7094_v11  ;;  %v7102_v17 = vpack.c.b16 %v7083_v8, %v7074_v1  ;;  %v1227_v18 = vmul.f32 %v8502_v3, %v713_v6 }
 0x5bd   : > { %v1235_v19 = vmul.f32 %v8502_v3, %v721_v7  ;;  %v7092_v20 = vsel %vm12515_vm5, %v7090_v9, %v7088_v12  ;;  %v7099_v21 = vand.u32 128, %v7098_v13  ;;  %v8116_v22 = vclamps-f32 %v1211_v42, 448.0 }
 0x5be   : > { %v8124_v23 = vclamps-f32 %v1219_v0, 448.0  ;;  %v7097_v24 = vsel %vm7096_vm6, 127, %v7095_v16  ;;  %v8132_v25 = vclamps-f32 %v1227_v18, 448.0  ;;  %v1212_v27 = vmul.f32 %v8502_v3, %v698_v15  ;;  %v707_v0 = vld [vmem:[%s8493_s9 + $0xf58] sm:$0xff] }
 0x5bf   : > { %v8140_v26 = vclamps-f32 %v1235_v19, 448.0  ;;  %v7101_v28 = vsel %vm12519_vm7, %v7099_v21, %v7097_v24  ;;  %v7106_v29 = vand.u32 2147483647, %v8116_v22  ;;  %v7107_v30 = vmul.f32 0.0625, %v8116_v22  ;;  %v715_v24 = vld [vmem:[%s8493_s9 + $0xf98] sm:$0xff] }
 0x5c0   : > { %vm7109_vm8 = vweird.f32 %v8116_v22  ;;  %v7103_v31 = vpack.c.b16 %v7101_v28, %v7092_v20  ;;  %v7111_v32 = vshrl.u32 %v8116_v22, 24  ;;  %v7115_v33 = vand.u32 2147483647, %v8124_v23 }
 0x5c1   : > { %v7116_v34 = vmul.f32 0.0625, %v8124_v23  ;;  %v7108_v35 = vcvt.f32.f8e4m3b11 %v7107_v30  ;;  %vm12531_vm9 = vcmp.le.f32.partialorder %v7106_v29, 0.0009765625  ;;  %vm7118_vm10 = vweird.f32 %v8124_v23 }
 0x5c2   : > { %v7120_v37 = vshrl.u32 %v8124_v23, 24  ;;  %v7104_v39 = vpack.c.b8 %v7103_v31, %v7102_v17  ;;  %v7112_v40 = vand.u32 128, %v7111_v32  ;;  %vm12536_vm11 = vcmp.le.f32.partialorder %v7115_v33, 0.0009765625 }
 0x5c3   : > { %v7117_v41 = vcvt.f32.f8e4m3b11 %v7116_v34  ;;  %v7110_v43 = vsel %vm7109_vm8, 127, %v7108_v35  ;;  %v7124_v45 = vand.u32 2147483647, %v8132_v25  ;;  %v7125_v46 = vmul.f32 0.0625, %v8132_v25  ;;  %v723_v35 = vld [vmem:[%s8493_s9 + $0xfd8] sm:$0xff] }
 0x5c4   : > { %v7121_v44 = vand.u32 128, %v7120_v37  ;;  %7506 = vst [vmem:[%s8554_s27 + $0x3c0] sm:$0xff] %v7104_v39  ;;  %vm7127_vm12 = vweird.f32 %v8132_v25  ;;  %v7129_v48 = vshrl.u32 %v8132_v25, 24  ;;  %v1220_v50 = vmul.f32 %v8502_v3, %v706_v38 }
 0x5c5   : > { %v7119_v47 = vsel %vm7118_vm10, 127, %v7117_v41  ;;  %v7114_v51 = vsel %vm12531_vm9, %v7112_v40, %v7110_v43  ;;  %v7126_v53 = vcvt.f32.f8e4m3b11 %v7125_v46  ;;  %v7133_v54 = vand.u32 2147483647, %v8140_v26 }
 0x5c6   : > { %v7123_v52 = vsel %vm12536_vm11, %v7121_v44, %v7119_v47  ;;  %v7130_v56 = vand.u32 128, %v7129_v48  ;;  %vm12548_vm13 = vcmp.le.f32.partialorder %v7124_v45, 0.0009765625  ;;  %v7134_v58 = vmul.f32 0.0625, %v8140_v26 }
 0x5c7   : > { %v7138_v59 = vshrl.u32 %v8140_v26, 24  ;;  %v7128_v60 = vsel %vm7127_vm12, 127, %v7126_v53  ;;  %vm7136_vm14 = vweird.f32 %v8140_v26  ;;  %vm12552_vm15 = vcmp.le.f32.partialorder %v7133_v54, 0.0009765625 }
 0x5c8   : > { %v1228_v62 = vmul.f32 %v8502_v3, %v714_v49  ;;  %v7135_v1 = vcvt.f32.f8e4m3b11 %v7134_v58  ;;  %v7142_v4 = vpack.c.b16 %v7123_v52, %v7114_v51  ;;  %v1236_v5 = vmul.f32 %v8502_v3, %v722_v55 }
 0x5c9   : > { %v7139_v2 = vand.u32 128, %v7138_v59  ;;  %v7132_v6 = vsel %vm12548_vm13, %v7130_v56, %v7128_v60  ;;  %v8117_v7 = vclamps-f32 %v1212_v27, 448.0  ;;  %v8125_v8 = vclamps-f32 %v1220_v50, 448.0 }
 0x5ca   : > { %v8133_v9 = vclamps-f32 %v1228_v62, 448.0  ;;  %v7137_v10 = vsel %vm7136_vm14, 127, %v7135_v1  ;;  %v8141_v11 = vclamps-f32 %v1236_v5, 448.0  ;;  %v1213_v12 = vmul.f32 %v8502_v3, %v699_v63 }
 0x5cb   : > { %v1221_v13 = vmul.f32 %v8502_v3, %v707_v0  ;;  %v7141_v14 = vsel %vm12552_vm15, %v7139_v2, %v7137_v10  ;;  %v7146_v15 = vand.u32 2147483647, %v8117_v7  ;;  %v7147_v16 = vmul.f32 0.0625, %v8117_v7  ;;  %v700_v2 = vld [vmem:[%s8493_s9 + $0xf20] sm:$0xff] }
 0x5cc   : > { %vm7149_vm0 = vweird.f32 %v8117_v7  ;;  %v7143_v17 = vpack.c.b16 %v7141_v14, %v7132_v6  ;;  %v7151_v18 = vshrl.u32 %v8117_v7, 24  ;;  %v7155_v19 = vand.u32 2147483647, %v8125_v8 }
 0x5cd   : > { %v7156_v20 = vmul.f32 0.0625, %v8125_v8  ;;  %v7148_v21 = vcvt.f32.f8e4m3b11 %v7147_v16  ;;  %vm12566_vm1 = vcmp.le.f32.partialorder %v7146_v15, 0.0009765625  ;;  %vm7158_vm2 = vweird.f32 %v8125_v8 }
 0x5ce   : > { %v7160_v23 = vshrl.u32 %v8125_v8, 24  ;;  %v7144_v25 = vpack.c.b8 %v7143_v17, %v7142_v4  ;;  %v7152_v26 = vand.u32 128, %v7151_v18  ;;  %vm12571_vm3 = vcmp.le.f32.partialorder %v7155_v19, 0.0009765625  ;;  %v708_v19 = vld [vmem:[%s8493_s9 + $0xf60] sm:$0xff] }
 0x5cf   : > { %v7157_v27 = vcvt.f32.f8e4m3b11 %v7156_v20  ;;  %v7150_v29 = vsel %vm7149_vm0, 127, %v7148_v21  ;;  %v7164_v31 = vand.u32 2147483647, %v8133_v9  ;;  %v7165_v32 = vmul.f32 0.0625, %v8133_v9  ;;  %v716_v20 = vld [vmem:[%s8493_s9 + $0xfa0] sm:$0xff] }
 0x5d0   : > { %v7161_v30 = vand.u32 128, %v7160_v23  ;;  %7507 = vst [vmem:[%s8554_s27 + $0x3c8] sm:$0xff] %v7144_v25  ;;  %vm7167_vm4 = vweird.f32 %v8133_v9  ;;  %v7169_v34 = vshrl.u32 %v8133_v9, 24  ;;  %v1229_v36 = vmul.f32 %v8502_v3, %v715_v24  ;;  %v724_v25 = vld [vmem:[%s8493_s9 + $0xfe0] sm:$0xff] }
 0x5d1   : > { %v7159_v33 = vsel %vm7158_vm2, 127, %v7157_v27  ;;  %v7154_v37 = vsel %vm12566_vm1, %v7152_v26, %v7150_v29  ;;  %v7166_v39 = vcvt.f32.f8e4m3b11 %v7165_v32  ;;  %v7173_v40 = vand.u32 2147483647, %v8141_v11  ;;  %v701_v29 = vld [vmem:[%s8493_s9 + $0xf28] sm:$0xff] }
 0x5d2   : > { %v7163_v38 = vsel %vm12571_vm3, %v7161_v30, %v7159_v33  ;;  %v7170_v41 = vand.u32 128, %v7169_v34  ;;  %vm12582_vm5 = vcmp.le.f32.partialorder %v7164_v31, 0.0009765625  ;;  %v7174_v43 = vmul.f32 0.0625, %v8141_v11 }
 0x5d3   : > { %v7178_v44 = vshrl.u32 %v8141_v11, 24  ;;  %v7168_v45 = vsel %vm7167_vm4, 127, %v7166_v39  ;;  %vm7176_vm6 = vweird.f32 %v8141_v11  ;;  %vm12586_vm7 = vcmp.le.f32.partialorder %v7173_v40, 0.0009765625 }
 0x5d4   : > { %v1237_v47 = vmul.f32 %v8502_v3, %v723_v35  ;;  %v7175_v48 = vcvt.f32.f8e4m3b11 %v7174_v43  ;;  %v7182_v50 = vpack.c.b16 %v7163_v38, %v7154_v37  ;;  %v8118_v51 = vclamps-f32 %v1213_v12, 448.0 }
 0x5d5   : > { %v7179_v49 = vand.u32 128, %v7178_v44  ;;  %v7172_v52 = vsel %vm12582_vm5, %v7170_v41, %v7168_v45  ;;  %v8126_v53 = vclamps-f32 %v1221_v13, 448.0  ;;  %v8134_v54 = vclamps-f32 %v1229_v36, 448.0 }
 0x5d6   : > { %v8142_v55 = vclamps-f32 %v1237_v47, 448.0  ;;  %v7177_v56 = vsel %vm7176_vm6, 127, %v7175_v48  ;;  %v7186_v57 = vand.u32 2147483647, %v8118_v51  ;;  %v7187_v58 = vmul.f32 0.0625, %v8118_v51 }
 0x5d7   : > { %vm7189_vm8 = vweird.f32 %v8118_v51  ;;  %v7181_v59 = vsel %vm12586_vm7, %v7179_v49, %v7177_v56  ;;  %v7191_v60 = vshrl.u32 %v8118_v51, 24  ;;  %v7195_v61 = vand.u32 2147483647, %v8126_v53 }
 0x5d8   : > { %v7196_v62 = vmul.f32 0.0625, %v8126_v53  ;;  %v7183_v63 = vpack.c.b16 %v7181_v59, %v7172_v52  ;;  %v7188_v0 = vcvt.f32.f8e4m3b11 %v7187_v58  ;;  %vm12595_vm9 = vcmp.le.f32.partialorder %v7186_v57, 0.0009765625  ;;  %v709_v52 = vld [vmem:[%s8493_s9 + $0xf68] sm:$0xff] }
 0x5d9   : > { %vm7198_vm10 = vweird.f32 %v8126_v53  ;;  %v7192_v4 = vand.u32 128, %v7191_v60  ;;  %v7200_v6 = vshrl.u32 %v8126_v53, 24  ;;  %vm12600_vm11 = vcmp.le.f32.partialorder %v7195_v61, 0.0009765625 }
 0x5da   : > { %v7197_v5 = vcvt.f32.f8e4m3b11 %v7196_v62  ;;  %v7184_v8 = vpack.c.b8 %v7183_v63, %v7182_v50  ;;  %v7190_v9 = vsel %vm7189_vm8, 127, %v7188_v0  ;;  %v7204_v10 = vand.u32 2147483647, %v8134_v54 }
 0x5db   : > { %v7205_v11 = vmul.f32 0.0625, %v8134_v54  ;;  %v7201_v13 = vand.u32 128, %v7200_v6  ;;  %vm7207_vm12 = vweird.f32 %v8134_v54  ;;  %v1214_v14 = vmul.f32 %v8502_v3, %v700_v2  ;;  %v725_v6 = vld [vmem:[%s8493_s9 + $0xfe8] sm:$0xff] }
 0x5dc   : > { %v7199_v12 = vsel %vm7198_vm10, 127, %v7197_v5  ;;  %7508 = vst [vmem:[%s8554_s27 + $0x3d0] sm:$0xff] %v7184_v8  ;;  %v7194_v15 = vsel %vm12595_vm9, %v7192_v4, %v7190_v9  ;;  %v7209_v17 = vshrl.u32 %v8134_v54, 24  ;;  %v7213_v18 = vand.u32 2147483647, %v8142_v55  ;;  %v717_v5 = vld [vmem:[%s8493_s9 + $0xfa8] sm:$0xff] }
 0x5dd   : > { %v7206_v16 = vcvt.f32.f8e4m3b11 %v7205_v11  ;;  %v7203_v21 = vsel %vm12600_vm11, %v7201_v13, %v7199_v12  ;;  %vm12612_vm13 = vcmp.le.f32.partialorder %v7204_v10, 0.0009765625  ;;  %v7214_v23 = vmul.f32 0.0625, %v8142_v55 }
 0x5de   : > { %v7218_v24 = vshrl.u32 %v8142_v55, 24  ;;  %v7210_v27 = vand.u32 128, %v7209_v17  ;;  %vm7216_vm14 = vweird.f32 %v8142_v55  ;;  %vm12617_vm15 = vcmp.le.f32.partialorder %v7213_v18, 0.0009765625 }
 0x5df   : > { %v7208_v26 = vsel %vm7207_vm12, 127, %v7206_v16  ;;  %v7215_v30 = vcvt.f32.f8e4m3b11 %v7214_v23  ;;  %v1222_v32 = vmul.f32 %v8502_v3, %v708_v19  ;;  %v1230_v33 = vmul.f32 %v8502_v3, %v716_v20 }
 0x5e0   : > { %v7219_v31 = vand.u32 128, %v7218_v24  ;;  %v7212_v34 = vsel %vm12612_vm13, %v7210_v27, %v7208_v26  ;;  %v7222_v35 = vpack.c.b16 %v7203_v21, %v7194_v15  ;;  %v1238_v36 = vmul.f32 %v8502_v3, %v724_v25 }
 0x5e1   : > { %v8119_v37 = vclamps-f32 %v1214_v14, 448.0  ;;  %v7217_v38 = vsel %vm7216_vm14, 127, %v7215_v30  ;;  %v8127_v39 = vclamps-f32 %v1222_v32, 448.0  ;;  %v8135_v40 = vclamps-f32 %v1230_v33, 448.0  ;;  %v702_v14 = vld [vmem:[%s8493_s9 + $0xf30] sm:$0xff] }
 0x5e2   : > { %v1215_v41 = vmul.f32 %v8502_v3, %v701_v29  ;;  %v7221_v42 = vsel %vm12617_vm15, %v7219_v31, %v7217_v38  ;;  %v8143_v43 = vclamps-f32 %v1238_v36, 448.0  ;;  %v1223_v63 = vmul.f32 %v8502_v3, %v709_v52 }
 0x5e3   : > { %v7226_v44 = vand.u32 2147483647, %v8119_v37  ;;  %v7227_v45 = vmul.f32 0.0625, %v8119_v37  ;;  %v7223_v46 = vpack.c.b16 %v7221_v42, %v7212_v34  ;;  %vm7229_vm0 = vweird.f32 %v8119_v37 }
 0x5e4   : > { %v7231_v47 = vshrl.u32 %v8119_v37, 24  ;;  %v7235_v48 = vand.u32 2147483647, %v8127_v39  ;;  %v7236_v51 = vmul.f32 0.0625, %v8127_v39  ;;  %vm7238_vm2 = vweird.f32 %v8127_v39  ;;  %v710_v37 = vld [vmem:[%s8493_s9 + $0xf70] sm:$0xff] }
 0x5e5   : > { %v7228_v49 = vcvt.f32.f8e4m3b11 %v7227_v45  ;;  %vm12630_vm1 = vcmp.le.f32.partialorder %v7226_v44, 0.0009765625  ;;  %v7224_v53 = vpack.c.b8 %v7223_v46, %v7222_v35  ;;  %v7240_v55 = vshrl.u32 %v8127_v39, 24 }
 0x5e6   : > { %v7232_v54 = vand.u32 128, %v7231_v47  ;;  %vm12635_vm3 = vcmp.le.f32.partialorder %v7235_v48, 0.0009765625  ;;  %v7237_v58 = vcvt.f32.f8e4m3b11 %v7236_v51  ;;  %v7244_v59 = vand.u32 2147483647, %v8135_v40  ;;  %v718_v48 = vld [vmem:[%s8493_s9 + $0xfb0] sm:$0xff] }
 0x5e7   : > { %v7230_v57 = vsel %vm7229_vm0, 127, %v7228_v49  ;;  %v7245_v60 = vmul.f32 0.0625, %v8135_v40  ;;  %7509 = vst [vmem:[%s8554_s27 + $0x3d8] sm:$0xff] %v7224_v53  ;;  %v7241_v61 = vand.u32 128, %v7240_v55  ;;  %vm7247_vm4 = vweird.f32 %v8135_v40 }
 0x5e8   : > { %v7249_v62 = vshrl.u32 %v8135_v40, 24  ;;  %v7234_v0 = vsel %vm12630_vm1, %v7232_v54, %v7230_v57  ;;  %v7239_v1 = vsel %vm7238_vm2, 127, %v7237_v58  ;;  %v7253_v4 = vand.u32 2147483647, %v8143_v43  ;;  %v726_v54 = vld [vmem:[%s8493_s9 + $0xff0] sm:$0xff] }
 0x5e9   : > { %v7246_v2 = vcvt.f32.f8e4m3b11 %v7245_v60  ;;  %v7243_v7 = vsel %vm12635_vm3, %v7241_v61, %v7239_v1  ;;  %vm12648_vm5 = vcmp.le.f32.partialorder %v7244_v59, 0.0009765625  ;;  %v7254_v10 = vmul.f32 0.0625, %v8143_v43 }
 0x5ea   : > { %v7250_v8 = vand.u32 128, %v7249_v62  ;;  %vm7256_vm6 = vweird.f32 %v8143_v43  ;;  %v7258_v12 = vshrl.u32 %v8143_v43, 24  ;;  %vm12652_vm7 = vcmp.le.f32.partialorder %v7253_v4, 0.0009765625  ;;  %v703_v62 = vld [vmem:[%s8493_s9 + $0xf38] sm:$0xff] }
 0x5eb   : > { %v7248_v11 = vsel %vm7247_vm4, 127, %v7246_v2  ;;  %v7255_v15 = vcvt.f32.f8e4m3b11 %v7254_v10  ;;  %v7262_v16 = vpack.c.b16 %v7243_v7, %v7234_v0  ;;  %v1231_v17 = vmul.f32 %v8502_v3, %v717_v5 }
 0x5ec   : > { %v1239_v18 = vmul.f32 %v8502_v3, %v725_v6  ;;  %v7252_v19 = vsel %vm12648_vm5, %v7250_v8, %v7248_v11  ;;  %v7259_v20 = vand.u32 128, %v7258_v12  ;;  %v8120_v21 = vclamps-f32 %v1215_v41, 448.0 }
 0x5ed   : > { %v8128_v22 = vclamps-f32 %v1223_v63, 448.0  ;;  %v7257_v23 = vsel %vm7256_vm6, 127, %v7255_v15  ;;  %v8136_v24 = vclamps-f32 %v1231_v17, 448.0  ;;  %v1216_v26 = vmul.f32 %v8502_v3, %v702_v14  ;;  %v711_v63 = vld [vmem:[%s8493_s9 + $0xf78] sm:$0xff] }
 0x5ee   : > { %v8144_v25 = vclamps-f32 %v1239_v18, 448.0  ;;  %v7261_v27 = vsel %vm12652_vm7, %v7259_v20, %v7257_v23  ;;  %v7266_v28 = vand.u32 2147483647, %v8120_v21  ;;  %v7267_v29 = vmul.f32 0.0625, %v8120_v21  ;;  %v719_v23 = vld [vmem:[%s8493_s9 + $0xfb8] sm:$0xff] }
 0x5ef   : > { %vm7269_vm8 = vweird.f32 %v8120_v21  ;;  %v7263_v30 = vpack.c.b16 %v7261_v27, %v7252_v19  ;;  %v7271_v31 = vshrl.u32 %v8120_v21, 24  ;;  %v7275_v32 = vand.u32 2147483647, %v8128_v22 }
 0x5f0   : > { %v7276_v33 = vmul.f32 0.0625, %v8128_v22  ;;  %v7268_v34 = vcvt.f32.f8e4m3b11 %v7267_v29  ;;  %vm12664_vm9 = vcmp.le.f32.partialorder %v7266_v28, 0.0009765625  ;;  %vm7278_vm10 = vweird.f32 %v8128_v22 }
 0x5f1   : > { %v7280_v36 = vshrl.u32 %v8128_v22, 24  ;;  %v7264_v38 = vpack.c.b8 %v7263_v30, %v7262_v16  ;;  %v7272_v39 = vand.u32 128, %v7271_v31  ;;  %vm12669_vm11 = vcmp.le.f32.partialorder %v7275_v32, 0.0009765625 }
 0x5f2   : > { %v7277_v40 = vcvt.f32.f8e4m3b11 %v7276_v33  ;;  %v7270_v42 = vsel %vm7269_vm8, 127, %v7268_v34  ;;  %v7284_v44 = vand.u32 2147483647, %v8136_v24  ;;  %v7285_v45 = vmul.f32 0.0625, %v8136_v24 }
 0x5f3   : > { %v7281_v43 = vand.u32 128, %v7280_v36  ;;  %7510 = vst [vmem:[%s8554_s27 + $0x3e0] sm:$0xff] %v7264_v38  ;;  %vm7287_vm12 = vweird.f32 %v8136_v24  ;;  %v7289_v47 = vshrl.u32 %v8136_v24, 24  ;;  %v1224_v49 = vmul.f32 %v8502_v3, %v710_v37 }
 0x5f4   : > { %v7279_v46 = vsel %vm7278_vm10, 127, %v7277_v40  ;;  %v7274_v50 = vsel %vm12664_vm9, %v7272_v39, %v7270_v42  ;;  %v7286_v52 = vcvt.f32.f8e4m3b11 %v7285_v45  ;;  %v7293_v53 = vand.u32 2147483647, %v8144_v25  ;;  %v727_v39 = vld [vmem:[%s8493_s9 + $0xff8] sm:$0xff] }
 0x5f5   : > { %v7283_v51 = vsel %vm12669_vm11, %v7281_v43, %v7279_v46  ;;  %v7290_v55 = vand.u32 128, %v7289_v47  ;;  %vm12681_vm13 = vcmp.le.f32.partialorder %v7284_v44, 0.0009765625  ;;  %v7294_v57 = vmul.f32 0.0625, %v8144_v25 }
 0x5f6   : > { %v7298_v58 = vshrl.u32 %v8144_v25, 24  ;;  %v7288_v59 = vsel %vm7287_vm12, 127, %v7286_v52  ;;  %vm7296_vm14 = vweird.f32 %v8144_v25  ;;  %vm12685_vm15 = vcmp.le.f32.partialorder %v7293_v53, 0.0009765625 }
 0x5f7   : > { %v1232_v61 = vmul.f32 %v8502_v3, %v718_v48  ;;  %v7295_v0 = vcvt.f32.f8e4m3b11 %v7294_v57  ;;  %v7302_v2 = vpack.c.b16 %v7283_v51, %v7274_v50  ;;  %v1240_v4 = vmul.f32 %v8502_v3, %v726_v54 }
 0x5f8   : > { %v7299_v1 = vand.u32 128, %v7298_v58  ;;  %v7292_v5 = vsel %vm12681_vm13, %v7290_v55, %v7288_v59  ;;  %v8121_v6 = vclamps-f32 %v1216_v26, 448.0  ;;  %v8129_v7 = vclamps-f32 %v1224_v49, 448.0 }
 0x5f9   : > { %v8137_v8 = vclamps-f32 %v1232_v61, 448.0  ;;  %v7297_v9 = vsel %vm7296_vm14, 127, %v7295_v0  ;;  %v8145_v10 = vclamps-f32 %v1240_v4, 448.0  ;;  %v1217_v11 = vmul.f32 %v8502_v3, %v703_v62 }
 0x5fa   : > { %v1225_v12 = vmul.f32 %v8502_v3, %v711_v63  ;;  %v7301_v13 = vsel %vm12685_vm15, %v7299_v1, %v7297_v9  ;;  %v7306_v14 = vand.u32 2147483647, %v8121_v6  ;;  %v7307_v15 = vmul.f32 0.0625, %v8121_v6 }
 0x5fb   : > { %vm7309_vm0 = vweird.f32 %v8121_v6  ;;  %v7303_v16 = vpack.c.b16 %v7301_v13, %v7292_v5  ;;  %v7311_v17 = vshrl.u32 %v8121_v6, 24  ;;  %v7315_v18 = vand.u32 2147483647, %v8129_v7 }
 0x5fc   : > { %v7316_v19 = vmul.f32 0.0625, %v8129_v7  ;;  %v7308_v20 = vcvt.f32.f8e4m3b11 %v7307_v15  ;;  %vm12699_vm1 = vcmp.le.f32.partialorder %v7306_v14, 0.0009765625  ;;  %vm7318_vm2 = vweird.f32 %v8129_v7 }
 0x5fd   : > { %v7320_v22 = vshrl.u32 %v8129_v7, 24  ;;  %v7304_v24 = vpack.c.b8 %v7303_v16, %v7302_v2  ;;  %v7312_v25 = vand.u32 128, %v7311_v17  ;;  %vm12704_vm3 = vcmp.le.f32.partialorder %v7315_v18, 0.0009765625 }
 0x5fe   : > { %v7317_v26 = vcvt.f32.f8e4m3b11 %v7316_v19  ;;  %v7310_v28 = vsel %vm7309_vm0, 127, %v7308_v20  ;;  %v7324_v30 = vand.u32 2147483647, %v8137_v8  ;;  %v7325_v31 = vmul.f32 0.0625, %v8137_v8 }
 0x5ff   : > { %v7321_v29 = vand.u32 128, %v7320_v22  ;;  %7511 = vst [vmem:[%s8554_s27 + $0x3e8] sm:$0xff] %v7304_v24  ;;  %vm7327_vm4 = vweird.f32 %v8137_v8  ;;  %v7329_v33 = vshrl.u32 %v8137_v8, 24  ;;  %v1233_v34 = vmul.f32 %v8502_v3, %v719_v23 }
 0x600   : > { %v7319_v32 = vsel %vm7318_vm2, 127, %v7317_v26  ;;  %v7314_v35 = vsel %vm12699_vm1, %v7312_v25, %v7310_v28  ;;  %v7326_v37 = vcvt.f32.f8e4m3b11 %v7325_v31  ;;  %v7333_v38 = vand.u32 2147483647, %v8145_v10 }
 0x601   : > { %v7323_v36 = vsel %vm12704_vm3, %v7321_v29, %v7319_v32  ;;  %v7330_v40 = vand.u32 128, %v7329_v33  ;;  %vm12715_vm5 = vcmp.le.f32.partialorder %v7324_v30, 0.0009765625  ;;  %v7334_v42 = vmul.f32 0.0625, %v8145_v10 }
 0x602   : > { %v7338_v43 = vshrl.u32 %v8145_v10, 24  ;;  %v7328_v44 = vsel %vm7327_vm4, 127, %v7326_v37  ;;  %vm7336_vm6 = vweird.f32 %v8145_v10  ;;  %vm12719_vm7 = vcmp.le.f32.partialorder %v7333_v38, 0.0009765625 }
 0x603   : > { %v7335_v46 = vcvt.f32.f8e4m3b11 %v7334_v42  ;;  %v1241_v48 = vmul.f32 %v8502_v3, %v727_v39  ;;  %v8122_v49 = vclamps-f32 %v1217_v11, 448.0  ;;  %v7332_v50 = vsel %vm12715_vm5, %v7330_v40, %v7328_v44 }
 0x604   : > { %v7339_v47 = vand.u32 128, %v7338_v43  ;;  %v7342_v51 = vpack.c.b16 %v7323_v36, %v7314_v35  ;;  %v8130_v52 = vclamps-f32 %v1225_v12, 448.0  ;;  %v8138_v53 = vclamps-f32 %v1233_v34, 448.0 }
 0x605   : > { %v7337_v54 = vsel %vm7336_vm6, 127, %v7335_v46  ;;  %v7346_v55 = vand.u32 2147483647, %v8122_v49  ;;  %v7347_v56 = vmul.f32 0.0625, %v8122_v49  ;;  %vm7349_vm8 = vweird.f32 %v8122_v49 }
 0x606   : > { %v7341_v57 = vsel %vm12719_vm7, %v7339_v47, %v7337_v54  ;;  %v7351_v58 = vshrl.u32 %v8122_v49, 24  ;;  %v7355_v59 = vand.u32 2147483647, %v8130_v52  ;;  %v7356_v60 = vmul.f32 0.0625, %v8130_v52 }
 0x607   : > { %v7343_v3 = vpack.c.b16 %v7341_v57, %v7332_v50  ;;  %v8146_v61 = vclamps-f32 %v1241_v48, 448.0  ;;  %v7348_v62 = vcvt.f32.f8e4m3b11 %v7347_v56  ;;  %vm7358_vm9 = vweird.f32 %v8130_v52 }
 0x608   : > { %v7352_v63 = vand.u32 128, %v7351_v58  ;;  %vm12730_vm10 = vcmp.le.f32.partialorder %v7346_v55, 0.0009765625  ;;  %v7357_v1 = vcvt.f32.f8e4m3b11 %v7356_v60  ;;  %v7360_v2 = vshrl.u32 %v8130_v52, 24 }
 0x609   : > { %v7344_v4 = vpack.c.b8 %v7343_v3, %v7342_v51  ;;  %v7350_v5 = vsel %vm7349_vm8, 127, %v7348_v62  ;;  %v7364_v6 = vand.u32 2147483647, %v8138_v53  ;;  %v7365_v7 = vmul.f32 0.0625, %v8138_v53 }
 0x60a   : > { %v7359_v8 = vsel %vm7358_vm9, 127, %v7357_v1  ;;  %v7361_v9 = vand.u32 128, %v7360_v2  ;;  %vm12734_vm11 = vcmp.le.f32.partialorder %v7355_v59, 0.0009765625  ;;  %vm7367_vm12 = vweird.f32 %v8138_v53 }
 0x60b   : > { %7512 = vst [vmem:[%s8554_s27 + $0x3f0] sm:$0xff] %v7344_v4  ;;  %v7366_v11 = vcvt.f32.f8e4m3b11 %v7365_v7  ;;  %v7369_v12 = vshrl.u32 %v8138_v53, 24  ;;  %v7373_v13 = vand.u32 2147483647, %v8146_v61  ;;  %v7354_v14 = vsel %vm12730_vm10, %v7352_v63, %v7350_v5 }
 0x60c   : > { %vm12741_vm13 = vcmp.le.f32.partialorder %v7364_v6, 0.0009765625  ;;  %v7374_v16 = vmul.f32 0.0625, %v8146_v61  ;;  %v7378_v17 = vshrl.u32 %v8146_v61, 24  ;;  %v7363_v18 = vsel %vm12734_vm11, %v7361_v9, %v7359_v8 }
 0x60d   : > { %v7368_v19 = vsel %vm7367_vm12, 127, %v7366_v11  ;;  %v7370_v20 = vand.u32 128, %v7369_v12  ;;  %vm7376_vm14 = vweird.f32 %v8146_v61  ;;  %vm7380_vm15 = vcmp.le.f32.partialorder %v7373_v13, 0.0009765625 }
 0x60e   : > { %v7375_v21 = vcvt.f32.f8e4m3b11 %v7374_v16  ;;  %v7379_v22 = vand.u32 128, %v7378_v17  ;;  %v7382_v25 = vpack.c.b16 %v7363_v18, %v7354_v14 }
 0x60f   : > { %v7372_v23 = vsel %vm12741_vm13, %v7370_v20, %v7368_v19 }
 0x610   : > { %v7377_v24 = vsel %vm7376_vm14, 127, %v7375_v21 }
 0x611   : > { %v7381_v26 = vsel %vm7380_vm15, %v7379_v22, %v7377_v24 }
 0x612   : > { %v7383_v27 = vpack.c.b16 %v7381_v26, %v7372_v23 }
 0x614   : > { %v7384_v28 = vpack.c.b8 %v7383_v27, %v7382_v25 }
 0x616   : > { %7513 = vst [vmem:[%s8554_s27 + $0x3f8] sm:$0xff] %v7384_v28 }
 0x617   : > { %8297 = shalt.err (!%p8294_p11)
}
 0x618   : > { %s8373_s7 = smov 1024   ;;  %s8374_s23 = smov 2048  }
 0x619   : > { %s8375_s27 = smov 64  }
 0x61a   : > { %8158 = dma.vmem_to_hbm [thread:$0]  (%p8464_p9), %s7531_s1, 16384, %s7533_s21, %s7515_s25, %s8373_s7, %s8374_s23, %s8375_s27  }
 0x61b PF: > { %p8169_p13 = scmp.ge.s32.totalorder %s8368_s20, 2  ;;  %s7547_s5 = sand.u32 1, %s8340_s14  }
 0x61c   : > { %s7548_s10 = scalar_lea.sflag [#allocation6], %s7547_s5 }
 0x61d   : > { %p8165_p0 = pnand %p8169_p13, %p8470_p12 }
 0x61f   : > { %p8166_p1 = pneg %p8165_p0 }
 0x621   : > { %8335 = dma.done.wait (%p8166_p1), %s7548_s10, 16384  }
 0x622   : > { %8337 = vsyncadd (%p8166_p1), %s7548_s10, 4294950912  ;;  %s21_s20 = sadd.s32 1, %s8368_s20   ;;  %s13825_s28 = sld [smem:[#allocation10_spill]] }
 0x623   : > { %p18_p2 = scmp.ge.s32.totalorder %s21_s20, 6   ;;  %s13826_s11 = sld [smem:[#allocation11_spill]] }
 0x624   : > { %s13827_s14 = smov %s8344_s15  ;;  %s13828_s15 = smov %s8348_s16 }
 0x625   : > { %s13829_s16 = smov %s8477_s6  ;;  %s13830_s17 = smov %s8360_s18 }
 0x626   : > { %s13831_s2 = smov %s8364_s19  ;;  %20 = sbr.rel (!%p18_p2) target bundleno = 9 (0x9), region = 77 }
 0x628   : > { %s13832_s18 = smov %s13825_s28 }
 0x629   : > { %s13833_s19 = smov %s13826_s11 }
 0x62b   :  { %7554 = vsyncpa [#allocation5], 1 }
 0x62c   :  { %7556 = vsyncpa [#allocation5 + $0x1], 1 }
 0x62d   :  { %7557 = vsyncpa [#allocation6], 1 }
 0x62e   :  { %7559 = vsyncpa [#allocation6 + $0x1], 1 }

</bundles_post_ra>
